<compile_context>
chip_gen: v5e
topology: v5e:2x2
jax: 0.10.0
libtpu: 0.0.40
codegen_flags: <defaults>
</compile_context>

<pallas_src>
import jax
import jax.numpy as jnp
from jax import lax
from jax.experimental import pallas as pl
from jax.experimental.pallas import tpu as pltpu


# ----------------------------------------------------------------------------
# Fused kernel: conv1 -> relu -> BN1 -> +time_emb -> conv2 -> relu -> BN2
#               -> CBAM (channel + spatial) -> conv4x4 stride-2 downsample
# ----------------------------------------------------------------------------
def block_cbam_kernel(
        # inputs
        x1_ref, t_ref,
        w1_ref, b1_ref, g1_ref, be1_ref,
        tw_ref, tb_ref,
        w2_ref, b2_ref, g2_ref, be2_ref,
        caw1_ref, cab1_ref, caw2_ref, cab2_ref,
        wsp_ref, spb_ref,
        w4_ref, b4_ref, sel_ref,
        chsel_ref, pavg_ref, pbc_ref, aavg_ref, abc_ref, qbc_ref,
        # output
        out_ref,
        # scratch
        pad2_ref, padsp_ref):
    f32 = jnp.float32
    bf16 = jnp.bfloat16

    N, Hp2, WC = pad2_ref.shape          # (N, H+2, W*C)
    H = Hp2 - 2
    NH = N * H
    C = g1_ref.shape[-1]
    W = WC // C
    W2 = padsp_ref.shape[-1]             # 2*W
    KH2 = w2_ref.shape[0]                # 3 row taps (conv2)
    KSP = wsp_ref.shape[0]               # 7 row taps (spatial attn)
    KT = w4_ref.shape[0]                 # 4 row taps (transform)

    def bcast_cols(vec_c):
        # (R, C) -> (R, W*C); value at [:, w*C + c] == vec_c[:, c]
        return jnp.dot(vec_c, pbc_ref[...], preferred_element_type=f32)

    def batchnorm(h, g_ref, be_ref):
        # Training-mode BatchNorm2d, fused E[x]/E[x^2] stats (biased var, eps=1e-5).
        s1 = jnp.mean(h, axis=0, keepdims=True)                        # (1, W*C)
        s2 = jnp.mean(h * h, axis=0, keepdims=True)
        mean_c = jnp.dot(s1, pavg_ref[...], preferred_element_type=f32)   # (1, C)
        ex2_c = jnp.dot(s2, pavg_ref[...], preferred_element_type=f32)
        var_c = ex2_c - mean_c * mean_c
        scale_c = g_ref[...] * lax.rsqrt(var_c + 1e-5)
        shift_c = be_ref[...] - mean_c * scale_c
        return h * bcast_cols(scale_c) + bcast_cols(shift_c)

    # ---- conv1 (3x3, pad 1): one bf16 MXU dot, K = 3*W*Cin ----
    h = jnp.dot(x1_ref[...], w1_ref[...], preferred_element_type=f32)   # (NH, W*C)
    h = jnp.maximum(h + b1_ref[...], 0.0)
    h = batchnorm(h, g1_ref, be1_ref)

    # ---- time embedding: relu(Linear(t)) broadcast over (h, w) ----
    te = jnp.maximum(jnp.dot(t_ref[...], tw_ref[...], preferred_element_type=f32)
                     + tb_ref[...], 0.0)                                # (N, C)
    h = h + bcast_cols(jnp.dot(abc_ref[...], te, preferred_element_type=f32))

    # ---- conv2 (3x3, pad 1): H-pad via border-zeroed scratch, 3 dots K=W*C ----
    pad2_ref[:, 0:1, :] = jnp.zeros((N, 1, WC), f32)
    pad2_ref[:, H + 1:H + 2, :] = jnp.zeros((N, 1, WC), f32)
    pad2_ref[:, 1:H + 1, :] = h.reshape(N, H, WC)
    acc = None
    for i in range(KH2):
        slab = pad2_ref[:, i:i + H, :].reshape(NH, WC).astype(bf16)
        c2 = jnp.dot(slab, w2_ref[i], preferred_element_type=f32)
        acc = c2 if acc is None else acc + c2
    h = jnp.maximum(acc + b2_ref[...], 0.0)
    h = batchnorm(h, g2_ref, be2_ref)

    # ---- CBAM channel attention (global-avg-pool via 0/1 pooling matmuls) ----
    xp = jnp.dot(h, pavg_ref[...], preferred_element_type=f32)          # (NH, C)
    gap = jnp.dot(aavg_ref[...], xp, preferred_element_type=f32)        # (N, C)
    z = jnp.maximum(jnp.dot(gap, caw1_ref[...], preferred_element_type=f32)
                    + cab1_ref[...], 0.0)
    ch = jax.nn.sigmoid(jnp.dot(z, caw2_ref[...], preferred_element_type=f32)
                        + cab2_ref[...])                                # (N, C)
    h = h * bcast_cols(jnp.dot(abc_ref[...], ch, preferred_element_type=f32))

    # ---- CBAM spatial attention ----
    # Per-pixel channel mean / max via lane-group selection matmuls.
    # TODO(synk): a pltpu.roll-based lane-group max would replace these C small dots.
    v = jnp.dot(h, chsel_ref[0], preferred_element_type=f32)            # (NH, W)
    mx = v
    sm = v
    for c in range(1, C):
        v = jnp.dot(h, chsel_ref[c], preferred_element_type=f32)
        mx = jnp.maximum(mx, v)
        sm = sm + v
    avgmap = sm * (1.0 / C)

    padsp_ref[:, 0:3, :] = jnp.zeros((N, 3, W2), f32)
    padsp_ref[:, H + 3:H + 6, :] = jnp.zeros((N, 3, W2), f32)
    padsp_ref[:, 3:H + 3, 0:W] = avgmap.reshape(N, H, W)
    padsp_ref[:, 3:H + 3, W:2 * W] = mx.reshape(N, H, W)
    sp = None
    for i in range(KSP):
        slab = padsp_ref[:, i:i + H, :].reshape(NH, W2)
        c7 = jnp.dot(slab, wsp_ref[i], preferred_element_type=f32)      # (NH, W)
        sp = c7 if sp is None else sp + c7
    sp_wt = jax.nn.sigmoid(sp + spb_ref[...])
    h = h * jnp.dot(sp_wt, qbc_ref[...], preferred_element_type=f32)    # bcast over C

    # ---- transform: Conv2d(C, C, 4, stride 2, pad 1), fused in-kernel ----
    # Stride-2 row taps (incl. H padding) selected with exact 0/1 matmuls.
    hb = h.astype(bf16)
    out = None
    for i in range(KT):
        rows = jnp.dot(sel_ref[i], hb, preferred_element_type=f32).astype(bf16)
        ct = jnp.dot(rows, w4_ref[i], preferred_element_type=f32)       # (N*Ho, Wo*C)
        out = ct if out is None else out + ct
    out_ref[...] = out + b4_ref[...]


# ----------------------------------------------------------------------------
# Wrapper-side helpers (plain JAX, cheap weight-space transforms)
# ----------------------------------------------------------------------------
def _band(wk, w_in, w_out, stride, pad):
    """Fold kernel-width taps + W-padding of a conv into a (kh, w_in*Ci, w_out*Co)
    stack of 'band' matrices: M[i][wp*Ci + c, wo*Co + d] = wk[i, wp - s*wo + pad, c, d]."""
    kh, kw, ci, co = wk.shape
    wp = jnp.arange(w_in)[:, None]
    wo = jnp.arange(w_out)[None, :]
    j = wp - stride * wo + pad
    valid = (j >= 0) & (j < kw)
    jc = jnp.clip(j, 0, kw - 1)
    m = wk[:, jc]                                      # (kh, w_in, w_out, ci, co)
    m = jnp.where(valid[None, :, :, None, None], m, 0.0)
    return m.transpose(0, 1, 3, 2, 4).reshape(kh, w_in * ci, w_out * co)


_VMEM_SPEC = pl.BlockSpec(memory_space=pltpu.MemorySpace.VMEM)


@jax.jit
def block_cbam_forward(x_nchw, t, p):
    f32, bf16 = jnp.float32, jnp.bfloat16
    x = jnp.transpose(x_nchw, (0, 2, 3, 1)).astype(f32)                 # NHWC
    N, H, W, Cin = x.shape
    C = p["b1"].shape[0]
    Ho, Wo = H // 2, W // 2
    NH, WC, WoC = N * H, W * C, Wo * C

    # conv1 row-im2col (K = 3*W*Cin), built once in the wrapper.
    xr = jnp.pad(x.reshape(N, H, W * Cin), ((0, 0), (1, 1), (0, 0)))
    x1 = jnp.concatenate([xr[:, i:i + H, :] for i in range(3)], axis=-1)
    x1 = x1.reshape(NH, 3 * W * Cin).astype(bf16)

    # Band weight matrices (one lane-dense MXU dot per conv row tap).
    w1b = _band(p["w1"], W, W, 1, 1).reshape(3 * W * Cin, WC).astype(bf16)
    w2b = _band(p["w2"], W, W, 1, 1).astype(bf16)                       # (3, WC, WC)
    w4b = _band(p["w4"], W, Wo, 2, 1).astype(bf16)                      # (4, WC, WoC)
    spa = _band(p["spw"][:, :, 0][:, :, None, None], W, W, 1, 3)        # (7, W, W)
    spm = _band(p["spw"][:, :, 1][:, :, None, None], W, W, 1, 3)
    wspb = jnp.concatenate([spa, spm], axis=1).astype(f32)              # (7, 2W, W)

    # Stride-2 row selectors for the 4x4/stride-2 transform (handle H-pad too).
    rows = jnp.arange(N * Ho)
    cols = jnp.arange(NH)
    n_r, ho_r = rows // Ho, rows % Ho
    n_c, h_c = cols // H, cols % H
    sels = []
    for i in range(4):
        tgt = 2 * ho_r + i - 1
        m = ((n_c[None, :] == n_r[:, None]) & (h_c[None, :] == tgt[:, None])
             & (tgt[:, None] >= 0) & (tgt[:, None] < H))
        sels.append(m)
    selT = jnp.stack(sels).astype(bf16)                                 # (4, N*Ho, NH)

    # Tiny 0/1 pooling / broadcast matrices (channel <-> lane-group folding).
    eyeC, eyeW, eyeN = jnp.eye(C, dtype=f32), jnp.eye(W, dtype=f32), jnp.eye(N, dtype=f32)
    p_bc = jnp.tile(eyeC, (1, W))                                       # (C, WC)
    p_avg = p_bc.T / W                                                  # (WC, C)
    a_bc = jnp.repeat(eyeN, H, axis=0)                                  # (NH, N)
    a_avg = a_bc.T / H                                                  # (N, NH)
    q_bc = jnp.repeat(eyeW, C, axis=1)                                  # (W, WC)
    chsel = (eyeC[:, None, :, None] * eyeW[None, :, None, :]).reshape(C, WC, W)

    b1t = jnp.tile(p["b1"], W).reshape(1, WC)
    b2t = jnp.tile(p["b2"], W).reshape(1, WC)
    b4t = jnp.tile(p["b4"], Wo).reshape(1, WoC)

    operands = (
        x1, t.astype(f32),
        w1b, b1t, p["g1"].reshape(1, C), p["be1"].reshape(1, C),
        p["tw"].astype(f32), p["tb"].reshape(1, C),
        w2b, b2t, p["g2"].reshape(1, C), p["be2"].reshape(1, C),
        p["caw1"], p["cab1"].reshape(1, -1), p["caw2"], p["cab2"].reshape(1, C),
        wspb, p["spb"].reshape(1, 1),
        w4b, b4t, selT,
        chsel, p_avg, p_bc, a_avg, a_bc, q_bc,
    )

    # TODO(synk): for production UNet sizes, tile over (N, H rows) with halo
    # BlockSpecs + two-pass BatchNorm; the toy activation set fits VMEM whole.
    out = pl.pallas_call(
        block_cbam_kernel,
        out_shape=jax.ShapeDtypeStruct((N * Ho, WoC), f32),
        in_specs=[_VMEM_SPEC] * len(operands),
        out_specs=_VMEM_SPEC,
        scratch_shapes=[
            pltpu.VMEM((N, H + 2, WC), f32),      # conv2 H-pad (borders zeroed only)
            pltpu.VMEM((N, H + 6, 2 * W), f32),   # spatial-attn H-pad [avg | max]
        ],
        compiler_params=pltpu.CompilerParams(vmem_limit_bytes=64 * 1024 * 1024),
    )(*operands)

    out = out.reshape(N, Ho, Wo, C)                                     # free reshape
    return jnp.transpose(out, (0, 3, 1, 2))                             # back to NCHW


# ----------------------------------------------------------------------------
# Pure-JAX reference (lax convs, f32) for numerical cross-check
# ----------------------------------------------------------------------------
@jax.jit
def reference_forward(x_nchw, t, p):
    x = jnp.transpose(x_nchw, (0, 2, 3, 1)).astype(jnp.float32)
    dn = ("NHWC", "HWIO", "NHWC")

    def bn(h, g, b):
        mu = h.mean(axis=(0, 1, 2), keepdims=True)
        var = ((h - mu) ** 2).mean(axis=(0, 1, 2), keepdims=True)
        return (h - mu) * lax.rsqrt(var + 1e-5) * g.reshape(1, 1, 1, -1) + b.reshape(1, 1, 1, -1)

    h = lax.conv_general_dilated(x, p["w1"], (1, 1), ((1, 1), (1, 1)), dimension_numbers=dn)
    h = jax.nn.relu(h + p["b1"].reshape(1, 1, 1, -1))
    h = bn(h, p["g1"], p["be1"])
    te = jax.nn.relu(t @ p["tw"] + p["tb"])
    h = h + te[:, None, None, :]
    h = lax.conv_general_dilated(h, p["w2"], (1, 1), ((1, 1), (1, 1)), dimension_numbers=dn)
    h = jax.nn.relu(h + p["b2"].reshape(1, 1, 1, -1))
    h = bn(h, p["g2"], p["be2"])
    gap = h.mean(axis=(1, 2))
    z = jax.nn.relu(gap @ p["caw1"] + p["cab1"])
    chw = jax.nn.sigmoid(z @ p["caw2"] + p["cab2"])
    h = h * chw[:, None, None, :]
    sp_in = jnp.concatenate([h.mean(-1, keepdims=True), h.max(-1, keepdims=True)], axis=-1)
    sp = lax.conv_general_dilated(sp_in, p["spw"].reshape(7, 7, 2, 1), (1, 1),
                                  ((3, 3), (3, 3)), dimension_numbers=dn)
    h = h * jax.nn.sigmoid(sp + p["spb"][0])
    out = lax.conv_general_dilated(h, p["w4"], (2, 2), ((1, 1), (1, 1)),
                                   dimension_numbers=dn) + p["b4"].reshape(1, 1, 1, -1)
    return jnp.transpose(out, (0, 3, 1, 2))


def init_params(key, in_ch, out_ch, time_emb_dim, reduction=16):
    C = out_ch
    Cr = max(out_ch // reduction, 1)
    ks = jax.random.split(key, 18)

    def n(k, shape, s=0.1):
        return (s * jax.random.normal(k, shape)).astype(jnp.float32)

    return dict(
        w1=n(ks[0], (3, 3, in_ch, C)),   b1=n(ks[1], (C,), 0.05),
        g1=1.0 + n(ks[2], (C,)),         be1=n(ks[3], (C,)),
        tw=n(ks[4], (time_emb_dim, C)),  tb=n(ks[5], (C,), 0.05),
        w2=n(ks[6], (3, 3, C, C)),       b2=n(ks[7], (C,), 0.05),
        g2=1.0 + n(ks[8], (C,)),         be2=n(ks[9], (C,)),
        caw1=n(ks[10], (C, Cr)),         cab1=n(ks[11], (Cr,), 0.05),
        caw2=n(ks[12], (Cr, C)),         cab2=n(ks[13], (C,), 0.05),
        spw=n(ks[14], (7, 7, 2)),        spb=n(ks[15], (1,), 0.05),
        w4=n(ks[16], (4, 4, C, C)),      b4=n(ks[17], (C,), 0.05),
    )


if __name__ == "__main__":
    key = jax.random.PRNGKey(0)
    kx, kt, kp = jax.random.split(key, 3)

    N, in_ch, out_ch, H, W, Temb = 2, 4, 16, 16, 16, 32
    x = jax.random.normal(kx, (N, in_ch, H, W), jnp.float32)
    t = jax.random.normal(kt, (N, Temb), jnp.float32)
    params = init_params(kp, in_ch, out_ch, Temb)

    out = jax.block_until_ready(block_cbam_forward(x, t, params))
    ref = jax.block_until_ready(reference_forward(x, t, params))

    assert out.shape == (N, out_ch, H // 2, W // 2), out.shape
    max_err = float(jnp.max(jnp.abs(out - ref)))
    assert max_err < 5e-2, f"kernel/reference mismatch: max abs err {max_err}"
    print("KERNEL_OK")
</pallas_src>

<mosaic_0001>
module attributes {stable_mosaic.version = 11 : i64} {
  func.func @block_cbam_kernel(%arg0: memref<32x192xbf16, #tpu.memory_space<vmem>>, %arg1: memref<2x32xf32, #tpu.memory_space<vmem>>, %arg2: memref<192x256xbf16, #tpu.memory_space<vmem>>, %arg3: memref<1x256xf32, #tpu.memory_space<vmem>>, %arg4: memref<1x16xf32, #tpu.memory_space<vmem>>, %arg5: memref<1x16xf32, #tpu.memory_space<vmem>>, %arg6: memref<32x16xf32, #tpu.memory_space<vmem>>, %arg7: memref<1x16xf32, #tpu.memory_space<vmem>>, %arg8: memref<3x256x256xbf16, #tpu.memory_space<vmem>>, %arg9: memref<1x256xf32, #tpu.memory_space<vmem>>, %arg10: memref<1x16xf32, #tpu.memory_space<vmem>>, %arg11: memref<1x16xf32, #tpu.memory_space<vmem>>, %arg12: memref<16x1xf32, #tpu.memory_space<vmem>>, %arg13: memref<1x1xf32, #tpu.memory_space<vmem>>, %arg14: memref<1x16xf32, #tpu.memory_space<vmem>>, %arg15: memref<1x16xf32, #tpu.memory_space<vmem>>, %arg16: memref<7x32x16xf32, #tpu.memory_space<vmem>>, %arg17: memref<1x1xf32, #tpu.memory_space<vmem>>, %arg18: memref<4x256x128xbf16, #tpu.memory_space<vmem>>, %arg19: memref<1x128xf32, #tpu.memory_space<vmem>>, %arg20: memref<4x16x32xbf16, #tpu.memory_space<vmem>>, %arg21: memref<16x256x16xf32, #tpu.memory_space<vmem>>, %arg22: memref<256x16xf32, #tpu.memory_space<vmem>>, %arg23: memref<16x256xf32, #tpu.memory_space<vmem>>, %arg24: memref<2x32xf32, #tpu.memory_space<vmem>>, %arg25: memref<32x2xf32, #tpu.memory_space<vmem>>, %arg26: memref<16x256xf32, #tpu.memory_space<vmem>>, %arg27: memref<16x128xf32, #tpu.memory_space<vmem>>, %arg28: memref<2x18x256xf32, #tpu.memory_space<vmem>>, %arg29: memref<2x22x32xf32, #tpu.memory_space<vmem>>) attributes {dimension_semantics = [], scalar_prefetch = 0 : i64, scratch_operands = 2 : i64, tpu.core_type = #tpu.core_type<tc>} {
    %c0 = arith.constant 0 : index
    %c0_0 = arith.constant 0 : index
    %0 = vector.load %arg0[%c0, %c0_0] : memref<32x192xbf16, #tpu.memory_space<vmem>>, vector<32x192xbf16>
    %c0_1 = arith.constant 0 : index
    %c0_2 = arith.constant 0 : index
    %1 = vector.load %arg2[%c0_1, %c0_2] : memref<192x256xbf16, #tpu.memory_space<vmem>>, vector<192x256xbf16>
    %cst = arith.constant dense<0.000000e+00> : vector<32x256xf32>
    %2 = tpu.matmul %0, %1, %cst {dimension_numbers = #tpu.dot_dimension_numbers<[1], [0], [0], [1], [0, 0, 1, 1], [], []>} : vector<32x192xbf16>, vector<192x256xbf16>, vector<32x256xf32> -> vector<32x256xf32>
    %c0_3 = arith.constant 0 : index
    %c0_4 = arith.constant 0 : index
    %3 = vector.load %arg3[%c0_3, %c0_4] : memref<1x256xf32, #tpu.memory_space<vmem>>, vector<1x256xf32>
    %4 = vector.broadcast %3 : vector<1x256xf32> to vector<32x256xf32>
    %5 = arith.addf %2, %4 : vector<32x256xf32>
    %cst_5 = arith.constant 0.000000e+00 : f32
    %6 = vector.broadcast %cst_5 : f32 to vector<32x256xf32>
    %7 = arith.maximumf %5, %6 : vector<32x256xf32>
    %cst_6 = arith.constant dense<0.000000e+00> : vector<256xf32>
    %8 = vector.multi_reduction <add>, %7, %cst_6 [0] : vector<32x256xf32> to vector<256xf32>
    %9 = vector.shape_cast %8 : vector<256xf32> to vector<1x256xf32>
    %cst_7 = arith.constant 3.200000e+01 : f32
    %10 = vector.broadcast %cst_7 : f32 to vector<1x256xf32>
    %11 = arith.divf %9, %10 : vector<1x256xf32>
    %12 = arith.mulf %7, %7 : vector<32x256xf32>
    %cst_8 = arith.constant dense<0.000000e+00> : vector<256xf32>
    %13 = vector.multi_reduction <add>, %12, %cst_8 [0] : vector<32x256xf32> to vector<256xf32>
    %14 = vector.shape_cast %13 : vector<256xf32> to vector<1x256xf32>
    %cst_9 = arith.constant 3.200000e+01 : f32
    %15 = vector.broadcast %cst_9 : f32 to vector<1x256xf32>
    %16 = arith.divf %14, %15 : vector<1x256xf32>
    %c0_10 = arith.constant 0 : index
    %c0_11 = arith.constant 0 : index
    %17 = vector.load %arg22[%c0_10, %c0_11] : memref<256x16xf32, #tpu.memory_space<vmem>>, vector<256x16xf32>
    %cst_12 = arith.constant dense<0.000000e+00> : vector<1x16xf32>
    %18 = tpu.matmul %11, %17, %cst_12 {dimension_numbers = #tpu.dot_dimension_numbers<[1], [0], [0], [1], [0, 0, 1, 1], [], []>} : vector<1x256xf32>, vector<256x16xf32>, vector<1x16xf32> -> vector<1x16xf32>
    %c0_13 = arith.constant 0 : index
    %c0_14 = arith.constant 0 : index
    %19 = vector.load %arg22[%c0_13, %c0_14] : memref<256x16xf32, #tpu.memory_space<vmem>>, vector<256x16xf32>
    %cst_15 = arith.constant dense<0.000000e+00> : vector<1x16xf32>
    %20 = tpu.matmul %16, %19, %cst_15 {dimension_numbers = #tpu.dot_dimension_numbers<[1], [0], [0], [1], [0, 0, 1, 1], [], []>} : vector<1x256xf32>, vector<256x16xf32>, vector<1x16xf32> -> vector<1x16xf32>
    %21 = arith.mulf %18, %18 : vector<1x16xf32>
    %22 = arith.subf %20, %21 : vector<1x16xf32>
    %c0_16 = arith.constant 0 : index
    %c0_17 = arith.constant 0 : index
    %23 = vector.load %arg4[%c0_16, %c0_17] : memref<1x16xf32, #tpu.memory_space<vmem>>, vector<1x16xf32>
    %cst_18 = arith.constant 9.99999974E-6 : f32
    %24 = vector.broadcast %cst_18 : f32 to vector<1x16xf32>
    %25 = arith.addf %22, %24 : vector<1x16xf32>
    %26 = math.rsqrt %25 : vector<1x16xf32>
    %27 = arith.mulf %23, %26 : vector<1x16xf32>
    %c0_19 = arith.constant 0 : index
    %c0_20 = arith.constant 0 : index
    %28 = vector.load %arg5[%c0_19, %c0_20] : memref<1x16xf32, #tpu.memory_space<vmem>>, vector<1x16xf32>
    %29 = arith.mulf %18, %27 : vector<1x16xf32>
    %30 = arith.subf %28, %29 : vector<1x16xf32>
    %c0_21 = arith.constant 0 : index
    %c0_22 = arith.constant 0 : index
    %31 = vector.load %arg23[%c0_21, %c0_22] : memref<16x256xf32, #tpu.memory_space<vmem>>, vector<16x256xf32>
    %cst_23 = arith.constant dense<0.000000e+00> : vector<1x256xf32>
    %32 = tpu.matmul %27, %31, %cst_23 {dimension_numbers = #tpu.dot_dimension_numbers<[1], [0], [0], [1], [0, 0, 1, 1], [], []>} : vector<1x16xf32>, vector<16x256xf32>, vector<1x256xf32> -> vector<1x256xf32>
    %33 = vector.broadcast %32 : vector<1x256xf32> to vector<32x256xf32>
    %34 = arith.mulf %7, %33 : vector<32x256xf32>
    %c0_24 = arith.constant 0 : index
    %c0_25 = arith.constant 0 : index
    %35 = vector.load %arg23[%c0_24, %c0_25] : memref<16x256xf32, #tpu.memory_space<vmem>>, vector<16x256xf32>
    %cst_26 = arith.constant dense<0.000000e+00> : vector<1x256xf32>
    %36 = tpu.matmul %30, %35, %cst_26 {dimension_numbers = #tpu.dot_dimension_numbers<[1], [0], [0], [1], [0, 0, 1, 1], [], []>} : vector<1x16xf32>, vector<16x256xf32>, vector<1x256xf32> -> vector<1x256xf32>
    %37 = vector.broadcast %36 : vector<1x256xf32> to vector<32x256xf32>
    %38 = arith.addf %34, %37 : vector<32x256xf32>
    %c0_27 = arith.constant 0 : index
    %c0_28 = arith.constant 0 : index
    %39 = vector.load %arg1[%c0_27, %c0_28] : memref<2x32xf32, #tpu.memory_space<vmem>>, vector<2x32xf32>
    %c0_29 = arith.constant 0 : index
    %c0_30 = arith.constant 0 : index
    %40 = vector.load %arg6[%c0_29, %c0_30] : memref<32x16xf32, #tpu.memory_space<vmem>>, vector<32x16xf32>
    %cst_31 = arith.constant dense<0.000000e+00> : vector<2x16xf32>
    %41 = tpu.matmul %39, %40, %cst_31 {dimension_numbers = #tpu.dot_dimension_numbers<[1], [0], [0], [1], [0, 0, 1, 1], [], []>} : vector<2x32xf32>, vector<32x16xf32>, vector<2x16xf32> -> vector<2x16xf32>
    %c0_32 = arith.constant 0 : index
    %c0_33 = arith.constant 0 : index
    %42 = vector.load %arg7[%c0_32, %c0_33] : memref<1x16xf32, #tpu.memory_space<vmem>>, vector<1x16xf32>
    %43 = vector.broadcast %42 : vector<1x16xf32> to vector<2x16xf32>
    %44 = arith.addf %41, %43 : vector<2x16xf32>
    %cst_34 = arith.constant 0.000000e+00 : f32
    %45 = vector.broadcast %cst_34 : f32 to vector<2x16xf32>
    %46 = arith.maximumf %44, %45 : vector<2x16xf32>
    %c0_35 = arith.constant 0 : index
    %c0_36 = arith.constant 0 : index
    %47 = vector.load %arg25[%c0_35, %c0_36] : memref<32x2xf32, #tpu.memory_space<vmem>>, vector<32x2xf32>
    %cst_37 = arith.constant dense<0.000000e+00> : vector<32x16xf32>
    %48 = tpu.matmul %47, %46, %cst_37 {dimension_numbers = #tpu.dot_dimension_numbers<[1], [0], [0], [1], [0, 0, 1, 1], [], []>} : vector<32x2xf32>, vector<2x16xf32>, vector<32x16xf32> -> vector<32x16xf32>
    %c0_38 = arith.constant 0 : index
    %c0_39 = arith.constant 0 : index
    %49 = vector.load %arg23[%c0_38, %c0_39] : memref<16x256xf32, #tpu.memory_space<vmem>>, vector<16x256xf32>
    %cst_40 = arith.constant dense<0.000000e+00> : vector<32x256xf32>
    %50 = tpu.matmul %48, %49, %cst_40 {dimension_numbers = #tpu.dot_dimension_numbers<[1], [0], [0], [1], [0, 0, 1, 1], [], []>} : vector<32x16xf32>, vector<16x256xf32>, vector<32x256xf32> -> vector<32x256xf32>
    %51 = arith.addf %38, %50 : vector<32x256xf32>
    %cst_41 = arith.constant 0.000000e+00 : f32
    %52 = vector.broadcast %cst_41 : f32 to vector<2x1x256xf32>
    %c0_42 = arith.constant 0 : index
    %c0_43 = arith.constant 0 : index
    %c0_44 = arith.constant 0 : index
    %53 = vector.load %arg28[%c0_42, %c0_43, %c0_44] : memref<2x18x256xf32, #tpu.memory_space<vmem>>, vector<2x1x256xf32>
    tpu.vector_store %arg28[%c0_42, %c0_43, %c0_44], %52 {strides = array<i32>} : memref<2x18x256xf32, #tpu.memory_space<vmem>>, vector<2x1x256xf32>,
    %cst_45 = arith.constant 0.000000e+00 : f32
    %54 = vector.broadcast %cst_45 : f32 to vector<2x1x256xf32>
    %c0_46 = arith.constant 0 : index
    %c17 = arith.constant 17 : index
    %c0_47 = arith.constant 0 : index
    %55 = vector.load %arg28[%c0_46, %c17, %c0_47] : memref<2x18x256xf32, #tpu.memory_space<vmem>>, vector<2x1x256xf32>
    tpu.vector_store %arg28[%c0_46, %c17, %c0_47], %54 {strides = array<i32>} : memref<2x18x256xf32, #tpu.memory_space<vmem>>, vector<2x1x256xf32>,
    %56 = vector.shape_cast %51 : vector<32x256xf32> to vector<2x16x256xf32>
    %c0_48 = arith.constant 0 : index
    %c1 = arith.constant 1 : index
    %c0_49 = arith.constant 0 : index
    %57 = vector.load %arg28[%c0_48, %c1, %c0_49] : memref<2x18x256xf32, #tpu.memory_space<vmem>>, vector<2x16x256xf32>
    tpu.vector_store %arg28[%c0_48, %c1, %c0_49], %56 {strides = array<i32>} : memref<2x18x256xf32, #tpu.memory_space<vmem>>, vector<2x16x256xf32>,
    %c0_50 = arith.constant 0 : index
    %c0_51 = arith.constant 0 : index
    %c0_52 = arith.constant 0 : index
    %58 = vector.load %arg28[%c0_50, %c0_51, %c0_52] : memref<2x18x256xf32, #tpu.memory_space<vmem>>, vector<2x16x256xf32>
    %59 = vector.shape_cast %58 : vector<2x16x256xf32> to vector<32x256xf32>
    %60 = arith.truncf %59 : vector<32x256xf32> to vector<32x256xbf16>
    %c0_53 = arith.constant 0 : index
    %c0_54 = arith.constant 0 : index
    %c0_55 = arith.constant 0 : index
    %61 = vector.load %arg8[%c0_53, %c0_54, %c0_55] : memref<3x256x256xbf16, #tpu.memory_space<vmem>>, vector<1x256x256xbf16>
    %62 = vector.shape_cast %61 : vector<1x256x256xbf16> to vector<256x256xbf16>
    %cst_56 = arith.constant dense<0.000000e+00> : vector<32x256xf32>
    %63 = tpu.matmul %60, %62, %cst_56 {dimension_numbers = #tpu.dot_dimension_numbers<[1], [0], [0], [1], [0, 0, 1, 1], [], []>} : vector<32x256xbf16>, vector<256x256xbf16>, vector<32x256xf32> -> vector<32x256xf32>
    %c0_57 = arith.constant 0 : index
    %c1_58 = arith.constant 1 : index
    %c0_59 = arith.constant 0 : index
    %64 = vector.load %arg28[%c0_57, %c1_58, %c0_59] : memref<2x18x256xf32, #tpu.memory_space<vmem>>, vector<2x16x256xf32>
    %65 = vector.shape_cast %64 : vector<2x16x256xf32> to vector<32x256xf32>
    %66 = arith.truncf %65 : vector<32x256xf32> to vector<32x256xbf16>
    %c1_60 = arith.constant 1 : index
    %c0_61 = arith.constant 0 : index
    %c0_62 = arith.constant 0 : index
    %67 = vector.load %arg8[%c1_60, %c0_61, %c0_62] : memref<3x256x256xbf16, #tpu.memory_space<vmem>>, vector<1x256x256xbf16>
    %68 = vector.shape_cast %67 : vector<1x256x256xbf16> to vector<256x256xbf16>
    %cst_63 = arith.constant dense<0.000000e+00> : vector<32x256xf32>
    %69 = tpu.matmul %66, %68, %cst_63 {dimension_numbers = #tpu.dot_dimension_numbers<[1], [0], [0], [1], [0, 0, 1, 1], [], []>} : vector<32x256xbf16>, vector<256x256xbf16>, vector<32x256xf32> -> vector<32x256xf32>
    %70 = arith.addf %63, %69 : vector<32x256xf32>
    %c0_64 = arith.constant 0 : index
    %c2 = arith.constant 2 : index
    %c0_65 = arith.constant 0 : index
    %71 = vector.load %arg28[%c0_64, %c2, %c0_65] : memref<2x18x256xf32, #tpu.memory_space<vmem>>, vector<2x16x256xf32>
    %72 = vector.shape_cast %71 : vector<2x16x256xf32> to vector<32x256xf32>
    %73 = arith.truncf %72 : vector<32x256xf32> to vector<32x256xbf16>
    %c2_66 = arith.constant 2 : index
    %c0_67 = arith.constant 0 : index
    %c0_68 = arith.constant 0 : index
    %74 = vector.load %arg8[%c2_66, %c0_67, %c0_68] : memref<3x256x256xbf16, #tpu.memory_space<vmem>>, vector<1x256x256xbf16>
    %75 = vector.shape_cast %74 : vector<1x256x256xbf16> to vector<256x256xbf16>
    %cst_69 = arith.constant dense<0.000000e+00> : vector<32x256xf32>
    %76 = tpu.matmul %73, %75, %cst_69 {dimension_numbers = #tpu.dot_dimension_numbers<[1], [0], [0], [1], [0, 0, 1, 1], [], []>} : vector<32x256xbf16>, vector<256x256xbf16>, vector<32x256xf32> -> vector<32x256xf32>
    %77 = arith.addf %70, %76 : vector<32x256xf32>
    %c0_70 = arith.constant 0 : index
    %c0_71 = arith.constant 0 : index
    %78 = vector.load %arg9[%c0_70, %c0_71] : memref<1x256xf32, #tpu.memory_space<vmem>>, vector<1x256xf32>
    %79 = vector.broadcast %78 : vector<1x256xf32> to vector<32x256xf32>
    %80 = arith.addf %77, %79 : vector<32x256xf32>
    %cst_72 = arith.constant 0.000000e+00 : f32
    %81 = vector.broadcast %cst_72 : f32 to vector<32x256xf32>
    %82 = arith.maximumf %80, %81 : vector<32x256xf32>
    %cst_73 = arith.constant dense<0.000000e+00> : vector<256xf32>
    %83 = vector.multi_reduction <add>, %82, %cst_73 [0] : vector<32x256xf32> to vector<256xf32>
    %84 = vector.shape_cast %83 : vector<256xf32> to vector<1x256xf32>
    %cst_74 = arith.constant 3.200000e+01 : f32
    %85 = vector.broadcast %cst_74 : f32 to vector<1x256xf32>
    %86 = arith.divf %84, %85 : vector<1x256xf32>
    %87 = arith.mulf %82, %82 : vector<32x256xf32>
    %cst_75 = arith.constant dense<0.000000e+00> : vector<256xf32>
    %88 = vector.multi_reduction <add>, %87, %cst_75 [0] : vector<32x256xf32> to vector<256xf32>
    %89 = vector.shape_cast %88 : vector<256xf32> to vector<1x256xf32>
    %cst_76 = arith.constant 3.200000e+01 : f32
    %90 = vector.broadcast %cst_76 : f32 to vector<1x256xf32>
    %91 = arith.divf %89, %90 : vector<1x256xf32>
    %c0_77 = arith.constant 0 : index
    %c0_78 = arith.constant 0 : index
    %92 = vector.load %arg22[%c0_77, %c0_78] : memref<256x16xf32, #tpu.memory_space<vmem>>, vector<256x16xf32>
    %cst_79 = arith.constant dense<0.000000e+00> : vector<1x16xf32>
    %93 = tpu.matmul %86, %92, %cst_79 {dimension_numbers = #tpu.dot_dimension_numbers<[1], [0], [0], [1], [0, 0, 1, 1], [], []>} : vector<1x256xf32>, vector<256x16xf32>, vector<1x16xf32> -> vector<1x16xf32>
    %c0_80 = arith.constant 0 : index
    %c0_81 = arith.constant 0 : index
    %94 = vector.load %arg22[%c0_80, %c0_81] : memref<256x16xf32, #tpu.memory_space<vmem>>, vector<256x16xf32>
    %cst_82 = arith.constant dense<0.000000e+00> : vector<1x16xf32>
    %95 = tpu.matmul %91, %94, %cst_82 {dimension_numbers = #tpu.dot_dimension_numbers<[1], [0], [0], [1], [0, 0, 1, 1], [], []>} : vector<1x256xf32>, vector<256x16xf32>, vector<1x16xf32> -> vector<1x16xf32>
    %96 = arith.mulf %93, %93 : vector<1x16xf32>
    %97 = arith.subf %95, %96 : vector<1x16xf32>
    %c0_83 = arith.constant 0 : index
    %c0_84 = arith.constant 0 : index
    %98 = vector.load %arg10[%c0_83, %c0_84] : memref<1x16xf32, #tpu.memory_space<vmem>>, vector<1x16xf32>
    %cst_85 = arith.constant 9.99999974E-6 : f32
    %99 = vector.broadcast %cst_85 : f32 to vector<1x16xf32>
    %100 = arith.addf %97, %99 : vector<1x16xf32>
    %101 = math.rsqrt %100 : vector<1x16xf32>
    %102 = arith.mulf %98, %101 : vector<1x16xf32>
    %c0_86 = arith.constant 0 : index
    %c0_87 = arith.constant 0 : index
    %103 = vector.load %arg11[%c0_86, %c0_87] : memref<1x16xf32, #tpu.memory_space<vmem>>, vector<1x16xf32>
    %104 = arith.mulf %93, %102 : vector<1x16xf32>
    %105 = arith.subf %103, %104 : vector<1x16xf32>
    %c0_88 = arith.constant 0 : index
    %c0_89 = arith.constant 0 : index
    %106 = vector.load %arg23[%c0_88, %c0_89] : memref<16x256xf32, #tpu.memory_space<vmem>>, vector<16x256xf32>
    %cst_90 = arith.constant dense<0.000000e+00> : vector<1x256xf32>
    %107 = tpu.matmul %102, %106, %cst_90 {dimension_numbers = #tpu.dot_dimension_numbers<[1], [0], [0], [1], [0, 0, 1, 1], [], []>} : vector<1x16xf32>, vector<16x256xf32>, vector<1x256xf32> -> vector<1x256xf32>
    %108 = vector.broadcast %107 : vector<1x256xf32> to vector<32x256xf32>
    %109 = arith.mulf %82, %108 : vector<32x256xf32>
    %c0_91 = arith.constant 0 : index
    %c0_92 = arith.constant 0 : index
    %110 = vector.load %arg23[%c0_91, %c0_92] : memref<16x256xf32, #tpu.memory_space<vmem>>, vector<16x256xf32>
    %cst_93 = arith.constant dense<0.000000e+00> : vector<1x256xf32>
    %111 = tpu.matmul %105, %110, %cst_93 {dimension_numbers = #tpu.dot_dimension_numbers<[1], [0], [0], [1], [0, 0, 1, 1], [], []>} : vector<1x16xf32>, vector<16x256xf32>, vector<1x256xf32> -> vector<1x256xf32>
    %112 = vector.broadcast %111 : vector<1x256xf32> to vector<32x256xf32>
    %113 = arith.addf %109, %112 : vector<32x256xf32>
    %c0_94 = arith.constant 0 : index
    %c0_95 = arith.constant 0 : index
    %114 = vector.load %arg22[%c0_94, %c0_95] : memref<256x16xf32, #tpu.memory_space<vmem>>, vector<256x16xf32>
    %cst_96 = arith.constant dense<0.000000e+00> : vector<32x16xf32>
    %115 = tpu.matmul %113, %114, %cst_96 {dimension_numbers = #tpu.dot_dimension_numbers<[1], [0], [0], [1], [0, 0, 1, 1], [], []>} : vector<32x256xf32>, vector<256x16xf32>, vector<32x16xf32> -> vector<32x16xf32>
    %c0_97 = arith.constant 0 : index
    %c0_98 = arith.constant 0 : index
    %116 = vector.load %arg24[%c0_97, %c0_98] : memref<2x32xf32, #tpu.memory_space<vmem>>, vector<2x32xf32>
    %cst_99 = arith.constant dense<0.000000e+00> : vector<2x16xf32>
    %117 = tpu.matmul %116, %115, %cst_99 {dimension_numbers = #tpu.dot_dimension_numbers<[1], [0], [0], [1], [0, 0, 1, 1], [], []>} : vector<2x32xf32>, vector<32x16xf32>, vector<2x16xf32> -> vector<2x16xf32>
    %c0_100 = arith.constant 0 : index
    %c0_101 = arith.constant 0 : index
    %118 = vector.load %arg12[%c0_100, %c0_101] : memref<16x1xf32, #tpu.memory_space<vmem>>, vector<16x1xf32>
    %cst_102 = arith.constant dense<0.000000e+00> : vector<2x1xf32>
    %119 = tpu.matmul %117, %118, %cst_102 {dimension_numbers = #tpu.dot_dimension_numbers<[1], [0], [0], [1], [0, 0, 1, 1], [], []>} : vector<2x16xf32>, vector<16x1xf32>, vector<2x1xf32> -> vector<2x1xf32>
    %c0_103 = arith.constant 0 : index
    %c0_104 = arith.constant 0 : index
    %120 = vector.load %arg13[%c0_103, %c0_104] : memref<1x1xf32, #tpu.memory_space<vmem>>, vector<1x1xf32>
    %121 = vector.broadcast %120 : vector<1x1xf32> to vector<2x1xf32>
    %122 = arith.addf %119, %121 : vector<2x1xf32>
    %cst_105 = arith.constant 0.000000e+00 : f32
    %123 = vector.broadcast %cst_105 : f32 to vector<2x1xf32>
    %124 = arith.maximumf %122, %123 : vector<2x1xf32>
    %c0_106 = arith.constant 0 : index
    %c0_107 = arith.constant 0 : index
    %125 = vector.load %arg14[%c0_106, %c0_107] : memref<1x16xf32, #tpu.memory_space<vmem>>, vector<1x16xf32>
    %cst_108 = arith.constant dense<0.000000e+00> : vector<2x16xf32>
    %126 = tpu.matmul %124, %125, %cst_108 {dimension_numbers = #tpu.dot_dimension_numbers<[1], [0], [0], [1], [0, 0, 1, 1], [], []>} : vector<2x1xf32>, vector<1x16xf32>, vector<2x16xf32> -> vector<2x16xf32>
    %c0_109 = arith.constant 0 : index
    %c0_110 = arith.constant 0 : index
    %127 = vector.load %arg15[%c0_109, %c0_110] : memref<1x16xf32, #tpu.memory_space<vmem>>, vector<1x16xf32>
    %128 = vector.broadcast %127 : vector<1x16xf32> to vector<2x16xf32>
    %129 = arith.addf %126, %128 : vector<2x16xf32>
    %130 = arith.negf %129 : vector<2x16xf32>
    %131 = math.exp %130 : vector<2x16xf32>
    %cst_111 = arith.constant 1.000000e+00 : f32
    %132 = vector.broadcast %cst_111 : f32 to vector<2x16xf32>
    %133 = arith.addf %132, %131 : vector<2x16xf32>
    %134 = arith.divf %132, %133 : vector<2x16xf32>
    %c0_112 = arith.constant 0 : index
    %c0_113 = arith.constant 0 : index
    %135 = vector.load %arg25[%c0_112, %c0_113] : memref<32x2xf32, #tpu.memory_space<vmem>>, vector<32x2xf32>
    %cst_114 = arith.constant dense<0.000000e+00> : vector<32x16xf32>
    %136 = tpu.matmul %135, %134, %cst_114 {dimension_numbers = #tpu.dot_dimension_numbers<[1], [0], [0], [1], [0, 0, 1, 1], [], []>} : vector<32x2xf32>, vector<2x16xf32>, vector<32x16xf32> -> vector<32x16xf32>
    %c0_115 = arith.constant 0 : index
    %c0_116 = arith.constant 0 : index
    %137 = vector.load %arg23[%c0_115, %c0_116] : memref<16x256xf32, #tpu.memory_space<vmem>>, vector<16x256xf32>
    %cst_117 = arith.constant dense<0.000000e+00> : vector<32x256xf32>
    %138 = tpu.matmul %136, %137, %cst_117 {dimension_numbers = #tpu.dot_dimension_numbers<[1], [0], [0], [1], [0, 0, 1, 1], [], []>} : vector<32x16xf32>, vector<16x256xf32>, vector<32x256xf32> -> vector<32x256xf32>
    %139 = arith.mulf %113, %138 : vector<32x256xf32>
    %c0_118 = arith.constant 0 : index
    %c0_119 = arith.constant 0 : index
    %c0_120 = arith.constant 0 : index
    %140 = vector.load %arg21[%c0_118, %c0_119, %c0_120] : memref<16x256x16xf32, #tpu.memory_space<vmem>>, vector<1x256x16xf32>
    %141 = vector.shape_cast %140 : vector<1x256x16xf32> to vector<256x16xf32>
    %cst_121 = arith.constant dense<0.000000e+00> : vector<32x16xf32>
    %142 = tpu.matmul %139, %141, %cst_121 {dimension_numbers = #tpu.dot_dimension_numbers<[1], [0], [0], [1], [0, 0, 1, 1], [], []>} : vector<32x256xf32>, vector<256x16xf32>, vector<32x16xf32> -> vector<32x16xf32>
    %c1_122 = arith.constant 1 : index
    %c0_123 = arith.constant 0 : index
    %c0_124 = arith.constant 0 : index
    %143 = vector.load %arg21[%c1_122, %c0_123, %c0_124] : memref<16x256x16xf32, #tpu.memory_space<vmem>>, vector<1x256x16xf32>
    %144 = vector.shape_cast %143 : vector<1x256x16xf32> to vector<256x16xf32>
    %cst_125 = arith.constant dense<0.000000e+00> : vector<32x16xf32>
    %145 = tpu.matmul %139, %144, %cst_125 {dimension_numbers = #tpu.dot_dimension_numbers<[1], [0], [0], [1], [0, 0, 1, 1], [], []>} : vector<32x256xf32>, vector<256x16xf32>, vector<32x16xf32> -> vector<32x16xf32>
    %146 = arith.maximumf %142, %145 : vector<32x16xf32>
    %147 = arith.addf %142, %145 : vector<32x16xf32>
    %c2_126 = arith.constant 2 : index
    %c0_127 = arith.constant 0 : index
    %c0_128 = arith.constant 0 : index
    %148 = vector.load %arg21[%c2_126, %c0_127, %c0_128] : memref<16x256x16xf32, #tpu.memory_space<vmem>>, vector<1x256x16xf32>
    %149 = vector.shape_cast %148 : vector<1x256x16xf32> to vector<256x16xf32>
    %cst_129 = arith.constant dense<0.000000e+00> : vector<32x16xf32>
    %150 = tpu.matmul %139, %149, %cst_129 {dimension_numbers = #tpu.dot_dimension_numbers<[1], [0], [0], [1], [0, 0, 1, 1], [], []>} : vector<32x256xf32>, vector<256x16xf32>, vector<32x16xf32> -> vector<32x16xf32>
    %151 = arith.maximumf %146, %150 : vector<32x16xf32>
    %152 = arith.addf %147, %150 : vector<32x16xf32>
    %c3 = arith.constant 3 : index
    %c0_130 = arith.constant 0 : index
    %c0_131 = arith.constant 0 : index
    %153 = vector.load %arg21[%c3, %c0_130, %c0_131] : memref<16x256x16xf32, #tpu.memory_space<vmem>>, vector<1x256x16xf32>
    %154 = vector.shape_cast %153 : vector<1x256x16xf32> to vector<256x16xf32>
    %cst_132 = arith.constant dense<0.000000e+00> : vector<32x16xf32>
    %155 = tpu.matmul %139, %154, %cst_132 {dimension_numbers = #tpu.dot_dimension_numbers<[1], [0], [0], [1], [0, 0, 1, 1], [], []>} : vector<32x256xf32>, vector<256x16xf32>, vector<32x16xf32> -> vector<32x16xf32>
    %156 = arith.maximumf %151, %155 : vector<32x16xf32>
    %157 = arith.addf %152, %155 : vector<32x16xf32>
    %c4 = arith.constant 4 : index
    %c0_133 = arith.constant 0 : index
    %c0_134 = arith.constant 0 : index
    %158 = vector.load %arg21[%c4, %c0_133, %c0_134] : memref<16x256x16xf32, #tpu.memory_space<vmem>>, vector<1x256x16xf32>
    %159 = vector.shape_cast %158 : vector<1x256x16xf32> to vector<256x16xf32>
    %cst_135 = arith.constant dense<0.000000e+00> : vector<32x16xf32>
    %160 = tpu.matmul %139, %159, %cst_135 {dimension_numbers = #tpu.dot_dimension_numbers<[1], [0], [0], [1], [0, 0, 1, 1], [], []>} : vector<32x256xf32>, vector<256x16xf32>, vector<32x16xf32> -> vector<32x16xf32>
    %161 = arith.maximumf %156, %160 : vector<32x16xf32>
    %162 = arith.addf %157, %160 : vector<32x16xf32>
    %c5 = arith.constant 5 : index
    %c0_136 = arith.constant 0 : index
    %c0_137 = arith.constant 0 : index
    %163 = vector.load %arg21[%c5, %c0_136, %c0_137] : memref<16x256x16xf32, #tpu.memory_space<vmem>>, vector<1x256x16xf32>
    %164 = vector.shape_cast %163 : vector<1x256x16xf32> to vector<256x16xf32>
    %cst_138 = arith.constant dense<0.000000e+00> : vector<32x16xf32>
    %165 = tpu.matmul %139, %164, %cst_138 {dimension_numbers = #tpu.dot_dimension_numbers<[1], [0], [0], [1], [0, 0, 1, 1], [], []>} : vector<32x256xf32>, vector<256x16xf32>, vector<32x16xf32> -> vector<32x16xf32>
    %166 = arith.maximumf %161, %165 : vector<32x16xf32>
    %167 = arith.addf %162, %165 : vector<32x16xf32>
    %c6 = arith.constant 6 : index
    %c0_139 = arith.constant 0 : index
    %c0_140 = arith.constant 0 : index
    %168 = vector.load %arg21[%c6, %c0_139, %c0_140] : memref<16x256x16xf32, #tpu.memory_space<vmem>>, vector<1x256x16xf32>
    %169 = vector.shape_cast %168 : vector<1x256x16xf32> to vector<256x16xf32>
    %cst_141 = arith.constant dense<0.000000e+00> : vector<32x16xf32>
    %170 = tpu.matmul %139, %169, %cst_141 {dimension_numbers = #tpu.dot_dimension_numbers<[1], [0], [0], [1], [0, 0, 1, 1], [], []>} : vector<32x256xf32>, vector<256x16xf32>, vector<32x16xf32> -> vector<32x16xf32>
    %171 = arith.maximumf %166, %170 : vector<32x16xf32>
    %172 = arith.addf %167, %170 : vector<32x16xf32>
    %c7 = arith.constant 7 : index
    %c0_142 = arith.constant 0 : index
    %c0_143 = arith.constant 0 : index
    %173 = vector.load %arg21[%c7, %c0_142, %c0_143] : memref<16x256x16xf32, #tpu.memory_space<vmem>>, vector<1x256x16xf32>
    %174 = vector.shape_cast %173 : vector<1x256x16xf32> to vector<256x16xf32>
    %cst_144 = arith.constant dense<0.000000e+00> : vector<32x16xf32>
    %175 = tpu.matmul %139, %174, %cst_144 {dimension_numbers = #tpu.dot_dimension_numbers<[1], [0], [0], [1], [0, 0, 1, 1], [], []>} : vector<32x256xf32>, vector<256x16xf32>, vector<32x16xf32> -> vector<32x16xf32>
    %176 = arith.maximumf %171, %175 : vector<32x16xf32>
    %177 = arith.addf %172, %175 : vector<32x16xf32>
    %c8 = arith.constant 8 : index
    %c0_145 = arith.constant 0 : index
    %c0_146 = arith.constant 0 : index
    %178 = vector.load %arg21[%c8, %c0_145, %c0_146] : memref<16x256x16xf32, #tpu.memory_space<vmem>>, vector<1x256x16xf32>
    %179 = vector.shape_cast %178 : vector<1x256x16xf32> to vector<256x16xf32>
    %cst_147 = arith.constant dense<0.000000e+00> : vector<32x16xf32>
    %180 = tpu.matmul %139, %179, %cst_147 {dimension_numbers = #tpu.dot_dimension_numbers<[1], [0], [0], [1], [0, 0, 1, 1], [], []>} : vector<32x256xf32>, vector<256x16xf32>, vector<32x16xf32> -> vector<32x16xf32>
    %181 = arith.maximumf %176, %180 : vector<32x16xf32>
    %182 = arith.addf %177, %180 : vector<32x16xf32>
    %c9 = arith.constant 9 : index
    %c0_148 = arith.constant 0 : index
    %c0_149 = arith.constant 0 : index
    %183 = vector.load %arg21[%c9, %c0_148, %c0_149] : memref<16x256x16xf32, #tpu.memory_space<vmem>>, vector<1x256x16xf32>
    %184 = vector.shape_cast %183 : vector<1x256x16xf32> to vector<256x16xf32>
    %cst_150 = arith.constant dense<0.000000e+00> : vector<32x16xf32>
    %185 = tpu.matmul %139, %184, %cst_150 {dimension_numbers = #tpu.dot_dimension_numbers<[1], [0], [0], [1], [0, 0, 1, 1], [], []>} : vector<32x256xf32>, vector<256x16xf32>, vector<32x16xf32> -> vector<32x16xf32>
    %186 = arith.maximumf %181, %185 : vector<32x16xf32>
    %187 = arith.addf %182, %185 : vector<32x16xf32>
    %c10 = arith.constant 10 : index
    %c0_151 = arith.constant 0 : index
    %c0_152 = arith.constant 0 : index
    %188 = vector.load %arg21[%c10, %c0_151, %c0_152] : memref<16x256x16xf32, #tpu.memory_space<vmem>>, vector<1x256x16xf32>
    %189 = vector.shape_cast %188 : vector<1x256x16xf32> to vector<256x16xf32>
    %cst_153 = arith.constant dense<0.000000e+00> : vector<32x16xf32>
    %190 = tpu.matmul %139, %189, %cst_153 {dimension_numbers = #tpu.dot_dimension_numbers<[1], [0], [0], [1], [0, 0, 1, 1], [], []>} : vector<32x256xf32>, vector<256x16xf32>, vector<32x16xf32> -> vector<32x16xf32>
    %191 = arith.maximumf %186, %190 : vector<32x16xf32>
    %192 = arith.addf %187, %190 : vector<32x16xf32>
    %c11 = arith.constant 11 : index
    %c0_154 = arith.constant 0 : index
    %c0_155 = arith.constant 0 : index
    %193 = vector.load %arg21[%c11, %c0_154, %c0_155] : memref<16x256x16xf32, #tpu.memory_space<vmem>>, vector<1x256x16xf32>
    %194 = vector.shape_cast %193 : vector<1x256x16xf32> to vector<256x16xf32>
    %cst_156 = arith.constant dense<0.000000e+00> : vector<32x16xf32>
    %195 = tpu.matmul %139, %194, %cst_156 {dimension_numbers = #tpu.dot_dimension_numbers<[1], [0], [0], [1], [0, 0, 1, 1], [], []>} : vector<32x256xf32>, vector<256x16xf32>, vector<32x16xf32> -> vector<32x16xf32>
    %196 = arith.maximumf %191, %195 : vector<32x16xf32>
    %197 = arith.addf %192, %195 : vector<32x16xf32>
    %c12 = arith.constant 12 : index
    %c0_157 = arith.constant 0 : index
    %c0_158 = arith.constant 0 : index
    %198 = vector.load %arg21[%c12, %c0_157, %c0_158] : memref<16x256x16xf32, #tpu.memory_space<vmem>>, vector<1x256x16xf32>
    %199 = vector.shape_cast %198 : vector<1x256x16xf32> to vector<256x16xf32>
    %cst_159 = arith.constant dense<0.000000e+00> : vector<32x16xf32>
    %200 = tpu.matmul %139, %199, %cst_159 {dimension_numbers = #tpu.dot_dimension_numbers<[1], [0], [0], [1], [0, 0, 1, 1], [], []>} : vector<32x256xf32>, vector<256x16xf32>, vector<32x16xf32> -> vector<32x16xf32>
    %201 = arith.maximumf %196, %200 : vector<32x16xf32>
    %202 = arith.addf %197, %200 : vector<32x16xf32>
    %c13 = arith.constant 13 : index
    %c0_160 = arith.constant 0 : index
    %c0_161 = arith.constant 0 : index
    %203 = vector.load %arg21[%c13, %c0_160, %c0_161] : memref<16x256x16xf32, #tpu.memory_space<vmem>>, vector<1x256x16xf32>
    %204 = vector.shape_cast %203 : vector<1x256x16xf32> to vector<256x16xf32>
    %cst_162 = arith.constant dense<0.000000e+00> : vector<32x16xf32>
    %205 = tpu.matmul %139, %204, %cst_162 {dimension_numbers = #tpu.dot_dimension_numbers<[1], [0], [0], [1], [0, 0, 1, 1], [], []>} : vector<32x256xf32>, vector<256x16xf32>, vector<32x16xf32> -> vector<32x16xf32>
    %206 = arith.maximumf %201, %205 : vector<32x16xf32>
    %207 = arith.addf %202, %205 : vector<32x16xf32>
    %c14 = arith.constant 14 : index
    %c0_163 = arith.constant 0 : index
    %c0_164 = arith.constant 0 : index
    %208 = vector.load %arg21[%c14, %c0_163, %c0_164] : memref<16x256x16xf32, #tpu.memory_space<vmem>>, vector<1x256x16xf32>
    %209 = vector.shape_cast %208 : vector<1x256x16xf32> to vector<256x16xf32>
    %cst_165 = arith.constant dense<0.000000e+00> : vector<32x16xf32>
    %210 = tpu.matmul %139, %209, %cst_165 {dimension_numbers = #tpu.dot_dimension_numbers<[1], [0], [0], [1], [0, 0, 1, 1], [], []>} : vector<32x256xf32>, vector<256x16xf32>, vector<32x16xf32> -> vector<32x16xf32>
    %211 = arith.maximumf %206, %210 : vector<32x16xf32>
    %212 = arith.addf %207, %210 : vector<32x16xf32>
    %c15 = arith.constant 15 : index
    %c0_166 = arith.constant 0 : index
    %c0_167 = arith.constant 0 : index
    %213 = vector.load %arg21[%c15, %c0_166, %c0_167] : memref<16x256x16xf32, #tpu.memory_space<vmem>>, vector<1x256x16xf32>
    %214 = vector.shape_cast %213 : vector<1x256x16xf32> to vector<256x16xf32>
    %cst_168 = arith.constant dense<0.000000e+00> : vector<32x16xf32>
    %215 = tpu.matmul %139, %214, %cst_168 {dimension_numbers = #tpu.dot_dimension_numbers<[1], [0], [0], [1], [0, 0, 1, 1], [], []>} : vector<32x256xf32>, vector<256x16xf32>, vector<32x16xf32> -> vector<32x16xf32>
    %216 = arith.maximumf %211, %215 : vector<32x16xf32>
    %217 = arith.addf %212, %215 : vector<32x16xf32>
    %cst_169 = arith.constant 6.250000e-02 : f32
    %218 = vector.broadcast %cst_169 : f32 to vector<32x16xf32>
    %219 = arith.mulf %217, %218 : vector<32x16xf32>
    %cst_170 = arith.constant 0.000000e+00 : f32
    %220 = vector.broadcast %cst_170 : f32 to vector<2x3x32xf32>
    %c0_171 = arith.constant 0 : index
    %c0_172 = arith.constant 0 : index
    %c0_173 = arith.constant 0 : index
    %221 = vector.load %arg29[%c0_171, %c0_172, %c0_173] : memref<2x22x32xf32, #tpu.memory_space<vmem>>, vector<2x3x32xf32>
    tpu.vector_store %arg29[%c0_171, %c0_172, %c0_173], %220 {strides = array<i32>} : memref<2x22x32xf32, #tpu.memory_space<vmem>>, vector<2x3x32xf32>,
    %cst_174 = arith.constant 0.000000e+00 : f32
    %222 = vector.broadcast %cst_174 : f32 to vector<2x3x32xf32>
    %c0_175 = arith.constant 0 : index
    %c19 = arith.constant 19 : index
    %c0_176 = arith.constant 0 : index
    %223 = vector.load %arg29[%c0_175, %c19, %c0_176] : memref<2x22x32xf32, #tpu.memory_space<vmem>>, vector<2x3x32xf32>
    tpu.vector_store %arg29[%c0_175, %c19, %c0_176], %222 {strides = array<i32>} : memref<2x22x32xf32, #tpu.memory_space<vmem>>, vector<2x3x32xf32>,
    %224 = vector.shape_cast %219 : vector<32x16xf32> to vector<2x16x16xf32>
    %c0_177 = arith.constant 0 : index
    %c3_178 = arith.constant 3 : index
    %c0_179 = arith.constant 0 : index
    %225 = vector.load %arg29[%c0_177, %c3_178, %c0_179] : memref<2x22x32xf32, #tpu.memory_space<vmem>>, vector<2x16x16xf32>
    tpu.vector_store %arg29[%c0_177, %c3_178, %c0_179], %224 {strides = array<i32>} : memref<2x22x32xf32, #tpu.memory_space<vmem>>, vector<2x16x16xf32>,
    %226 = vector.shape_cast %216 : vector<32x16xf32> to vector<2x16x16xf32>
    %c0_180 = arith.constant 0 : index
    %c3_181 = arith.constant 3 : index
    %c16 = arith.constant 16 : index
    %227 = vector.load %arg29[%c0_180, %c3_181, %c16] : memref<2x22x32xf32, #tpu.memory_space<vmem>>, vector<2x16x16xf32>
    tpu.vector_store %arg29[%c0_180, %c3_181, %c16], %226 {strides = array<i32>} : memref<2x22x32xf32, #tpu.memory_space<vmem>>, vector<2x16x16xf32>,
    %c0_182 = arith.constant 0 : index
    %c0_183 = arith.constant 0 : index
    %c0_184 = arith.constant 0 : index
    %228 = vector.load %arg29[%c0_182, %c0_183, %c0_184] : memref<2x22x32xf32, #tpu.memory_space<vmem>>, vector<2x16x32xf32>
    %229 = vector.shape_cast %228 : vector<2x16x32xf32> to vector<32x32xf32>
    %c0_185 = arith.constant 0 : index
    %c0_186 = arith.constant 0 : index
    %c0_187 = arith.constant 0 : index
    %230 = vector.load %arg16[%c0_185, %c0_186, %c0_187] : memref<7x32x16xf32, #tpu.memory_space<vmem>>, vector<1x32x16xf32>
    %231 = vector.shape_cast %230 : vector<1x32x16xf32> to vector<32x16xf32>
    %cst_188 = arith.constant dense<0.000000e+00> : vector<32x16xf32>
    %232 = tpu.matmul %229, %231, %cst_188 {dimension_numbers = #tpu.dot_dimension_numbers<[1], [0], [0], [1], [0, 0, 1, 1], [], []>} : vector<32x32xf32>, vector<32x16xf32>, vector<32x16xf32> -> vector<32x16xf32>
    %c0_189 = arith.constant 0 : index
    %c1_190 = arith.constant 1 : index
    %c0_191 = arith.constant 0 : index
    %233 = vector.load %arg29[%c0_189, %c1_190, %c0_191] : memref<2x22x32xf32, #tpu.memory_space<vmem>>, vector<2x16x32xf32>
    %234 = vector.shape_cast %233 : vector<2x16x32xf32> to vector<32x32xf32>
    %c1_192 = arith.constant 1 : index
    %c0_193 = arith.constant 0 : index
    %c0_194 = arith.constant 0 : index
    %235 = vector.load %arg16[%c1_192, %c0_193, %c0_194] : memref<7x32x16xf32, #tpu.memory_space<vmem>>, vector<1x32x16xf32>
    %236 = vector.shape_cast %235 : vector<1x32x16xf32> to vector<32x16xf32>
    %cst_195 = arith.constant dense<0.000000e+00> : vector<32x16xf32>
    %237 = tpu.matmul %234, %236, %cst_195 {dimension_numbers = #tpu.dot_dimension_numbers<[1], [0], [0], [1], [0, 0, 1, 1], [], []>} : vector<32x32xf32>, vector<32x16xf32>, vector<32x16xf32> -> vector<32x16xf32>
    %238 = arith.addf %232, %237 : vector<32x16xf32>
    %c0_196 = arith.constant 0 : index
    %c2_197 = arith.constant 2 : index
    %c0_198 = arith.constant 0 : index
    %239 = vector.load %arg29[%c0_196, %c2_197, %c0_198] : memref<2x22x32xf32, #tpu.memory_space<vmem>>, vector<2x16x32xf32>
    %240 = vector.shape_cast %239 : vector<2x16x32xf32> to vector<32x32xf32>
    %c2_199 = arith.constant 2 : index
    %c0_200 = arith.constant 0 : index
    %c0_201 = arith.constant 0 : index
    %241 = vector.load %arg16[%c2_199, %c0_200, %c0_201] : memref<7x32x16xf32, #tpu.memory_space<vmem>>, vector<1x32x16xf32>
    %242 = vector.shape_cast %241 : vector<1x32x16xf32> to vector<32x16xf32>
    %cst_202 = arith.constant dense<0.000000e+00> : vector<32x16xf32>
    %243 = tpu.matmul %240, %242, %cst_202 {dimension_numbers = #tpu.dot_dimension_numbers<[1], [0], [0], [1], [0, 0, 1, 1], [], []>} : vector<32x32xf32>, vector<32x16xf32>, vector<32x16xf32> -> vector<32x16xf32>
    %244 = arith.addf %238, %243 : vector<32x16xf32>
    %c0_203 = arith.constant 0 : index
    %c3_204 = arith.constant 3 : index
    %c0_205 = arith.constant 0 : index
    %245 = vector.load %arg29[%c0_203, %c3_204, %c0_205] : memref<2x22x32xf32, #tpu.memory_space<vmem>>, vector<2x16x32xf32>
    %246 = vector.shape_cast %245 : vector<2x16x32xf32> to vector<32x32xf32>
    %c3_206 = arith.constant 3 : index
    %c0_207 = arith.constant 0 : index
    %c0_208 = arith.constant 0 : index
    %247 = vector.load %arg16[%c3_206, %c0_207, %c0_208] : memref<7x32x16xf32, #tpu.memory_space<vmem>>, vector<1x32x16xf32>
    %248 = vector.shape_cast %247 : vector<1x32x16xf32> to vector<32x16xf32>
    %cst_209 = arith.constant dense<0.000000e+00> : vector<32x16xf32>
    %249 = tpu.matmul %246, %248, %cst_209 {dimension_numbers = #tpu.dot_dimension_numbers<[1], [0], [0], [1], [0, 0, 1, 1], [], []>} : vector<32x32xf32>, vector<32x16xf32>, vector<32x16xf32> -> vector<32x16xf32>
    %250 = arith.addf %244, %249 : vector<32x16xf32>
    %c0_210 = arith.constant 0 : index
    %c4_211 = arith.constant 4 : index
    %c0_212 = arith.constant 0 : index
    %251 = vector.load %arg29[%c0_210, %c4_211, %c0_212] : memref<2x22x32xf32, #tpu.memory_space<vmem>>, vector<2x16x32xf32>
    %252 = vector.shape_cast %251 : vector<2x16x32xf32> to vector<32x32xf32>
    %c4_213 = arith.constant 4 : index
    %c0_214 = arith.constant 0 : index
    %c0_215 = arith.constant 0 : index
    %253 = vector.load %arg16[%c4_213, %c0_214, %c0_215] : memref<7x32x16xf32, #tpu.memory_space<vmem>>, vector<1x32x16xf32>
    %254 = vector.shape_cast %253 : vector<1x32x16xf32> to vector<32x16xf32>
    %cst_216 = arith.constant dense<0.000000e+00> : vector<32x16xf32>
    %255 = tpu.matmul %252, %254, %cst_216 {dimension_numbers = #tpu.dot_dimension_numbers<[1], [0], [0], [1], [0, 0, 1, 1], [], []>} : vector<32x32xf32>, vector<32x16xf32>, vector<32x16xf32> -> vector<32x16xf32>
    %256 = arith.addf %250, %255 : vector<32x16xf32>
    %c0_217 = arith.constant 0 : index
    %c5_218 = arith.constant 5 : index
    %c0_219 = arith.constant 0 : index
    %257 = vector.load %arg29[%c0_217, %c5_218, %c0_219] : memref<2x22x32xf32, #tpu.memory_space<vmem>>, vector<2x16x32xf32>
    %258 = vector.shape_cast %257 : vector<2x16x32xf32> to vector<32x32xf32>
    %c5_220 = arith.constant 5 : index
    %c0_221 = arith.constant 0 : index
    %c0_222 = arith.constant 0 : index
    %259 = vector.load %arg16[%c5_220, %c0_221, %c0_222] : memref<7x32x16xf32, #tpu.memory_space<vmem>>, vector<1x32x16xf32>
    %260 = vector.shape_cast %259 : vector<1x32x16xf32> to vector<32x16xf32>
    %cst_223 = arith.constant dense<0.000000e+00> : vector<32x16xf32>
    %261 = tpu.matmul %258, %260, %cst_223 {dimension_numbers = #tpu.dot_dimension_numbers<[1], [0], [0], [1], [0, 0, 1, 1], [], []>} : vector<32x32xf32>, vector<32x16xf32>, vector<32x16xf32> -> vector<32x16xf32>
    %262 = arith.addf %256, %261 : vector<32x16xf32>
    %c0_224 = arith.constant 0 : index
    %c6_225 = arith.constant 6 : index
    %c0_226 = arith.constant 0 : index
    %263 = vector.load %arg29[%c0_224, %c6_225, %c0_226] : memref<2x22x32xf32, #tpu.memory_space<vmem>>, vector<2x16x32xf32>
    %264 = vector.shape_cast %263 : vector<2x16x32xf32> to vector<32x32xf32>
    %c6_227 = arith.constant 6 : index
    %c0_228 = arith.constant 0 : index
    %c0_229 = arith.constant 0 : index
    %265 = vector.load %arg16[%c6_227, %c0_228, %c0_229] : memref<7x32x16xf32, #tpu.memory_space<vmem>>, vector<1x32x16xf32>
    %266 = vector.shape_cast %265 : vector<1x32x16xf32> to vector<32x16xf32>
    %cst_230 = arith.constant dense<0.000000e+00> : vector<32x16xf32>
    %267 = tpu.matmul %264, %266, %cst_230 {dimension_numbers = #tpu.dot_dimension_numbers<[1], [0], [0], [1], [0, 0, 1, 1], [], []>} : vector<32x32xf32>, vector<32x16xf32>, vector<32x16xf32> -> vector<32x16xf32>
    %268 = arith.addf %262, %267 : vector<32x16xf32>
    %c0_231 = arith.constant 0 : index
    %c0_232 = arith.constant 0 : index
    %269 = vector.load %arg17[%c0_231, %c0_232] : memref<1x1xf32, #tpu.memory_space<vmem>>, vector<1x1xf32>
    %270 = vector.broadcast %269 : vector<1x1xf32> to vector<32x16xf32>
    %271 = arith.addf %268, %270 : vector<32x16xf32>
    %272 = arith.negf %271 : vector<32x16xf32>
    %273 = math.exp %272 : vector<32x16xf32>
    %cst_233 = arith.constant 1.000000e+00 : f32
    %274 = vector.broadcast %cst_233 : f32 to vector<32x16xf32>
    %275 = arith.addf %274, %273 : vector<32x16xf32>
    %276 = arith.divf %274, %275 : vector<32x16xf32>
    %c0_234 = arith.constant 0 : index
    %c0_235 = arith.constant 0 : index
    %277 = vector.load %arg26[%c0_234, %c0_235] : memref<16x256xf32, #tpu.memory_space<vmem>>, vector<16x256xf32>
    %cst_236 = arith.constant dense<0.000000e+00> : vector<32x256xf32>
    %278 = tpu.matmul %276, %277, %cst_236 {dimension_numbers = #tpu.dot_dimension_numbers<[1], [0], [0], [1], [0, 0, 1, 1], [], []>} : vector<32x16xf32>, vector<16x256xf32>, vector<32x256xf32> -> vector<32x256xf32>
    %279 = arith.mulf %139, %278 : vector<32x256xf32>
    %280 = arith.truncf %279 : vector<32x256xf32> to vector<32x256xbf16>
    %c0_237 = arith.constant 0 : index
    %c0_238 = arith.constant 0 : index
    %c0_239 = arith.constant 0 : index
    %281 = vector.load %arg20[%c0_237, %c0_238, %c0_239] : memref<4x16x32xbf16, #tpu.memory_space<vmem>>, vector<1x16x32xbf16>
    %282 = vector.shape_cast %281 : vector<1x16x32xbf16> to vector<16x32xbf16>
    %cst_240 = arith.constant dense<0.000000e+00> : vector<16x256xf32>
    %283 = tpu.matmul %282, %280, %cst_240 {dimension_numbers = #tpu.dot_dimension_numbers<[1], [0], [0], [1], [0, 0, 1, 1], [], []>} : vector<16x32xbf16>, vector<32x256xbf16>, vector<16x256xf32> -> vector<16x256xf32>
    %284 = arith.truncf %283 : vector<16x256xf32> to vector<16x256xbf16>
    %c0_241 = arith.constant 0 : index
    %c0_242 = arith.constant 0 : index
    %c0_243 = arith.constant 0 : index
    %285 = vector.load %arg18[%c0_241, %c0_242, %c0_243] : memref<4x256x128xbf16, #tpu.memory_space<vmem>>, vector<1x256x128xbf16>
    %286 = vector.shape_cast %285 : vector<1x256x128xbf16> to vector<256x128xbf16>
    %cst_244 = arith.constant dense<0.000000e+00> : vector<16x128xf32>
    %287 = tpu.matmul %284, %286, %cst_244 {dimension_numbers = #tpu.dot_dimension_numbers<[1], [0], [0], [1], [0, 0, 1, 1], [], []>} : vector<16x256xbf16>, vector<256x128xbf16>, vector<16x128xf32> -> vector<16x128xf32>
    %c1_245 = arith.constant 1 : index
    %c0_246 = arith.constant 0 : index
    %c0_247 = arith.constant 0 : index
    %288 = vector.load %arg20[%c1_245, %c0_246, %c0_247] : memref<4x16x32xbf16, #tpu.memory_space<vmem>>, vector<1x16x32xbf16>
    %289 = vector.shape_cast %288 : vector<1x16x32xbf16> to vector<16x32xbf16>
    %cst_248 = arith.constant dense<0.000000e+00> : vector<16x256xf32>
    %290 = tpu.matmul %289, %280, %cst_248 {dimension_numbers = #tpu.dot_dimension_numbers<[1], [0], [0], [1], [0, 0, 1, 1], [], []>} : vector<16x32xbf16>, vector<32x256xbf16>, vector<16x256xf32> -> vector<16x256xf32>
    %291 = arith.truncf %290 : vector<16x256xf32> to vector<16x256xbf16>
    %c1_249 = arith.constant 1 : index
    %c0_250 = arith.constant 0 : index
    %c0_251 = arith.constant 0 : index
    %292 = vector.load %arg18[%c1_249, %c0_250, %c0_251] : memref<4x256x128xbf16, #tpu.memory_space<vmem>>, vector<1x256x128xbf16>
    %293 = vector.shape_cast %292 : vector<1x256x128xbf16> to vector<256x128xbf16>
    %cst_252 = arith.constant dense<0.000000e+00> : vector<16x128xf32>
    %294 = tpu.matmul %291, %293, %cst_252 {dimension_numbers = #tpu.dot_dimension_numbers<[1], [0], [0], [1], [0, 0, 1, 1], [], []>} : vector<16x256xbf16>, vector<256x128xbf16>, vector<16x128xf32> -> vector<16x128xf32>
    %295 = arith.addf %287, %294 : vector<16x128xf32>
    %c2_253 = arith.constant 2 : index
    %c0_254 = arith.constant 0 : index
    %c0_255 = arith.constant 0 : index
    %296 = vector.load %arg20[%c2_253, %c0_254, %c0_255] : memref<4x16x32xbf16, #tpu.memory_space<vmem>>, vector<1x16x32xbf16>
    %297 = vector.shape_cast %296 : vector<1x16x32xbf16> to vector<16x32xbf16>
    %cst_256 = arith.constant dense<0.000000e+00> : vector<16x256xf32>
    %298 = tpu.matmul %297, %280, %cst_256 {dimension_numbers = #tpu.dot_dimension_numbers<[1], [0], [0], [1], [0, 0, 1, 1], [], []>} : vector<16x32xbf16>, vector<32x256xbf16>, vector<16x256xf32> -> vector<16x256xf32>
    %299 = arith.truncf %298 : vector<16x256xf32> to vector<16x256xbf16>
    %c2_257 = arith.constant 2 : index
    %c0_258 = arith.constant 0 : index
    %c0_259 = arith.constant 0 : index
    %300 = vector.load %arg18[%c2_257, %c0_258, %c0_259] : memref<4x256x128xbf16, #tpu.memory_space<vmem>>, vector<1x256x128xbf16>
    %301 = vector.shape_cast %300 : vector<1x256x128xbf16> to vector<256x128xbf16>
    %cst_260 = arith.constant dense<0.000000e+00> : vector<16x128xf32>
    %302 = tpu.matmul %299, %301, %cst_260 {dimension_numbers = #tpu.dot_dimension_numbers<[1], [0], [0], [1], [0, 0, 1, 1], [], []>} : vector<16x256xbf16>, vector<256x128xbf16>, vector<16x128xf32> -> vector<16x128xf32>
    %303 = arith.addf %295, %302 : vector<16x128xf32>
    %c3_261 = arith.constant 3 : index
    %c0_262 = arith.constant 0 : index
    %c0_263 = arith.constant 0 : index
    %304 = vector.load %arg20[%c3_261, %c0_262, %c0_263] : memref<4x16x32xbf16, #tpu.memory_space<vmem>>, vector<1x16x32xbf16>
    %305 = vector.shape_cast %304 : vector<1x16x32xbf16> to vector<16x32xbf16>
    %cst_264 = arith.constant dense<0.000000e+00> : vector<16x256xf32>
    %306 = tpu.matmul %305, %280, %cst_264 {dimension_numbers = #tpu.dot_dimension_numbers<[1], [0], [0], [1], [0, 0, 1, 1], [], []>} : vector<16x32xbf16>, vector<32x256xbf16>, vector<16x256xf32> -> vector<16x256xf32>
    %307 = arith.truncf %306 : vector<16x256xf32> to vector<16x256xbf16>
    %c3_265 = arith.constant 3 : index
    %c0_266 = arith.constant 0 : index
    %c0_267 = arith.constant 0 : index
    %308 = vector.load %arg18[%c3_265, %c0_266, %c0_267] : memref<4x256x128xbf16, #tpu.memory_space<vmem>>, vector<1x256x128xbf16>
    %309 = vector.shape_cast %308 : vector<1x256x128xbf16> to vector<256x128xbf16>
    %cst_268 = arith.constant dense<0.000000e+00> : vector<16x128xf32>
    %310 = tpu.matmul %307, %309, %cst_268 {dimension_numbers = #tpu.dot_dimension_numbers<[1], [0], [0], [1], [0, 0, 1, 1], [], []>} : vector<16x256xbf16>, vector<256x128xbf16>, vector<16x128xf32> -> vector<16x128xf32>
    %311 = arith.addf %303, %310 : vector<16x128xf32>
    %c0_269 = arith.constant 0 : index
    %c0_270 = arith.constant 0 : index
    %312 = vector.load %arg19[%c0_269, %c0_270] : memref<1x128xf32, #tpu.memory_space<vmem>>, vector<1x128xf32>
    %313 = vector.broadcast %312 : vector<1x128xf32> to vector<16x128xf32>
    %314 = arith.addf %311, %313 : vector<16x128xf32>
    %c0_271 = arith.constant 0 : index
    %c0_272 = arith.constant 0 : index
    %315 = vector.load %arg27[%c0_271, %c0_272] : memref<16x128xf32, #tpu.memory_space<vmem>>, vector<16x128xf32>
    tpu.vector_store %arg27[%c0_271, %c0_272], %314 {strides = array<i32>} : memref<16x128xf32, #tpu.memory_space<vmem>>, vector<16x128xf32>,
    return
  }
}

</mosaic_0001>

<bundles_post_ra>
// kernel: tile.28
= control target key start
LH: loop header
LB: loop body
LE: loop exit
PB: predicated region body
PF: predicated region fallthrough
CT: control target
= control target key end

     0   :  { %s28_s0 = inlined_call_operand.vmem [shape: f32[16], index: 0, kind: input, shape index: {}]   ;;  %s29_s1 = inlined_call_operand.vmem [shape: f32[16,16], index: 1, kind: output, shape index: {}]  }
   0x1   :  { %v4_v0 = vld [vmem:[%s28_s0] ss:$0 sm:$0xff] }
   0x2   :  { %5 = vst [vmem:[%s29_s1] sm:$0xff] %v4_v0 }
   0x3   :  { %8 = vst [vmem:[%s29_s1 + $0x8] sm:$0xff] %v4_v0 }

// kernel: tile.29
= control target key start
LH: loop header
LB: loop body
LE: loop exit
PB: predicated region body
PF: predicated region fallthrough
CT: control target
= control target key end

     0   :  { %s7_s6 = smov 3  ;;  %s21_s9 = smov 3  ;;  %vm4_vm0 = vcmask 130048   ;;  %vm11_vm1 = vcmask 1048448   ;;  %vm18_vm2 = vcmask 917248   ;;  %vm25_vm3 = vcmask 786048   ;;  %s129_s0 = inlined_call_operand.vmem [shape: f32[16,16], index: 0, kind: input, shape index: {}]   ;;  %s130_s1 = inlined_call_operand.vmem [shape: f32[1,256], index: 1, kind: output, shape index: {}]  }
   0x1   :  { %v67_v0 = vld [vmem:[%s129_s0 + $0x7] ss:$8 sm:%s7_s6]   ;;  %s82_s10 = smov 112   ;;  %v69_v1 = vld [vmem:[%s129_s0 + $0x5] ss:$8 sm:%s21_s9]   ;;  %s83_s13 = smov 80  }
   0x2   :  { %9 = vrot.lane.b32.xlu0 %v67_v0, %s82_s10  ;;  %23 = vrot.lane.b32.xlu1 %v69_v1, %s83_s13  ;;  %s14_s14 = smov 3  ;;  %s28_s15 = smov 3  ;;  %vm32_vm4 = vcmask 654848   ;;  %vm39_vm5 = vcmask 523648   ;;  %vm46_vm6 = vcmask 392448   ;;  %vm53_vm7 = vcmask 261248  }
   0x3   :  { %s35_s16 = smov 3  ;;  %v68_v3 = vld [vmem:[%s129_s0 + $0x6] ss:$8 sm:%s14_s14]   ;;  %s84_s21 = smov 48   ;;  %v70_v4 = vld [vmem:[%s129_s0 + $0x4] ss:$8 sm:%s28_s15]  }
   0x4   :  { %v71_v2 = vld [vmem:[%s129_s0 + $0x3] ss:$8 sm:%s35_s16]   ;;  %s42_s24 = smov 3  ;;  %s85_s25 = smov 96  }
   0x5   :  { %37 = vrot.lane.b32.xlu2 %v71_v2, %s84_s21  ;;  %s86_s26 = smov 64   ;;  %s49_s27 = smov 3  ;;  %v72_v5 = vld [vmem:[%s129_s0 + $0x2] ss:$8 sm:%s42_s24]  }
   0x6   :  { %v73_v6 = vld [vmem:[%s129_s0 + $0x1] ss:$8 sm:%s49_s27]   ;;  %s87_s3 = smov 32   ;;  %s88_s4 = smov 16  }
   0x7   :  { %s2_s5 = smov 3 }
   0x8   :  { %v3_v7 = vld [vmem:[%s129_s0] ss:$8 sm:%s2_s5]  }
   0x9   :  { %5 = vst.msk [vmem:[#allocation0] ss:$8 sm:$0x3] %vm4_vm0, %v3_v7  }
   0xa   :  { %16 = vrot.lane.b32.xlu0 %v68_v3, %s85_s25  ;;  %30 = vrot.lane.b32.xlu1 %v70_v4, %s86_s26 }
   0xd   :  { %44 = vrot.lane.b32.xlu2 %v72_v5, %s87_s3 }
  0x12   :  { %51 = vrot.lane.b32.xlu0 %v73_v6, %s88_s4 }
  0x5f   :  { %v38_v8 = vpop.permute.xlu2 %37  }
  0x67   :  { %v45_v9 = vpop.permute.xlu2 %44  }
  0x74   :  { %v10_v10 = vpop.permute.xlu0 %9   ;;  %v24_v11 = vpop.permute.xlu1 %23  }
  0x75   :  { %12 = vst.msk [vmem:[#allocation0] ss:$8 sm:$0x3] %vm11_vm1, %v10_v10  }
  0x7c   :  { %v17_v12 = vpop.permute.xlu0 %16   ;;  %v31_v13 = vpop.permute.xlu1 %30  }
  0x7d   :  { %19 = vst.msk [vmem:[#allocation0] ss:$8 sm:$0x3] %vm18_vm2, %v17_v12  }
  0x7e   :  { %26 = vst.msk [vmem:[#allocation0] ss:$8 sm:$0x3] %vm25_vm3, %v24_v11  }
  0x7f   :  { %33 = vst.msk [vmem:[#allocation0] ss:$8 sm:$0x3] %vm32_vm4, %v31_v13  }
  0x80   :  { %40 = vst.msk [vmem:[#allocation0] ss:$8 sm:$0x3] %vm39_vm5, %v38_v8  }
  0x81   :  { %47 = vst.msk [vmem:[#allocation0] ss:$8 sm:$0x3] %vm46_vm6, %v45_v9  }
  0x84   :  { %v52_v14 = vpop.permute.xlu0 %51  }
  0x85   :  { %54 = vst.msk [vmem:[#allocation0] ss:$8 sm:$0x3] %vm53_vm7, %v52_v14  }
  0x8c   :  { %v57_v15 = vld [vmem:[#allocation0] sm:$0x1]  ;;  %v62_v16 = vld [vmem:[#allocation0 + $0x8] sm:$0x1] }
  0x8d   :  { %60 = vst [vmem:[%s130_s1] sm:$0x1] %v57_v15 }
  0x8e   :  { %74 = vst [vmem:[%s130_s1 + $0x1] sm:$0x1] %v62_v16 }

// kernel: tile.38
= control target key start
LH: loop header
LB: loop body
LE: loop exit
PB: predicated region body
PF: predicated region fallthrough
CT: control target
= control target key end

     0   :  { %s22_s0 = inlined_call_operand.vmem [shape: f32[16], index: 0, kind: input, shape index: {}]   ;;  %s23_s1 = inlined_call_operand.vmem [shape: f32[8,16], index: 1, kind: output, shape index: {}]  }
   0x1   :  { %v4_v0 = vld [vmem:[%s22_s0] ss:$0 sm:$0xff] }
   0x2   :  { %5 = vst [vmem:[%s23_s1] sm:$0xff] %v4_v0 }

// kernel: tile.39
= control target key start
LH: loop header
LB: loop body
LE: loop exit
PB: predicated region body
PF: predicated region fallthrough
CT: control target
= control target key end

     0   :  { %s67_s10 = smov 112   ;;  %s68_s11 = smov 80   ;;  %vm3_vm0 = vcmask 130048   ;;  %vm9_vm1 = vcmask 1048448   ;;  %vm15_vm2 = vcmask 917248   ;;  %vm21_vm3 = vcmask 786048   ;;  %s111_s0 = inlined_call_operand.vmem [shape: f32[8,16], index: 0, kind: input, shape index: {}]   ;;  %s112_s1 = inlined_call_operand.vmem [shape: f32[1,128], index: 1, kind: output, shape index: {}]  }
   0x1   :  { %v53_v0 = vld [vmem:[%s111_s0 + $0x7] sm:$0x1]   ;;  %v55_v1 = vld [vmem:[%s111_s0 + $0x5] sm:$0x1]   ;;  %v57_v2 = vld [vmem:[%s111_s0 + $0x3] sm:$0x1]  }
   0x2   :  { %7 = vrot.lane.b32.xlu0 %v53_v0, %s67_s10  ;;  %19 = vrot.lane.b32.xlu1 %v55_v1, %s68_s11  ;;  %s69_s14 = smov 48   ;;  %v54_v3 = vld [vmem:[%s111_s0 + $0x6] sm:$0x1]   ;;  %v56_v4 = vld [vmem:[%s111_s0 + $0x4] sm:$0x1]   ;;  %s70_s21 = smov 96  }
   0x3   :  { %31 = vrot.lane.b32.xlu2 %v57_v2, %s69_s14  ;;  %v58_v5 = vld [vmem:[%s111_s0 + $0x2] sm:$0x1]   ;;  %s71_s22 = smov 64   ;;  %s72_s23 = smov 32   ;;  %v59_v6 = vld [vmem:[%s111_s0 + $0x1] sm:$0x1]  }
   0x4   :  { %s73_s26 = smov 16   ;;  %v2_v7 = vld [vmem:[%s111_s0] sm:$0x1]   ;;  %vm27_vm4 = vcmask 654848   ;;  %vm33_vm5 = vcmask 523648   ;;  %vm39_vm6 = vcmask 392448  }
   0x5   :  { %4 = vst.msk [vmem:[#allocation0] sm:$0x1] %vm3_vm0, %v2_v7   ;;  %vm45_vm7 = vcmask 261248  }
   0xa   :  { %13 = vrot.lane.b32.xlu0 %v54_v3, %s70_s21  ;;  %25 = vrot.lane.b32.xlu1 %v56_v4, %s71_s22 }
   0xb   :  { %37 = vrot.lane.b32.xlu2 %v58_v5, %s72_s23 }
  0x12   :  { %43 = vrot.lane.b32.xlu0 %v59_v6, %s73_s26 }
  0x5d   :  { %v32_v8 = vpop.permute.xlu2 %31  }
  0x65   :  { %v38_v9 = vpop.permute.xlu2 %37  }
  0x74   :  { %v8_v10 = vpop.permute.xlu0 %7   ;;  %v20_v11 = vpop.permute.xlu1 %19  }
  0x75   :  { %10 = vst.msk [vmem:[#allocation0] sm:$0x1] %vm9_vm1, %v8_v10  }
  0x7c   :  { %v14_v12 = vpop.permute.xlu0 %13   ;;  %v26_v13 = vpop.permute.xlu1 %25  }
  0x7d   :  { %16 = vst.msk [vmem:[#allocation0] sm:$0x1] %vm15_vm2, %v14_v12  }
  0x7e   :  { %22 = vst.msk [vmem:[#allocation0] sm:$0x1] %vm21_vm3, %v20_v11  }
  0x7f   :  { %28 = vst.msk [vmem:[#allocation0] sm:$0x1] %vm27_vm4, %v26_v13  }
  0x80   :  { %34 = vst.msk [vmem:[#allocation0] sm:$0x1] %vm33_vm5, %v32_v8  }
  0x81   :  { %40 = vst.msk [vmem:[#allocation0] sm:$0x1] %vm39_vm6, %v38_v9  }
  0x84   :  { %v44_v14 = vpop.permute.xlu0 %43  }
  0x85   :  { %46 = vst.msk [vmem:[#allocation0] sm:$0x1] %vm45_vm7, %v44_v14  }
  0x8c   :  { %v49_v15 = vld [vmem:[#allocation0] sm:$0x1] }
  0x8d   :  { %52 = vst [vmem:[%s112_s1] sm:$0x1] %v49_v15 }

// kernel: block_cbam_forward.1
= control target key start
LH: loop header
LB: loop body
LE: loop exit
PB: predicated region body
PF: predicated region fallthrough
CT: control target
= control target key end

     0   :  { %vm263_vm0 = vcmask 523264   ;;  %vm659_vm2 = vcmask 261120   ;;  %vm543_vm6 = vcmask 130048   ;;  %vm701_vm7 = vcmask 1041408   ;;  %s11243_s2 = inlined_call_operand.vmem [shape: bf16[192,256], index: 2, kind: input, shape index: {}]   ;;  %s11244_s0 = inlined_call_operand.vmem [shape: bf16[32,192], index: 0, kind: input, shape index: {}]   ;;  %s11245_s22 = inlined_call_operand.vmem [shape: f32[256,16], index: 22, kind: input, shape index: {}]   ;;  %s11246_s3 = inlined_call_operand.vmem [shape: f32[1,256], index: 3, kind: input, shape index: {}]   ;;  %s11247_s6 = inlined_call_operand.vmem [shape: f32[32,16], index: 6, kind: input, shape index: {}]   ;;  %s11248_s1 = inlined_call_operand.vmem [shape: f32[2,32], index: 1, kind: input, shape index: {}]   ;;  %s11249_s7 = inlined_call_operand.vmem [shape: f32[1,16], index: 7, kind: input, shape index: {}]   ;;  %s11250_s23 = inlined_call_operand.vmem [shape: f32[16,256], index: 23, kind: input, shape index: {}]   ;;  %s11251_s4 = inlined_call_operand.vmem [shape: f32[1,16], index: 4, kind: input, shape index: {}]   ;;  %s11252_s5 = inlined_call_operand.vmem [shape: f32[1,16], index: 5, kind: input, shape index: {}]   ;;  %s11253_s25 = inlined_call_operand.vmem [shape: f32[32,2], index: 25, kind: input, shape index: {}]   ;;  %s11254_s8 = inlined_call_operand.vmem [shape: bf16[3,256,256], index: 8, kind: input, shape index: {}]   ;;  %s11255_s9 = inlined_call_operand.vmem [shape: f32[1,256], index: 9, kind: input, shape index: {}]   ;;  %s11256_s10 = inlined_call_operand.vmem [shape: f32[1,16], index: 10, kind: input, shape index: {}]   ;;  %s11257_s11 = inlined_call_operand.vmem [shape: f32[1,16], index: 11, kind: input, shape index: {}]   ;;  %s11258_s12 = inlined_call_operand.vmem [shape: f32[16,1], index: 12, kind: input, shape index: {}]   ;;  %s11259_s24 = inlined_call_operand.vmem [shape: f32[2,32], index: 24, kind: input, shape index: {}]   ;;  %s11260_s13 = inlined_call_operand.<no memory space> [shape: f32[1,1], index: 13, kind: input, shape index: {}]   ;;  %s11261_s15 = inlined_call_operand.vmem [shape: f32[1,16], index: 15, kind: input, shape index: {}]   ;;  %s11262_s14 = inlined_call_operand.vmem [shape: f32[1,16], index: 14, kind: input, shape index: {}]   ;;  %s11263_s21 = inlined_call_operand.vmem [shape: f32[16,256,16], index: 21, kind: input, shape index: {}]   ;;  %s11264_s16 = inlined_call_operand.vmem [shape: f32[7,32,16], index: 16, kind: input, shape index: {}]   ;;  %s11265_s17 = inlined_call_operand.<no memory space> [shape: f32[1,1], index: 17, kind: input, shape index: {}]   ;;  %s11266_s26 = inlined_call_operand.vmem [shape: f32[16,256], index: 26, kind: input, shape index: {}]   ;;  %s11267_s18 = inlined_call_operand.vmem [shape: bf16[4,256,128], index: 18, kind: input, shape index: {}]   ;;  %s11268_s20 = inlined_call_operand.vmem [shape: bf16[4,16,32], index: 20, kind: input, shape index: {}]   ;;  %s11269_s19 = inlined_call_operand.vmem [shape: f32[1,128], index: 19, kind: input, shape index: {}]   ;;  %s11270_s27 = inlined_call_operand.vmem [shape: f32[16,128], index: 27, kind: output, shape index: {}]  }
   0x1   :  { %11289 = sst [smem:[#allocation34_spill]] %s11243_s2  ;;  %vm688_vm8 = vcmask 15360   ;;  %vm835_vm10 = vcmask 1040384   ;;  %vm936_vm11 = vcmask 1046528   ;;  %vm1490_vm12 = vcmask 1045504  }
   0x2   :  { %11290 = sst [smem:[#allocation35_spill]] %s11244_s0 }
   0x3   :  { %11291 = sst [smem:[#allocation36_spill]] %s11245_s22 }
   0x4   :  { %11292 = sst [smem:[#allocation37_spill]] %s11246_s3 }
   0x5   :  { %11293 = sst [smem:[#allocation38_spill]] %s11247_s6 }
   0x6   :  { %11294 = sst [smem:[#allocation39_spill]] %s11248_s1 }
   0x7   :  { %11295 = sst [smem:[#allocation40_spill]] %s11249_s7 }
   0x8   :  { %11296 = sst [smem:[#allocation41_spill]] %s11250_s23 }
   0x9   :  { %11297 = sst [smem:[#allocation42_spill]] %s11251_s4 }
   0xa   :  { %11298 = sst [smem:[#allocation43_spill]] %s11252_s5 }
   0xb   :  { %11299 = sst [smem:[#allocation44_spill]] %s11253_s25 }
   0xc   :  { %11300 = sst [smem:[#allocation45_spill]] %s11254_s8 }
   0xd   :  { %11301 = sst [smem:[#allocation46_spill]] %s11270_s27 }
   0xe   :  { %s11302_s22 = sld [smem:[#allocation34_spill]] }
   0xf   :  { %s11303_s4 = sld [smem:[#allocation35_spill]] }
  0x10   :  { %s11305_s0 = sld [smem:[#allocation37_spill]] }
  0x11   :  { %s11306_s28 = sld [smem:[#allocation38_spill]] }
  0x12   :  { %s11307_s6 = sld [smem:[#allocation39_spill]] }
  0x13   :  { %s11308_s5 = sld [smem:[#allocation41_spill]] }
  0x14   :  { %v5430_v0 = vld [vmem:[%s11302_s22 + $0x70] sm:$0xf]  ;;  %v6905_v1 = vld [vmem:[%s11302_s22 + $0x74] sm:$0xf0]  ;;  %v5422_v5 = vld [vmem:[%s11302_s22 + $0x60] sm:$0xf] }
  0x15   :  { %v5462_v2 = vld [vmem:[%s11302_s22 + $0xb0] sm:$0xf]  ;;  %v5431_v3 = vor.u32 %v6905_v1, %v5430_v0  ;;  %v6913_v4 = vld [vmem:[%s11302_s22 + $0xb4] sm:$0xf0]  ;;  %v6903_v6 = vld [vmem:[%s11302_s22 + $0x64] sm:$0xf0] }
  0x16   :  { %v5463_v7 = vor.u32 %v6913_v4, %v5462_v2  ;;  %v5454_v8 = vld [vmem:[%s11302_s22 + $0xa0] sm:$0xf]  ;;  %v6911_v9 = vld [vmem:[%s11302_s22 + $0xa4] sm:$0xf0]  ;;  %v5423_v10 = vor.u32 %v6903_v6, %v5422_v5  ;;  %v5414_v12 = vld [vmem:[%s11302_s22 + $0x50] sm:$0xf] }
  0x17   :  { %270 = vmatpush.bf16.msra.mxu0 %v5431_v3  ;;  %v5455_v11 = vor.u32 %v6911_v9, %v5454_v8  ;;  %v6901_v13 = vld [vmem:[%s11302_s22 + $0x54] sm:$0xf0]  ;;  %v5446_v14 = vld [vmem:[%s11302_s22 + $0x90] sm:$0xf]  ;;  %v5406_v18 = vld [vmem:[%s11302_s22 + $0x40] sm:$0xf] }
  0x18   :  { %293 = vmatpush.bf16.msra.mxu2 %v5463_v7  ;;  %v6909_v15 = vld [vmem:[%s11302_s22 + $0x94] sm:$0xf0]  ;;  %v5415_v16 = vor.u32 %v6901_v13, %v5414_v12  ;;  %v6899_v19 = vld [vmem:[%s11302_s22 + $0x44] sm:$0xf0]  ;;  %v5438_v20 = vld [vmem:[%s11302_s22 + $0x80] sm:$0xf] }
  0x19   :  { %v5447_v17 = vor.u32 %v6909_v15, %v5446_v14  ;;  %v6907_v21 = vld [vmem:[%s11302_s22 + $0x84] sm:$0xf0]  ;;  %v6904_v22 = vld [vmem:[%s11302_s22 + $0x74] sm:$0xf]  ;;  %v5432_v23 = vld [vmem:[%s11302_s22 + $0x78] sm:$0xf0]  ;;  %v5407_v26 = vor.u32 %v6899_v19, %v5406_v18 }
  0x1a   :  { %v6912_v24 = vld [vmem:[%s11302_s22 + $0xb4] sm:$0xf]  ;;  %v5464_v25 = vld [vmem:[%s11302_s22 + $0xb8] sm:$0xf0]  ;;  %v6886_v27 = vld [vmem:[%s11303_s4 + $0x4] sm:$0xf]  ;;  %v5439_v31 = vor.u32 %v6907_v21, %v5438_v20  ;;  %v5435_v35 = vor.u32 %v6904_v22, %v5432_v23 }
  0x1b   :  { %271 = vmatpush.bf16.msra.mxu0 %v5423_v10  ;;  %v5360_v28 = vld [vmem:[%s11303_s4 + $0x8] sm:$0xf0]  ;;  %v5398_v29 = vld [vmem:[%s11302_s22 + $0x30] sm:$0xf]  ;;  %v5467_v30 = vor.u32 %v6912_v24, %v5464_v25  ;;  %v6897_v32 = vld [vmem:[%s11302_s22 + $0x34] sm:$0xf0] }
  0x1c   :  { %294 = vmatpush.bf16.msra.mxu2 %v5455_v11  ;;  %v6910_v33 = vld [vmem:[%s11302_s22 + $0xa4] sm:$0xf]  ;;  %v5456_v34 = vld [vmem:[%s11302_s22 + $0xa8] sm:$0xf0]  ;;  %v6908_v39 = vld [vmem:[%s11302_s22 + $0x94] sm:$0xf]  ;;  %v5363_v40 = vor.u32 %v6886_v27, %v5360_v28  ;;  %v5399_v41 = vor.u32 %v6897_v32, %v5398_v29 }
  0x1d   :  { %331 = vmatpush.bf16.msra.mxu3 %v5467_v30  ;;  %v5459_v36 = vor.u32 %v6910_v33, %v5456_v34  ;;  %v6902_v37 = vld [vmem:[%s11302_s22 + $0x64] sm:$0xf]  ;;  %v5424_v38 = vld [vmem:[%s11302_s22 + $0x68] sm:$0xf0]  ;;  %v5448_v42 = vld [vmem:[%s11302_s22 + $0x98] sm:$0xf0] }
  0x1e   :  { %v5390_v43 = vld [vmem:[%s11302_s22 + $0x20] sm:$0xf]  ;;  %v6895_v44 = vld [vmem:[%s11302_s22 + $0x24] sm:$0xf0]  ;;  %v5427_v45 = vor.u32 %v6902_v37, %v5424_v38  ;;  %v6900_v46 = vld [vmem:[%s11302_s22 + $0x54] sm:$0xf]  ;;  %v5451_v47 = vor.u32 %v6908_v39, %v5448_v42 }
  0x1f   :  { %272 = vmatpush.bf16.msra.mxu0 %v5415_v16  ;;  %v5416_v48 = vld [vmem:[%s11302_s22 + $0x58] sm:$0xf0]  ;;  %v6906_v49 = vld [vmem:[%s11302_s22 + $0x84] sm:$0xf]  ;;  %v5440_v50 = vld [vmem:[%s11302_s22 + $0x88] sm:$0xf0]  ;;  %v5391_v51 = vor.u32 %v6895_v44, %v5390_v43 }
  0x20   :  { %295 = vmatpush.bf16.msra.mxu2 %v5447_v17  ;;  %v5382_v52 = vld [vmem:[%s11302_s22 + $0x10] sm:$0xf]  ;;  %v6893_v53 = vld [vmem:[%s11302_s22 + $0x14] sm:$0xf0]  ;;  %v5419_v54 = vor.u32 %v6900_v46, %v5416_v48  ;;  %v5443_v55 = vor.u32 %v6906_v49, %v5440_v50  ;;  %v6898_v56 = vld [vmem:[%s11302_s22 + $0x44] sm:$0xf] }
  0x21   :  { %332 = vmatpush.bf16.msra.mxu3 %v5459_v36  ;;  %v5408_v57 = vld [vmem:[%s11302_s22 + $0x48] sm:$0xf0]  ;;  %v5383_v58 = vor.u32 %v6893_v53, %v5382_v52  ;;  %v5374_v59 = vld [vmem:[%s11302_s22] sm:$0xf]  ;;  %v6891_v60 = vld [vmem:[%s11302_s22 + $0x4] sm:$0xf0] }
  0x22   :  { %v5411_v61 = vor.u32 %v6898_v56, %v5408_v57  ;;  %v6896_v62 = vld [vmem:[%s11302_s22 + $0x34] sm:$0xf]  ;;  %v5400_v63 = vld [vmem:[%s11302_s22 + $0x38] sm:$0xf0]  ;;  %v5375_v0 = vor.u32 %v6891_v60, %v5374_v59  ;;  %v5358_v1 = vld [vmem:[%s11303_s4] sm:$0xf] }
  0x23   :  { %273 = vmatpush.bf16.msra.mxu0 %v5407_v26  ;;  %v6887_v2 = vld [vmem:[%s11303_s4 + $0x4] sm:$0xf0]  ;;  %v6888_v3 = vld [vmem:[%s11303_s4 + $0x14] sm:$0xf]  ;;  %v5368_v4 = vld [vmem:[%s11303_s4 + $0x18] sm:$0xf0]  ;;  %v5403_v5 = vor.u32 %v6896_v62, %v5400_v63 }
  0x24   :  { %296 = vmatpush.bf16.msra.mxu2 %v5439_v31  ;;  %v5359_v6 = vor.u32 %v6887_v2, %v5358_v1  ;;  %v6894_v7 = vld [vmem:[%s11302_s22 + $0x24] sm:$0xf]  ;;  %v5392_v8 = vld [vmem:[%s11302_s22 + $0x28] sm:$0xf0]  ;;  %v5371_v9 = vor.u32 %v6888_v3, %v5368_v4  ;;  %v6892_v11 = vld [vmem:[%s11302_s22 + $0x14] sm:$0xf] }
  0x25   :  { %333 = vmatpush.bf16.msra.mxu3 %v5451_v47  ;;  %v5395_v10 = vor.u32 %v6894_v7, %v5392_v8  ;;  %v5384_v12 = vld [vmem:[%s11302_s22 + $0x18] sm:$0xf0]  ;;  %v6890_v14 = vld [vmem:[%s11302_s22 + $0x4] sm:$0xf]  ;;  %v5376_v15 = vld [vmem:[%s11302_s22 + $0x8] sm:$0xf0] }
  0x26   :  { %v5387_v13 = vor.u32 %v6892_v11, %v5384_v12  ;;  %v5379_v16 = vor.u32 %v6890_v14, %v5376_v15  ;;  %v5366_v17 = vld [vmem:[%s11303_s4 + $0x10] sm:$0xf]  ;;  %v6889_v18 = vld [vmem:[%s11303_s4 + $0x14] sm:$0xf0]  ;;  %s11304_s22 = sld [smem:[#allocation36_spill]] }
  0x27   :  { %5468 = vmatmul.msk.bf16.vlgmr.msra.gmra.mxu2 %vm263_vm0, %v5363_v40  ;;  %274 = vmatpush.bf16.msra.mxu0 %v5399_v41  ;;  %v5367_v19 = vor.u32 %v6889_v18, %v5366_v17  ;;  %v7475_v37 = vld [vmem:[%s11305_s0] sm:$0x3]  ;;  %s11309_s8 = sld [smem:[#allocation40_spill]] }
  0x28   :  { %308 = vmatpush.bf16.msrb.mxu2 %v5435_v35  ;;  %v121_v43 = vperm.slane %v7475_v37, 0  ;;  %s11310_s23 = sld [smem:[#allocation42_spill]] }
  0x29   :  { %334 = vmatpush.bf16.msra.mxu3 %v5443_v55  ;;  %v7115_v55 = vmov 32.0   ;;  %s11312_s29 = sld [smem:[#allocation44_spill]] }
  0x2a   :  { %7089 = vrcp.f32 %v7115_v55  ;;  %v651_v55 = vld [vmem:[%s11306_s28] sm:$0xff]  ;;  %s11313_s1 = sld [smem:[#allocation45_spill]] }
  0x2b   :  { %275 = vmatpush.bf16.msra.mxu0 %v5391_v51 }
  0x2c   :  { %309 = vmatpush.bf16.msrb.mxu2 %v5427_v45  ;;  %5470 = vmatmul.msk.bf16.vlgmr.msra.gmra.mxu3 %vm263_vm0, %v5363_v40  ;;  %v424_v20 = vld [vmem:[%s11304_s22 + $0x78] sm:$0xff]  ;;  %v423_v21 = vld [vmem:[%s11304_s22 + $0x70] sm:$0xff]  ;;  %v422_v22 = vld [vmem:[%s11304_s22 + $0x68] sm:$0xff] }
  0x2d   :  { %441 = vmatpush.msra.mxu1 %v424_v20  ;;  %v421_v23 = vld [vmem:[%s11304_s22 + $0x60] sm:$0xff]  ;;  %v420_v25 = vld [vmem:[%s11304_s22 + $0x58] sm:$0xff]  ;;  %v419_v26 = vld [vmem:[%s11304_s22 + $0x50] sm:$0xff] }
  0x2e   :  { %v418_v27 = vld [vmem:[%s11304_s22 + $0x48] sm:$0xff]  ;;  %v417_v28 = vld [vmem:[%s11304_s22 + $0x40] sm:$0xff]  ;;  %v416_v31 = vld [vmem:[%s11304_s22 + $0x38] sm:$0xff] }
  0x2f   :  { %276 = vmatpush.bf16.msra.mxu0 %v5383_v58  ;;  %442 = vmatpush.msra.mxu1 %v423_v21  ;;  %v415_v32 = vld [vmem:[%s11304_s22 + $0x30] sm:$0xff]  ;;  %v414_v33 = vld [vmem:[%s11304_s22 + $0x28] sm:$0xff]  ;;  %v413_v34 = vld [vmem:[%s11304_s22 + $0x20] sm:$0xff] }
  0x30   :  { %310 = vmatpush.bf16.msrb.mxu2 %v5419_v54  ;;  %v440_v35 = vld [vmem:[%s11304_s22 + $0xf8] sm:$0xff]  ;;  %v439_v40 = vld [vmem:[%s11304_s22 + $0xf0] sm:$0xff]  ;;  %v438_v42 = vld [vmem:[%s11304_s22 + $0xe8] sm:$0xff]  ;;  %v7519_v63 = vpop.eup %7089 }
  0x31   :  { %443 = vmatpush.msra.mxu1 %v422_v22  ;;  %461 = vmatpush.msrb.mxu3 %v440_v35  ;;  %v412_v39 = vld [vmem:[%s11304_s22 + $0x18] sm:$0xff]  ;;  %v411_v41 = vld [vmem:[%s11304_s22 + $0x10] sm:$0xff]  ;;  %v410_v44 = vld [vmem:[%s11304_s22 + $0x8] sm:$0xff]  ;;  %v373_v7 = vmul.f32 32.0, %v7519_v63  ;;  %vm377_vm1 = vweird.f32 %v7519_v63 }
  0x32   :  { %v437_v45 = vld [vmem:[%s11304_s22 + $0xe0] sm:$0xff]  ;;  %v436_v48 = vld [vmem:[%s11304_s22 + $0xd8] sm:$0xff]  ;;  %v435_v52 = vld [vmem:[%s11304_s22 + $0xd0] sm:$0xff] }
  0x33   :  { %277 = vmatpush.bf16.msra.mxu0 %v5375_v0  ;;  %444 = vmatpush.msra.mxu1 %v421_v23  ;;  %v409_v47 = vld [vmem:[%s11304_s22] sm:$0xff]  ;;  %v434_v56 = vld [vmem:[%s11304_s22 + $0xc8] sm:$0xff]  ;;  %v432_v62 = vld [vmem:[%s11304_s22 + $0xb8] sm:$0xff] }
  0x34   :  { %311 = vmatpush.bf16.msrb.mxu2 %v5411_v61  ;;  %462 = vmatpush.msrb.mxu3 %v439_v40  ;;  %v433_v60 = vld [vmem:[%s11304_s22 + $0xc0] sm:$0xff]  ;;  %v431_v4 = vld [vmem:[%s11304_s22 + $0xb0] sm:$0xff]  ;;  %v430_v8 = vld [vmem:[%s11304_s22 + $0xa8] sm:$0xff] }
  0x35   :  { %445 = vmatpush.msra.mxu1 %v420_v25  ;;  %v428_v14 = vld [vmem:[%s11304_s22 + $0x98] sm:$0xff] }
  0x36   :  { %278 = vmatmul.bf16.vlgmr.msra.gmra.mxu0 %v5359_v6  ;;  %463 = vmatpush.msrb.mxu3 %v438_v42 }
  0x37   :  { %5469 = vmatmul.msk.bf16.gmra.mxu2 %vm263_vm0, %v5371_v9  ;;  %481 = vmatpush.msrb.mxu0 %v424_v20  ;;  %v427_v20 = vld [vmem:[%s11304_s22 + $0x90] sm:$0xff] }
  0x38   :  { %312 = vmatpush.bf16.msrb.mxu2 %v5403_v5  ;;  %446 = vmatpush.msra.mxu1 %v419_v26 }
  0x39   :  { %482 = vmatpush.msrb.mxu0 %v423_v21  ;;  %464 = vmatpush.msrb.mxu3 %v437_v45 }
  0x3a   :  { %447 = vmatpush.msra.mxu1 %v418_v27 }
  0x3b   :  { %483 = vmatpush.msrb.mxu0 %v422_v22  ;;  %465 = vmatpush.msrb.mxu3 %v436_v48 }
  0x3c   :  { %313 = vmatpush.bf16.msrb.mxu2 %v5395_v10  ;;  %5471 = vmatmul.msk.bf16.gmra.mxu3 %vm263_vm0, %v5371_v9  ;;  %vm2227_vm0 = vcmask 7168  }
  0x3d   :  { %484 = vmatpush.msrb.mxu0 %v421_v23  ;;  %448 = vmatpush.msra.mxu1 %v417_v28 }
  0x3e   :  { %466 = vmatpush.msrb.mxu3 %v435_v52 }
  0x3f   :  { %485 = vmatpush.msrb.mxu0 %v420_v25  ;;  %449 = vmatpush.msra.mxu1 %v416_v31  ;;  %v426_v25 = vld [vmem:[%s11304_s22 + $0x88] sm:$0xff] }
  0x40   :  { %314 = vmatpush.bf16.msrb.mxu2 %v5387_v13  ;;  %467 = vmatpush.msrb.mxu3 %v434_v56  ;;  %v429_v13 = vld [vmem:[%s11304_s22 + $0xa0] sm:$0xff] }
  0x41   :  { %486 = vmatpush.msrb.mxu0 %v419_v26  ;;  %450 = vmatpush.msra.mxu1 %v415_v32 }
  0x42   :  { %468 = vmatpush.msrb.mxu3 %v433_v60 }
  0x43   :  { %487 = vmatpush.msrb.mxu0 %v418_v27  ;;  %451 = vmatpush.msra.mxu1 %v414_v33 }
  0x44   :  { %315 = vmatpush.bf16.msrb.mxu2 %v5379_v16  ;;  %469 = vmatpush.msrb.mxu3 %v432_v62 }
  0x45   :  { %488 = vmatpush.msrb.mxu0 %v417_v28  ;;  %452 = vmatpush.msra.mxu1 %v413_v34  ;;  %v122_v28 = vperm.slane %v7475_v37, 1 }
  0x46   :  { %283 = vmatmul.bf16.gmra.mxu0 %v5367_v19  ;;  %470 = vmatpush.msrb.mxu3 %v431_v4 }
  0x47   :  { %316 = vmatmul.bf16.vlgmr.msrb.gmra.mxu2 %v5359_v6  ;;  %489 = vmatpush.msrb.mxu0 %v416_v31 }
  0x48   :  { %501 = vmatpush.msra.mxu2 %v440_v35  ;;  %453 = vmatpush.msra.mxu1 %v412_v39 }
  0x49   :  { %490 = vmatpush.msrb.mxu0 %v415_v32  ;;  %471 = vmatpush.msrb.mxu3 %v430_v8 }
  0x4a   :  { %502 = vmatpush.msra.mxu2 %v439_v40  ;;  %454 = vmatpush.msra.mxu1 %v411_v41 }
  0x4b   :  { %491 = vmatpush.msrb.mxu0 %v414_v33  ;;  %472 = vmatpush.msrb.mxu3 %v429_v13 }
  0x4c   :  { %503 = vmatpush.msra.mxu2 %v438_v42  ;;  %455 = vmatpush.msra.mxu1 %v410_v44 }
  0x4d   :  { %492 = vmatpush.msrb.mxu0 %v413_v34  ;;  %473 = vmatpush.msrb.mxu3 %v428_v14 }
  0x4e   :  { %504 = vmatpush.msra.mxu2 %v437_v45  ;;  %456 = vmatpush.msra.mxu1 %v409_v47  ;;  %v653_v45 = vld [vmem:[%s11306_s28 + $0x10] sm:$0xff] }
  0x4f   :  { %493 = vmatpush.msrb.mxu0 %v412_v39  ;;  %474 = vmatpush.msrb.mxu3 %v427_v20 }
  0x50   :  { %505 = vmatpush.msra.mxu2 %v436_v48 }
  0x51   :  { %494 = vmatpush.msrb.mxu0 %v411_v41  ;;  %475 = vmatpush.msrb.mxu3 %v426_v25 }
  0x52   :  { %506 = vmatpush.msra.mxu2 %v435_v52 }
  0x53   :  { %495 = vmatpush.msrb.mxu0 %v410_v44  ;;  %v654_v44 = vld [vmem:[%s11306_s28 + $0x18] sm:$0xff] }
  0x54   :  { %507 = vmatpush.msra.mxu2 %v434_v56 }
  0x55   :  { %496 = vmatpush.msrb.mxu0 %v409_v47 }
  0x56   :  { %508 = vmatpush.msra.mxu2 %v433_v60 }
  0x57   :  { %321 = vmatmul.bf16.gmra.mxu2 %v5367_v19  ;;  %v374_v19 = vsub.f32 1.0, %v373_v7  ;;  %675 = vmatpush.msra.mxu0 %v654_v44 }
  0x58   :  { %509 = vmatpush.msra.mxu2 %v432_v62 }
  0x59   :  { %676 = vmatpush.msra.mxu0 %v653_v45 }
  0x5a   :  { %510 = vmatpush.msra.mxu2 %v431_v4 }
  0x5c   :  { %511 = vmatpush.msra.mxu2 %v430_v8 }
  0x5e   :  { %512 = vmatpush.msra.mxu2 %v429_v13 }
  0x60   :  { %513 = vmatpush.msra.mxu2 %v428_v14  ;;  %v650_v14 = vld [vmem:[%s11307_s6] sm:$0x3] }
  0x62   :  { %514 = vmatpush.msra.mxu2 %v427_v20 }
  0x64   :  { %515 = vmatpush.msra.mxu2 %v426_v25 }
  0xaa   :  { %v7443_v24 = vpop.f32.mrf.mxu2 }
  0xaf   :  { %v7509_v59 = vpop.f32.mrf.mxu3 }
  0xb2   :  { %v300_v29 = vpop.f32.mrf.mxu2 }
  0xb3   :  { %v279_v30 = vpop.f32.mrf.mxu0 }
  0xb4   :  { %v280_v49 = vadd.f32 %v279_v30, %v121_v43  ;;  %v425_v30 = vld [vmem:[%s11304_s22 + $0x80] sm:$0xff] }
  0xb5   :  { %476 = vmatpush.msrb.mxu3 %v425_v30  ;;  %516 = vmatpush.msra.mxu2 %v425_v30 }
  0xb6   :  { %v299_v57 = vadd.f32 %v7443_v24, %v280_v49 }
  0xb7   :  { %v338_v18 = vpop.f32.mrf.mxu3 }
  0xb8   :  { %v7521_v0 = vmax.f32 %v299_v57, 0.0 }
  0xba   :  { %v303_v36 = vpop.f32.mrf.mxu2  ;;  %v381_v9 = vmul.f32 %v7521_v0, %v7521_v0 }
  0xbb   :  { %v281_v38 = vpop.f32.mrf.mxu0 }
  0xbc   :  { %v282_v46 = vadd.f32 %v281_v38, %v121_v43 }
  0xbe   :  { %v301_v53 = vadd.f32 %v300_v29, %v282_v46  ;;  %v375_v29 = vmul.f32 %v7519_v63, %v374_v19 }
  0xbf   :  { %v341_v37 = vpop.f32.mrf.mxu3 }
  0xc0   :  { %v7514_v61 = vmax.f32 %v301_v53, 0.0  ;;  %v376_v38 = vadd.f32 %v7519_v63, %v375_v29 }
  0xc2   :  { %v305_v50 = vpop.f32.mrf.mxu2  ;;  %v383_v5 = vmul.f32 %v7514_v61, %v7514_v61  ;;  %v354_v10 = vadd.f32 %v7514_v61, %v7521_v0 }
  0xc3   :  { %v284_v51 = vpop.f32.mrf.mxu0 }
  0xc4   :  { %v285_v54 = vadd.f32 %v284_v51, %v121_v43  ;;  %v389_v15 = vadd.f32 %v383_v5, %v381_v9  ;;  %v652_v51 = vld [vmem:[%s11306_s28 + $0x8] sm:$0xff]  ;;  %s11311_s28 = sld [smem:[#allocation43_spill]] }
  0xc5   :  { %677 = vmatpush.msra.mxu0 %v652_v51 }
  0xc6   :  { %v304_v58 = vadd.f32 %v303_v36, %v285_v54 }
  0xc7   :  { %678 = vmatpush.msra.mxu0 %v651_v55 }
  0xc8   :  { %v7523_v1 = vmax.f32 %v304_v58, 0.0 }
  0xca   :  { %v317_v2 = vpop.f32.mrf.mxu2  ;;  %v385_v11 = vmul.f32 %v7523_v1, %v7523_v1  ;;  %v355_v16 = vadd.f32 %v354_v10, %v7523_v1 }
  0xcb   :  { %v286_v3 = vpop.f32.mrf.mxu0  ;;  %v318_v36 = vadd.f32 %v317_v2, %v122_v28 }
  0xcc   :  { %v287_v6 = vadd.f32 %v286_v3, %v121_v43  ;;  %v390_v21 = vadd.f32 %v389_v15, %v385_v11  ;;  %v343_v3 = vpop.f32.mrf.mxu3 }
  0xcd   :  { %v337_v48 = vadd.f32 %v7509_v59, %v318_v36 }
  0xce   :  { %v306_v12 = vadd.f32 %v305_v50, %v287_v6  ;;  %v7573_v50 = vsel %vm377_vm1, %v7519_v63, %v376_v38 }
  0xcf   :  { %v7584_v58 = vmax.f32 %v337_v48, 0.0 }
  0xd0   :  { %v7547_v17 = vmax.f32 %v306_v12, 0.0 }
  0xd1   :  { %v382_v4 = vmul.f32 %v7584_v58, %v7584_v58 }
  0xd2   :  { %v356_v22 = vadd.f32 %v355_v16, %v7547_v17  ;;  %v387_v23 = vmul.f32 %v7547_v17, %v7547_v17  ;;  %v319_v24 = vpop.f32.mrf.mxu2 }
  0xd3   :  { %v320_v33 = vadd.f32 %v319_v24, %v122_v28 }
  0xd4   :  { %v391_v26 = vadd.f32 %v390_v21, %v387_v23  ;;  %v357_v27 = vrot.slane %v356_v22, 4 }
  0xd5   :  { %v339_v42 = vadd.f32 %v338_v18, %v320_v33  ;;  %v539_v33 = vld [vmem:[%s11308_s5] sm:$0xff] }
  0xd6   :  { %v358_v31 = vadd.f32 %v357_v27, %v356_v22  ;;  %v392_v32 = vrot.slane %v391_v26, 4 }
  0xd7   :  { %v7578_v54 = vmax.f32 %v339_v42, 0.0 }
  0xd8   :  { %v359_v34 = vrot.slane %v358_v31, 2  ;;  %v393_v35 = vadd.f32 %v392_v32, %v391_v26  ;;  %v542_v32 = vld [vmem:[%s11308_s5 + $0x18] sm:$0xff] }
  0xd9   :  { %v384_v63 = vmul.f32 %v7578_v54, %v7578_v54  ;;  %v363_v5 = vadd.f32 %v7578_v54, %v7584_v58  ;;  %581 = vmatpush.msra.mxu3 %v542_v32 }
  0xda   :  { %v322_v39 = vpop.f32.mrf.mxu2  ;;  %v360_v40 = vadd.f32 %v359_v34, %v358_v31  ;;  %v394_v41 = vrot.slane %v393_v35, 2  ;;  %v541_v31 = vld [vmem:[%s11308_s5 + $0x10] sm:$0xff]  ;;  %v540_v34 = vld [vmem:[%s11308_s5 + $0x8] sm:$0xff] }
  0xdb   :  { %v323_v43 = vadd.f32 %v322_v39, %v122_v28  ;;  %v398_v8 = vadd.f32 %v384_v63, %v382_v4  ;;  %561 = vmatpush.msrb.mxu1 %v541_v31  ;;  %760 = vmatpush.msrb.mxu2 %v541_v31  ;;  %v536_v63 = vld [vmem:[%s11311_s28] sm:$0x1]  ;;  %v685_v4 = vld [vmem:[%s11312_s29 + $0x8] sm:$0xff] }
  0xdc   :  { %v361_v46 = vrot.slane %v360_v40, 1  ;;  %v395_v47 = vadd.f32 %v394_v41, %v393_v35  ;;  %582 = vmatpush.msra.mxu3 %v540_v34 }
  0xdd   :  { %v342_v49 = vadd.f32 %v341_v37, %v323_v43  ;;  %562 = vmatpush.msrb.mxu1 %v539_v33  ;;  %761 = vmatpush.msrb.mxu2 %v539_v33 }
  0xde   :  { %v362_v52 = vadd.f32 %v361_v46, %v360_v40  ;;  %v396_v53 = vrot.slane %v395_v47, 1 }
  0xdf   :  { %v7586_v59 = vmax.f32 %v342_v49, 0.0 }
  0xe0   :  { %v379_v56 = vmul.f32 %v7573_v50, %v362_v52  ;;  %v397_v57 = vadd.f32 %v396_v53, %v395_v47  ;;  %v7084_v47 = vld [vmem:[%s11309_s8] ss:$0 sm:$0xff] }
  0xe1   :  { %v386_v6 = vmul.f32 %v7586_v59, %v7586_v59  ;;  %v364_v9 = vadd.f32 %v363_v5, %v7586_v59  ;;  %v523_v53 = vld [vmem:[%s11310_s23] sm:$0x1]  ;;  %v686_v5 = vld [vmem:[%s11312_s29 + $0x10] sm:$0xff] }
  0xe2   :  { %v324_v60 = vpop.f32.mrf.mxu2  ;;  %457 = vmatmul.f32.vlgmr.msra.gmra.mxu1 %v379_v56  ;;  %v407_v62 = vmul.f32 %v397_v57, %v7573_v50 }
  0xe3   :  { %v325_v2 = vadd.f32 %v324_v60, %v122_v28  ;;  %v399_v11 = vadd.f32 %v398_v8, %v386_v6  ;;  %614 = vmatpush.msra.mxu1 %v541_v31  ;;  %v687_v6 = vld [vmem:[%s11312_s29 + $0x18] sm:$0xff]  ;;  %v6975_v31 = vld [vmem:[%s11313_s1 + $0x1e4] sm:$0xf0] }
  0xe4   :  { %497 = vmatmul.f32.vlgmr.msrb.gmra.mxu0 %v407_v62 }
  0xe5   :  { %v344_v7 = vadd.f32 %v343_v3, %v325_v2  ;;  %615 = vmatpush.msra.mxu1 %v539_v33  ;;  %v684_v3 = vld [vmem:[%s11312_s29] sm:$0xff]  ;;  %v5574_v33 = vld [vmem:[%s11313_s1 + $0x168] sm:$0xf0] }
  0xe7   :  { %v7598_v10 = vmax.f32 %v344_v7, 0.0 }
  0xe9   :  { %v365_v12 = vadd.f32 %v364_v9, %v7598_v10  ;;  %v388_v13 = vmul.f32 %v7598_v10, %v7598_v10  ;;  %v5580_v9 = vld [vmem:[%s11313_s1 + $0x170] sm:$0xf] }
  0xeb   :  { %v366_v15 = vrot.slane %v365_v12, 4  ;;  %v400_v16 = vadd.f32 %v399_v11, %v388_v13  ;;  %v6961_v11 = vld [vmem:[%s11313_s1 + $0x174] sm:$0xf0]  ;;  %v5644_v13 = vld [vmem:[%s11313_s1 + $0x1f0] sm:$0xf] }
  0xec   :  { %5476 = vmatmul.msk.f32.vlgmr.msra.gmra.mxu0 %vm659_vm2, %v650_v14  ;;  %v6977_v14 = vld [vmem:[%s11313_s1 + $0x1f4] sm:$0xf0] }
  0xed   :  { %v401_v18 = vrot.slane %v400_v16, 4  ;;  %v367_v19 = vadd.f32 %v366_v15, %v365_v12  ;;  %v5581_v12 = vor.u32 %v6961_v11, %v5580_v9  ;;  %v6960_v15 = vld [vmem:[%s11313_s1 + $0x174] sm:$0xf]  ;;  %v5548_v11 = vld [vmem:[%s11313_s1 + $0x130] sm:$0xf] }
  0xee   :  { %v6945_v9 = vld [vmem:[%s11313_s1 + $0xf4] sm:$0xf0] }
  0xef   :  { %v402_v20 = vadd.f32 %v401_v18, %v400_v16  ;;  %v368_v21 = vrot.slane %v367_v19, 2  ;;  %v5645_v16 = vor.u32 %v6977_v14, %v5644_v13  ;;  %v5582_v18 = vld [vmem:[%s11313_s1 + $0x178] sm:$0xf0]  ;;  %1162 = vmatpush.bf16.msrb.mxu0 %v5581_v12  ;;  %v6953_v12 = vld [vmem:[%s11313_s1 + $0x134] sm:$0xf0] }
  0xf0   :  { %v5612_v13 = vld [vmem:[%s11313_s1 + $0x1b0] sm:$0xf]  ;;  %v5549_v14 = vor.u32 %v6953_v12, %v5548_v11 }
  0xf1   :  { %v369_v22 = vadd.f32 %v368_v21, %v367_v19  ;;  %v403_v23 = vrot.slane %v402_v20, 2  ;;  %v6976_v19 = vld [vmem:[%s11313_s1 + $0x1f4] sm:$0xf]  ;;  %v5585_v21 = vor.u32 %v6960_v15, %v5582_v18  ;;  %v6969_v15 = vld [vmem:[%s11313_s1 + $0x1b4] sm:$0xf0] }
  0xf2   :  { %v5550_v18 = vld [vmem:[%s11313_s1 + $0x138] sm:$0xf0] }
  0xf3   :  { %v370_v24 = vrot.slane %v369_v22, 1  ;;  %v404_v25 = vadd.f32 %v403_v23, %v402_v20  ;;  %v5646_v20 = vld [vmem:[%s11313_s1 + $0x1f8] sm:$0xf0] }
  0xf5   :  { %v371_v26 = vadd.f32 %v370_v24, %v369_v22  ;;  %v405_v27 = vrot.slane %v404_v25, 1  ;;  %v5649_v22 = vor.u32 %v6976_v19, %v5646_v20  ;;  %v5613_v20 = vor.u32 %v6969_v15, %v5612_v13  ;;  %v5708_v13 = vld [vmem:[%s11313_s1 + $0x70] sm:$0xf] }
  0xf7   :  { %v380_v28 = vmul.f32 %v7573_v50, %v371_v26  ;;  %v406_v29 = vadd.f32 %v405_v27, %v404_v25  ;;  %v5572_v27 = vld [vmem:[%s11313_s1 + $0x160] sm:$0xf] }
  0xf9   :  { %477 = vmatmul.f32.vlgmr.msrb.gmra.mxu3 %v380_v28  ;;  %v408_v30 = vmul.f32 %v406_v29, %v7573_v50  ;;  %v6959_v28 = vld [vmem:[%s11313_s1 + $0x164] sm:$0xf0]  ;;  %v5636_v29 = vld [vmem:[%s11313_s1 + $0x1e0] sm:$0xf] }
  0xfa   :  { %634 = vmatpush.msrb.mxu3 %v542_v32 }
  0xfb   :  { %517 = vmatmul.f32.vlgmr.msra.gmra.mxu2 %v408_v30  ;;  %v5573_v30 = vor.u32 %v6959_v28, %v5572_v27  ;;  %v6951_v27 = vld [vmem:[%s11313_s1 + $0x124] sm:$0xf0]  ;;  %v5604_v28 = vld [vmem:[%s11313_s1 + $0x1a0] sm:$0xf] }
  0xfc   :  { %635 = vmatpush.msrb.mxu3 %v540_v34  ;;  %1200 = vmatpush.bf16.msra.mxu2 %v5585_v21 }
  0xfd   :  { %1163 = vmatpush.bf16.msrb.mxu0 %v5573_v30  ;;  %v6967_v30 = vld [vmem:[%s11313_s1 + $0x1a4] sm:$0xf0] }
 0x15f   :  { %v458_v35 = vpop.f32.mrf.mxu1 }
 0x161   :  { %v498_v37 = vpop.f32.mrf.mxu0 }
 0x169   :  { %v680_v48 = vpop.f32.mrf.mxu0 }
 0x16a   :  { %v681_v52 = vadd.f32 %v7084_v47, %v680_v48  ;;  %v6972_v48 = vld [vmem:[%s11313_s1 + $0x1d4] sm:$0xf] }
 0x16c   :  { %v683_v57 = vmax.f32 %v681_v52, 0.0  ;;  %v812_v52 = vlaneseq }
 0x16e   :  { %vm7759_vm9 = vcmp.lt.s32.totalorder %v812_v52, 256  ;;  %v5524_v52 = vld [vmem:[%s11313_s1 + $0x100] sm:$0xf] }
 0x17c   :  { %v478_v36 = vpop.f32.mrf.mxu3 }
 0x17d   :  { %v479_v38 = vadd.f32 %v478_v36, %v458_v35  ;;  %v6974_v36 = vld [vmem:[%s11313_s1 + $0x1e4] sm:$0xf] }
 0x17e   :  { %v518_v39 = vpop.f32.mrf.mxu2 }
 0x17f   :  { %v521_v40 = vmul.f32 %v479_v38, %v479_v38  ;;  %v519_v41 = vadd.f32 %v518_v39, %v498_v37  ;;  %v5564_v39 = vld [vmem:[%s11313_s1 + $0x150] sm:$0xf] }
 0x181   :  { %v522_v42 = vsub.f32 %v519_v41, %v521_v40  ;;  %v6957_v40 = vld [vmem:[%s11313_s1 + $0x154] sm:$0xf0]  ;;  %v5628_v41 = vld [vmem:[%s11313_s1 + $0x1d0] sm:$0xf] }
 0x183   :  { %v524_v43 = vadd.f32 1e-05, %v522_v42  ;;  %v5565_v42 = vor.u32 %v6957_v40, %v5564_v39  ;;  %v6949_v39 = vld [vmem:[%s11313_s1 + $0x114] sm:$0xf0]  ;;  %v5596_v40 = vld [vmem:[%s11313_s1 + $0x190] sm:$0xf] }
 0x185   :  { %7091 = vrsqrt.f32 %v524_v43  ;;  %vm531_vm4 = vweird.f32 %v524_v43  ;;  %1164 = vmatpush.bf16.msrb.mxu0 %v5565_v42  ;;  %v6965_v42 = vld [vmem:[%s11313_s1 + $0x194] sm:$0xf0] }
 0x18b   :  { %v7092_v44 = vpop.eup %7091 }
 0x18c   :  { %v526_v45 = vmul.f32 %v7092_v44, %v524_v43  ;;  %vm532_vm3 = vweird.f32 %v7092_v44  ;;  %v6973_v43 = vld [vmem:[%s11313_s1 + $0x1d4] sm:$0xf0] }
 0x18d   :  { %vm533_vm5 = vmor %vm531_vm4, %vm532_vm3 }
 0x18e   :  { %v527_v46 = vmul.f32 %v7092_v44, %v526_v45  ;;  %v5566_v45 = vld [vmem:[%s11313_s1 + $0x158] sm:$0xf0] }
 0x190   :  { %v528_v49 = vmul.f32 0.5, %v527_v46  ;;  %v5629_v46 = vor.u32 %v6973_v43, %v5628_v41  ;;  %v6948_v43 = vld [vmem:[%s11313_s1 + $0x114] sm:$0xf] }
 0x192   :  { %v529_v51 = vsub.f32 1.5, %v528_v49  ;;  %v5630_v49 = vld [vmem:[%s11313_s1 + $0x1d8] sm:$0xf0] }
 0x194   :  { %v530_v55 = vmul.f32 %v7092_v44, %v529_v51  ;;  %v5633_v51 = vor.u32 %v6972_v48, %v5630_v49  ;;  %v5598_v48 = vld [vmem:[%s11313_s1 + $0x198] sm:$0xf0] }
 0x196   :  { %v534_v56 = vsel %vm533_vm5, %v7092_v44, %v530_v55  ;;  %v6956_v44 = vld [vmem:[%s11313_s1 + $0x154] sm:$0xf]  ;;  %v6955_v55 = vld [vmem:[%s11313_s1 + $0x144] sm:$0xf0] }
 0x197   :  { %v535_v60 = vmul.f32 %v534_v56, %v523_v53  ;;  %v5569_v47 = vor.u32 %v6956_v44, %v5566_v45  ;;  %v5556_v53 = vld [vmem:[%s11313_s1 + $0x140] sm:$0xf]  ;;  %v5534_v44 = vld [vmem:[%s11313_s1 + $0x118] sm:$0xf0]  ;;  %v5597_v45 = vor.u32 %v6965_v42, %v5596_v40  ;;  %v6942_v40 = vld [vmem:[%s11313_s1 + $0xe4] sm:$0xf] }
 0x198   :  { %v5620_v56 = vld [vmem:[%s11313_s1 + $0x1c0] sm:$0xf]  ;;  %v5692_v42 = vld [vmem:[%s11313_s1 + $0x50] sm:$0xf] }
 0x199   :  { %5472 = vmatmul.msk.f32.vlgmr.msrb.gmra.mxu1 %vm543_vm6, %v535_v60  ;;  %5473 = vmatmul.msk.f32.vlgmr.msra.gmra.mxu3 %vm543_vm6, %v535_v60  ;;  %v537_v62 = vmul.f32 %v535_v60, %v479_v38  ;;  %v5638_v38 = vld [vmem:[%s11313_s1 + $0x1e8] sm:$0xf0]  ;;  %v6971_v60 = vld [vmem:[%s11313_s1 + $0x1c4] sm:$0xf0] }
 0x19a   :  { %5477 = vmatpush.msk.msrb.mxu1 %vm701_vm7, %v683_v57  ;;  %789 = vmatpush.msra.mxu3 %v542_v32  ;;  %v6958_v32 = vld [vmem:[%s11313_s1 + $0x164] sm:$0xf]  ;;  %v5641_v37 = vor.u32 %v6974_v36, %v5638_v38  ;;  %v5557_v57 = vor.u32 %v6955_v55, %v5556_v53  ;;  %v5606_v36 = vld [vmem:[%s11313_s1 + $0x1a8] sm:$0xf0]  ;;  %v6947_v53 = vld [vmem:[%s11313_s1 + $0x104] sm:$0xf0] }
 0x19b   :  { %v538_v2 = vsub.f32 %v536_v63, %v537_v62  ;;  %v5577_v35 = vor.u32 %v6958_v32, %v5574_v33  ;;  %v6954_v62 = vld [vmem:[%s11313_s1 + $0x144] sm:$0xf]  ;;  %v5558_v63 = vld [vmem:[%s11313_s1 + $0x148] sm:$0xf0]  ;;  %v5605_v33 = vor.u32 %v6967_v30, %v5604_v28  ;;  %v5588_v55 = vld [vmem:[%s11313_s1 + $0x180] sm:$0xf] }
 0x19c   :  { %790 = vmatpush.msra.mxu3 %v540_v34  ;;  %v5637_v34 = vor.u32 %v6975_v31, %v5636_v29  ;;  %1165 = vmatpush.bf16.msrb.mxu0 %v5557_v57  ;;  %v6950_v31 = vld [vmem:[%s11313_s1 + $0x124] sm:$0xf]  ;;  %v5542_v32 = vld [vmem:[%s11313_s1 + $0x128] sm:$0xf0]  ;;  %v6963_v57 = vld [vmem:[%s11313_s1 + $0x184] sm:$0xf0] }
 0x19d   :  { %1201 = vmatpush.bf16.msra.mxu2 %v5577_v35  ;;  %v6966_v35 = vld [vmem:[%s11313_s1 + $0x1a4] sm:$0xf] }
 0x19e   :  { %v5609_v38 = vor.u32 %v6966_v35, %v5606_v36  ;;  %v5702_v35 = vld [vmem:[%s11313_s1 + $0x68] sm:$0xf0] }
 0x1a0   :  { %1166 = vmatpush.bf16.msrb.mxu0 %v5549_v14  ;;  %v6929_v14 = vld [vmem:[%s11313_s1 + $0x74] sm:$0xf0] }
 0x1a1   :  { %5474 = vmatmul.msk.f32.vlgmr.msra.gmra.mxu1 %vm543_vm6, %v538_v2  ;;  %5475 = vmatmul.msk.f32.vlgmr.msrb.gmra.mxu3 %vm543_vm6, %v538_v2  ;;  %v5621_v2 = vor.u32 %v6971_v60, %v5620_v56  ;;  %v5525_v56 = vor.u32 %v6947_v53, %v5524_v52  ;;  %v6946_v60 = vld [vmem:[%s11313_s1 + $0x104] sm:$0xf]  ;;  %v5709_v15 = vor.u32 %v6929_v14, %v5708_v13  ;;  %v6924_v52 = vld [vmem:[%s11313_s1 + $0x54] sm:$0xf]  ;;  %v5694_v53 = vld [vmem:[%s11313_s1 + $0x58] sm:$0xf0] }
 0x1a2   :  { %1181 = vmatpush.bf16.msra.mxu1 %v5645_v16  ;;  %1219 = vmatpush.bf16.msrb.mxu3 %v5649_v22  ;;  %v6952_v16 = vld [vmem:[%s11313_s1 + $0x134] sm:$0xf]  ;;  %v6939_v13 = vld [vmem:[%s11313_s1 + $0xc4] sm:$0xf0] }
 0x1a3   :  { %1202 = vmatpush.bf16.msra.mxu2 %v5569_v47  ;;  %v5553_v21 = vor.u32 %v6952_v16, %v5550_v18  ;;  %v6968_v22 = vld [vmem:[%s11313_s1 + $0x1b4] sm:$0xf]  ;;  %v5710_v18 = vld [vmem:[%s11313_s1 + $0x78] sm:$0xf0] }
 0x1a4   :  { %v6964_v47 = vld [vmem:[%s11313_s1 + $0x194] sm:$0xf] }
 0x1a5   :  { %v5601_v49 = vor.u32 %v6964_v47, %v5598_v48  ;;  %v6928_v16 = vld [vmem:[%s11313_s1 + $0x74] sm:$0xf] }
 0x1a6   :  { %1182 = vmatpush.bf16.msra.mxu1 %v5637_v34  ;;  %1220 = vmatpush.bf16.msrb.mxu3 %v5641_v37  ;;  %v5545_v34 = vor.u32 %v6950_v31, %v5542_v32  ;;  %v5532_v37 = vld [vmem:[%s11313_s1 + $0x110] sm:$0xf] }
 0x1a7   :  { %v5533_v41 = vor.u32 %v6949_v39, %v5532_v37 }
 0x1a9   :  { %5478 = vmatmul.msk.f32.vlgmr.msrb.gmra.mxu1 %vm688_vm8, %v684_v3  ;;  %v5561_v3 = vor.u32 %v6954_v62, %v5558_v63  ;;  %v5526_v62 = vld [vmem:[%s11313_s1 + $0x108] sm:$0xf0] }
 0x1aa   :  { %1183 = vmatpush.bf16.msra.mxu1 %v5629_v46  ;;  %1221 = vmatpush.bf16.msrb.mxu3 %v5633_v51  ;;  %v5537_v46 = vor.u32 %v6948_v43, %v5534_v44  ;;  %v6925_v44 = vld [vmem:[%s11313_s1 + $0x54] sm:$0xf0] }
 0x1ab   :  { %1203 = vmatpush.bf16.msra.mxu2 %v5561_v3  ;;  %v5589_v3 = vor.u32 %v6963_v57, %v5588_v55  ;;  %v5697_v55 = vor.u32 %v6924_v52, %v5694_v53  ;;  %v5758_v57 = vld [vmem:[%s11313_s1 + $0xd8] sm:$0xf0]  ;;  %v6919_v52 = vld [vmem:[%s11313_s1 + $0x24] sm:$0xf0]  ;;  %v5732_v53 = vld [vmem:[%s11313_s1 + $0xa0] sm:$0xf] }
 0x1ae   :  { %1184 = vmatpush.bf16.msra.mxu1 %v5621_v2 }
 0x1af   :  { %1204 = vmatpush.bf16.msra.mxu2 %v5553_v21 }
 0x1b1   :  { %5479 = vmatmul.msk.f32.gmra.mxu1 %vm688_vm8, %v685_v4  ;;  %v6970_v4 = vld [vmem:[%s11313_s1 + $0x1c4] sm:$0xf] }
 0x1b2   :  { %1185 = vmatpush.bf16.msra.mxu1 %v5613_v20 }
 0x1b3   :  { %1205 = vmatpush.bf16.msra.mxu2 %v5545_v34  ;;  %v6926_v34 = vld [vmem:[%s11313_s1 + $0x64] sm:$0xf] }
 0x1b4   :  { %v5705_v39 = vor.u32 %v6926_v34, %v5702_v35 }
 0x1b6   :  { %1186 = vmatpush.bf16.msra.mxu1 %v5605_v33  ;;  %v6943_v33 = vld [vmem:[%s11313_s1 + $0xe4] sm:$0xf0] }
 0x1b7   :  { %1206 = vmatpush.bf16.msra.mxu2 %v5537_v46  ;;  %v6941_v46 = vld [vmem:[%s11313_s1 + $0xd4] sm:$0xf0] }
 0x1b9   :  { %5480 = vmatmul.msk.f32.gmra.mxu1 %vm688_vm8, %v686_v5  ;;  %v5622_v5 = vld [vmem:[%s11313_s1 + $0x1c8] sm:$0xf0] }
 0x1ba   :  { %1187 = vmatpush.bf16.msra.mxu1 %v5597_v45  ;;  %v5756_v45 = vld [vmem:[%s11313_s1 + $0xd0] sm:$0xf] }
 0x1be   :  { %1188 = vmatpush.bf16.msra.mxu1 %v5589_v3 }
 0x1c1   :  { %5481 = vmatmul.msk.f32.gmra.mxu1 %vm688_vm8, %v687_v6  ;;  %v5625_v6 = vor.u32 %v6970_v4, %v5622_v5  ;;  %v5529_v4 = vor.u32 %v6946_v60, %v5526_v62  ;;  %v6962_v5 = vld [vmem:[%s11313_s1 + $0x184] sm:$0xf]  ;;  %v5684_v60 = vld [vmem:[%s11313_s1 + $0x40] sm:$0xf] }
 0x1c3   :  { %1222 = vmatpush.bf16.msrb.mxu3 %v5625_v6  ;;  %v5590_v6 = vld [vmem:[%s11313_s1 + $0x188] sm:$0xf0]  ;;  %1207 = vmatpush.bf16.msra.mxu2 %v5529_v4 }
 0x216   :  { %v7651_v7 = vpop.f32.mrf.mxu1 }
 0x217   :  { %v7863_v63 = vperm.slane %v7651_v7, 0  ;;  %v5593_v7 = vor.u32 %v6962_v5, %v5590_v6  ;;  %v6923_v5 = vld [vmem:[%s11313_s1 + $0x44] sm:$0xf0]  ;;  %v5748_v6 = vld [vmem:[%s11313_s1 + $0xc0] sm:$0xf] }
 0x219   :  { %v591_v62 = vmul.f32 %v7863_v63, %v7514_v61  ;;  %v6922_v61 = vld [vmem:[%s11313_s1 + $0x44] sm:$0xf] }
 0x21c   :  { %v584_v19 = vpop.f32.mrf.mxu3 }
 0x21d   :  { %v7865_v2 = vperm.slane %v584_v19, 0  ;;  %v589_v19 = vmul.f32 %v7863_v63, %v7521_v0  ;;  %v5700_v0 = vld [vmem:[%s11313_s1 + $0x60] sm:$0xf] }
 0x21e   :  { %v7653_v8 = vpop.f32.mrf.mxu1 }
 0x21f   :  { %v7874_v11 = vperm.slane %v7653_v8, 0  ;;  %v5772_v8 = vld [vmem:[%s11313_s1 + $0xf0] sm:$0xf]  ;;  %v590_v20 = vmul.f32 %v7865_v2, %v7584_v58  ;;  %v6927_v58 = vld [vmem:[%s11313_s1 + $0x64] sm:$0xf0]  ;;  %v592_v3 = vmul.f32 %v7865_v2, %v7578_v54 }
 0x220   :  { %v5773_v21 = vor.u32 %v6945_v9, %v5772_v8  ;;  %v5701_v32 = vor.u32 %v6927_v58, %v5700_v0  ;;  %v5749_v8 = vor.u32 %v6939_v13, %v5748_v6  ;;  %v6938_v9 = vld [vmem:[%s11313_s1 + $0xc4] sm:$0xf]  ;;  %v593_v0 = vmul.f32 %v7863_v63, %v7523_v1  ;;  %v5660_v13 = vld [vmem:[%s11313_s1 + $0x10] sm:$0xf] }
 0x221   :  { %v644_v54 = vadd.f32 %v7874_v11, %v591_v62  ;;  %v594_v1 = vmul.f32 %v7865_v2, %v7586_v59  ;;  %v5678_v59 = vld [vmem:[%s11313_s1 + $0x38] sm:$0xf0]  ;;  %v5670_v62 = vld [vmem:[%s11313_s1 + $0x28] sm:$0xf0] }
 0x222   :  { %1417 = vmatpush.bf16.msrb.mxu1 %v5773_v21 }
 0x224   :  { %v637_v51 = vpop.f32.mrf.mxu3 }
 0x225   :  { %v7876_v12 = vperm.slane %v637_v51, 0  ;;  %v5757_v51 = vor.u32 %v6941_v46, %v5756_v45  ;;  %v5742_v46 = vld [vmem:[%s11313_s1 + $0xb8] sm:$0xf0] }
 0x226   :  { %v722_v23 = vpop.f32.mrf.mxu1 }
 0x227   :  { %5482 = vmatmul.msk.f32.vlgmr.msrb.gmra.mxu2 %vm543_vm6, %v722_v23  ;;  %5486 = vmatmul.msk.f32.vlgmr.msra.gmra.mxu3 %vm543_vm6, %v722_v23  ;;  %v5614_v23 = vld [vmem:[%s11313_s1 + $0x1b8] sm:$0xf0]  ;;  %v643_v28 = vadd.f32 %v7876_v12, %v590_v20  ;;  %v645_v14 = vadd.f32 %v7876_v12, %v592_v3  ;;  %v6934_v3 = vld [vmem:[%s11313_s1 + $0xa4] sm:$0xf] }
 0x22e   :  { %v725_v24 = vpop.f32.mrf.mxu1 }
 0x22f   :  { %5483 = vmatmul.msk.f32.gmra.mxu2 %vm543_vm6, %v725_v24  ;;  %5487 = vmatmul.msk.f32.gmra.mxu3 %vm543_vm6, %v725_v24  ;;  %v5617_v24 = vor.u32 %v6968_v22, %v5614_v23  ;;  %v5713_v22 = vor.u32 %v6928_v16, %v5710_v18  ;;  %v6944_v23 = vld [vmem:[%s11313_s1 + $0xf4] sm:$0xf]  ;;  %v5750_v16 = vld [vmem:[%s11313_s1 + $0xc8] sm:$0xf0] }
 0x230   :  { %v5753_v21 = vor.u32 %v6938_v9, %v5750_v16  ;;  %v596_v9 = vmul.f32 %v7865_v2, %v7598_v10  ;;  %v5662_v10 = vld [vmem:[%s11313_s1 + $0x18] sm:$0xf0] }
 0x231   :  { %1223 = vmatpush.bf16.msrb.mxu3 %v5617_v24  ;;  %v5774_v24 = vld [vmem:[%s11313_s1 + $0xf8] sm:$0xf0]  ;;  %1436 = vmatpush.bf16.msrb.mxu2 %v5713_v22 }
 0x232   :  { %v649_v2 = vadd.f32 %v7876_v12, %v596_v9  ;;  %v6991_v9 = vld [vmem:[%s11313_s1 + $0x264] sm:$0xf0] }
 0x235   :  { %1224 = vmatpush.bf16.msrb.mxu3 %v5609_v38  ;;  %1437 = vmatpush.bf16.msrb.mxu2 %v5705_v39  ;;  %v646_v39 = vadd.f32 %v7874_v11, %v593_v0 }
 0x236   :  { %v728_v25 = vpop.f32.mrf.mxu1 }
 0x237   :  { %5484 = vmatmul.msk.f32.gmra.mxu2 %vm543_vm6, %v728_v25  ;;  %5488 = vmatmul.msk.f32.gmra.mxu3 %vm543_vm6, %v728_v25  ;;  %v11279_v25 = vmov 0.0  }
 0x238   :  { %816 = vst.msk [vmem:[#allocation2] ss:$8 sm:$0x3] %vm7759_vm9, %v11279_v25 }
 0x239   :  { %819 = vst.msk [vmem:[#allocation2 + $0x30] ss:$8 sm:$0x3] %vm7759_vm9, %v11279_v25  ;;  %1225 = vmatpush.bf16.msrb.mxu3 %v5601_v49  ;;  %v5693_v49 = vor.u32 %v6925_v44, %v5692_v42  ;;  %1438 = vmatpush.bf16.msrb.mxu2 %v5697_v55  ;;  %v6936_v42 = vld [vmem:[%s11313_s1 + $0xb4] sm:$0xf] }
 0x23a   :  { %822 = vst.msk [vmem:[#allocation2 + $0x21] ss:$8 sm:$0x3] %vm7759_vm9, %v11279_v25  ;;  %v6935_v55 = vld [vmem:[%s11313_s1 + $0xa4] sm:$0xf0] }
 0x23b   :  { %825 = vst.msk [vmem:[#allocation2 + $0x51] ss:$8 sm:$0x3] %vm7759_vm9, %v11279_v25  ;;  %v6404_v25 = vld [vmem:[%s11263_s21 + $0xee0] sm:$0xff] }
 0x23d   :  { %1226 = vmatpush.bf16.msrb.mxu3 %v5593_v7  ;;  %v5685_v7 = vor.u32 %v6923_v5, %v5684_v60  ;;  %v6918_v60 = vld [vmem:[%s11313_s1 + $0x24] sm:$0xf] }
 0x23e   :  { %v731_v26 = vpop.f32.mrf.mxu1  ;;  %v5673_v6 = vor.u32 %v6918_v60, %v5670_v62  ;;  %v7009_v60 = vld [vmem:[%s11313_s1 + $0x2f4] sm:$0xf0] }
 0x23f   :  { %5485 = vmatmul.msk.f32.gmra.mxu2 %vm543_vm6, %v731_v26  ;;  %5489 = vmatmul.msk.f32.gmra.mxu3 %vm543_vm6, %v731_v26  ;;  %v5540_v26 = vld [vmem:[%s11313_s1 + $0x120] sm:$0xf] }
 0x240   :  { %v5541_v29 = vor.u32 %v6951_v27, %v5540_v26  ;;  %v5777_v26 = vor.u32 %v6944_v23, %v5774_v24  ;;  %v642_v27 = vadd.f32 %v7874_v11, %v589_v19 }
 0x242   :  { %1167 = vmatpush.bf16.msrb.mxu0 %v5541_v29  ;;  %v5764_v29 = vld [vmem:[%s11313_s1 + $0xe0] sm:$0xf]  ;;  %1455 = vmatpush.bf16.msra.mxu3 %v5777_v26 }
 0x243   :  { %v5765_v37 = vor.u32 %v6943_v33, %v5764_v29 }
 0x245   :  { %1418 = vmatpush.bf16.msrb.mxu1 %v5765_v37  ;;  %v6920_v37 = vld [vmem:[%s11313_s1 + $0x34] sm:$0xf] }
 0x246   :  { %1168 = vmatpush.bf16.msrb.mxu0 %v5533_v41  ;;  %v5766_v41 = vld [vmem:[%s11313_s1 + $0xe8] sm:$0xf0]  ;;  %v5681_v45 = vor.u32 %v6920_v37, %v5678_v59  ;;  %v6931_v37 = vld [vmem:[%s11313_s1 + $0x84] sm:$0xf0] }
 0x247   :  { %v5769_v43 = vor.u32 %v6942_v40, %v5766_v41  ;;  %v647_v40 = vadd.f32 %v7876_v12, %v594_v1 }
 0x249   :  { %1456 = vmatpush.bf16.msra.mxu3 %v5769_v43  ;;  %1419 = vmatpush.bf16.msrb.mxu1 %v5757_v51  ;;  %v5745_v51 = vor.u32 %v6936_v42, %v5742_v46 }
 0x24a   :  { %1169 = vmatpush.bf16.msrb.mxu0 %v5525_v56  ;;  %v6940_v56 = vld [vmem:[%s11313_s1 + $0xd4] sm:$0xf] }
 0x24b   :  { %v5761_v4 = vor.u32 %v6940_v56, %v5758_v57  ;;  %v5733_v57 = vor.u32 %v6935_v55, %v5732_v53 }
 0x24d   :  { %1457 = vmatpush.bf16.msra.mxu3 %v5761_v4  ;;  %1420 = vmatpush.bf16.msrb.mxu1 %v5749_v8  ;;  %v6917_v8 = vld [vmem:[%s11313_s1 + $0x14] sm:$0xf0] }
 0x24e   :  { %1398 = vmatpush.bf16.msra.mxu0 %v5709_v15  ;;  %v5686_v15 = vld [vmem:[%s11313_s1 + $0x48] sm:$0xf0] }
 0x24f   :  { %v5689_v20 = vor.u32 %v6922_v61, %v5686_v15  ;;  %v595_v61 = vmul.f32 %v7863_v63, %v7547_v17  ;;  %v5724_v15 = vld [vmem:[%s11313_s1 + $0x90] sm:$0xf]  ;;  %v5661_v63 = vor.u32 %v6917_v8, %v5660_v13  ;;  %v5860_v8 = vld [vmem:[%s11313_s1 + $0x260] sm:$0xf] }
 0x251   :  { %1439 = vmatpush.bf16.msrb.mxu2 %v5689_v20  ;;  %1458 = vmatpush.bf16.msra.mxu3 %v5753_v21  ;;  %v6916_v21 = vld [vmem:[%s11313_s1 + $0x14] sm:$0xf] }
 0x252   :  { %1399 = vmatpush.bf16.msra.mxu0 %v5701_v32 }
 0x255   :  { %1440 = vmatpush.bf16.msrb.mxu2 %v5681_v45  ;;  %1459 = vmatpush.bf16.msra.mxu3 %v5745_v51  ;;  %v5718_v45 = vld [vmem:[%s11313_s1 + $0x88] sm:$0xf0]  ;;  %v5868_v51 = vld [vmem:[%s11313_s1 + $0x270] sm:$0xf] }
 0x256   :  { %1400 = vmatpush.bf16.msra.mxu0 %v5693_v49 }
 0x259   :  { %1441 = vmatpush.bf16.msrb.mxu2 %v5673_v6 }
 0x25a   :  { %1401 = vmatpush.bf16.msra.mxu0 %v5685_v7  ;;  %v5734_v7 = vld [vmem:[%s11313_s1 + $0xa8] sm:$0xf0] }
 0x2aa   :  { %v763_v30 = vpop.f32.mrf.mxu2  ;;  %v792_v31 = vpop.f32.mrf.mxu3 }
 0x2ab   :  { %v7929_v36 = vadd.f32 %v763_v30, %v642_v27  ;;  %v7931_v38 = vadd.f32 %v792_v31, %v643_v28  ;;  %v5676_v27 = vld [vmem:[%s11313_s1 + $0x30] sm:$0xf]  ;;  %v6921_v28 = vld [vmem:[%s11313_s1 + $0x34] sm:$0xf0] }
 0x2ac   :  { %v5677_v29 = vor.u32 %v6921_v28, %v5676_v27  ;;  %v5740_v30 = vld [vmem:[%s11313_s1 + $0xb0] sm:$0xf]  ;;  %v6937_v31 = vld [vmem:[%s11313_s1 + $0xb4] sm:$0xf0]  ;;  %v5726_v27 = vld [vmem:[%s11313_s1 + $0x98] sm:$0xf0] }
 0x2ad   :  { %v836_v47 = vrot.slane %v7929_v36, 7  ;;  %v837_v48 = vrot.slane %v7931_v38, 7  ;;  %v5741_v35 = vor.u32 %v6937_v31, %v5740_v30  ;;  %v5652_v30 = vld [vmem:[%s11313_s1] sm:$0xf]  ;;  %v6915_v31 = vld [vmem:[%s11313_s1 + $0x4] sm:$0xf0] }
 0x2ae   :  { %1402 = vmatpush.bf16.msra.mxu0 %v5677_v29 }
 0x2af   :  { %860 = vst [vmem:[#allocation2] sm:$0xfe] %v836_v47  ;;  %1421 = vmatpush.bf16.msrb.mxu1 %v5741_v35 }
 0x2b0   :  { %861 = vst [vmem:[#allocation2 + $0x8] sm:$0xfe] %v837_v48 }
 0x2b2   :  { %v766_v18 = vpop.f32.mrf.mxu2  ;;  %v795_v19 = vpop.f32.mrf.mxu3 }
 0x2b3   :  { %v806_v22 = vadd.f32 %v766_v18, %v644_v54  ;;  %v807_v23 = vadd.f32 %v795_v19, %v645_v14  ;;  %1422 = vmatpush.bf16.msrb.mxu1 %v5733_v57  ;;  %v5737_v14 = vor.u32 %v6934_v3, %v5734_v7  ;;  %v6933_v18 = vld [vmem:[%s11313_s1 + $0x94] sm:$0xf0]  ;;  %v648_v19 = vadd.f32 %v7874_v11, %v595_v61  ;;  %v6932_v11 = vld [vmem:[%s11313_s1 + $0x94] sm:$0xf]  ;;  %v5932_v57 = vld [vmem:[%s11313_s1 + $0x2f0] sm:$0xf] }
 0x2b4   :  { %v5725_v20 = vor.u32 %v6933_v18, %v5724_v15  ;;  %v5729_v12 = vor.u32 %v6932_v11, %v5726_v27  ;;  %v5933_v61 = vor.u32 %v7009_v60, %v5932_v57  ;;  %v5916_v27 = vld [vmem:[%s11313_s1 + $0x2d0] sm:$0xf] }
 0x2b5   :  { %v838_v24 = vrot.slane %v806_v22, 7  ;;  %v840_v26 = vrot.slane %v807_v23, 7  ;;  %1460 = vmatpush.bf16.msra.mxu3 %v5737_v14  ;;  %v5934_v14 = vld [vmem:[%s11313_s1 + $0x2f8] sm:$0xf0] }
 0x2b6   :  { %v8003_v58 = vld [vmem:[#allocation2] sm:$0xfe] }
 0x2b7   :  { %v8012_v32 = vsel %vm835_vm10, %v836_v47, %v838_v24  ;;  %864 = vst [vmem:[#allocation2 + $0x20] sm:$0x1] %v838_v24  ;;  %v8015_v33 = vsel %vm835_vm10, %v837_v48, %v840_v26  ;;  %v8019_v34 = vld [vmem:[#allocation2 + $0x8] sm:$0xfe]  ;;  %v937_v36 = vrot.slane %v8003_v58, 1  ;;  %1423 = vmatpush.bf16.msrb.mxu1 %v5725_v20 }
 0x2b8   :  { %v938_v38 = vrot.slane %v8012_v32, 1  ;;  %v940_v41 = vrot.slane %v8019_v34, 1  ;;  %865 = vst [vmem:[#allocation2 + $0x28] sm:$0x1] %v840_v26  ;;  %v5668_v47 = vld [vmem:[%s11313_s1 + $0x20] sm:$0xf]  ;;  %v5665_v26 = vor.u32 %v6916_v21, %v5662_v10 }
 0x2b9   :  { %v5669_v56 = vor.u32 %v6919_v52, %v5668_v47  ;;  %v941_v17 = vrot.slane %v8015_v33, 1  ;;  %1461 = vmatpush.bf16.msra.mxu3 %v5729_v12  ;;  %v6993_v52 = vld [vmem:[%s11313_s1 + $0x274] sm:$0xf0]  ;;  %v5862_v20 = vld [vmem:[%s11313_s1 + $0x268] sm:$0xf0] }
 0x2ba   :  { %v769_v43 = vpop.f32.mrf.mxu2  ;;  %v798_v44 = vpop.f32.mrf.mxu3  ;;  %v939_v22 = vsel %vm936_vm11, %v937_v36, %v938_v38  ;;  %v5653_v36 = vor.u32 %v6915_v31, %v5652_v30  ;;  %1442 = vmatpush.bf16.msrb.mxu2 %v5665_v26  ;;  %v7006_v21 = vld [vmem:[%s11313_s1 + $0x2e4] sm:$0xf]  ;;  %v6988_v12 = vld [vmem:[%s11313_s1 + $0x254] sm:$0xf]  ;;  %v5854_v30 = vld [vmem:[%s11313_s1 + $0x258] sm:$0xf0] }
 0x2bb   :  { %v8041_v48 = vadd.f32 %v769_v43, %v646_v39  ;;  %v8043_v49 = vadd.f32 %v798_v44, %v647_v40  ;;  %1403 = vmatpush.bf16.msra.mxu0 %v5669_v56  ;;  %v6914_v39 = vld [vmem:[%s11313_s1 + $0x4] sm:$0xf]  ;;  %v942_v40 = vsel %vm936_vm11, %v940_v41, %v941_v17  ;;  %v5654_v43 = vld [vmem:[%s11313_s1 + $0x8] sm:$0xf0]  ;;  %v5869_v56 = vor.u32 %v6993_v52, %v5868_v51  ;;  %v7004_v31 = vld [vmem:[%s11313_s1 + $0x2d4] sm:$0xf] }
 0x2bc   :  { %v6930_v44 = vld [vmem:[%s11313_s1 + $0x84] sm:$0xf]  ;;  %v5657_v41 = vor.u32 %v6914_v39, %v5654_v43  ;;  %v5857_v39 = vor.u32 %v6988_v12, %v5854_v30  ;;  %v5910_v52 = vld [vmem:[%s11313_s1 + $0x2c8] sm:$0xf0]  ;;  %v6996_v30 = vld [vmem:[%s11313_s1 + $0x294] sm:$0xf] }
 0x2bd   :  { %v842_v4 = vrot.slane %v8041_v48, 7  ;;  %v843_v5 = vrot.slane %v8043_v49, 7  ;;  %v5721_v55 = vor.u32 %v6930_v44, %v5718_v45  ;;  %v6992_v48 = vld [vmem:[%s11313_s1 + $0x274] sm:$0xf]  ;;  %v5870_v49 = vld [vmem:[%s11313_s1 + $0x278] sm:$0xf0] }
 0x2be   :  { %v918_v54 = vld [vmem:[#allocation2 + $0x20] sm:$0x1]  ;;  %1443 = vmatpush.bf16.msrb.mxu2 %v5657_v41  ;;  %v5846_v41 = vld [vmem:[%s11313_s1 + $0x248] sm:$0xf0]  ;;  %v7002_v51 = vld [vmem:[%s11313_s1 + $0x2c4] sm:$0xf] }
 0x2bf   :  { %866 = vst [vmem:[#allocation2 + $0x30] sm:$0xfe] %v842_v4  ;;  %v943_v16 = vrot.slane %v918_v54, 1  ;;  %v919_v24 = vld [vmem:[#allocation2 + $0x28] sm:$0x1]  ;;  %1404 = vmatpush.bf16.msra.mxu0 %v5661_v63  ;;  %1462 = vmatpush.bf16.msra.mxu3 %v5721_v55  ;;  %v5873_v54 = vor.u32 %v6992_v48, %v5870_v49  ;;  %v5861_v63 = vor.u32 %v6991_v9, %v5860_v8 }
 0x2c0   :  { %867 = vst [vmem:[#allocation2 + $0x38] sm:$0xfe] %v843_v5  ;;  %v945_v29 = vrot.slane %v919_v24, 1  ;;  %v5913_v60 = vor.u32 %v7002_v51, %v5910_v52  ;;  %v7001_v48 = vld [vmem:[%s11313_s1 + $0x2b4] sm:$0xf0] }
 0x2c1   :  { %v944_v23 = vsel %vm936_vm11, %v938_v38, %v943_v16  ;;  %v5716_v38 = vld [vmem:[%s11313_s1 + $0x80] sm:$0xf]  ;;  %v5838_v49 = vld [vmem:[%s11313_s1 + $0x238] sm:$0xf0] }
 0x2c2   :  { %v772_v28 = vpop.f32.mrf.mxu2  ;;  %v801_v0 = vpop.f32.mrf.mxu3  ;;  %v965_v58 = vpack.c.bf16 %v944_v23, %v939_v22  ;;  %v946_v59 = vsel %vm936_vm11, %v941_v17, %v945_v29  ;;  %v5717_v42 = vor.u32 %v6931_v37, %v5716_v38  ;;  %v5924_v16 = vld [vmem:[%s11313_s1 + $0x2e0] sm:$0xf]  ;;  %v7007_v17 = vld [vmem:[%s11313_s1 + $0x2e4] sm:$0xf0]  ;;  %v5852_v22 = vld [vmem:[%s11313_s1 + $0x250] sm:$0xf] }
 0x2c3   :  { %v810_v1 = vadd.f32 %v772_v28, %v648_v19  ;;  %v811_v35 = vadd.f32 %v801_v0, %v649_v2  ;;  %v966_v47 = vpack.c.bf16 %v946_v59, %v942_v40  ;;  %1405 = vmatpush.bf16.msra.mxu0 %v5653_v36  ;;  %v5925_v18 = vor.u32 %v7007_v17, %v5924_v16  ;;  %v6990_v19 = vld [vmem:[%s11313_s1 + $0x264] sm:$0xf]  ;;  %v5926_v2 = vld [vmem:[%s11313_s1 + $0x2e8] sm:$0xf0]  ;;  %v6989_v23 = vld [vmem:[%s11313_s1 + $0x254] sm:$0xf0] }
 0x2c4   :  { %1170 = vmatmul.bf16.vlgmr.msrb.gmra.mxu0 %v965_v58  ;;  %1208 = vmatmul.bf16.vlgmr.msra.gmra.mxu2 %v965_v58  ;;  %v5865_v10 = vor.u32 %v6990_v19, %v5862_v20  ;;  %v5929_v26 = vor.u32 %v7006_v21, %v5926_v2  ;;  %v5853_v11 = vor.u32 %v6989_v23, %v5852_v22  ;;  %v7005_v28 = vld [vmem:[%s11313_s1 + $0x2d4] sm:$0xf0]  ;;  %v6987_v59 = vld [vmem:[%s11313_s1 + $0x244] sm:$0xf0]  ;;  %v5828_v8 = vld [vmem:[%s11313_s1 + $0x220] sm:$0xf] }
 0x2c5   :  { %v844_v46 = vrot.slane %v810_v1, 7  ;;  %v846_v34 = vrot.slane %v811_v35, 7  ;;  %1424 = vmatpush.bf16.msrb.mxu1 %v5717_v42  ;;  %1227 = vmatmul.bf16.vlgmr.msrb.gmra.mxu3 %v966_v47  ;;  %v5917_v29 = vor.u32 %v7005_v28, %v5916_v27  ;;  %v5918_v1 = vld [vmem:[%s11313_s1 + $0x2d8] sm:$0xf0]  ;;  %v5844_v35 = vld [vmem:[%s11313_s1 + $0x240] sm:$0xf] }
 0x2c6   :  { %v920_v53 = vld [vmem:[#allocation2 + $0x30] sm:$0xfe]  ;;  %1189 = vmatmul.bf16.vlgmr.msra.gmra.mxu1 %v966_v47  ;;  %1754 = vmatpush.bf16.msra.mxu2 %v5873_v54  ;;  %v5921_v40 = vor.u32 %v7004_v31, %v5918_v1  ;;  %v5908_v42 = vld [vmem:[%s11313_s1 + $0x2c0] sm:$0xf]  ;;  %v5845_v45 = vor.u32 %v6987_v59, %v5844_v35  ;;  %v6999_v16 = vld [vmem:[%s11313_s1 + $0x2a4] sm:$0xf0] }
 0x2c7   :  { %v8148_v62 = vsel %vm835_vm10, %v842_v4, %v844_v46  ;;  %870 = vst [vmem:[#allocation2 + $0x50] sm:$0x1] %v844_v46  ;;  %v8153_v3 = vsel %vm835_vm10, %v843_v5, %v846_v34  ;;  %v8155_v6 = vld [vmem:[#allocation2 + $0x38] sm:$0xfe]  ;;  %v947_v7 = vrot.slane %v920_v53, 1  ;;  %1716 = vmatpush.bf16.msrb.mxu0 %v5869_v56  ;;  %v876_v52 = vld [vmem:[#allocation2 + $0x30] sm:$0xff] }
 0x2c8   :  { %v948_v13 = vrot.slane %v8148_v62, 1  ;;  %v950_v4 = vrot.slane %v8155_v6, 1  ;;  %v7008_v5 = vld [vmem:[%s11313_s1 + $0x2f4] sm:$0xf]  ;;  %871 = vst [vmem:[#allocation2 + $0x58] sm:$0x1] %v846_v34 }
 0x2c9   :  { %1735 = vmatpush.bf16.msra.mxu1 %v5933_v61  ;;  %v5937_v15 = vor.u32 %v7008_v5, %v5934_v14  ;;  %v951_v58 = vrot.slane %v8153_v3, 1  ;;  %v7003_v46 = vld [vmem:[%s11313_s1 + $0x2c4] sm:$0xf0]  ;;  %v6986_v34 = vld [vmem:[%s11313_s1 + $0x244] sm:$0xf] }
 0x2ca   :  { %1755 = vmatpush.bf16.msra.mxu2 %v5865_v10  ;;  %v949_v36 = vsel %vm936_vm11, %v947_v7, %v948_v13  ;;  %v5909_v47 = vor.u32 %v7003_v46, %v5908_v42  ;;  %v5849_v57 = vor.u32 %v6986_v34, %v5846_v41  ;;  %v5836_v6 = vld [vmem:[%s11313_s1 + $0x230] sm:$0xf]  ;;  %v6985_v7 = vld [vmem:[%s11313_s1 + $0x234] sm:$0xf0]  ;;  %v7000_v54 = vld [vmem:[%s11313_s1 + $0x2b4] sm:$0xf] }
 0x2cb   :  { %1773 = vmatpush.bf16.msrb.mxu3 %v5937_v15  ;;  %1717 = vmatpush.bf16.msrb.mxu0 %v5861_v63  ;;  %v952_v53 = vsel %vm936_vm11, %v950_v4, %v951_v58  ;;  %v5837_v61 = vor.u32 %v6985_v7, %v5836_v6  ;;  %v6984_v4 = vld [vmem:[%s11313_s1 + $0x234] sm:$0xf]  ;;  %v5902_v14 = vld [vmem:[%s11313_s1 + $0x2b8] sm:$0xf0]  ;;  %v6983_v15 = vld [vmem:[%s11313_s1 + $0x224] sm:$0xf0] }
 0x2cc   :  { %v5892_v9 = vld [vmem:[%s11313_s1 + $0x2a0] sm:$0xf]  ;;  %v5841_v17 = vor.u32 %v6984_v4, %v5838_v49  ;;  %v5905_v63 = vor.u32 %v7000_v54, %v5902_v14  ;;  %v5830_v19 = vld [vmem:[%s11313_s1 + $0x228] sm:$0xf0]  ;;  %v5829_v20 = vor.u32 %v6983_v15, %v5828_v8  ;;  %v6998_v10 = vld [vmem:[%s11313_s1 + $0x2a4] sm:$0xf] }
 0x2cd   :  { %1736 = vmatpush.bf16.msra.mxu1 %v5925_v18  ;;  %v6982_v18 = vld [vmem:[%s11313_s1 + $0x224] sm:$0xf]  ;;  %v5893_v21 = vor.u32 %v6999_v16, %v5892_v9  ;;  %v5894_v2 = vld [vmem:[%s11313_s1 + $0x2a8] sm:$0xf0]  ;;  %v5820_v22 = vld [vmem:[%s11313_s1 + $0x210] sm:$0xf] }
 0x2ce   :  { %v922_v24 = vld [vmem:[#allocation2 + $0x50] sm:$0x1]  ;;  %1756 = vmatpush.bf16.msra.mxu2 %v5857_v39  ;;  %v6981_v23 = vld [vmem:[%s11313_s1 + $0x214] sm:$0xf0]  ;;  %v5833_v27 = vor.u32 %v6982_v18, %v5830_v19  ;;  %v5897_v28 = vor.u32 %v6998_v10, %v5894_v2  ;;  %v5886_v31 = vld [vmem:[%s11313_s1 + $0x298] sm:$0xf0] }
 0x2cf   :  { %v953_v0 = vrot.slane %v922_v24, 1  ;;  %v923_v37 = vld [vmem:[#allocation2 + $0x58] sm:$0x1]  ;;  %1774 = vmatpush.bf16.msrb.mxu3 %v5929_v26  ;;  %1718 = vmatpush.bf16.msrb.mxu0 %v5853_v11  ;;  %v5884_v24 = vld [vmem:[%s11313_s1 + $0x290] sm:$0xf]  ;;  %v872_v11 = vld [vmem:[#allocation2] sm:$0xff] }
 0x2d0   :  { %v955_v44 = vrot.slane %v923_v37, 1  ;;  %v6997_v26 = vld [vmem:[%s11313_s1 + $0x294] sm:$0xf0]  ;;  %v5812_v1 = vld [vmem:[%s11313_s1 + $0x200] sm:$0xf]  ;;  %v873_v37 = vld [vmem:[#allocation2 + $0x8] sm:$0xff]  ;;  %v880_v42 = vpack.c.bf16 %v8012_v32, %v872_v11 }
 0x2d1   :  { %v954_v38 = vsel %vm936_vm11, %v948_v13, %v953_v0  ;;  %1737 = vmatpush.bf16.msra.mxu1 %v5917_v29  ;;  %v5900_v13 = vld [vmem:[%s11313_s1 + $0x2b0] sm:$0xf]  ;;  %v6980_v0 = vld [vmem:[%s11313_s1 + $0x214] sm:$0xf]  ;;  %v5821_v29 = vor.u32 %v6981_v23, %v5820_v22  ;;  %v5885_v12 = vor.u32 %v6997_v26, %v5884_v24  ;;  %v6979_v35 = vld [vmem:[%s11313_s1 + $0x204] sm:$0xf0] }
 0x2d2   :  { %v967_v43 = vpack.c.bf16 %v954_v38, %v949_v36  ;;  %v956_v55 = vsel %vm936_vm11, %v951_v58, %v955_v44  ;;  %v5901_v5 = vor.u32 %v7001_v48, %v5900_v13  ;;  %1757 = vmatpush.bf16.msra.mxu2 %v5849_v57  ;;  %v5822_v58 = vld [vmem:[%s11313_s1 + $0x218] sm:$0xf0]  ;;  %v5876_v36 = vld [vmem:[%s11313_s1 + $0x280] sm:$0xf]  ;;  %v6995_v38 = vld [vmem:[%s11313_s1 + $0x284] sm:$0xf0] }
 0x2d3   :  { %v968_v56 = vpack.c.bf16 %v956_v55, %v952_v53  ;;  %1775 = vmatpush.bf16.msrb.mxu3 %v5921_v40  ;;  %1719 = vmatpush.bf16.msrb.mxu0 %v5845_v45  ;;  %v5825_v39 = vor.u32 %v6980_v0, %v5822_v58  ;;  %v5889_v40 = vor.u32 %v6996_v30, %v5886_v31  ;;  %v6978_v59 = vld [vmem:[%s11313_s1 + $0x204] sm:$0xf]  ;;  %v5814_v45 = vld [vmem:[%s11313_s1 + $0x208] sm:$0xf0]  ;;  %v877_v55 = vld [vmem:[#allocation2 + $0x38] sm:$0xff]  ;;  %v1495_v54 = vrot.slane %v8015_v33, 2 }
 0x2d4   :  { %1175 = vmatmul.bf16.gmra.mxu0 %v967_v43  ;;  %1213 = vmatmul.bf16.gmra.mxu2 %v967_v43  ;;  %v5813_v43 = vor.u32 %v6979_v35, %v5812_v1  ;;  %v5877_v44 = vor.u32 %v6995_v38, %v5876_v36  ;;  %v6994_v46 = vld [vmem:[%s11313_s1 + $0x284] sm:$0xf]  ;;  %v5878_v34 = vld [vmem:[%s11313_s1 + $0x288] sm:$0xf0]  ;;  %v5817_v41 = vor.u32 %v6978_v59, %v5814_v45  ;;  %v1476_v57 = vld [vmem:[#allocation2 + $0x20] sm:$0x3] }
 0x2d5   :  { %1738 = vmatpush.bf16.msra.mxu1 %v5909_v47  ;;  %1232 = vmatmul.bf16.gmra.mxu3 %v968_v56  ;;  %v881_v47 = vpack.c.bf16 %v8015_v33, %v873_v37  ;;  %v5881_v51 = vor.u32 %v6994_v46, %v5878_v34  ;;  %v882_v53 = vpack.c.bf16 %v8148_v62, %v876_v52  ;;  %v1497_v6 = vrot.slane %v1476_v57, 2  ;;  %v1477_v7 = vld [vmem:[#allocation2 + $0x28] sm:$0x3]  ;;  %v1475_v48 = vld [vmem:[#allocation2 + $0x8] sm:$0xfc] }
 0x2d6   :  { %1194 = vmatmul.bf16.gmra.mxu1 %v968_v56  ;;  %1758 = vmatpush.bf16.msra.mxu2 %v5841_v17  ;;  %v883_v56 = vpack.c.bf16 %v8153_v3, %v877_v55  ;;  %v1499_v4 = vrot.slane %v1477_v7, 2  ;;  %v1478_v17 = vld [vmem:[#allocation2 + $0x30] sm:$0xfc]  ;;  %v1481_v18 = vld [vmem:[#allocation2 + $0x58] sm:$0x3]  ;;  %v1505_v22 = vrot.slane %v8153_v3, 2 }
 0x2d7   :  { %1776 = vmatpush.bf16.msrb.mxu3 %v5913_v60  ;;  %1720 = vmatpush.bf16.msrb.mxu0 %v5837_v61  ;;  %v1474_v60 = vld [vmem:[#allocation2] sm:$0xfc]  ;;  %v1492_v61 = vrot.slane %v8012_v32, 2  ;;  %v1480_v32 = vld [vmem:[#allocation2 + $0x50] sm:$0x3]  ;;  %v1501_v19 = vrot.slane %v1478_v17, 2 }
 0x2d8   :  { %v1491_v13 = vrot.slane %v1474_v60, 2  ;;  %v1500_v15 = vsel %vm1490_vm12, %v1495_v54, %v1499_v4  ;;  %v1479_v33 = vld [vmem:[#allocation2 + $0x38] sm:$0xfc] }
 0x2d9   :  { %1739 = vmatpush.bf16.msra.mxu1 %v5901_v5  ;;  %v1498_v49 = vsel %vm1490_vm12, %v1492_v61, %v1497_v6  ;;  %v1494_v5 = vrot.slane %v1475_v48, 2  ;;  %v1504_v2 = vrot.slane %v1479_v33, 2  ;;  %v8389_v60 = vld [vmem:[%s11304_s22 + $0x78] sm:$0xff]  ;;  %v8394_v6 = vld [vmem:[%s11304_s22 + $0x70] sm:$0xff]  ;;  %v8405_v48 = vld [vmem:[%s11304_s22 + $0x68] sm:$0xff] }
 0x2da   :  { %1759 = vmatpush.bf16.msra.mxu2 %v5833_v27  ;;  %v1493_v14 = vsel %vm1490_vm12, %v1491_v13, %v1492_v61  ;;  %v8422_v17 = vld [vmem:[%s11304_s22 + $0x58] sm:$0xff] }
 0x2db   :  { %1777 = vmatpush.bf16.msrb.mxu3 %v5905_v63  ;;  %1721 = vmatpush.bf16.msrb.mxu0 %v5829_v20  ;;  %v1519_v8 = vpack.c.bf16 %v1498_v49, %v1493_v14  ;;  %v1496_v9 = vsel %vm1490_vm12, %v1494_v5, %v1495_v54  ;;  %v1507_v63 = vrot.slane %v1480_v32, 2  ;;  %v1502_v20 = vrot.slane %v8148_v62, 2  ;;  %v8417_v32 = vld [vmem:[%s11304_s22 + $0xf8] sm:$0xff] }
 0x2dc   :  { %v1520_v16 = vpack.c.bf16 %v1500_v15, %v1496_v9  ;;  %v1506_v11 = vsel %vm1490_vm12, %v1504_v2, %v1505_v22  ;;  %v8441_v2 = vld [vmem:[%s11304_s22 + $0xe8] sm:$0xff] }
 0x2dd   :  { %1740 = vmatpush.bf16.msra.mxu1 %v5893_v21  ;;  %v1509_v21 = vrot.slane %v1481_v18, 2  ;;  %v1508_v10 = vsel %vm1490_vm12, %v1502_v20, %v1507_v63  ;;  %v1503_v23 = vsel %vm1490_vm12, %v1501_v19, %v1502_v20  ;;  %v8429_v19 = vld [vmem:[%s11304_s22 + $0xf0] sm:$0xff] }
 0x2de   :  { %1760 = vmatpush.bf16.msra.mxu2 %v5825_v39  ;;  %v1521_v24 = vpack.c.bf16 %v1508_v10, %v1503_v23  ;;  %v8436_v10 = vld [vmem:[%s11304_s22 + $0x50] sm:$0xff] }
 0x2df   :  { %1778 = vmatpush.bf16.msrb.mxu3 %v5897_v28  ;;  %1722 = vmatpush.bf16.msrb.mxu0 %v5821_v29  ;;  %v1510_v26 = vsel %vm1490_vm12, %v1505_v22, %v1509_v21 }
 0x2e0   :  { %v1522_v27 = vpack.c.bf16 %v1510_v26, %v1506_v11 }
 0x2e1   :  { %1741 = vmatpush.bf16.msra.mxu1 %v5885_v12 }
 0x2e2   :  { %1761 = vmatpush.bf16.msra.mxu2 %v5817_v41 }
 0x2e3   :  { %1779 = vmatpush.bf16.msrb.mxu3 %v5889_v40  ;;  %1723 = vmatpush.bf16.msrb.mxu0 %v5813_v43 }
 0x2e4   :  { %1406 = vmatmul.bf16.vlgmr.msra.gmra.mxu0 %v880_v42  ;;  %1444 = vmatmul.bf16.vlgmr.msrb.gmra.mxu2 %v880_v42 }
 0x2e5   :  { %1742 = vmatpush.bf16.msra.mxu1 %v5877_v44  ;;  %1463 = vmatmul.bf16.vlgmr.msra.gmra.mxu3 %v881_v47 }
 0x2e6   :  { %1425 = vmatmul.bf16.vlgmr.msrb.gmra.mxu1 %v881_v47  ;;  %1942 = vmatpush.msrb.mxu2 %v8389_v60 }
 0x2e7   :  { %1780 = vmatpush.bf16.msrb.mxu3 %v5881_v51  ;;  %1902 = vmatpush.msra.mxu0 %v8389_v60 }
 0x2e8   :  { %1943 = vmatpush.msrb.mxu2 %v8394_v6 }
 0x2e9   :  { %1903 = vmatpush.msra.mxu0 %v8394_v6  ;;  %1922 = vmatpush.msrb.mxu1 %v8417_v32 }
 0x2ea   :  { %1944 = vmatpush.msrb.mxu2 %v8405_v48 }
 0x2eb   :  { %1904 = vmatpush.msra.mxu0 %v8405_v48  ;;  %1962 = vmatpush.msra.mxu3 %v8417_v32 }
 0x2ec   :  { %1923 = vmatpush.msrb.mxu1 %v8429_v19 }
 0x2ed   :  { %1963 = vmatpush.msra.mxu3 %v8429_v19 }
 0x2ee   :  { %1924 = vmatpush.msrb.mxu1 %v8441_v2 }
 0x2ef   :  { %1964 = vmatpush.msra.mxu3 %v8441_v2 }
 0x2f4   :  { %1411 = vmatmul.bf16.gmra.mxu0 %v882_v53  ;;  %1449 = vmatmul.bf16.gmra.mxu2 %v882_v53 }
 0x2f5   :  { %1468 = vmatmul.bf16.gmra.mxu3 %v883_v56 }
 0x2f6   :  { %1430 = vmatmul.bf16.gmra.mxu1 %v883_v56 }
 0x304   :  { %1724 = vmatmul.bf16.vlgmr.msrb.gmra.mxu0 %v1519_v8  ;;  %1762 = vmatmul.bf16.vlgmr.msra.gmra.mxu2 %v1519_v8 }
 0x305   :  { %1781 = vmatmul.bf16.vlgmr.msrb.gmra.mxu3 %v1520_v16 }
 0x306   :  { %1743 = vmatmul.bf16.vlgmr.msra.gmra.mxu1 %v1520_v16  ;;  %v8412_v16 = vld [vmem:[%s11304_s22 + $0x60] sm:$0xff] }
 0x307   :  { %1905 = vmatpush.msra.mxu0 %v8412_v16  ;;  %1945 = vmatpush.msrb.mxu2 %v8412_v16 }
 0x309   :  { %1906 = vmatpush.msra.mxu0 %v8422_v17  ;;  %1946 = vmatpush.msrb.mxu2 %v8422_v17 }
 0x30b   :  { %1907 = vmatpush.msra.mxu0 %v8436_v10  ;;  %1947 = vmatpush.msrb.mxu2 %v8436_v10 }
 0x314   :  { %1729 = vmatmul.bf16.gmra.mxu0 %v1521_v24  ;;  %1767 = vmatmul.bf16.gmra.mxu2 %v1521_v24  ;;  %v1800_v24 = vld [vmem:[%s11255_s9] sm:$0x3] }
 0x315   :  { %1786 = vmatmul.bf16.gmra.mxu3 %v1522_v27 }
 0x316   :  { %1748 = vmatmul.bf16.gmra.mxu1 %v1522_v27 }
 0x341   :  { %v1171_v62 = vpop.f32.mrf.mxu0 }
 0x343   :  { %v1190_v28 = vpop.f32.mrf.mxu1 }
 0x344   :  { %v1191_v8 = vadd.f32 %v1190_v28, %v1171_v62  ;;  %v8453_v28 = vld [vmem:[%s11304_s22 + $0x48] sm:$0xff] }
 0x345   :  { %1908 = vmatpush.msra.mxu0 %v8453_v28  ;;  %1948 = vmatpush.msrb.mxu2 %v8453_v28 }
 0x347   :  { %v1209_v0 = vpop.f32.mrf.mxu2 }
 0x348   :  { %v1228_v29 = vpop.f32.mrf.mxu3 }
 0x349   :  { %v1173_v58 = vpop.f32.mrf.mxu0  ;;  %v1229_v20 = vadd.f32 %v1228_v29, %v1209_v0  ;;  %v8460_v29 = vld [vmem:[%s11304_s22 + $0xe0] sm:$0xff] }
 0x34a   :  { %1925 = vmatpush.msrb.mxu1 %v8460_v29  ;;  %1965 = vmatpush.msra.mxu3 %v8460_v29 }
 0x34b   :  { %v1192_v12 = vpop.f32.mrf.mxu1 }
 0x34c   :  { %v1193_v54 = vadd.f32 %v1192_v12, %v1173_v58 }
 0x34f   :  { %v1211_v30 = vpop.f32.mrf.mxu2 }
 0x350   :  { %v1230_v31 = vpop.f32.mrf.mxu3 }
 0x351   :  { %v1176_v3 = vpop.f32.mrf.mxu0  ;;  %v1231_v22 = vadd.f32 %v1230_v31, %v1211_v30 }
 0x353   :  { %v1195_v1 = vpop.f32.mrf.mxu1 }
 0x354   :  { %v1196_v15 = vadd.f32 %v1195_v1, %v1176_v3  ;;  %v8464_v3 = vperm.slane %v1800_v24, 0 }
 0x357   :  { %v8360_v35 = vpop.f32.mrf.mxu2 }
 0x358   :  { %v8364_v38 = vpop.f32.mrf.mxu3 }
 0x359   :  { %v8362_v36 = vpop.f32.mrf.mxu0  ;;  %v1234_v12 = vadd.f32 %v8364_v38, %v8360_v35  ;;  %v8477_v35 = vld [vmem:[%s11304_s22 + $0xd8] sm:$0xff] }
 0x35a   :  { %1926 = vmatpush.msrb.mxu1 %v8477_v35  ;;  %1966 = vmatpush.msra.mxu3 %v8477_v35 }
 0x35b   :  { %v8366_v37 = vpop.f32.mrf.mxu1 }
 0x35f   :  { %v8368_v39 = vpop.f32.mrf.mxu2 }
 0x360   :  { %v8370_v59 = vpop.f32.mrf.mxu3 }
 0x361   :  { %v1407_v40 = vpop.f32.mrf.mxu0 }
 0x362   :  { %v1408_v63 = vadd.f32 %v1407_v40, %v1191_v8  ;;  %v8471_v40 = vld [vmem:[%s11304_s22 + $0x40] sm:$0xff] }
 0x363   :  { %v1426_v42 = vpop.f32.mrf.mxu1  ;;  %1909 = vmatpush.msra.mxu0 %v8471_v40  ;;  %1949 = vmatpush.msrb.mxu2 %v8471_v40 }
 0x364   :  { %v1427_v0 = vadd.f32 %v1426_v42, %v1408_v63 }
 0x367   :  { %v1445_v43 = vpop.f32.mrf.mxu2 }
 0x368   :  { %v8372_v45 = vpop.f32.mrf.mxu3  ;;  %v1446_v11 = vadd.f32 %v1445_v43, %v1229_v20 }
 0x369   :  { %v1409_v44 = vpop.f32.mrf.mxu0 }
 0x36a   :  { %v1410_v9 = vadd.f32 %v1409_v44, %v1193_v54  ;;  %v1465_v38 = vadd.f32 %v8372_v45, %v1446_v11  ;;  %v8494_v45 = vld [vmem:[%s11304_s22 + $0xd0] sm:$0xff]  ;;  %v8507_v54 = vperm.slane %v1800_v24, 1 }
 0x36b   :  { %v1428_v46 = vpop.f32.mrf.mxu1  ;;  %1927 = vmatpush.msrb.mxu1 %v8494_v45  ;;  %1967 = vmatpush.msra.mxu3 %v8494_v45 }
 0x36c   :  { %v1429_v27 = vadd.f32 %v1428_v46, %v1410_v9  ;;  %v8523_v9 = vld [vmem:[%s11304_s22 + $0x28] sm:$0xff] }
 0x36f   :  { %v1447_v34 = vpop.f32.mrf.mxu2 }
 0x370   :  { %v8374_v41 = vpop.f32.mrf.mxu3  ;;  %v1448_v58 = vadd.f32 %v1447_v34, %v1231_v22  ;;  %v8485_v34 = vld [vmem:[%s11304_s22 + $0x38] sm:$0xff] }
 0x371   :  { %v1412_v47 = vpop.f32.mrf.mxu0  ;;  %1910 = vmatpush.msra.mxu0 %v8485_v34  ;;  %1950 = vmatpush.msrb.mxu2 %v8485_v34 }
 0x372   :  { %v1413_v33 = vadd.f32 %v1412_v47, %v1196_v15  ;;  %v1467_v47 = vadd.f32 %v8374_v41, %v1448_v58  ;;  %v8504_v41 = vld [vmem:[%s11304_s22 + $0x30] sm:$0xff] }
 0x373   :  { %v1431_v51 = vpop.f32.mrf.mxu1  ;;  %1911 = vmatpush.msra.mxu0 %v8504_v41  ;;  %1951 = vmatpush.msrb.mxu2 %v8504_v41 }
 0x374   :  { %v1432_v30 = vadd.f32 %v1431_v51, %v1413_v33  ;;  %v1236_v33 = vadd.f32 %v8370_v59, %v8368_v39  ;;  %v8552_v39 = vld [vmem:[%s11304_s22 + $0xb8] sm:$0xff] }
 0x375   :  { %1912 = vmatpush.msra.mxu0 %v8523_v9  ;;  %1952 = vmatpush.msrb.mxu2 %v8523_v9 }
 0x377   :  { %v8376_v52 = vpop.f32.mrf.mxu2 }
 0x378   :  { %v8380_v55 = vpop.f32.mrf.mxu3  ;;  %v1451_v51 = vadd.f32 %v8376_v52, %v1234_v12 }
 0x379   :  { %v8378_v53 = vpop.f32.mrf.mxu0 }
 0x37a   :  { %v1470_v63 = vadd.f32 %v8380_v55, %v1451_v51  ;;  %v8542_v55 = vld [vmem:[%s11304_s22 + $0x20] sm:$0xff] }
 0x37b   :  { %v8382_v56 = vpop.f32.mrf.mxu1  ;;  %1913 = vmatpush.msra.mxu0 %v8542_v55  ;;  %1953 = vmatpush.msrb.mxu2 %v8542_v55 }
 0x37f   :  { %v8384_v57 = vpop.f32.mrf.mxu2 }
 0x380   :  { %v8398_v13 = vpop.f32.mrf.mxu3  ;;  %v1453_v58 = vadd.f32 %v8384_v57, %v1236_v33  ;;  %v8580_v57 = vld [vmem:[%s11304_s22 + $0x10] sm:$0xff] }
 0x381   :  { %v1725_v7 = vpop.f32.mrf.mxu0 }
 0x383   :  { %v1744_v61 = vpop.f32.mrf.mxu1 }
 0x384   :  { %v1745_v23 = vadd.f32 %v1744_v61, %v1725_v7 }
 0x386   :  { %v1792_v42 = vadd.f32 %v1745_v23, %v1427_v0  ;;  %v8562_v0 = vld [vmem:[%s11304_s22 + $0x18] sm:$0xff] }
 0x387   :  { %v1763_v4 = vpop.f32.mrf.mxu2  ;;  %1914 = vmatpush.msra.mxu0 %v8562_v0  ;;  %1954 = vmatpush.msrb.mxu2 %v8562_v0 }
 0x388   :  { %v1782_v5 = vpop.f32.mrf.mxu3  ;;  %v1806_v52 = vadd.f32 %v8464_v3, %v1792_v42 }
 0x389   :  { %v1727_v49 = vpop.f32.mrf.mxu0  ;;  %v1783_v43 = vadd.f32 %v1782_v5, %v1763_v4  ;;  %v1198_v4 = vadd.f32 %v8366_v37, %v8362_v36  ;;  %v8514_v36 = vld [vmem:[%s11304_s22 + $0xc8] sm:$0xff]  ;;  %1915 = vmatpush.msra.mxu0 %v8580_v57  ;;  %1955 = vmatpush.msrb.mxu2 %v8580_v57 }
 0x38a   :  { %1928 = vmatpush.msrb.mxu1 %v8514_v36  ;;  %v8544_v23 = vmax.f32 %v1806_v52, 0.0  ;;  %1968 = vmatpush.msra.mxu3 %v8514_v36 }
 0x38b   :  { %v1746_v14 = vpop.f32.mrf.mxu1  ;;  %v1793_v5 = vadd.f32 %v1783_v43, %v1465_v38  ;;  %v1415_v37 = vadd.f32 %v8378_v53, %v1198_v4  ;;  %v8531_v53 = vld [vmem:[%s11304_s22 + $0xc0] sm:$0xff]  ;;  %v1472_v4 = vadd.f32 %v8398_v13, %v1453_v58 }
 0x38c   :  { %v1747_v21 = vadd.f32 %v1746_v14, %v1727_v49  ;;  %1929 = vmatpush.msrb.mxu1 %v8531_v53  ;;  %1969 = vmatpush.msra.mxu3 %v8531_v53  ;;  %v1842_v42 = vmul.f32 %v8544_v23, %v8544_v23  ;;  %v8625_v13 = vld [vmem:[%s11304_s22] sm:$0xff] }
 0x38d   :  { %v1807_v24 = vadd.f32 %v8507_v54, %v1793_v5  ;;  %v1434_v59 = vadd.f32 %v8382_v56, %v1415_v37  ;;  %v8571_v56 = vld [vmem:[%s11304_s22 + $0xb0] sm:$0xff] }
 0x38e   :  { %v1794_v31 = vadd.f32 %v1747_v21, %v1429_v27  ;;  %1930 = vmatpush.msrb.mxu1 %v8552_v39  ;;  %1970 = vmatpush.msra.mxu3 %v8552_v39 }
 0x38f   :  { %v1765_v18 = vpop.f32.mrf.mxu2  ;;  %v8584_v43 = vmax.f32 %v1807_v24, 0.0 }
 0x390   :  { %v1784_v62 = vpop.f32.mrf.mxu3  ;;  %v1808_v49 = vadd.f32 %v8464_v3, %v1794_v31  ;;  %1931 = vmatpush.msrb.mxu1 %v8571_v56  ;;  %1971 = vmatpush.msra.mxu3 %v8571_v56 }
 0x391   :  { %v1730_v26 = vpop.f32.mrf.mxu0  ;;  %v1785_v44 = vadd.f32 %v1784_v62, %v1765_v18 }
 0x392   :  { %v8535_v21 = vmax.f32 %v1808_v49, 0.0 }
 0x393   :  { %v1749_v1 = vpop.f32.mrf.mxu1  ;;  %v1795_v14 = vadd.f32 %v1785_v44, %v1467_v47 }
 0x394   :  { %v1750_v46 = vadd.f32 %v1749_v1, %v1730_v26  ;;  %v1822_v38 = vadd.f32 %v8535_v21, %v8544_v23 }
 0x395   :  { %v1809_v26 = vadd.f32 %v8507_v54, %v1795_v14 }
 0x396   :  { %v1796_v7 = vadd.f32 %v1750_v46, %v1432_v30  ;;  %v1844_v30 = vmul.f32 %v8535_v21, %v8535_v21  ;;  %v8593_v46 = vld [vmem:[%s11304_s22 + $0xa8] sm:$0xff] }
 0x397   :  { %v1768_v61 = vpop.f32.mrf.mxu2  ;;  %v8586_v44 = vmax.f32 %v1809_v26, 0.0  ;;  %1932 = vmatpush.msrb.mxu1 %v8593_v46  ;;  %1972 = vmatpush.msra.mxu3 %v8593_v46 }
 0x398   :  { %v1810_v8 = vadd.f32 %v8464_v3, %v1796_v7  ;;  %v1787_v15 = vpop.f32.mrf.mxu3  ;;  %v1850_v5 = vadd.f32 %v1844_v30, %v1842_v42 }
 0x399   :  { %v1788_v18 = vadd.f32 %v1787_v15, %v1768_v61  ;;  %v1732_v20 = vpop.f32.mrf.mxu0  ;;  %v8605_v61 = vld [vmem:[%s11304_s22 + $0x8] sm:$0xff]  ;;  %v1845_v15 = vmul.f32 %v8586_v44, %v8586_v44  ;;  %v1831_v24 = vadd.f32 %v8586_v44, %v8584_v43 }
 0x39a   :  { %v8555_v27 = vmax.f32 %v1810_v8, 0.0  ;;  %v1843_v8 = vmul.f32 %v8584_v43, %v8584_v43  ;;  %1916 = vmatpush.msra.mxu0 %v8605_v61  ;;  %1956 = vmatpush.msrb.mxu2 %v8605_v61 }
 0x39b   :  { %v1751_v22 = vpop.f32.mrf.mxu1  ;;  %v1797_v11 = vadd.f32 %v1788_v18, %v1470_v63  ;;  %v8636_v18 = vld [vmem:[%s11304_s22 + $0x98] sm:$0xff] }
 0x39c   :  { %v1752_v62 = vadd.f32 %v1751_v22, %v1732_v20  ;;  %v1846_v47 = vmul.f32 %v8555_v27, %v8555_v27  ;;  %v1823_v14 = vadd.f32 %v1822_v38, %v8555_v27  ;;  %1917 = vmatpush.msra.mxu0 %v8625_v13  ;;  %1957 = vmatpush.msrb.mxu2 %v8625_v13 }
 0x39d   :  { %v1811_v12 = vadd.f32 %v8507_v54, %v1797_v11 }
 0x39e   :  { %v1798_v31 = vadd.f32 %v1752_v62, %v1434_v59  ;;  %v1851_v20 = vadd.f32 %v1850_v5, %v1846_v47  ;;  %v8653_v59 = vld [vmem:[%s11304_s22 + $0x90] sm:$0xff] }
 0x39f   :  { %v1770_v1 = vpop.f32.mrf.mxu2  ;;  %v8608_v49 = vmax.f32 %v1811_v12, 0.0  ;;  %v1859_v12 = vadd.f32 %v1845_v15, %v1843_v8 }
 0x3a0   :  { %v1812_v51 = vadd.f32 %v8464_v3, %v1798_v31  ;;  %v1789_v7 = vpop.f32.mrf.mxu3  ;;  %v8615_v3 = vld [vmem:[%s11304_s22 + $0xa0] sm:$0xff] }
 0x3a1   :  { %v1790_v52 = vadd.f32 %v1789_v7, %v1770_v1  ;;  %1933 = vmatpush.msrb.mxu1 %v8615_v3  ;;  %v1847_v26 = vmul.f32 %v8608_v49, %v8608_v49  ;;  %1973 = vmatpush.msra.mxu3 %v8615_v3  ;;  %v1832_v30 = vadd.f32 %v1831_v24, %v8608_v49  ;;  %v8674_v7 = vld [vmem:[%s11304_s22 + $0x80] sm:$0xff] }
 0x3a2   :  { %v8618_v37 = vmax.f32 %v1812_v51, 0.0 }
 0x3a3   :  { %v1799_v63 = vadd.f32 %v1790_v52, %v1472_v4  ;;  %1934 = vmatpush.msrb.mxu1 %v8636_v18  ;;  %1974 = vmatpush.msra.mxu3 %v8636_v18  ;;  %v1860_v38 = vadd.f32 %v1859_v12, %v1847_v26 }
 0x3a4   :  { %v1824_v33 = vadd.f32 %v1823_v14, %v8618_v37  ;;  %v1848_v22 = vmul.f32 %v8618_v37, %v8618_v37 }
 0x3a5   :  { %v1813_v11 = vadd.f32 %v8507_v54, %v1799_v63  ;;  %v8664_v54 = vld [vmem:[%s11304_s22 + $0x88] sm:$0xff]  ;;  %1935 = vmatpush.msrb.mxu1 %v8653_v59  ;;  %1975 = vmatpush.msra.mxu3 %v8653_v59 }
 0x3a6   :  { %v1825_v62 = vrot.slane %v1824_v33, 4  ;;  %v1852_v58 = vadd.f32 %v1851_v20, %v1848_v22 }
 0x3a7   :  { %v8658_v31 = vmax.f32 %v1813_v11, 0.0  ;;  %1936 = vmatpush.msrb.mxu1 %v8664_v54  ;;  %1976 = vmatpush.msra.mxu3 %v8664_v54 }
 0x3a8   :  { %v1826_v1 = vadd.f32 %v1825_v62, %v1824_v33  ;;  %v1853_v42 = vrot.slane %v1852_v58, 4 }
 0x3a9   :  { %v1833_v47 = vadd.f32 %v1832_v30, %v8658_v31  ;;  %v1849_v51 = vmul.f32 %v8658_v31, %v8658_v31  ;;  %1937 = vmatpush.msrb.mxu1 %v8674_v7  ;;  %1977 = vmatpush.msra.mxu3 %v8674_v7 }
 0x3aa   :  { %v1854_v4 = vadd.f32 %v1853_v42, %v1852_v58  ;;  %v1827_v52 = vrot.slane %v1826_v1, 2 }
 0x3ab   :  { %v1834_v5 = vrot.slane %v1833_v47, 4  ;;  %v1861_v14 = vadd.f32 %v1860_v38, %v1849_v51 }
 0x3ac   :  { %v1855_v8 = vrot.slane %v1854_v4, 2  ;;  %v1828_v15 = vadd.f32 %v1827_v52, %v1826_v1 }
 0x3ad   :  { %v1835_v63 = vadd.f32 %v1834_v5, %v1833_v47  ;;  %v1862_v20 = vrot.slane %v1861_v14, 4 }
 0x3ae   :  { %v1829_v33 = vrot.slane %v1828_v15, 1  ;;  %v1856_v22 = vadd.f32 %v1855_v8, %v1854_v4  ;;  %v8688_v8 = vld [vmem:[%s11308_s5 + $0x10] sm:$0xff] }
 0x3af   :  { %v1836_v24 = vrot.slane %v1835_v63, 2  ;;  %v1863_v26 = vadd.f32 %v1862_v20, %v1861_v14  ;;  %2021 = vmatpush.msrb.mxu0 %v8688_v8  ;;  %2074 = vmatpush.msra.mxu2 %v8688_v8 }
 0x3b0   :  { %v1830_v11 = vadd.f32 %v1829_v33, %v1828_v15  ;;  %v1857_v62 = vrot.slane %v1856_v22, 1  ;;  %v8693_v15 = vld [vmem:[%s11308_s5 + $0x18] sm:$0xff] }
 0x3b1   :  { %v1837_v58 = vadd.f32 %v1836_v24, %v1835_v63  ;;  %v1864_v12 = vrot.slane %v1863_v26, 2  ;;  %v8698_v63 = vld [vmem:[%s11308_s5] sm:$0xff]  ;;  %2041 = vmatpush.msra.mxu1 %v8693_v15  ;;  %2094 = vmatpush.msrb.mxu3 %v8693_v15 }
 0x3b2   :  { %v1840_v30 = vmul.f32 %v1830_v11, %v7573_v50  ;;  %v1858_v42 = vadd.f32 %v1857_v62, %v1856_v22  ;;  %2022 = vmatpush.msrb.mxu0 %v8698_v63  ;;  %2075 = vmatpush.msra.mxu2 %v8698_v63 }
 0x3b3   :  { %v1838_v1 = vrot.slane %v1837_v58, 1  ;;  %v1865_v38 = vadd.f32 %v1864_v12, %v1863_v26 }
 0x3b4   :  { %1918 = vmatmul.f32.vlgmr.msra.gmra.mxu0 %v1840_v30  ;;  %v1868_v51 = vmul.f32 %v1858_v42, %v7573_v50  ;;  %v2193_v30 = vld [vmem:[%s11258_s12 + $0x8] sm:$0xff] }
 0x3b5   :  { %v1839_v47 = vadd.f32 %v1838_v1, %v1837_v58  ;;  %v1866_v52 = vrot.slane %v1865_v38, 1  ;;  %2110 = vmatpush.msra.mxu0 %v8389_v60 }
 0x3b6   :  { %1958 = vmatmul.f32.vlgmr.msrb.gmra.mxu2 %v1868_v51 }
 0x3b7   :  { %v1841_v4 = vmul.f32 %v1839_v47, %v7573_v50  ;;  %v1867_v5 = vadd.f32 %v1866_v52, %v1865_v38  ;;  %2111 = vmatpush.msra.mxu0 %v8394_v6 }
 0x3b9   :  { %1938 = vmatmul.f32.vlgmr.msrb.gmra.mxu1 %v1841_v4  ;;  %v1869_v14 = vmul.f32 %v1867_v5, %v7573_v50  ;;  %v8705_v50 = vld [vmem:[%s11308_s5 + $0x8] sm:$0xff]  ;;  %2112 = vmatpush.msra.mxu0 %v8405_v48 }
 0x3ba   :  { %2042 = vmatpush.msra.mxu1 %v8705_v50  ;;  %2095 = vmatpush.msrb.mxu3 %v8705_v50 }
 0x3bb   :  { %1978 = vmatmul.f32.vlgmr.msra.gmra.mxu3 %v1869_v14  ;;  %2113 = vmatpush.msra.mxu0 %v8412_v16  ;;  %v2168_v14 = vld [vmem:[%s11259_s24] sm:$0x3] }
 0x3bc   :  { %2139 = vmatpush.msrb.mxu1 %v8417_v32  ;;  %2215 = vmatpush.msra.mxu3 %v2193_v30  ;;  %v5988_v30 = vld [vmem:[%s11263_s21 + $0x1e0] sm:$0xff] }
 0x3bd   :  { %2114 = vmatpush.msra.mxu0 %v8422_v17 }
 0x3be   :  { %2140 = vmatpush.msrb.mxu1 %v8429_v19 }
 0x3bf   :  { %2115 = vmatpush.msra.mxu0 %v8436_v10  ;;  %v1984_v10 = vld [vmem:[%s11256_s10] sm:$0x1]  ;;  %s11375_s10 = sld [smem:[#allocation46_spill]] }
 0x3c0   :  { %2141 = vmatpush.msrb.mxu1 %v8441_v2 }
 0x3c1   :  { %2116 = vmatpush.msra.mxu0 %v8453_v28 }
 0x3c2   :  { %2142 = vmatpush.msrb.mxu1 %v8460_v29  ;;  %v1997_v29 = vld [vmem:[%s11257_s11] sm:$0x1] }
 0x3c3   :  { %2117 = vmatpush.msra.mxu0 %v8471_v40 }
 0x3c4   :  { %2143 = vmatpush.msrb.mxu1 %v8477_v35 }
 0x3c5   :  { %2118 = vmatpush.msra.mxu0 %v8485_v34 }
 0x3c6   :  { %2144 = vmatpush.msrb.mxu1 %v8494_v45 }
 0x3c7   :  { %2119 = vmatpush.msra.mxu0 %v8504_v41 }
 0x3c8   :  { %2145 = vmatpush.msrb.mxu1 %v8514_v36 }
 0x3c9   :  { %2120 = vmatpush.msra.mxu0 %v8523_v9 }
 0x3ca   :  { %2146 = vmatpush.msrb.mxu1 %v8531_v53 }
 0x3cb   :  { %2121 = vmatpush.msra.mxu0 %v8542_v55 }
 0x3cc   :  { %2147 = vmatpush.msrb.mxu1 %v8552_v39 }
 0x3cd   :  { %2122 = vmatpush.msra.mxu0 %v8562_v0 }
 0x3ce   :  { %2148 = vmatpush.msrb.mxu1 %v8571_v56 }
 0x3cf   :  { %2123 = vmatpush.msra.mxu0 %v8580_v57 }
 0x3d0   :  { %2149 = vmatpush.msrb.mxu1 %v8593_v46 }
 0x3d1   :  { %2124 = vmatpush.msra.mxu0 %v8605_v61 }
 0x3d2   :  { %2150 = vmatpush.msrb.mxu1 %v8615_v3 }
 0x3d3   :  { %2125 = vmatpush.msra.mxu0 %v8625_v13 }
 0x3d4   :  { %2151 = vmatpush.msrb.mxu1 %v8636_v18 }
 0x3d6   :  { %2152 = vmatpush.msrb.mxu1 %v8653_v59 }
 0x3d8   :  { %2153 = vmatpush.msrb.mxu1 %v8664_v54 }
 0x3da   :  { %2154 = vmatpush.msrb.mxu1 %v8674_v7 }
 0x431   :  { %v1919_v33 = vpop.f32.mrf.mxu0 }
 0x436   :  { %v1939_v20 = vpop.f32.mrf.mxu1 }
 0x437   :  { %v1940_v22 = vadd.f32 %v1939_v20, %v1919_v33  ;;  %v2192_v20 = vld [vmem:[%s11258_s12] sm:$0xff]  ;;  %v32_v33 = vstv %s11260_s13 }
 0x438   :  { %2216 = vmatpush.msra.mxu3 %v2192_v20  ;;  %33 = vst [vmem:[#allocation4] sm:$0x1] %v32_v33  ;;  %v5969_v20 = vld [vmem:[%s11263_s21 + $0x148] sm:$0xff] }
 0x439   :  { %v1959_v24 = vpop.f32.mrf.mxu2  ;;  %v1982_v11 = vmul.f32 %v1940_v22, %v1940_v22  ;;  %v5985_v33 = vld [vmem:[%s11263_s21 + $0x1c8] sm:$0xff] }
 0x43e   :  { %v1979_v26 = vpop.f32.mrf.mxu3 }
 0x43f   :  { %v1980_v62 = vadd.f32 %v1979_v26, %v1959_v24  ;;  %v2222_v24 = vld [vmem:[%s11262_s14] sm:$0x1]  ;;  %v7085_v26 = vld [vmem:[#allocation4] ss:$0 sm:$0xff] }
 0x441   :  { %v1983_v58 = vsub.f32 %v1980_v62, %v1982_v11 }
 0x443   :  { %v1985_v60 = vadd.f32 1e-05, %v1983_v58 }
 0x445   :  { %7093 = vrsqrt.f32 %v1985_v60  ;;  %vm1992_vm14 = vweird.f32 %v1985_v60 }
 0x44b   :  { %v7094_v6 = vpop.eup %7093 }
 0x44c   :  { %v1987_v48 = vmul.f32 %v7094_v6, %v1985_v60  ;;  %vm1993_vm13 = vweird.f32 %v7094_v6  ;;  %v7086_v60 = vld [vmem:[%s11261_s15] ss:$0 sm:$0xff] }
 0x44d   :  { %vm1994_vm15 = vmor %vm1992_vm14, %vm1993_vm13 }
 0x44e   :  { %v1988_v16 = vmul.f32 %v7094_v6, %v1987_v48 }
 0x450   :  { %v1989_v32 = vmul.f32 0.5, %v1988_v16 }
 0x452   :  { %v1990_v17 = vsub.f32 1.5, %v1989_v32 }
 0x454   :  { %v1991_v19 = vmul.f32 %v7094_v6, %v1990_v17 }
 0x456   :  { %v1995_v2 = vsel %vm1994_vm15, %v7094_v6, %v1991_v19 }
 0x457   :  { %v1996_v28 = vmul.f32 %v1995_v2, %v1984_v10 }
 0x459   :  { %v1998_v40 = vmul.f32 %v1996_v28, %v1940_v22  ;;  %5938 = vmatmul.msk.f32.vlgmr.msrb.gmra.mxu0 %vm543_vm6, %v1996_v28  ;;  %5939 = vmatmul.msk.f32.vlgmr.msra.gmra.mxu1 %vm543_vm6, %v1996_v28 }
 0x45b   :  { %v1999_v35 = vsub.f32 %v1997_v29, %v1998_v40 }
 0x45d   :  { %5940 = vmatmul.msk.f32.vlgmr.msra.gmra.mxu2 %vm543_vm6, %v1999_v35  ;;  %5941 = vmatmul.msk.f32.vlgmr.msrb.gmra.mxu3 %vm543_vm6, %v1999_v35 }
 0x4d6   :  { %v2024_v34 = vpop.f32.mrf.mxu0  ;;  %v2044_v45 = vpop.f32.mrf.mxu1 }
 0x4d7   :  { %v2047_v41 = vperm.slane %v2024_v34, 0  ;;  %v2048_v36 = vperm.slane %v2044_v45, 0  ;;  %v2273_v34 = vld [vmem:[%s11312_s29] sm:$0xff] }
 0x4d9   :  { %v2049_v0 = vmul.f32 %v2047_v41, %v8544_v23  ;;  %v2050_v56 = vmul.f32 %v2048_v36, %v8584_v43  ;;  %v2051_v61 = vmul.f32 %v2047_v41, %v8535_v21  ;;  %v2052_v3 = vmul.f32 %v2048_v36, %v8586_v44 }
 0x4da   :  { %v2053_v23 = vmul.f32 %v2047_v41, %v8555_v27  ;;  %v2054_v43 = vmul.f32 %v2048_v36, %v8608_v49  ;;  %v2055_v21 = vmul.f32 %v2047_v41, %v8618_v37  ;;  %v2056_v44 = vmul.f32 %v2048_v36, %v8658_v31  ;;  %v2274_v41 = vld [vmem:[%s11312_s29 + $0x8] sm:$0xff]  ;;  %v2275_v36 = vld [vmem:[%s11312_s29 + $0x10] sm:$0xff] }
 0x4e0   :  { %v2077_v9 = vpop.f32.mrf.mxu2  ;;  %v2097_v53 = vpop.f32.mrf.mxu3 }
 0x4e1   :  { %v2100_v55 = vperm.slane %v2077_v9, 0  ;;  %v2101_v39 = vperm.slane %v2097_v53, 0  ;;  %v2276_v9 = vld [vmem:[%s11312_s29 + $0x18] sm:$0xff] }
 0x4e2   :  { %v5975_v53 = vld [vmem:[%s11263_s21 + $0x178] sm:$0xff] }
 0x4e3   :  { %v8757_v57 = vadd.f32 %v2100_v55, %v2049_v0  ;;  %v8759_v46 = vadd.f32 %v2101_v39, %v2050_v56  ;;  %v8765_v13 = vadd.f32 %v2100_v55, %v2051_v61  ;;  %v8767_v18 = vadd.f32 %v2101_v39, %v2052_v3  ;;  %v2429_v0 = vld [vmem:[%s11263_s21 + $0xf0] sm:$0xff]  ;;  %2522 = vmatpush.msra.mxu1 %v5975_v53  ;;  %v2412_v3 = vld [vmem:[%s11263_s21 + $0x68] sm:$0xff] }
 0x4e4   :  { %v8773_v59 = vadd.f32 %v2100_v55, %v2053_v23  ;;  %v8775_v54 = vadd.f32 %v2101_v39, %v2054_v43  ;;  %v8781_v7 = vadd.f32 %v2100_v55, %v2055_v21  ;;  %v8783_v12 = vadd.f32 %v2101_v39, %v2056_v44  ;;  %v5991_v55 = vld [vmem:[%s11263_s21 + $0x1f8] sm:$0xff]  ;;  %v2413_v39 = vld [vmem:[%s11263_s21 + $0x70] sm:$0xff]  ;;  %v2428_v23 = vld [vmem:[%s11263_s21 + $0xe8] sm:$0xff] }
 0x4e5   :  { %2126 = vmatmul.f32.vlgmr.msra.gmra.mxu0 %v8757_v57  ;;  %2155 = vmatmul.f32.vlgmr.msrb.gmra.mxu1 %v8759_v46  ;;  %v5974_v56 = vld [vmem:[%s11263_s21 + $0x170] sm:$0xff]  ;;  %v5973_v43 = vld [vmem:[%s11263_s21 + $0x168] sm:$0xff]  ;;  %v2411_v44 = vld [vmem:[%s11263_s21 + $0x60] sm:$0xff] }
 0x4e6   :  { %v5990_v61 = vld [vmem:[%s11263_s21 + $0x1f0] sm:$0xff]  ;;  %v5989_v21 = vld [vmem:[%s11263_s21 + $0x1e8] sm:$0xff]  ;;  %2523 = vmatpush.msra.mxu1 %v5974_v56 }
 0x4e7   :  { %v5962_v53 = vld [vmem:[%s11263_s21 + $0x110] sm:$0xff]  ;;  %v2416_v56 = vld [vmem:[%s11263_s21 + $0x88] sm:$0xff] }
 0x4e8   :  { %2524 = vmatpush.msra.mxu1 %v5973_v43  ;;  %v2415_v43 = vld [vmem:[%s11263_s21 + $0x80] sm:$0xff] }
 0x4ed   :  { %2129 = vmatmul.f32.gmra.mxu0 %v8765_v13  ;;  %2158 = vmatmul.f32.gmra.mxu1 %v8767_v18 }
 0x4f5   :  { %2132 = vmatmul.f32.gmra.mxu0 %v8773_v59  ;;  %2161 = vmatmul.f32.gmra.mxu1 %v8775_v54 }
 0x4fd   :  { %2135 = vmatmul.f32.gmra.mxu0 %v8781_v7  ;;  %2164 = vmatmul.f32.gmra.mxu1 %v8783_v12 }
 0x562   :  { %v2127_v27 = vpop.f32.mrf.mxu0  ;;  %v2156_v49 = vpop.f32.mrf.mxu1 }
 0x563   :  { %v2157_v5 = vadd.f32 %v2156_v49, %v2127_v27  ;;  %v2427_v27 = vld [vmem:[%s11263_s21 + $0xe0] sm:$0xff] }
 0x564   :  { %v5972_v49 = vld [vmem:[%s11263_s21 + $0x160] sm:$0xff] }
 0x565   :  { %2525 = vmatpush.msra.mxu1 %v5972_v49  ;;  %v6023_v49 = vld [vmem:[%s11263_s21 + $0x2f8] sm:$0xff] }
 0x56a   :  { %v2130_v42 = vpop.f32.mrf.mxu0  ;;  %v2159_v1 = vpop.f32.mrf.mxu1 }
 0x56b   :  { %v2160_v4 = vadd.f32 %v2159_v1, %v2130_v42  ;;  %v2410_v1 = vld [vmem:[%s11263_s21 + $0x58] sm:$0xff] }
 0x572   :  { %v2133_v37 = vpop.f32.mrf.mxu0  ;;  %v2162_v38 = vpop.f32.mrf.mxu1 }
 0x573   :  { %v2163_v52 = vadd.f32 %v2162_v38, %v2133_v37  ;;  %v2426_v37 = vld [vmem:[%s11263_s21 + $0xd8] sm:$0xff] }
 0x574   :  { %v5971_v38 = vld [vmem:[%s11263_s21 + $0x158] sm:$0xff] }
 0x575   :  { %2526 = vmatpush.msra.mxu1 %v5971_v38  ;;  %v6038_v38 = vld [vmem:[%s11263_s21 + $0x370] sm:$0xff] }
 0x57a   :  { %v2136_v31 = vpop.f32.mrf.mxu0  ;;  %v2165_v51 = vpop.f32.mrf.mxu1 }
 0x57b   :  { %v2166_v47 = vadd.f32 %v2165_v51, %v2136_v31  ;;  %v5987_v31 = vld [vmem:[%s11263_s21 + $0x1d8] sm:$0xff]  ;;  %v2409_v51 = vld [vmem:[%s11263_s21 + $0x50] sm:$0xff] }
 0x57d   :  { %2184 = vmatpush.msrb.mxu2 %v2166_v47  ;;  %v2425_v47 = vld [vmem:[%s11263_s21 + $0xd0] sm:$0xff] }
 0x57f   :  { %2185 = vmatpush.msrb.mxu2 %v2163_v52  ;;  %v5970_v52 = vld [vmem:[%s11263_s21 + $0x150] sm:$0xff] }
 0x580   :  { %2527 = vmatpush.msra.mxu1 %v5970_v52  ;;  %v6037_v52 = vld [vmem:[%s11263_s21 + $0x368] sm:$0xff] }
 0x581   :  { %2186 = vmatpush.msrb.mxu2 %v2160_v4  ;;  %v5986_v4 = vld [vmem:[%s11263_s21 + $0x1d0] sm:$0xff] }
 0x582   :  { %2528 = vmatpush.msra.mxu1 %v5969_v20  ;;  %v6036_v20 = vld [vmem:[%s11263_s21 + $0x360] sm:$0xff] }
 0x583   :  { %2187 = vmatpush.msrb.mxu2 %v2157_v5  ;;  %v2408_v5 = vld [vmem:[%s11263_s21 + $0x48] sm:$0xff] }
 0x584   :  { %5942 = vmatmul.msk.f32.vlgmr.msrb.gmra.mxu2 %vm659_vm2, %v2168_v14  ;;  %v2424_v14 = vld [vmem:[%s11263_s21 + $0xc8] sm:$0xff] }
 0x585   :  { %5944 = vmatpush.msk.msra.mxu2 %vm835_vm10, %v2222_v24  ;;  %v2423_v24 = vld [vmem:[%s11263_s21 + $0xc0] sm:$0xff] }
 0x587   :  { %2347 = vmatpush.msrb.mxu2 %v8688_v8 }
 0x589   :  { %2348 = vmatpush.msrb.mxu2 %v8698_v63 }
 0x607   :  { %v2189_v22 = vpop.f32.mrf.mxu2 }
 0x608   :  { %5943 = vmatmul.msk.f32.vlgmr.msra.gmra.mxu3 %vm543_vm6, %v2189_v22  ;;  %v2407_v22 = vld [vmem:[%s11263_s21 + $0x40] sm:$0xff] }
 0x68b   :  { %v2218_v11 = vpop.f32.mrf.mxu3 }
 0x68c   :  { %v2219_v62 = vadd.f32 %v7085_v26, %v2218_v11  ;;  %v5968_v11 = vld [vmem:[%s11263_s21 + $0x140] sm:$0xff] }
 0x68d   :  { %2529 = vmatpush.msra.mxu1 %v5968_v11  ;;  %v6051_v11 = vld [vmem:[%s11263_s21 + $0x3d8] sm:$0xff] }
 0x68e   :  { %v2221_v58 = vmax.f32 %v2219_v62, 0.0  ;;  %v5984_v62 = vld [vmem:[%s11263_s21 + $0x1c0] sm:$0xff] }
 0x690   :  { %5945 = vmatmul.msk.f32.vlgmr.msra.gmra.mxu2 %vm2227_vm0, %v2221_v58  ;;  %v2406_v58 = vld [vmem:[%s11263_s21 + $0x38] sm:$0xff] }
 0x713   :  { %v2251_v6 = vpop.f32.mrf.mxu2 }
 0x714   :  { %v2252_v48 = vadd.f32 %v7086_v60, %v2251_v6  ;;  %v2422_v60 = vld [vmem:[%s11263_s21 + $0xb8] sm:$0xff] }
 0x715   :  { %v5967_v6 = vld [vmem:[%s11263_s21 + $0x138] sm:$0xff] }
 0x716   :  { %v5946_v16 = vmul.f32 -1.442695, %v2252_v48  ;;  %v5983_v48 = vld [vmem:[%s11263_s21 + $0x1b8] sm:$0xff]  ;;  %2530 = vmatpush.msra.mxu1 %v5967_v6  ;;  %v6050_v6 = vld [vmem:[%s11263_s21 + $0x3d0] sm:$0xff] }
 0x718   :  { %7095 = vpow2.f32 %v5946_v16  ;;  %v2405_v16 = vld [vmem:[%s11263_s21 + $0x30] sm:$0xff] }
 0x71e   :  { %v7096_v32 = vpop.eup %7095 }
 0x71f   :  { %v2257_v17 = vadd.f32 1.0, %v7096_v32  ;;  %v2421_v32 = vld [vmem:[%s11263_s21 + $0xb0] sm:$0xff] }
 0x721   :  { %7097 = vrcp.f32 %v2257_v17  ;;  %v2269_v10 = vand.u32 2147483648, %v2257_v17  ;;  %v2267_v28 = vand.u32 2147483647, %v2257_v17  ;;  %vm2263_vm3 = vweird.f32 %v2257_v17 }
 0x723   :  { %v2270_v40 = vor.u32 1.1754944e-38, %v2269_v10  ;;  %vm2268_vm5 = vcmp.eq.f32.partialorder %v2267_v28, 8.507059e+37  ;;  %v5965_v10 = vld [vmem:[%s11263_s21 + $0x128] sm:$0xff] }
 0x727   :  { %v7098_v8 = vpop.eup %7097 }
 0x728   :  { %v2259_v19 = vmul.f32 %v7098_v8, %v2257_v17  ;;  %vm2264_vm1 = vweird.f32 %v7098_v8  ;;  %v5966_v17 = vld [vmem:[%s11263_s21 + $0x130] sm:$0xff] }
 0x729   :  { %vm2265_vm4 = vmor %vm2263_vm3, %vm2264_vm1  ;;  %2531 = vmatpush.msra.mxu1 %v5966_v17  ;;  %v6049_v17 = vld [vmem:[%s11263_s21 + $0x3c8] sm:$0xff] }
 0x72a   :  { %v2260_v63 = vsub.f32 1.0, %v2259_v19  ;;  %v2404_v19 = vld [vmem:[%s11263_s21 + $0x28] sm:$0xff] }
 0x72b   :  { %2532 = vmatpush.msra.mxu1 %v5965_v10  ;;  %v6048_v10 = vld [vmem:[%s11263_s21 + $0x3c0] sm:$0xff] }
 0x72c   :  { %v2261_v2 = vmul.f32 %v7098_v8, %v2260_v63  ;;  %v2420_v63 = vld [vmem:[%s11263_s21 + $0xa8] sm:$0xff] }
 0x72e   :  { %v2262_v29 = vadd.f32 %v7098_v8, %v2261_v2  ;;  %v5981_v2 = vld [vmem:[%s11263_s21 + $0x1a8] sm:$0xff] }
 0x730   :  { %v2266_v35 = vsel %vm2265_vm4, %v7098_v8, %v2262_v29  ;;  %v5982_v8 = vld [vmem:[%s11263_s21 + $0x1b0] sm:$0xff]  ;;  %v2403_v29 = vld [vmem:[%s11263_s21 + $0x20] sm:$0xff] }
 0x731   :  { %v2271_v45 = vsel %vm2268_vm5, %v2270_v40, %v2266_v35  ;;  %v2419_v40 = vld [vmem:[%s11263_s21 + $0xa0] sm:$0xff] }
 0x732   :  { %5947 = vmatpush.msk.msrb.mxu3 %vm701_vm7, %v2271_v45  ;;  %v5964_v35 = vld [vmem:[%s11263_s21 + $0x120] sm:$0xff]  ;;  %v2402_v45 = vld [vmem:[%s11263_s21 + $0x18] sm:$0xff]  ;;  %vm3978_vm7 = vcmask 256000  }
 0x733   :  { %5948 = vmatmul.msk.f32.vlgmr.msrb.gmra.mxu3 %vm688_vm8, %v2273_v34  ;;  %v5980_v34 = vld [vmem:[%s11263_s21 + $0x1a0] sm:$0xff]  ;;  %2533 = vmatpush.msra.mxu1 %v5964_v35  ;;  %v5998_v35 = vld [vmem:[%s11263_s21 + $0x230] sm:$0xff] }
 0x734   :  { %2376 = vmatpush.msra.mxu3 %v8693_v15  ;;  %v2414_v15 = vld [vmem:[%s11263_s21 + $0x78] sm:$0xff] }
 0x735   :  { %2431 = vmatpush.msra.mxu2 %v2414_v15  ;;  %v2401_v15 = vld [vmem:[%s11263_s21 + $0x10] sm:$0xff] }
 0x736   :  { %2377 = vmatpush.msra.mxu3 %v8705_v50  ;;  %v2430_v50 = vld [vmem:[%s11263_s21 + $0xf8] sm:$0xff] }
 0x737   :  { %2460 = vmatpush.msrb.mxu0 %v2430_v50  ;;  %2432 = vmatpush.msra.mxu2 %v2413_v39  ;;  %v2417_v50 = vld [vmem:[%s11263_s21 + $0x90] sm:$0xff] }
 0x738   :  { %2551 = vmatpush.msrb.mxu3 %v5991_v55  ;;  %v5978_v55 = vld [vmem:[%s11263_s21 + $0x190] sm:$0xff] }
 0x739   :  { %2461 = vmatpush.msrb.mxu0 %v2429_v0  ;;  %2433 = vmatpush.msra.mxu2 %v2412_v3  ;;  %v2400_v0 = vld [vmem:[%s11263_s21 + $0x8] sm:$0xff] }
 0x73a   :  { %2552 = vmatpush.msrb.mxu3 %v5990_v61  ;;  %v5961_v61 = vld [vmem:[%s11263_s21 + $0x108] sm:$0xff] }
 0x73b   :  { %5949 = vmatmul.msk.f32.gmra.mxu3 %vm688_vm8, %v2274_v41  ;;  %2462 = vmatpush.msrb.mxu0 %v2428_v23  ;;  %v2418_v41 = vld [vmem:[%s11263_s21 + $0x98] sm:$0xff]  ;;  %v5977_v3 = vld [vmem:[%s11263_s21 + $0x188] sm:$0xff]  ;;  %v2399_v23 = vld [vmem:[%s11263_s21] sm:$0xff] }
 0x73c   :  { %2553 = vmatpush.msrb.mxu3 %v5989_v21  ;;  %2434 = vmatpush.msra.mxu2 %v2411_v44  ;;  %v5960_v21 = vld [vmem:[%s11263_s21 + $0x100] sm:$0xff] }
 0x73d   :  { %2463 = vmatpush.msrb.mxu0 %v2427_v27  ;;  %v5976_v44 = vld [vmem:[%s11263_s21 + $0x180] sm:$0xff]  ;;  %v6007_v27 = vld [vmem:[%s11263_s21 + $0x278] sm:$0xff] }
 0x73e   :  { %2554 = vmatpush.msrb.mxu3 %v5988_v30  ;;  %2435 = vmatpush.msra.mxu2 %v2410_v1  ;;  %v6039_v30 = vld [vmem:[%s11263_s21 + $0x378] sm:$0xff]  ;;  %v6006_v1 = vld [vmem:[%s11263_s21 + $0x270] sm:$0xff] }
 0x73f   :  { %2464 = vmatpush.msrb.mxu0 %v2426_v37  ;;  %v6022_v37 = vld [vmem:[%s11263_s21 + $0x2f0] sm:$0xff] }
 0x740   :  { %2555 = vmatpush.msrb.mxu3 %v5987_v31  ;;  %2436 = vmatpush.msra.mxu2 %v2409_v51  ;;  %v6054_v31 = vld [vmem:[%s11263_s21 + $0x3f0] sm:$0xff]  ;;  %v6005_v51 = vld [vmem:[%s11263_s21 + $0x268] sm:$0xff] }
 0x741   :  { %2465 = vmatpush.msrb.mxu0 %v2425_v47  ;;  %v6021_v47 = vld [vmem:[%s11263_s21 + $0x2e8] sm:$0xff] }
 0x742   :  { %2556 = vmatpush.msrb.mxu3 %v5986_v4  ;;  %2437 = vmatpush.msra.mxu2 %v2408_v5  ;;  %v6053_v4 = vld [vmem:[%s11263_s21 + $0x3e8] sm:$0xff]  ;;  %v6004_v5 = vld [vmem:[%s11263_s21 + $0x260] sm:$0xff] }
 0x743   :  { %5950 = vmatmul.msk.f32.gmra.mxu3 %vm688_vm8, %v2275_v36  ;;  %2466 = vmatpush.msrb.mxu0 %v2424_v14  ;;  %v5963_v36 = vld [vmem:[%s11263_s21 + $0x118] sm:$0xff]  ;;  %v6020_v14 = vld [vmem:[%s11263_s21 + $0x2e0] sm:$0xff] }
 0x744   :  { %2557 = vmatpush.msrb.mxu3 %v5985_v33  ;;  %2438 = vmatpush.msra.mxu2 %v2407_v22  ;;  %v6052_v33 = vld [vmem:[%s11263_s21 + $0x3e0] sm:$0xff]  ;;  %v6003_v22 = vld [vmem:[%s11263_s21 + $0x258] sm:$0xff] }
 0x745   :  { %2467 = vmatpush.msrb.mxu0 %v2423_v24  ;;  %2534 = vmatpush.msra.mxu1 %v5963_v36  ;;  %v6019_v24 = vld [vmem:[%s11263_s21 + $0x2d8] sm:$0xff]  ;;  %v5997_v36 = vld [vmem:[%s11263_s21 + $0x228] sm:$0xff] }
 0x746   :  { %2558 = vmatpush.msrb.mxu3 %v5984_v62  ;;  %2439 = vmatpush.msra.mxu2 %v2406_v58  ;;  %v6002_v62 = vld [vmem:[%s11263_s21 + $0x250] sm:$0xff] }
 0x747   :  { %2468 = vmatpush.msrb.mxu0 %v2422_v60  ;;  %2535 = vmatpush.msra.mxu1 %v5962_v53  ;;  %v6018_v58 = vld [vmem:[%s11263_s21 + $0x2d0] sm:$0xff]  ;;  %v5996_v53 = vld [vmem:[%s11263_s21 + $0x220] sm:$0xff] }
 0x748   :  { %2559 = vmatpush.msrb.mxu3 %v5983_v48  ;;  %2440 = vmatpush.msra.mxu2 %v2405_v16  ;;  %v6034_v60 = vld [vmem:[%s11263_s21 + $0x350] sm:$0xff]  ;;  %v6001_v48 = vld [vmem:[%s11263_s21 + $0x248] sm:$0xff] }
 0x749   :  { %2469 = vmatpush.msrb.mxu0 %v2421_v32  ;;  %2536 = vmatpush.msra.mxu1 %v5961_v61  ;;  %v6017_v16 = vld [vmem:[%s11263_s21 + $0x2c8] sm:$0xff]  ;;  %v6011_v61 = vld [vmem:[%s11263_s21 + $0x298] sm:$0xff] }
 0x74a   :  { %2560 = vmatpush.msrb.mxu3 %v5982_v8  ;;  %2441 = vmatpush.msra.mxu2 %v2404_v19  ;;  %v6033_v32 = vld [vmem:[%s11263_s21 + $0x348] sm:$0xff]  ;;  %v6000_v8 = vld [vmem:[%s11263_s21 + $0x240] sm:$0xff] }
 0x74b   :  { %5951 = vmatmul.msk.f32.gmra.mxu3 %vm688_vm8, %v2276_v9  ;;  %2470 = vmatpush.msrb.mxu0 %v2420_v63  ;;  %v5979_v9 = vld [vmem:[%s11263_s21 + $0x198] sm:$0xff]  ;;  %v6016_v19 = vld [vmem:[%s11263_s21 + $0x2c0] sm:$0xff]  ;;  %vm4003_vm8 = vcmask 261248  }
 0x74c   :  { %2561 = vmatpush.msrb.mxu3 %v5981_v2  ;;  %2442 = vmatpush.msra.mxu2 %v2403_v29  ;;  %v6032_v63 = vld [vmem:[%s11263_s21 + $0x340] sm:$0xff]  ;;  %v5999_v2 = vld [vmem:[%s11263_s21 + $0x238] sm:$0xff] }
 0x74d   :  { %2471 = vmatpush.msrb.mxu0 %v2419_v40  ;;  %2537 = vmatpush.msra.mxu1 %v5960_v21  ;;  %v6031_v29 = vld [vmem:[%s11263_s21 + $0x338] sm:$0xff]  ;;  %v6010_v21 = vld [vmem:[%s11263_s21 + $0x290] sm:$0xff] }
 0x74e   :  { %2562 = vmatpush.msrb.mxu3 %v5980_v34  ;;  %2443 = vmatpush.msra.mxu2 %v2402_v45  ;;  %v6047_v40 = vld [vmem:[%s11263_s21 + $0x3b8] sm:$0xff]  ;;  %v6014_v34 = vld [vmem:[%s11263_s21 + $0x2b0] sm:$0xff] }
 0x74f   :  { %2472 = vmatpush.msrb.mxu0 %v2418_v41  ;;  %2720 = vmatpush.msrb.mxu1 %v6039_v30  ;;  %v6030_v45 = vld [vmem:[%s11263_s21 + $0x330] sm:$0xff]  ;;  %v6009_v30 = vld [vmem:[%s11263_s21 + $0x288] sm:$0xff] }
 0x750   :  { %2563 = vmatpush.msrb.mxu3 %v5979_v9  ;;  %2444 = vmatpush.msra.mxu2 %v2401_v15  ;;  %v6046_v41 = vld [vmem:[%s11263_s21 + $0x3b0] sm:$0xff]  ;;  %v6013_v9 = vld [vmem:[%s11263_s21 + $0x2a8] sm:$0xff] }
 0x751   :  { %2473 = vmatpush.msrb.mxu0 %v2417_v50  ;;  %2721 = vmatpush.msrb.mxu1 %v6038_v38  ;;  %v6029_v15 = vld [vmem:[%s11263_s21 + $0x328] sm:$0xff] }
 0x752   :  { %2564 = vmatpush.msrb.mxu3 %v5978_v55  ;;  %2445 = vmatpush.msra.mxu2 %v2400_v0  ;;  %v6045_v50 = vld [vmem:[%s11263_s21 + $0x3a8] sm:$0xff]  ;;  %v6012_v55 = vld [vmem:[%s11263_s21 + $0x2a0] sm:$0xff] }
 0x753   :  { %2474 = vmatpush.msrb.mxu0 %v2416_v56  ;;  %2722 = vmatpush.msrb.mxu1 %v6037_v52  ;;  %v6044_v0 = vld [vmem:[%s11263_s21 + $0x3a0] sm:$0xff]  ;;  %v5995_v56 = vld [vmem:[%s11263_s21 + $0x218] sm:$0xff] }
 0x754   :  { %2565 = vmatpush.msrb.mxu3 %v5977_v3  ;;  %2446 = vmatpush.msra.mxu2 %v2399_v23  ;;  %v6027_v3 = vld [vmem:[%s11263_s21 + $0x318] sm:$0xff]  ;;  %v6040_v52 = vld [vmem:[%s11263_s21 + $0x380] sm:$0xff] }
 0x755   :  { %2475 = vmatpush.msrb.mxu0 %v2415_v43  ;;  %2723 = vmatpush.msrb.mxu1 %v6036_v20  ;;  %v6043_v23 = vld [vmem:[%s11263_s21 + $0x398] sm:$0xff]  ;;  %v5994_v43 = vld [vmem:[%s11263_s21 + $0x210] sm:$0xff] }
 0x756   :  { %2566 = vmatpush.msrb.mxu3 %v5976_v44  ;;  %v6026_v44 = vld [vmem:[%s11263_s21 + $0x310] sm:$0xff]  ;;  %v6119_v20 = vld [vmem:[%s11263_s21 + $0x5f8] sm:$0xff] }
 0x757   :  { %2650 = vmatpush.msra.mxu0 %v6023_v49  ;;  %v5993_v49 = vld [vmem:[%s11263_s21 + $0x208] sm:$0xff] }
 0x759   :  { %2651 = vmatpush.msra.mxu0 %v6022_v37 }
 0x75b   :  { %2652 = vmatpush.msra.mxu0 %v6021_v47  ;;  %v6024_v47 = vld [vmem:[%s11263_s21 + $0x300] sm:$0xff] }
 0x75d   :  { %2653 = vmatpush.msra.mxu0 %v6020_v14  ;;  %v6103_v14 = vld [vmem:[%s11263_s21 + $0x578] sm:$0xff] }
 0x75f   :  { %2654 = vmatpush.msra.mxu0 %v6019_v24 }
 0x761   :  { %2655 = vmatpush.msra.mxu0 %v6018_v58  ;;  %v6102_v58 = vld [vmem:[%s11263_s21 + $0x570] sm:$0xff] }
 0x763   :  { %2656 = vmatpush.msra.mxu0 %v6017_v16  ;;  %v6068_v16 = vld [vmem:[%s11263_s21 + $0x460] sm:$0xff] }
 0x765   :  { %2657 = vmatpush.msra.mxu0 %v6016_v19  ;;  %v6067_v19 = vld [vmem:[%s11263_s21 + $0x458] sm:$0xff] }
 0x7b6   :  { %v2309_v42 = vpop.f32.mrf.mxu3 }
 0x7b7   :  { %5952 = vmatmul.msk.f32.vlgmr.msrb.gmra.mxu2 %vm543_vm6, %v2309_v42  ;;  %5956 = vmatmul.msk.f32.vlgmr.msra.gmra.mxu3 %vm543_vm6, %v2309_v42  ;;  %v6055_v42 = vld [vmem:[%s11263_s21 + $0x3f8] sm:$0xff] }
 0x7b8   :  { %2621 = vmatpush.msrb.mxu2 %v6007_v27  ;;  %2749 = vmatpush.msra.mxu3 %v6055_v42  ;;  %v6042_v27 = vld [vmem:[%s11263_s21 + $0x390] sm:$0xff] }
 0x7ba   :  { %2622 = vmatpush.msrb.mxu2 %v6006_v1  ;;  %2750 = vmatpush.msra.mxu3 %v6054_v31  ;;  %v6025_v31 = vld [vmem:[%s11263_s21 + $0x308] sm:$0xff] }
 0x7bc   :  { %2623 = vmatpush.msrb.mxu2 %v6005_v51  ;;  %2751 = vmatpush.msra.mxu3 %v6053_v4  ;;  %v6041_v51 = vld [vmem:[%s11263_s21 + $0x388] sm:$0xff]  ;;  %v6071_v4 = vld [vmem:[%s11263_s21 + $0x478] sm:$0xff] }
 0x7be   :  { %v2312_v26 = vpop.f32.mrf.mxu3  ;;  %2624 = vmatpush.msrb.mxu2 %v6004_v5  ;;  %2752 = vmatpush.msra.mxu3 %v6052_v33  ;;  %v6087_v5 = vld [vmem:[%s11263_s21 + $0x4f8] sm:$0xff]  ;;  %v6070_v33 = vld [vmem:[%s11263_s21 + $0x470] sm:$0xff] }
 0x7bf   :  { %5953 = vmatmul.msk.f32.gmra.mxu2 %vm543_vm6, %v2312_v26  ;;  %5957 = vmatmul.msk.f32.gmra.mxu3 %vm543_vm6, %v2312_v26  ;;  %v6035_v26 = vld [vmem:[%s11263_s21 + $0x358] sm:$0xff] }
 0x7c0   :  { %2625 = vmatpush.msrb.mxu2 %v6003_v22  ;;  %2724 = vmatpush.msrb.mxu1 %v6035_v26  ;;  %v6086_v22 = vld [vmem:[%s11263_s21 + $0x4f0] sm:$0xff] }
 0x7c1   :  { %2753 = vmatpush.msra.mxu3 %v6051_v11 }
 0x7c2   :  { %2626 = vmatpush.msrb.mxu2 %v6002_v62  ;;  %2725 = vmatpush.msrb.mxu1 %v6034_v60  ;;  %v6118_v60 = vld [vmem:[%s11263_s21 + $0x5f0] sm:$0xff] }
 0x7c3   :  { %2754 = vmatpush.msra.mxu3 %v6050_v6  ;;  %v6101_v6 = vld [vmem:[%s11263_s21 + $0x568] sm:$0xff] }
 0x7c4   :  { %2627 = vmatpush.msrb.mxu2 %v6001_v48  ;;  %2726 = vmatpush.msrb.mxu1 %v6033_v32  ;;  %v6117_v48 = vld [vmem:[%s11263_s21 + $0x5e8] sm:$0xff]  ;;  %v6084_v32 = vld [vmem:[%s11263_s21 + $0x4e0] sm:$0xff] }
 0x7c5   :  { %2755 = vmatpush.msra.mxu3 %v6049_v17  ;;  %v6100_v17 = vld [vmem:[%s11263_s21 + $0x560] sm:$0xff] }
 0x7c6   :  { %v2315_v28 = vpop.f32.mrf.mxu3  ;;  %2628 = vmatpush.msrb.mxu2 %v6000_v8  ;;  %2727 = vmatpush.msrb.mxu1 %v6032_v63  ;;  %v6116_v8 = vld [vmem:[%s11263_s21 + $0x5e0] sm:$0xff]  ;;  %v6083_v63 = vld [vmem:[%s11263_s21 + $0x4d8] sm:$0xff] }
 0x7c7   :  { %5954 = vmatmul.msk.f32.gmra.mxu2 %vm543_vm6, %v2315_v28  ;;  %5958 = vmatmul.msk.f32.gmra.mxu3 %vm543_vm6, %v2315_v28  ;;  %v6015_v28 = vld [vmem:[%s11263_s21 + $0x2b8] sm:$0xff] }
 0x7c8   :  { %2756 = vmatpush.msra.mxu3 %v6048_v10  ;;  %2629 = vmatpush.msrb.mxu2 %v5999_v2 }
 0x7c9   :  { %2658 = vmatpush.msra.mxu0 %v6015_v28  ;;  %2728 = vmatpush.msrb.mxu1 %v6031_v29 }
 0x7ca   :  { %2757 = vmatpush.msra.mxu3 %v6047_v40  ;;  %2630 = vmatpush.msrb.mxu2 %v5998_v35  ;;  %v6099_v40 = vld [vmem:[%s11263_s21 + $0x558] sm:$0xff] }
 0x7cb   :  { %2659 = vmatpush.msra.mxu0 %v6014_v34  ;;  %2729 = vmatpush.msrb.mxu1 %v6030_v45  ;;  %v6115_v35 = vld [vmem:[%s11263_s21 + $0x5d8] sm:$0xff]  ;;  %v6098_v34 = vld [vmem:[%s11263_s21 + $0x550] sm:$0xff] }
 0x7cc   :  { %2758 = vmatpush.msra.mxu3 %v6046_v41  ;;  %2631 = vmatpush.msrb.mxu2 %v5997_v36  ;;  %v6114_v45 = vld [vmem:[%s11263_s21 + $0x5d0] sm:$0xff]  ;;  %v6065_v41 = vld [vmem:[%s11263_s21 + $0x448] sm:$0xff] }
 0x7cd   :  { %2660 = vmatpush.msra.mxu0 %v6013_v9  ;;  %2730 = vmatpush.msrb.mxu1 %v6029_v15  ;;  %v6081_v36 = vld [vmem:[%s11263_s21 + $0x4c8] sm:$0xff] }
 0x7ce   :  { %v2318_v39 = vpop.f32.mrf.mxu3  ;;  %2759 = vmatpush.msra.mxu3 %v6045_v50  ;;  %2632 = vmatpush.msrb.mxu2 %v5996_v53  ;;  %v6097_v9 = vld [vmem:[%s11263_s21 + $0x548] sm:$0xff]  ;;  %v6064_v50 = vld [vmem:[%s11263_s21 + $0x440] sm:$0xff] }
 0x7cf   :  { %5955 = vmatmul.msk.f32.gmra.mxu2 %vm543_vm6, %v2318_v39  ;;  %5959 = vmatmul.msk.f32.gmra.mxu3 %vm543_vm6, %v2318_v39  ;;  %v6028_v39 = vld [vmem:[%s11263_s21 + $0x320] sm:$0xff]  ;;  %v6113_v15 = vld [vmem:[%s11263_s21 + $0x5c8] sm:$0xff] }
 0x7d0   :  { %2661 = vmatpush.msra.mxu0 %v6012_v55  ;;  %2731 = vmatpush.msrb.mxu1 %v6028_v39  ;;  %v6080_v53 = vld [vmem:[%s11263_s21 + $0x4c0] sm:$0xff] }
 0x7d1   :  { %2760 = vmatpush.msra.mxu3 %v6044_v0  ;;  %2633 = vmatpush.msrb.mxu2 %v5995_v56 }
 0x7d2   :  { %2662 = vmatpush.msra.mxu0 %v6011_v61  ;;  %2732 = vmatpush.msrb.mxu1 %v6027_v3  ;;  %v6096_v61 = vld [vmem:[%s11263_s21 + $0x540] sm:$0xff] }
 0x7d3   :  { %2761 = vmatpush.msra.mxu3 %v6043_v23  ;;  %2634 = vmatpush.msrb.mxu2 %v5994_v43  ;;  %v6112_v3 = vld [vmem:[%s11263_s21 + $0x5c0] sm:$0xff]  ;;  %v6095_v23 = vld [vmem:[%s11263_s21 + $0x538] sm:$0xff] }
 0x7d4   :  { %2663 = vmatpush.msra.mxu0 %v6010_v21  ;;  %2733 = vmatpush.msrb.mxu1 %v6026_v44  ;;  %v6111_v43 = vld [vmem:[%s11263_s21 + $0x5b8] sm:$0xff]  ;;  %v6062_v21 = vld [vmem:[%s11263_s21 + $0x430] sm:$0xff] }
 0x7d5   :  { %2762 = vmatpush.msra.mxu3 %v6042_v27  ;;  %2635 = vmatpush.msrb.mxu2 %v5993_v49  ;;  %v6078_v44 = vld [vmem:[%s11263_s21 + $0x4b0] sm:$0xff] }
 0x7d6   :  { %2664 = vmatpush.msra.mxu0 %v6009_v30  ;;  %2734 = vmatpush.msrb.mxu1 %v6025_v31  ;;  %v6094_v27 = vld [vmem:[%s11263_s21 + $0x530] sm:$0xff]  ;;  %v6061_v30 = vld [vmem:[%s11263_s21 + $0x428] sm:$0xff] }
 0x7d7   :  { %2763 = vmatpush.msra.mxu3 %v6041_v51  ;;  %v6110_v49 = vld [vmem:[%s11263_s21 + $0x5b0] sm:$0xff]  ;;  %v6109_v31 = vld [vmem:[%s11263_s21 + $0x5a8] sm:$0xff]  ;;  %v6060_v51 = vld [vmem:[%s11263_s21 + $0x420] sm:$0xff] }
 0x7d8   :  { %2735 = vmatpush.msrb.mxu1 %v6024_v47  ;;  %v6108_v47 = vld [vmem:[%s11263_s21 + $0x5a0] sm:$0xff] }
 0x7d9   :  { %2764 = vmatpush.msra.mxu3 %v6040_v52  ;;  %v6059_v52 = vld [vmem:[%s11263_s21 + $0x418] sm:$0xff] }
 0x83a   :  { %v2350_v42 = vpop.f32.mrf.mxu2  ;;  %v2379_v1 = vpop.f32.mrf.mxu3 }
 0x83b   :  { %v9204_v37 = vmul.f32 %v2350_v42, %v8757_v57  ;;  %v9207_v38 = vmul.f32 %v2379_v1, %v8759_v46  ;;  %v5992_v57 = vld [vmem:[%s11263_s21 + $0x200] sm:$0xff]  ;;  %v6077_v42 = vld [vmem:[%s11263_s21 + $0x4a8] sm:$0xff] }
 0x83c   :  { %v6008_v46 = vld [vmem:[%s11263_s21 + $0x280] sm:$0xff]  ;;  %2636 = vmatpush.msrb.mxu2 %v5992_v57  ;;  %v6093_v1 = vld [vmem:[%s11263_s21 + $0x528] sm:$0xff] }
 0x83d   :  { %11316 = vst [vmem:[#allocation6_spill] sm:$0xff] %v9204_v37  ;;  %2447 = vmatmul.f32.vlgmr.msra.gmra.mxu2 %v9204_v37  ;;  %2476 = vmatmul.f32.vlgmr.msrb.gmra.mxu0 %v9207_v38  ;;  %v6076_v57 = vld [vmem:[%s11263_s21 + $0x4a0] sm:$0xff] }
 0x83e   :  { %11317 = vst [vmem:[#allocation7_spill] sm:$0xff] %v9207_v38  ;;  %2538 = vmatmul.f32.vlgmr.msra.gmra.mxu1 %v9204_v37  ;;  %2567 = vmatmul.f32.vlgmr.msrb.gmra.mxu3 %v9207_v38 }
 0x83f   :  { %2665 = vmatpush.msra.mxu0 %v6008_v46  ;;  %2819 = vmatpush.msra.mxu2 %v6071_v4  ;;  %v6092_v46 = vld [vmem:[%s11263_s21 + $0x520] sm:$0xff]  ;;  %v6075_v4 = vld [vmem:[%s11263_s21 + $0x498] sm:$0xff] }
 0x840   :  { %2918 = vmatpush.msra.mxu1 %v6103_v14  ;;  %2947 = vmatpush.msrb.mxu3 %v6119_v20  ;;  %v6107_v14 = vld [vmem:[%s11263_s21 + $0x598] sm:$0xff]  ;;  %v6058_v20 = vld [vmem:[%s11263_s21 + $0x410] sm:$0xff] }
 0x841   :  { %2848 = vmatpush.msrb.mxu0 %v6087_v5  ;;  %2820 = vmatpush.msra.mxu2 %v6070_v33  ;;  %v6091_v5 = vld [vmem:[%s11263_s21 + $0x518] sm:$0xff]  ;;  %v6074_v33 = vld [vmem:[%s11263_s21 + $0x490] sm:$0xff] }
 0x842   :  { %v2353_v24 = vpop.f32.mrf.mxu2  ;;  %v2382_v26 = vpop.f32.mrf.mxu3  ;;  %2919 = vmatpush.msra.mxu1 %v6102_v58  ;;  %2948 = vmatpush.msrb.mxu3 %v6118_v60  ;;  %v6073_v58 = vld [vmem:[%s11263_s21 + $0x488] sm:$0xff] }
 0x843   :  { %v9250_v11 = vmul.f32 %v2353_v24, %v8765_v13  ;;  %v9253_v62 = vmul.f32 %v2382_v26, %v8767_v18  ;;  %2849 = vmatpush.msrb.mxu0 %v6086_v22  ;;  %v6069_v13 = vld [vmem:[%s11263_s21 + $0x468] sm:$0xff]  ;;  %v6090_v22 = vld [vmem:[%s11263_s21 + $0x510] sm:$0xff] }
 0x844   :  { %v6085_v18 = vld [vmem:[%s11263_s21 + $0x4e8] sm:$0xff]  ;;  %2821 = vmatpush.msra.mxu2 %v6069_v13  ;;  %2920 = vmatpush.msra.mxu1 %v6101_v6  ;;  %v6106_v24 = vld [vmem:[%s11263_s21 + $0x590] sm:$0xff]  ;;  %v6072_v6 = vld [vmem:[%s11263_s21 + $0x480] sm:$0xff] }
 0x845   :  { %11318 = vst [vmem:[#allocation8_spill] sm:$0xff] %v9250_v11  ;;  %2450 = vmatmul.f32.gmra.mxu2 %v9250_v11  ;;  %2479 = vmatmul.f32.gmra.mxu0 %v9253_v62  ;;  %v6057_v26 = vld [vmem:[%s11263_s21 + $0x408] sm:$0xff] }
 0x846   :  { %11319 = vst [vmem:[#allocation9_spill] sm:$0xff] %v9253_v62  ;;  %2541 = vmatmul.f32.gmra.mxu1 %v9250_v11  ;;  %2570 = vmatmul.f32.gmra.mxu3 %v9253_v62  ;;  %v6089_v60 = vld [vmem:[%s11263_s21 + $0x508] sm:$0xff] }
 0x847   :  { %2850 = vmatpush.msrb.mxu0 %v6085_v18  ;;  %2949 = vmatpush.msrb.mxu3 %v6117_v48  ;;  %v6105_v13 = vld [vmem:[%s11263_s21 + $0x588] sm:$0xff]  ;;  %v6056_v18 = vld [vmem:[%s11263_s21 + $0x400] sm:$0xff] }
 0x848   :  { %2822 = vmatpush.msra.mxu2 %v6068_v16  ;;  %2921 = vmatpush.msra.mxu1 %v6100_v17  ;;  %v6088_v48 = vld [vmem:[%s11263_s21 + $0x500] sm:$0xff]  ;;  %v6151_v17 = vld [vmem:[%s11263_s21 + $0x6f8] sm:$0xff] }
 0x849   :  { %2851 = vmatpush.msrb.mxu0 %v6084_v32  ;;  %2950 = vmatpush.msrb.mxu3 %v6116_v8  ;;  %v6104_v16 = vld [vmem:[%s11263_s21 + $0x580] sm:$0xff]  ;;  %v6135_v32 = vld [vmem:[%s11263_s21 + $0x678] sm:$0xff] }
 0x84a   :  { %v2356_v10 = vpop.f32.mrf.mxu2  ;;  %v2385_v2 = vpop.f32.mrf.mxu3  ;;  %2823 = vmatpush.msra.mxu2 %v6067_v19  ;;  %2922 = vmatpush.msra.mxu1 %v6099_v40  ;;  %v6167_v8 = vld [vmem:[%s11263_s21 + $0x778] sm:$0xff]  ;;  %v6182_v40 = vld [vmem:[%s11263_s21 + $0x7f0] sm:$0xff] }
 0x84b   :  { %v9296_v28 = vmul.f32 %v2356_v10, %v8773_v59  ;;  %v9299_v29 = vmul.f32 %v2385_v2, %v8775_v54  ;;  %2852 = vmatpush.msrb.mxu0 %v6083_v63  ;;  %v6066_v59 = vld [vmem:[%s11263_s21 + $0x450] sm:$0xff]  ;;  %2951 = vmatpush.msrb.mxu3 %v6115_v35  ;;  %v6183_v19 = vld [vmem:[%s11263_s21 + $0x7f8] sm:$0xff]  ;;  %v6133_v35 = vld [vmem:[%s11263_s21 + $0x668] sm:$0xff] }
 0x84c   :  { %v6082_v54 = vld [vmem:[%s11263_s21 + $0x4d0] sm:$0xff]  ;;  %2824 = vmatpush.msra.mxu2 %v6066_v59  ;;  %2923 = vmatpush.msra.mxu1 %v6098_v34  ;;  %v6149_v59 = vld [vmem:[%s11263_s21 + $0x6e8] sm:$0xff] }
 0x84d   :  { %11320 = vst [vmem:[#allocation10_spill] sm:$0xff] %v9296_v28  ;;  %2453 = vmatmul.f32.gmra.mxu2 %v9296_v28  ;;  %2482 = vmatmul.f32.gmra.mxu0 %v9299_v29  ;;  %v6134_v63 = vld [vmem:[%s11263_s21 + $0x670] sm:$0xff]  ;;  %v6181_v34 = vld [vmem:[%s11263_s21 + $0x7e8] sm:$0xff] }
 0x84e   :  { %11321 = vst [vmem:[#allocation11_spill] sm:$0xff] %v9299_v29  ;;  %2544 = vmatmul.f32.gmra.mxu1 %v9296_v28  ;;  %2573 = vmatmul.f32.gmra.mxu3 %v9299_v29  ;;  %v6150_v10 = vld [vmem:[%s11263_s21 + $0x6f0] sm:$0xff] }
 0x84f   :  { %2853 = vmatpush.msrb.mxu0 %v6082_v54  ;;  %2952 = vmatpush.msrb.mxu3 %v6114_v45  ;;  %v6166_v2 = vld [vmem:[%s11263_s21 + $0x770] sm:$0xff]  ;;  %v6165_v54 = vld [vmem:[%s11263_s21 + $0x768] sm:$0xff]  ;;  %v6132_v45 = vld [vmem:[%s11263_s21 + $0x660] sm:$0xff] }
 0x850   :  { %2825 = vmatpush.msra.mxu2 %v6065_v41  ;;  %2924 = vmatpush.msra.mxu1 %v6097_v9  ;;  %v6148_v41 = vld [vmem:[%s11263_s21 + $0x6e0] sm:$0xff] }
 0x851   :  { %2854 = vmatpush.msrb.mxu0 %v6081_v36  ;;  %2953 = vmatpush.msrb.mxu3 %v6113_v15  ;;  %v6164_v36 = vld [vmem:[%s11263_s21 + $0x760] sm:$0xff]  ;;  %v6131_v15 = vld [vmem:[%s11263_s21 + $0x658] sm:$0xff] }
 0x852   :  { %v2359_v55 = vpop.f32.mrf.mxu2  ;;  %v2388_v39 = vpop.f32.mrf.mxu3  ;;  %2826 = vmatpush.msra.mxu2 %v6064_v50  ;;  %2925 = vmatpush.msra.mxu1 %v6096_v61  ;;  %v6180_v9 = vld [vmem:[%s11263_s21 + $0x7e0] sm:$0xff]  ;;  %v6147_v50 = vld [vmem:[%s11263_s21 + $0x6d8] sm:$0xff]  ;;  %v6146_v61 = vld [vmem:[%s11263_s21 + $0x6d0] sm:$0xff] }
 0x853   :  { %v9342_v0 = vmul.f32 %v2359_v55, %v8781_v7  ;;  %v9345_v56 = vmul.f32 %v2388_v39, %v8783_v12  ;;  %2855 = vmatpush.msrb.mxu0 %v6080_v53  ;;  %v6063_v7 = vld [vmem:[%s11263_s21 + $0x438] sm:$0xff]  ;;  %2954 = vmatpush.msrb.mxu3 %v6112_v3  ;;  %v6130_v39 = vld [vmem:[%s11263_s21 + $0x650] sm:$0xff] }
 0x854   :  { %v6079_v12 = vld [vmem:[%s11263_s21 + $0x4b8] sm:$0xff]  ;;  %2827 = vmatpush.msra.mxu2 %v6063_v7  ;;  %2926 = vmatpush.msra.mxu1 %v6095_v23  ;;  %v6162_v3 = vld [vmem:[%s11263_s21 + $0x750] sm:$0xff]  ;;  %v6145_v23 = vld [vmem:[%s11263_s21 + $0x6c8] sm:$0xff] }
 0x855   :  { %11322 = vst [vmem:[#allocation12_spill] sm:$0xff] %v9342_v0  ;;  %2456 = vmatmul.f32.gmra.mxu2 %v9342_v0  ;;  %2485 = vmatmul.f32.gmra.mxu0 %v9345_v56  ;;  %v6163_v53 = vld [vmem:[%s11263_s21 + $0x758] sm:$0xff]  ;;  %v6178_v7 = vld [vmem:[%s11263_s21 + $0x7d0] sm:$0xff] }
 0x856   :  { %11323 = vst [vmem:[#allocation13_spill] sm:$0xff] %v9345_v56  ;;  %2547 = vmatmul.f32.gmra.mxu1 %v9342_v0  ;;  %2576 = vmatmul.f32.gmra.mxu3 %v9345_v56  ;;  %v6179_v55 = vld [vmem:[%s11263_s21 + $0x7d8] sm:$0xff] }
 0x857   :  { %2856 = vmatpush.msrb.mxu0 %v6079_v12  ;;  %2955 = vmatpush.msrb.mxu3 %v6111_v43  ;;  %v6129_v12 = vld [vmem:[%s11263_s21 + $0x648] sm:$0xff] }
 0x858   :  { %2828 = vmatpush.msra.mxu2 %v6062_v21  ;;  %2927 = vmatpush.msra.mxu1 %v6094_v27  ;;  %v6161_v43 = vld [vmem:[%s11263_s21 + $0x748] sm:$0xff]  ;;  %v6144_v27 = vld [vmem:[%s11263_s21 + $0x6c0] sm:$0xff] }
 0x859   :  { %2857 = vmatpush.msrb.mxu0 %v6078_v44  ;;  %2956 = vmatpush.msrb.mxu3 %v6110_v49  ;;  %v6177_v21 = vld [vmem:[%s11263_s21 + $0x7c8] sm:$0xff]  ;;  %v6128_v44 = vld [vmem:[%s11263_s21 + $0x640] sm:$0xff] }
 0x85a   :  { %2829 = vmatpush.msra.mxu2 %v6061_v30  ;;  %2928 = vmatpush.msra.mxu1 %v6093_v1  ;;  %v6160_v49 = vld [vmem:[%s11263_s21 + $0x740] sm:$0xff]  ;;  %v6143_v1 = vld [vmem:[%s11263_s21 + $0x6b8] sm:$0xff] }
 0x85b   :  { %2858 = vmatpush.msrb.mxu0 %v6077_v42  ;;  %2957 = vmatpush.msrb.mxu3 %v6109_v31  ;;  %v6176_v30 = vld [vmem:[%s11263_s21 + $0x7c0] sm:$0xff]  ;;  %v6127_v42 = vld [vmem:[%s11263_s21 + $0x638] sm:$0xff] }
 0x85c   :  { %2830 = vmatpush.msra.mxu2 %v6060_v51  ;;  %2929 = vmatpush.msra.mxu1 %v6092_v46  ;;  %v6159_v31 = vld [vmem:[%s11263_s21 + $0x738] sm:$0xff]  ;;  %v6142_v46 = vld [vmem:[%s11263_s21 + $0x6b0] sm:$0xff] }
 0x85d   :  { %2637 = vmatmul.f32.vlgmr.msrb.gmra.mxu2 %v9204_v37  ;;  %2666 = vmatmul.f32.vlgmr.msra.gmra.mxu0 %v9207_v38  ;;  %v6175_v51 = vld [vmem:[%s11263_s21 + $0x7b8] sm:$0xff] }
 0x85e   :  { %2736 = vmatmul.f32.vlgmr.msrb.gmra.mxu1 %v9204_v37  ;;  %2765 = vmatmul.f32.vlgmr.msra.gmra.mxu3 %v9207_v38 }
 0x85f   :  { %2859 = vmatpush.msrb.mxu0 %v6076_v57  ;;  %2958 = vmatpush.msrb.mxu3 %v6108_v47  ;;  %v6126_v57 = vld [vmem:[%s11263_s21 + $0x630] sm:$0xff] }
 0x860   :  { %2831 = vmatpush.msra.mxu2 %v6059_v52  ;;  %2930 = vmatpush.msra.mxu1 %v6091_v5  ;;  %v6158_v47 = vld [vmem:[%s11263_s21 + $0x730] sm:$0xff]  ;;  %v6141_v5 = vld [vmem:[%s11263_s21 + $0x6a8] sm:$0xff] }
 0x861   :  { %2860 = vmatpush.msrb.mxu0 %v6075_v4  ;;  %2959 = vmatpush.msrb.mxu3 %v6107_v14  ;;  %v6174_v52 = vld [vmem:[%s11263_s21 + $0x7b0] sm:$0xff]  ;;  %v6125_v4 = vld [vmem:[%s11263_s21 + $0x628] sm:$0xff] }
 0x862   :  { %2832 = vmatpush.msra.mxu2 %v6058_v20  ;;  %2931 = vmatpush.msra.mxu1 %v6090_v22  ;;  %v6157_v14 = vld [vmem:[%s11263_s21 + $0x728] sm:$0xff]  ;;  %v6140_v22 = vld [vmem:[%s11263_s21 + $0x6a0] sm:$0xff] }
 0x863   :  { %2861 = vmatpush.msrb.mxu0 %v6074_v33  ;;  %2960 = vmatpush.msrb.mxu3 %v6106_v24  ;;  %v6173_v20 = vld [vmem:[%s11263_s21 + $0x7a8] sm:$0xff]  ;;  %v6124_v33 = vld [vmem:[%s11263_s21 + $0x620] sm:$0xff] }
 0x864   :  { %2833 = vmatpush.msra.mxu2 %v6057_v26  ;;  %2932 = vmatpush.msra.mxu1 %v6089_v60  ;;  %v6156_v24 = vld [vmem:[%s11263_s21 + $0x720] sm:$0xff]  ;;  %v6139_v60 = vld [vmem:[%s11263_s21 + $0x698] sm:$0xff] }
 0x865   :  { %2640 = vmatmul.f32.gmra.mxu2 %v9250_v11  ;;  %2669 = vmatmul.f32.gmra.mxu0 %v9253_v62  ;;  %v6172_v26 = vld [vmem:[%s11263_s21 + $0x7a0] sm:$0xff] }
 0x866   :  { %2739 = vmatmul.f32.gmra.mxu1 %v9250_v11  ;;  %2768 = vmatmul.f32.gmra.mxu3 %v9253_v62 }
 0x867   :  { %2862 = vmatpush.msrb.mxu0 %v6073_v58  ;;  %2961 = vmatpush.msrb.mxu3 %v6105_v13  ;;  %v6123_v58 = vld [vmem:[%s11263_s21 + $0x618] sm:$0xff] }
 0x868   :  { %2834 = vmatpush.msra.mxu2 %v6056_v18  ;;  %2933 = vmatpush.msra.mxu1 %v6088_v48  ;;  %v6155_v13 = vld [vmem:[%s11263_s21 + $0x718] sm:$0xff]  ;;  %v6138_v48 = vld [vmem:[%s11263_s21 + $0x690] sm:$0xff] }
 0x869   :  { %2863 = vmatpush.msrb.mxu0 %v6072_v6  ;;  %2962 = vmatpush.msrb.mxu3 %v6104_v16  ;;  %v6171_v18 = vld [vmem:[%s11263_s21 + $0x798] sm:$0xff]  ;;  %v6122_v6 = vld [vmem:[%s11263_s21 + $0x610] sm:$0xff] }
 0x86a   :  { %3017 = vmatpush.msrb.mxu2 %v6135_v32  ;;  %3116 = vmatpush.msrb.mxu1 %v6167_v8  ;;  %v6154_v16 = vld [vmem:[%s11263_s21 + $0x710] sm:$0xff]  ;;  %v6137_v8 = vld [vmem:[%s11263_s21 + $0x688] sm:$0xff] }
 0x86b   :  { %3046 = vmatpush.msra.mxu0 %v6151_v17  ;;  %3145 = vmatpush.msra.mxu3 %v6183_v19  ;;  %v6170_v32 = vld [vmem:[%s11263_s21 + $0x790] sm:$0xff]  ;;  %v6121_v17 = vld [vmem:[%s11263_s21 + $0x608] sm:$0xff] }
 0x86c   :  { %3018 = vmatpush.msrb.mxu2 %v6134_v63  ;;  %3117 = vmatpush.msrb.mxu1 %v6166_v2  ;;  %v6153_v19 = vld [vmem:[%s11263_s21 + $0x708] sm:$0xff]  ;;  %v6136_v2 = vld [vmem:[%s11263_s21 + $0x680] sm:$0xff] }
 0x86d   :  { %2643 = vmatmul.f32.gmra.mxu2 %v9296_v28  ;;  %2672 = vmatmul.f32.gmra.mxu0 %v9299_v29  ;;  %v6169_v63 = vld [vmem:[%s11263_s21 + $0x788] sm:$0xff] }
 0x86e   :  { %2742 = vmatmul.f32.gmra.mxu1 %v9296_v28  ;;  %2771 = vmatmul.f32.gmra.mxu3 %v9299_v29 }
 0x86f   :  { %3047 = vmatpush.msra.mxu0 %v6150_v10  ;;  %3146 = vmatpush.msra.mxu3 %v6182_v40  ;;  %v6120_v10 = vld [vmem:[%s11263_s21 + $0x600] sm:$0xff] }
 0x870   :  { %3019 = vmatpush.msrb.mxu2 %v6133_v35  ;;  %3118 = vmatpush.msrb.mxu1 %v6165_v54  ;;  %v6152_v40 = vld [vmem:[%s11263_s21 + $0x700] sm:$0xff]  ;;  %v6215_v54 = vld [vmem:[%s11263_s21 + $0x8f8] sm:$0xff] }
 0x871   :  { %3048 = vmatpush.msra.mxu0 %v6149_v59  ;;  %3147 = vmatpush.msra.mxu3 %v6181_v34  ;;  %v6168_v35 = vld [vmem:[%s11263_s21 + $0x780] sm:$0xff]  ;;  %v6199_v59 = vld [vmem:[%s11263_s21 + $0x878] sm:$0xff] }
 0x872   :  { %3020 = vmatpush.msrb.mxu2 %v6132_v45  ;;  %3119 = vmatpush.msrb.mxu1 %v6164_v36  ;;  %v6231_v34 = vld [vmem:[%s11263_s21 + $0x978] sm:$0xff]  ;;  %v6214_v36 = vld [vmem:[%s11263_s21 + $0x8f0] sm:$0xff] }
 0x873   :  { %3049 = vmatpush.msra.mxu0 %v6148_v41  ;;  %3148 = vmatpush.msra.mxu3 %v6180_v9  ;;  %v6247_v45 = vld [vmem:[%s11263_s21 + $0x9f8] sm:$0xff]  ;;  %v6198_v41 = vld [vmem:[%s11263_s21 + $0x870] sm:$0xff] }
 0x874   :  { %3021 = vmatpush.msrb.mxu2 %v6131_v15  ;;  %3120 = vmatpush.msrb.mxu1 %v6163_v53  ;;  %v6230_v9 = vld [vmem:[%s11263_s21 + $0x970] sm:$0xff]  ;;  %v6213_v53 = vld [vmem:[%s11263_s21 + $0x8e8] sm:$0xff] }
 0x875   :  { %2646 = vmatmul.f32.gmra.mxu2 %v9342_v0  ;;  %2675 = vmatmul.f32.gmra.mxu0 %v9345_v56  ;;  %v6246_v15 = vld [vmem:[%s11263_s21 + $0x9f0] sm:$0xff] }
 0x876   :  { %2745 = vmatmul.f32.gmra.mxu1 %v9342_v0  ;;  %2774 = vmatmul.f32.gmra.mxu3 %v9345_v56 }
 0x877   :  { %3050 = vmatpush.msra.mxu0 %v6147_v50  ;;  %3149 = vmatpush.msra.mxu3 %v6179_v55  ;;  %v6197_v50 = vld [vmem:[%s11263_s21 + $0x868] sm:$0xff] }
 0x878   :  { %3022 = vmatpush.msrb.mxu2 %v6130_v39  ;;  %3121 = vmatpush.msrb.mxu1 %v6162_v3  ;;  %v6229_v55 = vld [vmem:[%s11263_s21 + $0x968] sm:$0xff]  ;;  %v6212_v3 = vld [vmem:[%s11263_s21 + $0x8e0] sm:$0xff] }
 0x879   :  { %3051 = vmatpush.msra.mxu0 %v6146_v61  ;;  %3150 = vmatpush.msra.mxu3 %v6178_v7  ;;  %v6245_v39 = vld [vmem:[%s11263_s21 + $0x9e8] sm:$0xff]  ;;  %v6196_v61 = vld [vmem:[%s11263_s21 + $0x860] sm:$0xff] }
 0x87a   :  { %3023 = vmatpush.msrb.mxu2 %v6129_v12  ;;  %3122 = vmatpush.msrb.mxu1 %v6161_v43  ;;  %v6228_v7 = vld [vmem:[%s11263_s21 + $0x960] sm:$0xff]  ;;  %v6211_v43 = vld [vmem:[%s11263_s21 + $0x8d8] sm:$0xff] }
 0x87b   :  { %3052 = vmatpush.msra.mxu0 %v6145_v23  ;;  %3151 = vmatpush.msra.mxu3 %v6177_v21  ;;  %v6244_v12 = vld [vmem:[%s11263_s21 + $0x9e0] sm:$0xff]  ;;  %v6195_v23 = vld [vmem:[%s11263_s21 + $0x858] sm:$0xff] }
 0x87c   :  { %3024 = vmatpush.msrb.mxu2 %v6128_v44  ;;  %3123 = vmatpush.msrb.mxu1 %v6160_v49  ;;  %v6227_v21 = vld [vmem:[%s11263_s21 + $0x958] sm:$0xff]  ;;  %v6210_v49 = vld [vmem:[%s11263_s21 + $0x8d0] sm:$0xff] }
 0x87d   :  { %2835 = vmatmul.f32.vlgmr.msra.gmra.mxu2 %v9204_v37  ;;  %2864 = vmatmul.f32.vlgmr.msrb.gmra.mxu0 %v9207_v38  ;;  %v6243_v44 = vld [vmem:[%s11263_s21 + $0x9d8] sm:$0xff] }
 0x87e   :  { %2934 = vmatmul.f32.vlgmr.msra.gmra.mxu1 %v9204_v37  ;;  %2963 = vmatmul.f32.vlgmr.msrb.gmra.mxu3 %v9207_v38 }
 0x87f   :  { %3053 = vmatpush.msra.mxu0 %v6144_v27  ;;  %3152 = vmatpush.msra.mxu3 %v6176_v30  ;;  %v6194_v27 = vld [vmem:[%s11263_s21 + $0x850] sm:$0xff] }
 0x880   :  { %3025 = vmatpush.msrb.mxu2 %v6127_v42  ;;  %3124 = vmatpush.msrb.mxu1 %v6159_v31  ;;  %v6226_v30 = vld [vmem:[%s11263_s21 + $0x950] sm:$0xff]  ;;  %v6209_v31 = vld [vmem:[%s11263_s21 + $0x8c8] sm:$0xff] }
 0x881   :  { %3054 = vmatpush.msra.mxu0 %v6143_v1  ;;  %3153 = vmatpush.msra.mxu3 %v6175_v51  ;;  %v6242_v42 = vld [vmem:[%s11263_s21 + $0x9d0] sm:$0xff]  ;;  %v6193_v1 = vld [vmem:[%s11263_s21 + $0x848] sm:$0xff] }
 0x882   :  { %3026 = vmatpush.msrb.mxu2 %v6126_v57  ;;  %3125 = vmatpush.msrb.mxu1 %v6158_v47  ;;  %v6225_v51 = vld [vmem:[%s11263_s21 + $0x948] sm:$0xff]  ;;  %v6208_v47 = vld [vmem:[%s11263_s21 + $0x8c0] sm:$0xff] }
 0x883   :  { %3055 = vmatpush.msra.mxu0 %v6142_v46  ;;  %3154 = vmatpush.msra.mxu3 %v6174_v52  ;;  %v6241_v57 = vld [vmem:[%s11263_s21 + $0x9c8] sm:$0xff]  ;;  %v6192_v46 = vld [vmem:[%s11263_s21 + $0x840] sm:$0xff] }
 0x884   :  { %3027 = vmatpush.msrb.mxu2 %v6125_v4  ;;  %3126 = vmatpush.msrb.mxu1 %v6157_v14  ;;  %v6224_v52 = vld [vmem:[%s11263_s21 + $0x940] sm:$0xff]  ;;  %v6207_v14 = vld [vmem:[%s11263_s21 + $0x8b8] sm:$0xff] }
 0x885   :  { %2838 = vmatmul.f32.gmra.mxu2 %v9250_v11  ;;  %2867 = vmatmul.f32.gmra.mxu0 %v9253_v62  ;;  %v6240_v4 = vld [vmem:[%s11263_s21 + $0x9c0] sm:$0xff] }
 0x886   :  { %2937 = vmatmul.f32.gmra.mxu1 %v9250_v11  ;;  %2966 = vmatmul.f32.gmra.mxu3 %v9253_v62 }
 0x887   :  { %3056 = vmatpush.msra.mxu0 %v6141_v5  ;;  %3155 = vmatpush.msra.mxu3 %v6173_v20  ;;  %v6191_v5 = vld [vmem:[%s11263_s21 + $0x838] sm:$0xff] }
 0x888   :  { %3028 = vmatpush.msrb.mxu2 %v6124_v33  ;;  %3127 = vmatpush.msrb.mxu1 %v6156_v24  ;;  %v6223_v20 = vld [vmem:[%s11263_s21 + $0x938] sm:$0xff]  ;;  %v6206_v24 = vld [vmem:[%s11263_s21 + $0x8b0] sm:$0xff] }
 0x889   :  { %3057 = vmatpush.msra.mxu0 %v6140_v22  ;;  %3156 = vmatpush.msra.mxu3 %v6172_v26  ;;  %v6239_v33 = vld [vmem:[%s11263_s21 + $0x9b8] sm:$0xff]  ;;  %v6190_v22 = vld [vmem:[%s11263_s21 + $0x830] sm:$0xff] }
 0x88a   :  { %3029 = vmatpush.msrb.mxu2 %v6123_v58  ;;  %3128 = vmatpush.msrb.mxu1 %v6155_v13  ;;  %v6222_v26 = vld [vmem:[%s11263_s21 + $0x930] sm:$0xff]  ;;  %v6205_v13 = vld [vmem:[%s11263_s21 + $0x8a8] sm:$0xff] }
 0x88b   :  { %3058 = vmatpush.msra.mxu0 %v6139_v60  ;;  %3157 = vmatpush.msra.mxu3 %v6171_v18  ;;  %v6238_v58 = vld [vmem:[%s11263_s21 + $0x9b0] sm:$0xff]  ;;  %v6189_v60 = vld [vmem:[%s11263_s21 + $0x828] sm:$0xff] }
 0x88c   :  { %3030 = vmatpush.msrb.mxu2 %v6122_v6  ;;  %3129 = vmatpush.msrb.mxu1 %v6154_v16  ;;  %v6221_v18 = vld [vmem:[%s11263_s21 + $0x928] sm:$0xff]  ;;  %v6204_v16 = vld [vmem:[%s11263_s21 + $0x8a0] sm:$0xff] }
 0x88d   :  { %2841 = vmatmul.f32.gmra.mxu2 %v9296_v28  ;;  %2870 = vmatmul.f32.gmra.mxu0 %v9299_v29  ;;  %v6237_v6 = vld [vmem:[%s11263_s21 + $0x9a8] sm:$0xff] }
 0x88e   :  { %2940 = vmatmul.f32.gmra.mxu1 %v9296_v28  ;;  %2969 = vmatmul.f32.gmra.mxu3 %v9299_v29 }
 0x88f   :  { %3059 = vmatpush.msra.mxu0 %v6138_v48  ;;  %3158 = vmatpush.msra.mxu3 %v6170_v32  ;;  %v6188_v48 = vld [vmem:[%s11263_s21 + $0x820] sm:$0xff] }
 0x890   :  { %3031 = vmatpush.msrb.mxu2 %v6121_v17  ;;  %3130 = vmatpush.msrb.mxu1 %v6153_v19  ;;  %v6220_v32 = vld [vmem:[%s11263_s21 + $0x920] sm:$0xff]  ;;  %v6203_v19 = vld [vmem:[%s11263_s21 + $0x898] sm:$0xff] }
 0x891   :  { %3060 = vmatpush.msra.mxu0 %v6137_v8  ;;  %3159 = vmatpush.msra.mxu3 %v6169_v63  ;;  %v6236_v17 = vld [vmem:[%s11263_s21 + $0x9a0] sm:$0xff]  ;;  %v6187_v8 = vld [vmem:[%s11263_s21 + $0x818] sm:$0xff] }
 0x892   :  { %3032 = vmatpush.msrb.mxu2 %v6120_v10  ;;  %3131 = vmatpush.msrb.mxu1 %v6152_v40  ;;  %v6219_v63 = vld [vmem:[%s11263_s21 + $0x918] sm:$0xff]  ;;  %v6202_v40 = vld [vmem:[%s11263_s21 + $0x890] sm:$0xff] }
 0x893   :  { %3061 = vmatpush.msra.mxu0 %v6136_v2  ;;  %3160 = vmatpush.msra.mxu3 %v6168_v35  ;;  %v6235_v10 = vld [vmem:[%s11263_s21 + $0x998] sm:$0xff]  ;;  %v6186_v2 = vld [vmem:[%s11263_s21 + $0x810] sm:$0xff] }
 0x894   :  { %3215 = vmatpush.msra.mxu2 %v6199_v59  ;;  %3314 = vmatpush.msra.mxu1 %v6231_v34  ;;  %v6218_v35 = vld [vmem:[%s11263_s21 + $0x910] sm:$0xff]  ;;  %v6201_v34 = vld [vmem:[%s11263_s21 + $0x888] sm:$0xff] }
 0x895   :  { %2844 = vmatmul.f32.gmra.mxu2 %v9342_v0  ;;  %2873 = vmatmul.f32.gmra.mxu0 %v9345_v56  ;;  %v6234_v59 = vld [vmem:[%s11263_s21 + $0x990] sm:$0xff] }
 0x896   :  { %2943 = vmatmul.f32.gmra.mxu1 %v9342_v0  ;;  %2972 = vmatmul.f32.gmra.mxu3 %v9345_v56 }
 0x897   :  { %3244 = vmatpush.msrb.mxu0 %v6215_v54  ;;  %3343 = vmatpush.msrb.mxu3 %v6247_v45  ;;  %v6185_v54 = vld [vmem:[%s11263_s21 + $0x808] sm:$0xff] }
 0x898   :  { %3216 = vmatpush.msra.mxu2 %v6198_v41  ;;  %3315 = vmatpush.msra.mxu1 %v6230_v9  ;;  %v6217_v41 = vld [vmem:[%s11263_s21 + $0x908] sm:$0xff] }
 0x899   :  { %3245 = vmatpush.msrb.mxu0 %v6214_v36  ;;  %3344 = vmatpush.msrb.mxu3 %v6246_v15  ;;  %v6233_v36 = vld [vmem:[%s11263_s21 + $0x988] sm:$0xff]  ;;  %v6184_v15 = vld [vmem:[%s11263_s21 + $0x800] sm:$0xff] }
 0x89a   :  { %3217 = vmatpush.msra.mxu2 %v6197_v50  ;;  %3316 = vmatpush.msra.mxu1 %v6229_v55  ;;  %v6200_v50 = vld [vmem:[%s11263_s21 + $0x880] sm:$0xff] }
 0x89b   :  { %3246 = vmatpush.msrb.mxu0 %v6213_v53  ;;  %3345 = vmatpush.msrb.mxu3 %v6245_v39  ;;  %v6216_v53 = vld [vmem:[%s11263_s21 + $0x900] sm:$0xff]  ;;  %v6263_v39 = vld [vmem:[%s11263_s21 + $0xa78] sm:$0xff] }
 0x89c   :  { %3218 = vmatpush.msra.mxu2 %v6196_v61  ;;  %3317 = vmatpush.msra.mxu1 %v6228_v7  ;;  %v6232_v55 = vld [vmem:[%s11263_s21 + $0x980] sm:$0xff]  ;;  %v6279_v61 = vld [vmem:[%s11263_s21 + $0xaf8] sm:$0xff] }
 0x89d   :  { %3033 = vmatmul.f32.vlgmr.msrb.gmra.mxu2 %v9204_v37  ;;  %3062 = vmatmul.f32.vlgmr.msra.gmra.mxu0 %v9207_v38  ;;  %v6311_v7 = vld [vmem:[%s11263_s21 + $0xbf8] sm:$0xff] }
 0x89e   :  { %3132 = vmatmul.f32.vlgmr.msrb.gmra.mxu1 %v9204_v37  ;;  %3161 = vmatmul.f32.vlgmr.msra.gmra.mxu3 %v9207_v38 }
 0x89f   :  { %3247 = vmatpush.msrb.mxu0 %v6212_v3  ;;  %3346 = vmatpush.msrb.mxu3 %v6244_v12  ;;  %v6295_v3 = vld [vmem:[%s11263_s21 + $0xb78] sm:$0xff] }
 0x8a0   :  { %3219 = vmatpush.msra.mxu2 %v6195_v23  ;;  %3318 = vmatpush.msra.mxu1 %v6227_v21  ;;  %v6278_v21 = vld [vmem:[%s11263_s21 + $0xaf0] sm:$0xff] }
 0x8a1   :  { %3248 = vmatpush.msrb.mxu0 %v6211_v43  ;;  %3347 = vmatpush.msrb.mxu3 %v6243_v44  ;;  %v6262_v43 = vld [vmem:[%s11263_s21 + $0xa70] sm:$0xff] }
 0x8a2   :  { %3220 = vmatpush.msra.mxu2 %v6194_v27  ;;  %3319 = vmatpush.msra.mxu1 %v6226_v30  ;;  %v6294_v44 = vld [vmem:[%s11263_s21 + $0xb70] sm:$0xff] }
 0x8a3   :  { %3249 = vmatpush.msrb.mxu0 %v6210_v49  ;;  %3348 = vmatpush.msrb.mxu3 %v6242_v42  ;;  %v6310_v27 = vld [vmem:[%s11263_s21 + $0xbf0] sm:$0xff]  ;;  %v6261_v42 = vld [vmem:[%s11263_s21 + $0xa68] sm:$0xff] }
 0x8a4   :  { %3221 = vmatpush.msra.mxu2 %v6193_v1  ;;  %3320 = vmatpush.msra.mxu1 %v6225_v51  ;;  %v6277_v1 = vld [vmem:[%s11263_s21 + $0xae8] sm:$0xff] }
 0x8a5   :  { %3036 = vmatmul.f32.gmra.mxu2 %v9250_v11  ;;  %3065 = vmatmul.f32.gmra.mxu0 %v9253_v62  ;;  %v6309_v51 = vld [vmem:[%s11263_s21 + $0xbe8] sm:$0xff] }
 0x8a6   :  { %3135 = vmatmul.f32.gmra.mxu1 %v9250_v11  ;;  %3164 = vmatmul.f32.gmra.mxu3 %v9253_v62 }
 0x8a7   :  { %3250 = vmatpush.msrb.mxu0 %v6209_v31  ;;  %3349 = vmatpush.msrb.mxu3 %v6241_v57  ;;  %v6293_v31 = vld [vmem:[%s11263_s21 + $0xb68] sm:$0xff]  ;;  %v6260_v57 = vld [vmem:[%s11263_s21 + $0xa60] sm:$0xff] }
 0x8a8   :  { %3222 = vmatpush.msra.mxu2 %v6192_v46  ;;  %3321 = vmatpush.msra.mxu1 %v6224_v52  ;;  %v6276_v46 = vld [vmem:[%s11263_s21 + $0xae0] sm:$0xff] }
 0x8a9   :  { %3251 = vmatpush.msrb.mxu0 %v6208_v47  ;;  %3350 = vmatpush.msrb.mxu3 %v6240_v4  ;;  %v6292_v47 = vld [vmem:[%s11263_s21 + $0xb60] sm:$0xff] }
 0x8aa   :  { %3223 = vmatpush.msra.mxu2 %v6191_v5  ;;  %3322 = vmatpush.msra.mxu1 %v6223_v20  ;;  %v6308_v52 = vld [vmem:[%s11263_s21 + $0xbe0] sm:$0xff]  ;;  %v6259_v5 = vld [vmem:[%s11263_s21 + $0xa58] sm:$0xff] }
 0x8ab   :  { %3252 = vmatpush.msrb.mxu0 %v6207_v14  ;;  %3351 = vmatpush.msrb.mxu3 %v6239_v33  ;;  %v6275_v14 = vld [vmem:[%s11263_s21 + $0xad8] sm:$0xff] }
 0x8ac   :  { %3224 = vmatpush.msra.mxu2 %v6190_v22  ;;  %3323 = vmatpush.msra.mxu1 %v6222_v26  ;;  %v6291_v33 = vld [vmem:[%s11263_s21 + $0xb58] sm:$0xff]  ;;  %v6258_v26 = vld [vmem:[%s11263_s21 + $0xa50] sm:$0xff] }
 0x8ad   :  { %3039 = vmatmul.f32.gmra.mxu2 %v9296_v28  ;;  %3068 = vmatmul.f32.gmra.mxu0 %v9299_v29  ;;  %v6307_v22 = vld [vmem:[%s11263_s21 + $0xbd8] sm:$0xff] }
 0x8ae   :  { %3138 = vmatmul.f32.gmra.mxu1 %v9296_v28  ;;  %3167 = vmatmul.f32.gmra.mxu3 %v9299_v29 }
 0x8af   :  { %3253 = vmatpush.msrb.mxu0 %v6206_v24  ;;  %3352 = vmatpush.msrb.mxu3 %v6238_v58  ;;  %v6274_v58 = vld [vmem:[%s11263_s21 + $0xad0] sm:$0xff] }
 0x8b0   :  { %3225 = vmatpush.msra.mxu2 %v6189_v60  ;;  %3324 = vmatpush.msra.mxu1 %v6221_v18  ;;  %v6306_v18 = vld [vmem:[%s11263_s21 + $0xbd0] sm:$0xff] }
 0x8b1   :  { %3254 = vmatpush.msrb.mxu0 %v6205_v13  ;;  %3353 = vmatpush.msrb.mxu3 %v6237_v6  ;;  %v6290_v13 = vld [vmem:[%s11263_s21 + $0xb50] sm:$0xff]  ;;  %v6257_v6 = vld [vmem:[%s11263_s21 + $0xa48] sm:$0xff] }
 0x8b2   :  { %3226 = vmatpush.msra.mxu2 %v6188_v48  ;;  %3325 = vmatpush.msra.mxu1 %v6220_v32  ;;  %v6273_v48 = vld [vmem:[%s11263_s21 + $0xac8] sm:$0xff] }
 0x8b3   :  { %3255 = vmatpush.msrb.mxu0 %v6204_v16  ;;  %3354 = vmatpush.msrb.mxu3 %v6236_v17  ;;  %v6289_v16 = vld [vmem:[%s11263_s21 + $0xb48] sm:$0xff]  ;;  %v6256_v17 = vld [vmem:[%s11263_s21 + $0xa40] sm:$0xff] }
 0x8b4   :  { %3227 = vmatpush.msra.mxu2 %v6187_v8  ;;  %3326 = vmatpush.msra.mxu1 %v6219_v63  ;;  %v6305_v32 = vld [vmem:[%s11263_s21 + $0xbc8] sm:$0xff]  ;;  %v6272_v8 = vld [vmem:[%s11263_s21 + $0xac0] sm:$0xff] }
 0x8b5   :  { %3042 = vmatmul.f32.gmra.mxu2 %v9342_v0  ;;  %3071 = vmatmul.f32.gmra.mxu0 %v9345_v56  ;;  %v6304_v63 = vld [vmem:[%s11263_s21 + $0xbc0] sm:$0xff] }
 0x8b6   :  { %3141 = vmatmul.f32.gmra.mxu1 %v9342_v0  ;;  %3170 = vmatmul.f32.gmra.mxu3 %v9345_v56 }
 0x8b7   :  { %3256 = vmatpush.msrb.mxu0 %v6203_v19  ;;  %3355 = vmatpush.msrb.mxu3 %v6235_v10  ;;  %v6288_v19 = vld [vmem:[%s11263_s21 + $0xb40] sm:$0xff] }
 0x8b8   :  { %3228 = vmatpush.msra.mxu2 %v6186_v2  ;;  %3327 = vmatpush.msra.mxu1 %v6218_v35  ;;  %v6255_v35 = vld [vmem:[%s11263_s21 + $0xa38] sm:$0xff] }
 0x8b9   :  { %3257 = vmatpush.msrb.mxu0 %v6202_v40  ;;  %3356 = vmatpush.msrb.mxu3 %v6234_v59  ;;  %v6271_v59 = vld [vmem:[%s11263_s21 + $0xab8] sm:$0xff] }
 0x8ba   :  { %v9867_v45 = vpop.f32.mrf.mxu0  ;;  %3229 = vmatpush.msra.mxu2 %v6185_v54  ;;  %3328 = vmatpush.msra.mxu1 %v6217_v41  ;;  %v6303_v41 = vld [vmem:[%s11263_s21 + $0xbb8] sm:$0xff] }
 0x8bb   :  { %v9875_v9 = vpop.f32.mrf.mxu1  ;;  %3258 = vmatpush.msrb.mxu0 %v6201_v34  ;;  %3357 = vmatpush.msrb.mxu3 %v6233_v36  ;;  %v6287_v34 = vld [vmem:[%s11263_s21 + $0xb38] sm:$0xff]  ;;  %v6254_v36 = vld [vmem:[%s11263_s21 + $0xa30] sm:$0xff] }
 0x8bc   :  { %3230 = vmatpush.msra.mxu2 %v6184_v15  ;;  %3329 = vmatpush.msra.mxu1 %v6216_v53  ;;  %v6270_v15 = vld [vmem:[%s11263_s21 + $0xab0] sm:$0xff] }
 0x8bd   :  { %3259 = vmatpush.msrb.mxu0 %v6200_v50  ;;  %3358 = vmatpush.msrb.mxu3 %v6232_v55  ;;  %v6286_v50 = vld [vmem:[%s11263_s21 + $0xb30] sm:$0xff]  ;;  %v6253_v55 = vld [vmem:[%s11263_s21 + $0xa28] sm:$0xff] }
 0x8be   :  { %3231 = vmatmul.f32.vlgmr.msra.gmra.mxu2 %v9204_v37  ;;  %3260 = vmatmul.f32.vlgmr.msrb.gmra.mxu0 %v9207_v38  ;;  %v6302_v53 = vld [vmem:[%s11263_s21 + $0xbb0] sm:$0xff] }
 0x8bf   :  { %3330 = vmatmul.f32.vlgmr.msra.gmra.mxu1 %v9204_v37  ;;  %3359 = vmatmul.f32.vlgmr.msrb.gmra.mxu3 %v9207_v38 }
 0x8c0   :  { %v9903_v12 = vpop.f32.mrf.mxu2  ;;  %3413 = vmatpush.msrb.mxu2 %v6263_v39  ;;  %3442 = vmatpush.msra.mxu0 %v6279_v61  ;;  %v6269_v39 = vld [vmem:[%s11263_s21 + $0xaa8] sm:$0xff] }
 0x8c1   :  { %v9907_v23 = vpop.f32.mrf.mxu3  ;;  %3512 = vmatpush.msrb.mxu1 %v6295_v3  ;;  %3541 = vmatpush.msra.mxu3 %v6311_v7  ;;  %v6285_v61 = vld [vmem:[%s11263_s21 + $0xb28] sm:$0xff] }
 0x8c2   :  { %v9921_v49 = vpop.f32.mrf.mxu0  ;;  %3414 = vmatpush.msrb.mxu2 %v6262_v43  ;;  %3443 = vmatpush.msra.mxu0 %v6278_v21  ;;  %v6301_v3 = vld [vmem:[%s11263_s21 + $0xba8] sm:$0xff]  ;;  %v6252_v43 = vld [vmem:[%s11263_s21 + $0xa20] sm:$0xff] }
 0x8c3   :  { %v9923_v30 = vpop.f32.mrf.mxu1  ;;  %3513 = vmatpush.msrb.mxu1 %v6294_v44  ;;  %3542 = vmatpush.msra.mxu3 %v6310_v27  ;;  %v6268_v21 = vld [vmem:[%s11263_s21 + $0xaa0] sm:$0xff] }
 0x8c4   :  { %3415 = vmatpush.msrb.mxu2 %v6261_v42  ;;  %3444 = vmatpush.msra.mxu0 %v6277_v1  ;;  %v6284_v27 = vld [vmem:[%s11263_s21 + $0xb20] sm:$0xff] }
 0x8c5   :  { %3514 = vmatpush.msrb.mxu1 %v6293_v31  ;;  %3543 = vmatpush.msra.mxu3 %v6309_v51  ;;  %v6300_v42 = vld [vmem:[%s11263_s21 + $0xba0] sm:$0xff]  ;;  %v6251_v51 = vld [vmem:[%s11263_s21 + $0xa18] sm:$0xff] }
 0x8c6   :  { %3416 = vmatpush.msrb.mxu2 %v6260_v57  ;;  %3445 = vmatpush.msra.mxu0 %v6276_v46  ;;  %v6267_v57 = vld [vmem:[%s11263_s21 + $0xa98] sm:$0xff] }
 0x8c7   :  { %3515 = vmatpush.msrb.mxu1 %v6292_v47  ;;  %3544 = vmatpush.msra.mxu3 %v6308_v52  ;;  %v6283_v46 = vld [vmem:[%s11263_s21 + $0xb18] sm:$0xff]  ;;  %v6250_v52 = vld [vmem:[%s11263_s21 + $0xa10] sm:$0xff] }
 0x8c8   :  { %v9949_v4 = vpop.f32.mrf.mxu2  ;;  %3234 = vmatmul.f32.gmra.mxu2 %v9250_v11  ;;  %3263 = vmatmul.f32.gmra.mxu0 %v9253_v62  ;;  %v6299_v47 = vld [vmem:[%s11263_s21 + $0xb98] sm:$0xff] }
 0x8c9   :  { %v9957_v20 = vpop.f32.mrf.mxu3  ;;  %3333 = vmatmul.f32.gmra.mxu1 %v9250_v11  ;;  %3362 = vmatmul.f32.gmra.mxu3 %v9253_v62 }
 0x8ca   :  { %v9967_v24 = vpop.f32.mrf.mxu0  ;;  %3417 = vmatpush.msrb.mxu2 %v6259_v5  ;;  %3446 = vmatpush.msra.mxu0 %v6275_v14  ;;  %v6266_v5 = vld [vmem:[%s11263_s21 + $0xa90] sm:$0xff] }
 0x8cb   :  { %v9977_v60 = vpop.f32.mrf.mxu1  ;;  %3516 = vmatpush.msrb.mxu1 %v6291_v33  ;;  %3545 = vmatpush.msra.mxu3 %v6307_v22  ;;  %v6282_v14 = vld [vmem:[%s11263_s21 + $0xb10] sm:$0xff] }
 0x8cc   :  { %3418 = vmatpush.msrb.mxu2 %v6258_v26  ;;  %3447 = vmatpush.msra.mxu0 %v6274_v58  ;;  %v6298_v33 = vld [vmem:[%s11263_s21 + $0xb90] sm:$0xff]  ;;  %v6249_v26 = vld [vmem:[%s11263_s21 + $0xa08] sm:$0xff] }
 0x8cd   :  { %3517 = vmatpush.msrb.mxu1 %v6290_v13  ;;  %3546 = vmatpush.msra.mxu3 %v6306_v18  ;;  %v6265_v58 = vld [vmem:[%s11263_s21 + $0xa88] sm:$0xff] }
 0x8ce   :  { %3419 = vmatpush.msrb.mxu2 %v6257_v6  ;;  %3448 = vmatpush.msra.mxu0 %v6273_v48  ;;  %v6281_v18 = vld [vmem:[%s11263_s21 + $0xb08] sm:$0xff] }
 0x8cf   :  { %3518 = vmatpush.msrb.mxu1 %v6289_v16  ;;  %3547 = vmatpush.msra.mxu3 %v6305_v32  ;;  %v6297_v6 = vld [vmem:[%s11263_s21 + $0xb88] sm:$0xff]  ;;  %v6248_v16 = vld [vmem:[%s11263_s21 + $0xa00] sm:$0xff] }
 0x8d0   :  { %v10009_v10 = vpop.f32.mrf.mxu2  ;;  %3420 = vmatpush.msrb.mxu2 %v6256_v17  ;;  %3449 = vmatpush.msra.mxu0 %v6272_v8  ;;  %v6264_v32 = vld [vmem:[%s11263_s21 + $0xa80] sm:$0xff] }
 0x8d1   :  { %v10011_v2 = vpop.f32.mrf.mxu3  ;;  %3519 = vmatpush.msrb.mxu1 %v6288_v19  ;;  %3548 = vmatpush.msra.mxu3 %v6304_v63  ;;  %v6280_v8 = vld [vmem:[%s11263_s21 + $0xb00] sm:$0xff]  ;;  %v6327_v63 = vld [vmem:[%s11263_s21 + $0xc78] sm:$0xff] }
 0x8d2   :  { %v10013_v40 = vpop.f32.mrf.mxu0  ;;  %3237 = vmatmul.f32.gmra.mxu2 %v9296_v28  ;;  %3266 = vmatmul.f32.gmra.mxu0 %v9299_v29  ;;  %v6296_v19 = vld [vmem:[%s11263_s21 + $0xb80] sm:$0xff] }
 0x8d3   :  { %11324 = vst [vmem:[#allocation14_spill] sm:$0xff] %v10013_v40  ;;  %v10021_v54 = vpop.f32.mrf.mxu1  ;;  %3336 = vmatmul.f32.gmra.mxu1 %v9296_v28  ;;  %3365 = vmatmul.f32.gmra.mxu3 %v9299_v29  ;;  %v6408_v40 = vld [vmem:[%s11263_s21 + $0xf00] sm:$0xff] }
 0x8d4   :  { %11325 = vst [vmem:[#allocation15_spill] sm:$0xff] %v10021_v54  ;;  %3421 = vmatpush.msrb.mxu2 %v6255_v35  ;;  %3450 = vmatpush.msra.mxu0 %v6271_v59  ;;  %v6343_v35 = vld [vmem:[%s11263_s21 + $0xcf8] sm:$0xff]  ;;  %v6409_v54 = vld [vmem:[%s11263_s21 + $0xf08] sm:$0xff] }
 0x8d5   :  { %3520 = vmatpush.msrb.mxu1 %v6287_v34  ;;  %3549 = vmatpush.msra.mxu3 %v6303_v41  ;;  %v6359_v59 = vld [vmem:[%s11263_s21 + $0xd78] sm:$0xff] }
 0x8d6   :  { %3422 = vmatpush.msrb.mxu2 %v6254_v36  ;;  %3451 = vmatpush.msra.mxu0 %v6270_v15  ;;  %v6375_v34 = vld [vmem:[%s11263_s21 + $0xdf8] sm:$0xff]  ;;  %v6326_v36 = vld [vmem:[%s11263_s21 + $0xc70] sm:$0xff] }
 0x8d7   :  { %3521 = vmatpush.msrb.mxu1 %v6286_v50  ;;  %3550 = vmatpush.msra.mxu3 %v6302_v53  ;;  %v6342_v15 = vld [vmem:[%s11263_s21 + $0xcf0] sm:$0xff] }
 0x8d8   :  { %v10057_v7 = vpop.f32.mrf.mxu2  ;;  %3423 = vmatpush.msrb.mxu2 %v6253_v55  ;;  %3452 = vmatpush.msra.mxu0 %v6269_v39  ;;  %v6358_v53 = vld [vmem:[%s11263_s21 + $0xd70] sm:$0xff] }
 0x8d9   :  { %11326 = vst [vmem:[#allocation16_spill] sm:$0xff] %v10057_v7  ;;  %v10065_v44 = vpop.f32.mrf.mxu3  ;;  %3522 = vmatpush.msrb.mxu1 %v6285_v61  ;;  %3551 = vmatpush.msra.mxu3 %v6301_v3  ;;  %v6374_v55 = vld [vmem:[%s11263_s21 + $0xdf0] sm:$0xff]  ;;  %v6325_v61 = vld [vmem:[%s11263_s21 + $0xc68] sm:$0xff] }
 0x8da   :  { %11327 = vst [vmem:[#allocation17_spill] sm:$0xff] %v10065_v44  ;;  %v10073_v1 = vpop.f32.mrf.mxu0  ;;  %3424 = vmatpush.msrb.mxu2 %v6252_v43  ;;  %3453 = vmatpush.msra.mxu0 %v6268_v21  ;;  %v6341_v3 = vld [vmem:[%s11263_s21 + $0xce8] sm:$0xff] }
 0x8db   :  { %v10075_v31 = vpop.f32.mrf.mxu1  ;;  %3523 = vmatpush.msrb.mxu1 %v6284_v27  ;;  %3552 = vmatpush.msra.mxu3 %v6300_v42  ;;  %v6357_v21 = vld [vmem:[%s11263_s21 + $0xd68] sm:$0xff]  ;;  %v6324_v42 = vld [vmem:[%s11263_s21 + $0xc60] sm:$0xff] }
 0x8dc   :  { %3240 = vmatmul.f32.gmra.mxu2 %v9342_v0  ;;  %3269 = vmatmul.f32.gmra.mxu0 %v9345_v56  ;;  %v6373_v27 = vld [vmem:[%s11263_s21 + $0xde8] sm:$0xff] }
 0x8dd   :  { %3339 = vmatmul.f32.gmra.mxu1 %v9342_v0  ;;  %3368 = vmatmul.f32.gmra.mxu3 %v9345_v56 }
 0x8de   :  { %3425 = vmatpush.msrb.mxu2 %v6251_v51  ;;  %3454 = vmatpush.msra.mxu0 %v6267_v57  ;;  %v6340_v51 = vld [vmem:[%s11263_s21 + $0xce0] sm:$0xff] }
 0x8df   :  { %3524 = vmatpush.msrb.mxu1 %v6283_v46  ;;  %3553 = vmatpush.msra.mxu3 %v6299_v47  ;;  %v6356_v57 = vld [vmem:[%s11263_s21 + $0xd60] sm:$0xff] }
 0x8e0   :  { %v10105_v22 = vpop.f32.mrf.mxu2  ;;  %3426 = vmatpush.msrb.mxu2 %v6250_v52  ;;  %3455 = vmatpush.msra.mxu0 %v6266_v5  ;;  %v6372_v46 = vld [vmem:[%s11263_s21 + $0xde0] sm:$0xff]  ;;  %v6323_v52 = vld [vmem:[%s11263_s21 + $0xc58] sm:$0xff] }
 0x8e1   :  { %v10113_v13 = vpop.f32.mrf.mxu3  ;;  %3525 = vmatpush.msrb.mxu1 %v6282_v14  ;;  %3554 = vmatpush.msra.mxu3 %v6298_v33  ;;  %v6339_v5 = vld [vmem:[%s11263_s21 + $0xcd8] sm:$0xff] }
 0x8e2   :  { %v10121_v48 = vpop.f32.mrf.mxu0  ;;  %3427 = vmatpush.msrb.mxu2 %v6249_v26  ;;  %3456 = vmatpush.msra.mxu0 %v6265_v58  ;;  %v6355_v33 = vld [vmem:[%s11263_s21 + $0xd58] sm:$0xff]  ;;  %v2767_v7 = vadd.f32 %v10113_v13, %v10075_v31 }
 0x8e3   :  { %v10129_v17 = vpop.f32.mrf.mxu1  ;;  %3526 = vmatpush.msrb.mxu1 %v6281_v18  ;;  %3555 = vmatpush.msra.mxu3 %v6297_v6  ;;  %v6371_v26 = vld [vmem:[%s11263_s21 + $0xdd8] sm:$0xff]  ;;  %v6322_v18 = vld [vmem:[%s11263_s21 + $0xc50] sm:$0xff] }
 0x8e4   :  { %3428 = vmatpush.msrb.mxu2 %v6248_v16  ;;  %3457 = vmatpush.msra.mxu0 %v6264_v32  ;;  %v6338_v6 = vld [vmem:[%s11263_s21 + $0xcd0] sm:$0xff] }
 0x8e5   :  { %3527 = vmatpush.msrb.mxu1 %v6280_v8  ;;  %3556 = vmatpush.msra.mxu3 %v6296_v19  ;;  %v6354_v32 = vld [vmem:[%s11263_s21 + $0xd50] sm:$0xff]  ;;  %v6321_v19 = vld [vmem:[%s11263_s21 + $0xc48] sm:$0xff] }
 0x8e6   :  { %3429 = vmatmul.f32.vlgmr.msrb.gmra.mxu2 %v9204_v37  ;;  %3458 = vmatmul.f32.vlgmr.msra.gmra.mxu0 %v9207_v38  ;;  %v6370_v8 = vld [vmem:[%s11263_s21 + $0xdd0] sm:$0xff] }
 0x8e7   :  { %3528 = vmatmul.f32.vlgmr.msrb.gmra.mxu1 %v9204_v37  ;;  %3557 = vmatmul.f32.vlgmr.msra.gmra.mxu3 %v9207_v38 }
 0x8e8   :  { %v10151_v41 = vpop.f32.mrf.mxu2  ;;  %3611 = vmatpush.msra.mxu2 %v6327_v63  ;;  %3640 = vmatpush.msrb.mxu0 %v6343_v35  ;;  %v6337_v63 = vld [vmem:[%s11263_s21 + $0xcc8] sm:$0xff] }
 0x8e9   :  { %v10161_v50 = vpop.f32.mrf.mxu3  ;;  %3710 = vmatpush.msra.mxu1 %v6359_v59  ;;  %3739 = vmatpush.msrb.mxu3 %v6375_v34  ;;  %v6353_v35 = vld [vmem:[%s11263_s21 + $0xd48] sm:$0xff]  ;;  %v6320_v34 = vld [vmem:[%s11263_s21 + $0xc40] sm:$0xff] }
 0x8ea   :  { %v10169_v39 = vpop.f32.mrf.mxu0  ;;  %3612 = vmatpush.msra.mxu2 %v6326_v36  ;;  %3641 = vmatpush.msrb.mxu0 %v6342_v15  ;;  %v6369_v59 = vld [vmem:[%s11263_s21 + $0xdc8] sm:$0xff]  ;;  %v6336_v36 = vld [vmem:[%s11263_s21 + $0xcc0] sm:$0xff] }
 0x8eb   :  { %v10177_v43 = vpop.f32.mrf.mxu1  ;;  %3711 = vmatpush.msra.mxu1 %v6358_v53  ;;  %3740 = vmatpush.msrb.mxu3 %v6374_v55  ;;  %v6352_v15 = vld [vmem:[%s11263_s21 + $0xd40] sm:$0xff] }
 0x8ec   :  { %3613 = vmatpush.msra.mxu2 %v6325_v61  ;;  %3642 = vmatpush.msrb.mxu0 %v6341_v3  ;;  %v6368_v53 = vld [vmem:[%s11263_s21 + $0xdc0] sm:$0xff] }
 0x8ed   :  { %3712 = vmatpush.msra.mxu1 %v6357_v21  ;;  %3741 = vmatpush.msrb.mxu3 %v6373_v27  ;;  %v6319_v21 = vld [vmem:[%s11263_s21 + $0xc38] sm:$0xff] }
 0x8ee   :  { %3614 = vmatpush.msra.mxu2 %v6324_v42  ;;  %3643 = vmatpush.msrb.mxu0 %v6340_v51  ;;  %v6335_v27 = vld [vmem:[%s11263_s21 + $0xcb8] sm:$0xff] }
 0x8ef   :  { %3713 = vmatpush.msra.mxu1 %v6356_v57  ;;  %3742 = vmatpush.msrb.mxu3 %v6372_v46  ;;  %v6351_v51 = vld [vmem:[%s11263_s21 + $0xd38] sm:$0xff]  ;;  %v6318_v46 = vld [vmem:[%s11263_s21 + $0xc30] sm:$0xff] }
 0x8f0   :  { %v10197_v47 = vpop.f32.mrf.mxu2  ;;  %3432 = vmatmul.f32.gmra.mxu2 %v9250_v11  ;;  %3461 = vmatmul.f32.gmra.mxu0 %v9253_v62  ;;  %v6367_v57 = vld [vmem:[%s11263_s21 + $0xdb8] sm:$0xff] }
 0x8f1   :  { %v10205_v14 = vpop.f32.mrf.mxu3  ;;  %3531 = vmatmul.f32.gmra.mxu1 %v9250_v11  ;;  %3560 = vmatmul.f32.gmra.mxu3 %v9253_v62 }
 0x8f2   :  { %v10215_v58 = vpop.f32.mrf.mxu0  ;;  %3615 = vmatpush.msra.mxu2 %v6323_v52  ;;  %3644 = vmatpush.msrb.mxu0 %v6339_v5  ;;  %v6334_v52 = vld [vmem:[%s11263_s21 + $0xcb0] sm:$0xff] }
 0x8f3   :  { %11328 = vst [vmem:[#allocation18_spill] sm:$0xff] %v10215_v58  ;;  %v10225_v16 = vpop.f32.mrf.mxu1  ;;  %3714 = vmatpush.msra.mxu1 %v6355_v33  ;;  %3743 = vmatpush.msrb.mxu3 %v6371_v26  ;;  %v6350_v5 = vld [vmem:[%s11263_s21 + $0xd30] sm:$0xff]  ;;  %v6317_v26 = vld [vmem:[%s11263_s21 + $0xc28] sm:$0xff] }
 0x8f4   :  { %11329 = vst [vmem:[#allocation19_spill] sm:$0xff] %v10225_v16  ;;  %3616 = vmatpush.msra.mxu2 %v6322_v18  ;;  %3645 = vmatpush.msrb.mxu0 %v6338_v6  ;;  %v6366_v33 = vld [vmem:[%s11263_s21 + $0xdb0] sm:$0xff]  ;;  %v6333_v18 = vld [vmem:[%s11263_s21 + $0xca8] sm:$0xff] }
 0x8f5   :  { %3715 = vmatpush.msra.mxu1 %v6354_v32  ;;  %3744 = vmatpush.msrb.mxu3 %v6370_v8  ;;  %v6349_v6 = vld [vmem:[%s11263_s21 + $0xd28] sm:$0xff] }
 0x8f6   :  { %3617 = vmatpush.msra.mxu2 %v6321_v19  ;;  %3646 = vmatpush.msrb.mxu0 %v6337_v63  ;;  %v6365_v32 = vld [vmem:[%s11263_s21 + $0xda8] sm:$0xff]  ;;  %v6316_v19 = vld [vmem:[%s11263_s21 + $0xc20] sm:$0xff] }
 0x8f7   :  { %3716 = vmatpush.msra.mxu1 %v6353_v35  ;;  %3745 = vmatpush.msrb.mxu3 %v6369_v59  ;;  %v6332_v63 = vld [vmem:[%s11263_s21 + $0xca0] sm:$0xff]  ;;  %v6397_v58 = vld [vmem:[%s11263_s21 + $0xea8] sm:$0xff] }
 0x8f8   :  { %v10257_v55 = vpop.f32.mrf.mxu2  ;;  %3618 = vmatpush.msra.mxu2 %v6320_v34  ;;  %3647 = vmatpush.msrb.mxu0 %v6336_v36  ;;  %v6348_v59 = vld [vmem:[%s11263_s21 + $0xd20] sm:$0xff] }
 0x8f9   :  { %11330 = vst [vmem:[#allocation20_spill] sm:$0xff] %v10257_v55  ;;  %v10259_v61 = vpop.f32.mrf.mxu3  ;;  %3717 = vmatpush.msra.mxu1 %v6352_v15  ;;  %3746 = vmatpush.msrb.mxu3 %v6368_v53  ;;  %v6364_v34 = vld [vmem:[%s11263_s21 + $0xda0] sm:$0xff]  ;;  %v6315_v53 = vld [vmem:[%s11263_s21 + $0xc18] sm:$0xff] }
 0x8fa   :  { %11331 = vst [vmem:[#allocation21_spill] sm:$0xff] %v10259_v61  ;;  %v10261_v3 = vpop.f32.mrf.mxu0  ;;  %3435 = vmatmul.f32.gmra.mxu2 %v9296_v28  ;;  %3464 = vmatmul.f32.gmra.mxu0 %v9299_v29  ;;  %v6412_v55 = vld [vmem:[%s11263_s21 + $0xf20] sm:$0xff] }
 0x8fb   :  { %v10269_v42 = vpop.f32.mrf.mxu1  ;;  %3534 = vmatmul.f32.gmra.mxu1 %v9296_v28  ;;  %3563 = vmatmul.f32.gmra.mxu3 %v9299_v29 }
 0x8fc   :  { %3619 = vmatpush.msra.mxu2 %v6319_v21  ;;  %3648 = vmatpush.msrb.mxu0 %v6335_v27  ;;  %v6331_v21 = vld [vmem:[%s11263_s21 + $0xc98] sm:$0xff] }
 0x8fd   :  { %3718 = vmatpush.msra.mxu1 %v6351_v51  ;;  %3747 = vmatpush.msrb.mxu3 %v6367_v57  ;;  %v6347_v27 = vld [vmem:[%s11263_s21 + $0xd18] sm:$0xff]  ;;  %v6314_v57 = vld [vmem:[%s11263_s21 + $0xc10] sm:$0xff] }
 0x8fe   :  { %3620 = vmatpush.msra.mxu2 %v6318_v46  ;;  %3649 = vmatpush.msrb.mxu0 %v6334_v52  ;;  %v6363_v51 = vld [vmem:[%s11263_s21 + $0xd98] sm:$0xff]  ;;  %v6330_v46 = vld [vmem:[%s11263_s21 + $0xc90] sm:$0xff] }
 0x8ff   :  { %3719 = vmatpush.msra.mxu1 %v6350_v5  ;;  %3748 = vmatpush.msrb.mxu3 %v6366_v33  ;;  %v6346_v52 = vld [vmem:[%s11263_s21 + $0xd10] sm:$0xff] }
 0x900   :  { %v10305_v8 = vpop.f32.mrf.mxu2  ;;  %3621 = vmatpush.msra.mxu2 %v6317_v26  ;;  %3650 = vmatpush.msrb.mxu0 %v6333_v18  ;;  %v6362_v5 = vld [vmem:[%s11263_s21 + $0xd90] sm:$0xff]  ;;  %v6313_v26 = vld [vmem:[%s11263_s21 + $0xc08] sm:$0xff] }
 0x901   :  { %v10313_v35 = vpop.f32.mrf.mxu3  ;;  %3720 = vmatpush.msra.mxu1 %v6349_v6  ;;  %3749 = vmatpush.msrb.mxu3 %v6365_v32  ;;  %v6329_v18 = vld [vmem:[%s11263_s21 + $0xc88] sm:$0xff] }
 0x902   :  { %v10321_v36 = vpop.f32.mrf.mxu0  ;;  %3622 = vmatpush.msra.mxu2 %v6316_v19  ;;  %3651 = vmatpush.msrb.mxu0 %v6332_v63  ;;  %v6345_v32 = vld [vmem:[%s11263_s21 + $0xd08] sm:$0xff] }
 0x903   :  { %v10323_v15 = vpop.f32.mrf.mxu1  ;;  %3721 = vmatpush.msra.mxu1 %v6348_v59  ;;  %3750 = vmatpush.msrb.mxu3 %v6364_v34  ;;  %v6361_v19 = vld [vmem:[%s11263_s21 + $0xd88] sm:$0xff]  ;;  %v6312_v59 = vld [vmem:[%s11263_s21 + $0xc00] sm:$0xff] }
 0x904   :  { %3438 = vmatmul.f32.gmra.mxu2 %v9342_v0  ;;  %3467 = vmatmul.f32.gmra.mxu0 %v9345_v56  ;;  %v6328_v34 = vld [vmem:[%s11263_s21 + $0xc80] sm:$0xff] }
 0x905   :  { %3537 = vmatmul.f32.gmra.mxu1 %v9342_v0  ;;  %3566 = vmatmul.f32.gmra.mxu3 %v9345_v56 }
 0x906   :  { %3623 = vmatpush.msra.mxu2 %v6315_v53  ;;  %3652 = vmatpush.msrb.mxu0 %v6331_v21  ;;  %v6344_v21 = vld [vmem:[%s11263_s21 + $0xd00] sm:$0xff] }
 0x907   :  { %3722 = vmatpush.msra.mxu1 %v6347_v27  ;;  %3751 = vmatpush.msrb.mxu3 %v6363_v51  ;;  %v6360_v27 = vld [vmem:[%s11263_s21 + $0xd80] sm:$0xff]  ;;  %v6391_v51 = vld [vmem:[%s11263_s21 + $0xe78] sm:$0xff] }
 0x908   :  { %v10353_v33 = vpop.f32.mrf.mxu2  ;;  %3624 = vmatpush.msra.mxu2 %v6314_v57  ;;  %3653 = vmatpush.msrb.mxu0 %v6330_v46  ;;  %v6407_v57 = vld [vmem:[%s11263_s21 + $0xef8] sm:$0xff] }
 0x909   :  { %v10361_v6 = vpop.f32.mrf.mxu3  ;;  %3723 = vmatpush.msra.mxu1 %v6346_v52  ;;  %3752 = vmatpush.msrb.mxu3 %v6362_v5  ;;  %v6423_v46 = vld [vmem:[%s11263_s21 + $0xf78] sm:$0xff] }
 0x90a   :  { %v10369_v63 = vpop.f32.mrf.mxu0  ;;  %3625 = vmatpush.msra.mxu2 %v6313_v26  ;;  %3654 = vmatpush.msrb.mxu0 %v6329_v18  ;;  %v6439_v52 = vld [vmem:[%s11263_s21 + $0xff8] sm:$0xff]  ;;  %v6390_v26 = vld [vmem:[%s11263_s21 + $0xe70] sm:$0xff] }
 0x90b   :  { %v10377_v53 = vpop.f32.mrf.mxu1  ;;  %3724 = vmatpush.msra.mxu1 %v6345_v32  ;;  %3753 = vmatpush.msrb.mxu3 %v6361_v19  ;;  %v6406_v18 = vld [vmem:[%s11263_s21 + $0xef0] sm:$0xff] }
 0x90c   :  { %3626 = vmatpush.msra.mxu2 %v6312_v59  ;;  %3655 = vmatpush.msrb.mxu0 %v6328_v34  ;;  %v6422_v19 = vld [vmem:[%s11263_s21 + $0xf70] sm:$0xff] }
 0x90d   :  { %3725 = vmatpush.msra.mxu1 %v6344_v21  ;;  %3754 = vmatpush.msrb.mxu3 %v6360_v27  ;;  %v6438_v59 = vld [vmem:[%s11263_s21 + $0xff0] sm:$0xff]  ;;  %v6389_v21 = vld [vmem:[%s11263_s21 + $0xe68] sm:$0xff] }
 0x90e   :  { %3627 = vmatmul.f32.vlgmr.msra.gmra.mxu2 %v9204_v37  ;;  %3656 = vmatmul.f32.vlgmr.msrb.gmra.mxu0 %v9207_v38  ;;  %v6405_v27 = vld [vmem:[%s11263_s21 + $0xee8] sm:$0xff] }
 0x90f   :  { %3726 = vmatmul.f32.vlgmr.msra.gmra.mxu1 %v9204_v37  ;;  %3755 = vmatmul.f32.vlgmr.msrb.gmra.mxu3 %v9207_v38 }
 0x910   :  { %v10399_v5 = vpop.f32.mrf.mxu2  ;;  %3809 = vmatpush.msrb.mxu2 %v6391_v51  ;;  %3838 = vmatpush.msra.mxu0 %v6407_v57  ;;  %v6421_v57 = vld [vmem:[%s11263_s21 + $0xf68] sm:$0xff] }
 0x911   :  { %v10409_v32 = vpop.f32.mrf.mxu3  ;;  %3908 = vmatpush.msrb.mxu1 %v6423_v46  ;;  %3937 = vmatpush.msra.mxu3 %v6439_v52  ;;  %v6437_v46 = vld [vmem:[%s11263_s21 + $0xfe8] sm:$0xff]  ;;  %v6388_v52 = vld [vmem:[%s11263_s21 + $0xe60] sm:$0xff] }
 0x912   :  { %v10417_v34 = vpop.f32.mrf.mxu0  ;;  %3810 = vmatpush.msrb.mxu2 %v6390_v26  ;;  %3839 = vmatpush.msra.mxu0 %v6406_v18  ;;  %v6420_v26 = vld [vmem:[%s11263_s21 + $0xf60] sm:$0xff] }
 0x913   :  { %11332 = vst [vmem:[#allocation22_spill] sm:$0xff] %v10417_v34  ;;  %v10425_v51 = vpop.f32.mrf.mxu1  ;;  %3909 = vmatpush.msrb.mxu1 %v6422_v19  ;;  %3938 = vmatpush.msra.mxu3 %v6438_v59  ;;  %v6436_v18 = vld [vmem:[%s11263_s21 + $0xfe0] sm:$0xff]  ;;  %v6387_v59 = vld [vmem:[%s11263_s21 + $0xe58] sm:$0xff]  ;;  %v6385_v34 = vld [vmem:[%s11263_s21 + $0xe48] sm:$0xff] }
 0x914   :  { %11333 = vst [vmem:[#allocation23_spill] sm:$0xff] %v10425_v51  ;;  %3811 = vmatpush.msrb.mxu2 %v6389_v21  ;;  %3840 = vmatpush.msra.mxu0 %v6405_v27  ;;  %v6403_v21 = vld [vmem:[%s11263_s21 + $0xed8] sm:$0xff]  ;;  %v6434_v51 = vld [vmem:[%s11263_s21 + $0xfd0] sm:$0xff] }
 0x915   :  { %3910 = vmatpush.msrb.mxu1 %v6421_v57  ;;  %3939 = vmatpush.msra.mxu3 %v6437_v46  ;;  %v6435_v57 = vld [vmem:[%s11263_s21 + $0xfd8] sm:$0xff] }
 0x916   :  { %3812 = vmatpush.msrb.mxu2 %v6388_v52  ;;  %3841 = vmatpush.msra.mxu0 %v6404_v25  ;;  %v6419_v25 = vld [vmem:[%s11263_s21 + $0xf58] sm:$0xff]  ;;  %v6386_v52 = vld [vmem:[%s11263_s21 + $0xe50] sm:$0xff] }
 0x917   :  { %3911 = vmatpush.msrb.mxu1 %v6420_v26  ;;  %3940 = vmatpush.msra.mxu3 %v6436_v18  ;;  %v6402_v26 = vld [vmem:[%s11263_s21 + $0xed0] sm:$0xff] }
 0x918   :  { %v10445_v19 = vpop.f32.mrf.mxu2  ;;  %3630 = vmatmul.f32.gmra.mxu2 %v9250_v11  ;;  %3659 = vmatmul.f32.gmra.mxu0 %v9253_v62 }
 0x919   :  { %11334 = vst [vmem:[#allocation24_spill] sm:$0xff] %v10445_v19  ;;  %v10453_v27 = vpop.f32.mrf.mxu3  ;;  %3729 = vmatmul.f32.gmra.mxu1 %v9250_v11  ;;  %3758 = vmatmul.f32.gmra.mxu3 %v9253_v62  ;;  %v6401_v19 = vld [vmem:[%s11263_s21 + $0xec8] sm:$0xff] }
 0x91a   :  { %11335 = vst [vmem:[#allocation25_spill] sm:$0xff] %v10453_v27  ;;  %v10463_v46 = vpop.f32.mrf.mxu0  ;;  %3813 = vmatpush.msrb.mxu2 %v6387_v59  ;;  %3842 = vmatpush.msra.mxu0 %v6403_v21  ;;  %v6418_v27 = vld [vmem:[%s11263_s21 + $0xf50] sm:$0xff]  ;;  %v6417_v59 = vld [vmem:[%s11263_s21 + $0xf48] sm:$0xff] }
 0x91b   :  { %v10473_v18 = vpop.f32.mrf.mxu1  ;;  %3912 = vmatpush.msrb.mxu1 %v6419_v25  ;;  %3941 = vmatpush.msra.mxu3 %v6435_v57  ;;  %v6433_v21 = vld [vmem:[%s11263_s21 + $0xfc8] sm:$0xff]  ;;  %v6384_v25 = vld [vmem:[%s11263_s21 + $0xe40] sm:$0xff] }
 0x91c   :  { %3814 = vmatpush.msrb.mxu2 %v6386_v52  ;;  %3843 = vmatpush.msra.mxu0 %v6402_v26  ;;  %v6400_v57 = vld [vmem:[%s11263_s21 + $0xec0] sm:$0xff] }
 0x91d   :  { %3913 = vmatpush.msrb.mxu1 %v6418_v27  ;;  %3942 = vmatpush.msra.mxu3 %v6434_v51  ;;  %v6416_v52 = vld [vmem:[%s11263_s21 + $0xf40] sm:$0xff] }
 0x91e   :  { %3815 = vmatpush.msrb.mxu2 %v6385_v34  ;;  %3844 = vmatpush.msra.mxu0 %v6401_v19  ;;  %v6432_v26 = vld [vmem:[%s11263_s21 + $0xfc0] sm:$0xff]  ;;  %v6383_v34 = vld [vmem:[%s11263_s21 + $0xe38] sm:$0xff] }
 0x91f   :  { %3914 = vmatpush.msrb.mxu1 %v6417_v59  ;;  %3943 = vmatpush.msra.mxu3 %v6433_v21  ;;  %v6399_v19 = vld [vmem:[%s11263_s21 + $0xeb8] sm:$0xff] }
 0x920   :  { %v10505_v27 = vpop.f32.mrf.mxu2  ;;  %3816 = vmatpush.msrb.mxu2 %v6384_v25  ;;  %3845 = vmatpush.msra.mxu0 %v6400_v57  ;;  %v6415_v59 = vld [vmem:[%s11263_s21 + $0xf38] sm:$0xff]  ;;  %v6382_v25 = vld [vmem:[%s11263_s21 + $0xe30] sm:$0xff] }
 0x921   :  { %v10507_v51 = vpop.f32.mrf.mxu3  ;;  %3915 = vmatpush.msrb.mxu1 %v6416_v52  ;;  %3944 = vmatpush.msra.mxu3 %v6432_v26  ;;  %v6431_v21 = vld [vmem:[%s11263_s21 + $0xfb8] sm:$0xff]  ;;  %v6398_v57 = vld [vmem:[%s11263_s21 + $0xeb0] sm:$0xff] }
 0x922   :  { %v10509_v61 = vpop.f32.mrf.mxu0  ;;  %3633 = vmatmul.f32.gmra.mxu2 %v9296_v28  ;;  %3662 = vmatmul.f32.gmra.mxu0 %v9299_v29  ;;  %v6414_v52 = vld [vmem:[%s11263_s21 + $0xf30] sm:$0xff] }
 0x923   :  { %v10517_v16 = vpop.f32.mrf.mxu1  ;;  %3732 = vmatmul.f32.gmra.mxu1 %v9296_v28  ;;  %3761 = vmatmul.f32.gmra.mxu3 %v9299_v29  ;;  %v6430_v26 = vld [vmem:[%s11263_s21 + $0xfb0] sm:$0xff] }
 0x924   :  { %11336 = vst [vmem:[#allocation26_spill] sm:$0xff] %v10517_v16  ;;  %3817 = vmatpush.msrb.mxu2 %v6383_v34  ;;  %3846 = vmatpush.msra.mxu0 %v6399_v19  ;;  %v6381_v16 = vld [vmem:[%s11263_s21 + $0xe28] sm:$0xff] }
 0x925   :  { %3916 = vmatpush.msrb.mxu1 %v6415_v59  ;;  %3945 = vmatpush.msra.mxu3 %v6431_v21  ;;  %v6413_v34 = vld [vmem:[%s11263_s21 + $0xf28] sm:$0xff]  ;;  %v6380_v21 = vld [vmem:[%s11263_s21 + $0xe20] sm:$0xff] }
 0x926   :  { %3818 = vmatpush.msrb.mxu2 %v6382_v25  ;;  %3847 = vmatpush.msra.mxu0 %v6398_v57  ;;  %v6429_v19 = vld [vmem:[%s11263_s21 + $0xfa8] sm:$0xff]  ;;  %v6396_v25 = vld [vmem:[%s11263_s21 + $0xea0] sm:$0xff] }
 0x927   :  { %3917 = vmatpush.msrb.mxu1 %v6414_v52  ;;  %3946 = vmatpush.msra.mxu3 %v6430_v26  ;;  %v6428_v52 = vld [vmem:[%s11263_s21 + $0xfa0] sm:$0xff] }
 0x928   :  { %v10553_v59 = vpop.f32.mrf.mxu2  ;;  %3819 = vmatpush.msrb.mxu2 %v6381_v16  ;;  %3848 = vmatpush.msra.mxu0 %v6397_v58  ;;  %v6379_v58 = vld [vmem:[%s11263_s21 + $0xe18] sm:$0xff] }
 0x929   :  { %v10561_v57 = vpop.f32.mrf.mxu3  ;;  %3918 = vmatpush.msrb.mxu1 %v6413_v34  ;;  %3947 = vmatpush.msra.mxu3 %v6429_v19  ;;  %v6395_v16 = vld [vmem:[%s11263_s21 + $0xe98] sm:$0xff]  ;;  %v2569_v34 = vadd.f32 %v9907_v23, %v9875_v9  ;;  %v6394_v9 = vld [vmem:[%s11263_s21 + $0xe90] sm:$0xff] }
 0x92a   :  { %11337 = vst [vmem:[#allocation27_spill] sm:$0xff] %v10561_v57  ;;  %v10569_v26 = vpop.f32.mrf.mxu0  ;;  %3820 = vmatpush.msrb.mxu2 %v6380_v21  ;;  %3849 = vmatpush.msra.mxu0 %v6396_v25  ;;  %v2478_v57 = vadd.f32 %v9867_v45, %v9903_v12  ;;  %v6427_v19 = vld [vmem:[%s11263_s21 + $0xf98] sm:$0xff]  ;;  %v6378_v45 = vld [vmem:[%s11263_s21 + $0xe10] sm:$0xff]  ;;  %v2668_v12 = vadd.f32 %v10073_v1, %v10105_v22  ;;  %v6393_v1 = vld [vmem:[%s11263_s21 + $0xe88] sm:$0xff] }
 0x92b   :  { %v10571_v44 = vpop.f32.mrf.mxu1  ;;  %3919 = vmatpush.msrb.mxu1 %v6412_v55  ;;  %3948 = vmatpush.msra.mxu3 %v6428_v52  ;;  %v6411_v55 = vld [vmem:[%s11263_s21 + $0xf18] sm:$0xff]  ;;  %v6410_v23 = vld [vmem:[%s11263_s21 + $0xf10] sm:$0xff]  ;;  %v6377_v52 = vld [vmem:[%s11263_s21 + $0xe08] sm:$0xff] }
 0x92c   :  { %3636 = vmatmul.f32.gmra.mxu2 %v9342_v0  ;;  %3665 = vmatmul.f32.gmra.mxu0 %v9345_v56  ;;  %v6426_v21 = vld [vmem:[%s11263_s21 + $0xf90] sm:$0xff] }
 0x92d   :  { %3735 = vmatmul.f32.gmra.mxu1 %v9342_v0  ;;  %3764 = vmatmul.f32.gmra.mxu3 %v9345_v56 }
 0x92e   :  { %3821 = vmatpush.msrb.mxu2 %v6379_v58  ;;  %3850 = vmatpush.msra.mxu0 %v6395_v16  ;;  %v2580_v58 = vmax.f32 %v2478_v57, %v2569_v34  ;;  %v2584_v16 = vadd.f32 %v2569_v34, %v2478_v57  ;;  %v6392_v57 = vld [vmem:[%s11263_s21 + $0xe80] sm:$0xff] }
 0x92f   :  { %3920 = vmatpush.msrb.mxu1 %v6411_v55  ;;  %3949 = vmatpush.msra.mxu3 %v6427_v19  ;;  %v6425_v55 = vld [vmem:[%s11263_s21 + $0xf88] sm:$0xff]  ;;  %v6376_v19 = vld [vmem:[%s11263_s21 + $0xe00] sm:$0xff] }
 0x930   :  { %v10607_v25 = vpop.f32.mrf.mxu2  ;;  %3822 = vmatpush.msrb.mxu2 %v6378_v45  ;;  %3851 = vmatpush.msra.mxu0 %v6394_v9  ;;  %v2679_v45 = vmax.f32 %v2580_v58, %v2668_v12  ;;  %v2683_v9 = vadd.f32 %v2668_v12, %v2584_v16  ;;  %v2866_v12 = vadd.f32 %v10261_v3, %v10305_v8 }
 0x931   :  { %v10615_v22 = vpop.f32.mrf.mxu3  ;;  %3921 = vmatpush.msrb.mxu1 %v6410_v23  ;;  %3950 = vmatpush.msra.mxu3 %v6426_v21  ;;  %v6424_v23 = vld [vmem:[%s11263_s21 + $0xf80] sm:$0xff]  ;;  %s7117_s21 = smov 16  }
 0x932   :  { %v10629_v34 = vpop.f32.mrf.mxu0  ;;  %3823 = vmatpush.msrb.mxu2 %v6377_v52  ;;  %3852 = vmatpush.msra.mxu0 %v6393_v1  ;;  %v2778_v52 = vmax.f32 %v2679_v45, %v2767_v7  ;;  %v2782_v1 = vadd.f32 %v2767_v7, %v2683_v9  ;;  %v3064_v7 = vadd.f32 %v10463_v46, %v10505_v27 }
 0x933   :  { %3922 = vmatpush.msrb.mxu1 %v6409_v54  ;;  %3951 = vmatpush.msra.mxu3 %v6425_v55  ;;  %v10637_v21 = vpop.f32.mrf.mxu1  ;;  %v2484_v45 = vadd.f32 %v9967_v24, %v10009_v10  ;;  %v2575_v9 = vadd.f32 %v10011_v2, %v9977_v60 }
 0x934   :  { %3824 = vmatpush.msrb.mxu2 %v6376_v19  ;;  %3853 = vmatpush.msra.mxu0 %v6392_v57  ;;  %v2877_v31 = vmax.f32 %v2778_v52, %v2866_v12  ;;  %v2881_v13 = vadd.f32 %v2866_v12, %v2782_v1 }
 0x935   :  { %3923 = vmatpush.msrb.mxu1 %v6408_v40  ;;  %3952 = vmatpush.msra.mxu3 %v6424_v23  ;;  %v2965_v40 = vadd.f32 %v10313_v35, %v10269_v42  ;;  %v3163_v42 = vadd.f32 %v10507_v51, %v10473_v18  ;;  %v2674_v35 = vadd.f32 %v10169_v39, %v10197_v47 }
 0x936   :  { %3825 = vmatmul.f32.vlgmr.msrb.gmra.mxu2 %v9204_v37  ;;  %3854 = vmatmul.f32.vlgmr.msra.gmra.mxu0 %v9207_v38  ;;  %v2582_v1 = vmax.f32 %v2484_v45, %v2575_v9  ;;  %v2586_v10 = vadd.f32 %v2575_v9, %v2484_v45  ;;  %v2773_v51 = vadd.f32 %v10205_v14, %v10177_v43 }
 0x937   :  { %3924 = vmatmul.f32.vlgmr.msrb.gmra.mxu1 %v9204_v37  ;;  %3953 = vmatmul.f32.vlgmr.msra.gmra.mxu3 %v9207_v38  ;;  %v2976_v8 = vmax.f32 %v2877_v31, %v2965_v40  ;;  %v2980_v16 = vadd.f32 %v2965_v40, %v2881_v13  ;;  %v2971_v45 = vadd.f32 %v10409_v32, %v10377_v53 }
 0x938   :  { %v10647_v54 = vpop.f32.mrf.mxu2  ;;  %v2681_v31 = vmax.f32 %v2582_v1, %v2674_v35  ;;  %v2685_v40 = vadd.f32 %v2674_v35, %v2586_v10  ;;  %v3070_v9 = vadd.f32 %v10569_v26, %v10607_v25  ;;  %v3169_v53 = vadd.f32 %v10615_v22, %v10571_v44 }
 0x939   :  { %v10649_v58 = vpop.f32.mrf.mxu3  ;;  %v3075_v19 = vmax.f32 %v2976_v8, %v3064_v7  ;;  %v3079_v57 = vadd.f32 %v3064_v7, %v2980_v16  ;;  %v2872_v7 = vadd.f32 %v10369_v63, %v10399_v5  ;;  %v2481_v10 = vadd.f32 %v9921_v49, %v9949_v4 }
 0x93a   :  { %v2784_v8 = vadd.f32 %v2773_v51, %v2685_v40  ;;  %v2572_v39 = vadd.f32 %v9957_v20, %v9923_v30  ;;  %v2671_v38 = vadd.f32 %v10121_v48, %v10151_v41  ;;  %v2869_v49 = vadd.f32 %v10321_v36, %v10353_v33  ;;  %v11346_v36 = vld [vmem:[#allocation15_spill] sm:$0xff]  ;;  %v11347_v33 = vld [vmem:[#allocation17_spill] sm:$0xff] }
 0x93b   :  { %v3261_v3 = vpop.f32.mrf.mxu0  ;;  %v3174_v27 = vmax.f32 %v3075_v19, %v3163_v42  ;;  %v3178_v23 = vadd.f32 %v3163_v42, %v3079_v57 }
 0x93c   :  { %v3331_v55 = vpop.f32.mrf.mxu1  ;;  %v2883_v19 = vadd.f32 %v2872_v7, %v2784_v8 }
 0x93e   :  { %3828 = vmatmul.f32.gmra.mxu2 %v9250_v11  ;;  %3857 = vmatmul.f32.gmra.mxu0 %v9253_v62  ;;  %v2982_v63 = vadd.f32 %v2971_v45, %v2883_v19 }
 0x93f   :  { %3927 = vmatmul.f32.gmra.mxu1 %v9250_v11  ;;  %3956 = vmatmul.f32.gmra.mxu3 %v9253_v62  ;;  %v2581_v11 = vmax.f32 %v2481_v10, %v2572_v39 }
 0x940   :  { %v3081_v35 = vadd.f32 %v3070_v9, %v2982_v63 }
 0x941   :  { %v3232_v46 = vpop.f32.mrf.mxu2 }
 0x942   :  { %v3262_v12 = vadd.f32 %v3261_v3, %v3232_v46  ;;  %v3360_v52 = vpop.f32.mrf.mxu3  ;;  %v2780_v3 = vmax.f32 %v2681_v31, %v2773_v51  ;;  %v3180_v26 = vadd.f32 %v3169_v53, %v3081_v35 }
 0x943   :  { %v10667_v24 = vadd.f32 %v3360_v52, %v3331_v55 }
 0x944   :  { %v10669_v60 = vmax.f32 %v3174_v27, %v3262_v12  ;;  %v3277_v2 = vadd.f32 %v3262_v12, %v3178_v23  ;;  %v2879_v55 = vmax.f32 %v2780_v3, %v2872_v7 }
 0x945   :  { %v10671_v13 = vpop.f32.mrf.mxu0 }
 0x946   :  { %3831 = vmatmul.f32.gmra.mxu2 %v9296_v28  ;;  %3860 = vmatmul.f32.gmra.mxu0 %v9299_v29  ;;  %v10678_v47 = vadd.f32 %v10667_v24, %v3277_v2  ;;  %v10682_v18 = vpop.f32.mrf.mxu1  ;;  %v2978_v14 = vmax.f32 %v2879_v55, %v2971_v45 }
 0x947   :  { %3930 = vmatmul.f32.gmra.mxu1 %v9296_v28  ;;  %3959 = vmatmul.f32.gmra.mxu3 %v9299_v29 }
 0x948   :  { %v3077_v42 = vmax.f32 %v2978_v14, %v3070_v9 }
 0x94a   :  { %v3176_v46 = vmax.f32 %v3077_v42, %v3169_v53 }
 0x94b   :  { %v10688_v16 = vpop.f32.mrf.mxu2 }
 0x94c   :  { %v10690_v57 = vpop.f32.mrf.mxu3 }
 0x94e   :  { %3834 = vmatmul.f32.gmra.mxu2 %v9342_v0  ;;  %3863 = vmatmul.f32.gmra.mxu0 %v9345_v56 }
 0x94f   :  { %3933 = vmatmul.f32.gmra.mxu1 %v9342_v0  ;;  %3962 = vmatmul.f32.gmra.mxu3 %v9345_v56  ;;  %v3267_v43 = vpop.f32.mrf.mxu0  ;;  %v2585_v56 = vadd.f32 %v2572_v39, %v2481_v10  ;;  %v2680_v0 = vmax.f32 %v2581_v11, %v2671_v38  ;;  %v2968_v11 = vadd.f32 %v10361_v6, %v10323_v15 }
 0x950   :  { %v3337_v5 = vpop.f32.mrf.mxu1  ;;  %v2578_v39 = vadd.f32 %v11347_v33, %v11346_v36 }
 0x951   :  { %v2684_v28 = vadd.f32 %v2671_v38, %v2585_v56  ;;  %v3067_v38 = vadd.f32 %v10509_v61, %v10553_v59  ;;  %v11344_v56 = vld [vmem:[#allocation16_spill] sm:$0xff]  ;;  %v11350_v59 = vld [vmem:[#allocation26_spill] sm:$0xff] }
 0x955   :  { %v3238_v32 = vpop.f32.mrf.mxu2 }
 0x956   :  { %v3268_v25 = vadd.f32 %v3267_v43, %v3238_v32  ;;  %v3366_v27 = vpop.f32.mrf.mxu3 }
 0x957   :  { %v10702_v23 = vadd.f32 %v3366_v27, %v3337_v5 }
 0x958   :  { %v10704_v12 = vmax.f32 %v3176_v46, %v3268_v25  ;;  %v3279_v52 = vadd.f32 %v3268_v25, %v3180_v26 }
 0x959   :  { %v10706_v1 = vpop.f32.mrf.mxu0 }
 0x95a   :  { %v10711_v2 = vadd.f32 %v10702_v23, %v3279_v52  ;;  %v10713_v31 = vpop.f32.mrf.mxu1 }
 0x95f   :  { %v10715_v44 = vpop.f32.mrf.mxu2 }
 0x960   :  { %v10717_v22 = vpop.f32.mrf.mxu3 }
 0x963   :  { %v3459_v40 = vpop.f32.mrf.mxu0 }
 0x964   :  { %v10719_v51 = vpop.f32.mrf.mxu1 }
 0x969   :  { %v3430_v7 = vpop.f32.mrf.mxu2 }
 0x96a   :  { %v10721_v3 = vpop.f32.mrf.mxu3  ;;  %v3460_v6 = vadd.f32 %v3459_v40, %v3430_v7 }
 0x96c   :  { %v3475_v40 = vadd.f32 %v3460_v6, %v10678_v47 }
 0x96d   :  { %v10723_v8 = vpop.f32.mrf.mxu0 }
 0x96e   :  { %v10725_v55 = vpop.f32.mrf.mxu1 }
 0x973   :  { %v10727_v19 = vpop.f32.mrf.mxu2 }
 0x974   :  { %v10729_v45 = vpop.f32.mrf.mxu3 }
 0x977   :  { %v10731_v9 = vpop.f32.mrf.mxu0 }
 0x978   :  { %v10733_v43 = vpop.f32.mrf.mxu1 }
 0x97d   :  { %v10735_v14 = vpop.f32.mrf.mxu2 }
 0x97e   :  { %v10737_v63 = vpop.f32.mrf.mxu3 }
 0x981   :  { %v10739_v5 = vpop.f32.mrf.mxu0 }
 0x982   :  { %11338 = vst [vmem:[#allocation28_spill] sm:$0xff] %v10739_v5  ;;  %v10741_v42 = vpop.f32.mrf.mxu1 }
 0x983   :  { %11339 = vst [vmem:[#allocation29_spill] sm:$0xff] %v10741_v42 }
 0x987   :  { %v10743_v35 = vpop.f32.mrf.mxu2 }
 0x988   :  { %11340 = vst [vmem:[#allocation30_spill] sm:$0xff] %v10743_v35  ;;  %v10745_v53 = vpop.f32.mrf.mxu3  ;;  %v11351_v35 = vld [vmem:[#allocation27_spill] sm:$0xff] }
 0x989   :  { %11341 = vst [vmem:[#allocation31_spill] sm:$0xff] %v10745_v53  ;;  %v2770_v53 = vadd.f32 %v10161_v50, %v10129_v17  ;;  %v11345_v17 = vld [vmem:[#allocation14_spill] sm:$0xff] }
 0x98a   :  { %v2487_v50 = vadd.f32 %v11345_v17, %v11344_v56  ;;  %v3166_v56 = vadd.f32 %v11351_v35, %v11350_v59  ;;  %v3265_v17 = vadd.f32 %v10671_v13, %v10688_v16 }
 0x98b   :  { %v3657_v32 = vpop.f32.mrf.mxu0  ;;  %v2779_v4 = vmax.f32 %v2680_v0, %v2770_v53  ;;  %v2783_v20 = vadd.f32 %v2770_v53, %v2684_v28  ;;  %v11348_v53 = vld [vmem:[#allocation20_spill] sm:$0xff] }
 0x98c   :  { %v10747_v46 = vpop.f32.mrf.mxu1  ;;  %v2587_v61 = vadd.f32 %v2578_v39, %v2487_v50 }
 0x98d   :  { %v2878_v48 = vmax.f32 %v2779_v4, %v2869_v49  ;;  %v2882_v42 = vadd.f32 %v2869_v49, %v2783_v20  ;;  %v11349_v49 = vld [vmem:[#allocation18_spill] sm:$0xff] }
 0x98e   :  { %v2677_v4 = vadd.f32 %v11349_v49, %v11348_v53  ;;  %v3559_v49 = vadd.f32 %v10721_v3, %v10719_v51  ;;  %v11357_v51 = vld [vmem:[#allocation23_spill] sm:$0xff]  ;;  %v11358_v3 = vld [vmem:[#allocation25_spill] sm:$0xff] }
 0x98f   :  { %v2977_v0 = vmax.f32 %v2878_v48, %v2968_v11  ;;  %v2981_v10 = vadd.f32 %v2968_v11, %v2882_v42 }
 0x990   :  { %v2686_v36 = vadd.f32 %v2677_v4, %v2587_v61  ;;  %v3574_v61 = vadd.f32 %v3559_v49, %v3475_v40 }
 0x991   :  { %v3628_v26 = vpop.f32.mrf.mxu2  ;;  %v3076_v20 = vmax.f32 %v2977_v0, %v3067_v38  ;;  %v3080_v15 = vadd.f32 %v3067_v38, %v2981_v10  ;;  %v11352_v0 = vmax.f32 %v10669_v60, %v10667_v24  ;;  %v11353_v38 = vld [vmem:[#allocation19_spill] sm:$0xff]  ;;  %v11356_v10 = vld [vmem:[#allocation22_spill] sm:$0xff]  ;;  %v3364_v24 = vadd.f32 %v10690_v57, %v10682_v18 }
 0x992   :  { %v10749_v25 = vpop.f32.mrf.mxu3  ;;  %v3463_v60 = vadd.f32 %v10723_v8, %v10727_v19 }
 0x993   :  { %v3175_v33 = vmax.f32 %v3076_v20, %v3166_v56  ;;  %v3179_v11 = vadd.f32 %v3166_v56, %v3080_v15  ;;  %v3471_v53 = vmax.f32 %v11352_v0, %v3460_v6  ;;  %v3757_v8 = vadd.f32 %v10749_v25, %v10747_v46 }
 0x995   :  { %v10751_v27 = vpop.f32.mrf.mxu0  ;;  %v3274_v16 = vmax.f32 %v3175_v33, %v3265_v17  ;;  %v3570_v6 = vmax.f32 %v3471_v53, %v3559_v49 }
 0x996   :  { %v10753_v52 = vpop.f32.mrf.mxu1 }
 0x997   :  { %v3373_v0 = vmax.f32 %v3274_v16, %v3364_v24  ;;  %v3466_v16 = vadd.f32 %v10731_v9, %v10735_v14  ;;  %v11359_v9 = vmax.f32 %v10704_v12, %v10702_v23 }
 0x999   :  { %v3472_v18 = vmax.f32 %v3373_v0, %v3463_v60  ;;  %v3473_v14 = vmax.f32 %v11359_v9, %v3466_v16 }
 0x99b   :  { %v10761_v37 = vpop.f32.mrf.mxu2 }
 0x99c   :  { %v10763_v62 = vpop.f32.mrf.mxu3 }
 0x99f   :  { %v10765_v29 = vpop.f32.mrf.mxu0 }
 0x9a0   :  { %v10771_v30 = vpop.f32.mrf.mxu1 }
 0x9a1   :  { %11342 = vst [vmem:[#allocation32_spill] sm:$0xff] %v10771_v30  ;;  %v2583_v30 = vmax.f32 %v2487_v50, %v2578_v39  ;;  %v11354_v50 = vld [vmem:[#allocation21_spill] sm:$0xff]  ;;  %v11355_v39 = vld [vmem:[#allocation24_spill] sm:$0xff] }
 0x9a2   :  { %v2776_v35 = vadd.f32 %v11354_v50, %v11353_v38  ;;  %v2875_v13 = vadd.f32 %v11356_v10, %v11355_v39 }
 0x9a3   :  { %v2682_v48 = vmax.f32 %v2583_v30, %v2677_v4  ;;  %v3278_v30 = vadd.f32 %v3265_v17, %v3179_v11  ;;  %v3658_v4 = vadd.f32 %v3657_v32, %v3628_v26  ;;  %v2974_v32 = vadd.f32 %v11358_v3, %v11357_v51 }
 0x9a4   :  { %v2785_v15 = vadd.f32 %v2776_v35, %v2686_v36  ;;  %v3073_v26 = vadd.f32 %v10629_v34, %v10647_v54  ;;  %v3562_v36 = vadd.f32 %v10729_v45, %v10725_v55  ;;  %v3172_v55 = vadd.f32 %v10649_v58, %v10637_v21 }
 0x9a5   :  { %v10773_v41 = vpop.f32.mrf.mxu2  ;;  %v2781_v20 = vmax.f32 %v2682_v48, %v2776_v35  ;;  %v3377_v17 = vadd.f32 %v3364_v24, %v3278_v30  ;;  %v3669_v11 = vmax.f32 %v3570_v6, %v3658_v4  ;;  %v3673_v38 = vadd.f32 %v3658_v4, %v3574_v61 }
 0x9a6   :  { %v10775_v5 = vpop.f32.mrf.mxu3  ;;  %v2884_v56 = vadd.f32 %v2875_v13, %v2785_v15  ;;  %v3661_v35 = vadd.f32 %v10751_v27, %v10761_v37  ;;  %v3571_v54 = vmax.f32 %v3472_v18, %v3562_v36  ;;  %v3271_v45 = vadd.f32 %v10706_v1, %v10715_v44 }
 0x9a7   :  { %11343 = vst [vmem:[#allocation33_spill] sm:$0xff] %v10775_v5  ;;  %v2880_v59 = vmax.f32 %v2781_v20, %v2875_v13  ;;  %v3476_v57 = vadd.f32 %v3463_v60, %v3377_v17  ;;  %v3768_v40 = vmax.f32 %v3669_v11, %v3757_v8  ;;  %v3772_v50 = vadd.f32 %v3757_v8, %v3673_v38  ;;  %v11361_v17 = vld [vmem:[#allocation28_spill] sm:$0xff] }
 0x9a8   :  { %v2983_v48 = vadd.f32 %v2974_v32, %v2884_v56  ;;  %v3670_v37 = vmax.f32 %v3571_v54, %v3661_v35  ;;  %v3477_v6 = vadd.f32 %v3466_v16, %v10711_v2  ;;  %v3760_v21 = vadd.f32 %v10763_v62, %v10753_v52 }
 0x9a9   :  { %v10785_v28 = vpop.f32.mrf.mxu0  ;;  %v2979_v19 = vmax.f32 %v2880_v59, %v2974_v32  ;;  %v3575_v46 = vadd.f32 %v3562_v36, %v3476_v57  ;;  %v3565_v61 = vadd.f32 %v10737_v63, %v10733_v43  ;;  %v3664_v23 = vadd.f32 %v10765_v29, %v10773_v41 }
 0x9aa   :  { %v10789_v5 = vpop.f32.mrf.mxu1  ;;  %v3082_v34 = vadd.f32 %v3073_v26, %v2983_v48  ;;  %v3769_v56 = vmax.f32 %v3670_v37, %v3760_v21  ;;  %v3370_v62 = vadd.f32 %v10717_v22, %v10713_v31  ;;  %v11362_v48 = vld [vmem:[#allocation32_spill] sm:$0xff] }
 0x9ab   :  { %v3078_v13 = vmax.f32 %v2979_v19, %v3073_v26  ;;  %v3674_v27 = vadd.f32 %v3661_v35, %v3575_v46  ;;  %v3572_v52 = vmax.f32 %v3473_v14, %v3565_v61  ;;  %v3576_v38 = vadd.f32 %v3565_v61, %v3477_v6 }
 0x9ac   :  { %v3181_v60 = vadd.f32 %v3172_v55, %v3082_v34 }
 0x9ad   :  { %v3177_v24 = vmax.f32 %v3078_v13, %v3172_v55  ;;  %v3773_v0 = vadd.f32 %v3760_v21, %v3674_v27  ;;  %v3671_v26 = vmax.f32 %v3572_v52, %v3664_v23  ;;  %v3675_v18 = vadd.f32 %v3664_v23, %v3576_v38  ;;  %v4014_v23 = vld [vmem:[%s11264_s16 + $0x10] sm:$0xff]  ;;  %v4013_v52 = vld [vmem:[%s11264_s16 + $0x8] sm:$0xff]  ;;  %v4012_v38 = vld [vmem:[%s11264_s16] sm:$0xff] }
 0x9ae   :  { %v3280_v44 = vadd.f32 %v3271_v45, %v3181_v60  ;;  %v11363_v36 = vld [vmem:[#allocation33_spill] sm:$0xff] }
 0x9af   :  { %v10795_v42 = vpop.f32.mrf.mxu2  ;;  %v3276_v1 = vmax.f32 %v3177_v24, %v3271_v45  ;;  %v3763_v31 = vadd.f32 %v11363_v36, %v11362_v48  ;;  %v6485_v48 = vld [vmem:[%s11264_s16 + $0xc8] sm:$0xff]  ;;  %v6468_v36 = vld [vmem:[%s11264_s16 + $0x80] sm:$0xff] }
 0x9b0   :  { %v10801_v7 = vpop.f32.mrf.mxu3  ;;  %v3379_v32 = vadd.f32 %v3370_v62, %v3280_v44  ;;  %v3667_v34 = vadd.f32 %v10785_v28, %v10795_v42 }
 0x9b1   :  { %v3375_v3 = vmax.f32 %v3276_v1, %v3370_v62  ;;  %v3774_v13 = vadd.f32 %v3763_v31, %v3675_v18  ;;  %v6441_v62 = vld [vmem:[%s11264_s16 + $0x28] sm:$0xff]  ;;  %v6487_v18 = vld [vmem:[%s11264_s16 + $0xd8] sm:$0xff] }
 0x9b3   :  { %v3855_v47 = vpop.f32.mrf.mxu0 }
 0x9b4   :  { %v3925_v33 = vpop.f32.mrf.mxu1 }
 0x9b9   :  { %v3826_v53 = vpop.f32.mrf.mxu2 }
 0x9ba   :  { %v3856_v39 = vadd.f32 %v3855_v47, %v3826_v53  ;;  %v3954_v10 = vpop.f32.mrf.mxu3  ;;  %v11364_v53 = vld [vmem:[#allocation29_spill] sm:$0xff] }
 0x9bb   :  { %v3955_v49 = vadd.f32 %v3954_v10, %v3925_v33  ;;  %v3858_v4 = vpop.f32.mrf.mxu0  ;;  %v11360_v33 = vld [vmem:[#allocation30_spill] sm:$0xff]  ;;  %v3770_v10 = vmax.f32 %v3671_v26, %v3763_v31  ;;  %v6476_v31 = vld [vmem:[%s11264_s16 + $0xa0] sm:$0xff] }
 0x9bc   :  { %v3867_v25 = vmax.f32 %v3768_v40, %v3856_v39  ;;  %v3871_v30 = vadd.f32 %v3856_v39, %v3772_v50  ;;  %v3928_v47 = vpop.f32.mrf.mxu1  ;;  %v3469_v11 = vadd.f32 %v11361_v17, %v11360_v33  ;;  %v11365_v40 = vld [vmem:[#allocation31_spill] sm:$0xff]  ;;  %v6453_v33 = vld [vmem:[%s11264_s16 + $0x48] sm:$0xff] }
 0x9bd   :  { %v3568_v50 = vadd.f32 %v11365_v40, %v11364_v53  ;;  %v6461_v17 = vld [vmem:[%s11264_s16 + $0x68] sm:$0xff]  ;;  %v6479_v26 = vld [vmem:[%s11264_s16 + $0xb8] sm:$0xff] }
 0x9be   :  { %v3970_v20 = vadd.f32 %v3955_v49, %v3871_v30  ;;  %v3966_v15 = vmax.f32 %v3867_v25, %v3955_v49  ;;  %v3474_v57 = vmax.f32 %v3375_v3, %v3469_v11  ;;  %v3478_v19 = vadd.f32 %v3469_v11, %v3379_v32  ;;  %v6440_v11 = vld [vmem:[%s11264_s16 + $0x20] sm:$0xff]  ;;  %v6471_v32 = vld [vmem:[%s11264_s16 + $0x98] sm:$0xff] }
 0x9c0   :  { %v3974_v58 = vmul.f32 0.0625, %v3970_v20  ;;  %3991 = vrot.lane.b32.xlu0 %v3966_v15, %s7117_s21  ;;  %v3573_v46 = vmax.f32 %v3474_v57, %v3568_v50  ;;  %v3577_v25 = vadd.f32 %v3568_v50, %v3478_v19  ;;  %v3766_v20 = vadd.f32 %v10801_v7, %v10789_v5  ;;  %v6443_v5 = vld [vmem:[%s11264_s16 + $0x38] sm:$0xff]  ;;  %v6486_v57 = vld [vmem:[%s11264_s16 + $0xd0] sm:$0xff]  ;;  %v6477_v19 = vld [vmem:[%s11264_s16 + $0xa8] sm:$0xff] }
 0x9c1   :  { %v3829_v59 = vpop.f32.mrf.mxu2  ;;  %v4015_v7 = vld [vmem:[%s11264_s16 + $0x18] sm:$0xff]  ;;  %4049 = vmatpush.msra.mxu2 %v6443_v5 }
 0x9c2   :  { %3983 = vst.msk [vmem:[#allocation3 + $0x3] sm:$0xff] %vm543_vm6, %v3974_v58  ;;  %v3859_v12 = vadd.f32 %v3858_v4, %v3829_v59  ;;  %v3957_v2 = vpop.f32.mrf.mxu3  ;;  %v3672_v45 = vmax.f32 %v3573_v46, %v3667_v34  ;;  %v3676_v4 = vadd.f32 %v3667_v34, %v3577_v25  ;;  %v6455_v59 = vld [vmem:[%s11264_s16 + $0x58] sm:$0xff]  ;;  %4090 = vmatpush.msrb.mxu0 %v4015_v7 }
 0x9c3   :  { %v3958_v63 = vadd.f32 %v3957_v2, %v3928_v47  ;;  %v3861_v8 = vpop.f32.mrf.mxu0  ;;  %4140 = vmatpush.msra.mxu1 %v6455_v59  ;;  %v6462_v2 = vld [vmem:[%s11264_s16 + $0x70] sm:$0xff] }
 0x9c4   :  { %v3868_v51 = vmax.f32 %v3769_v56, %v3859_v12  ;;  %v3872_v43 = vadd.f32 %v3859_v12, %v3773_v0  ;;  %v3931_v35 = vpop.f32.mrf.mxu1  ;;  %v3771_v24 = vmax.f32 %v3672_v45, %v3766_v20  ;;  %v3775_v60 = vadd.f32 %v3766_v20, %v3676_v4  ;;  %v6463_v56 = vld [vmem:[%s11264_s16 + $0x78] sm:$0xff]  ;;  %v6442_v0 = vld [vmem:[%s11264_s16 + $0x30] sm:$0xff]  ;;  %4091 = vmatpush.msrb.mxu0 %v4014_v23 }
 0x9c5   :  { %4194 = vmatpush.msrb.mxu3 %v6463_v56  ;;  %v6454_v12 = vld [vmem:[%s11264_s16 + $0x50] sm:$0xff]  ;;  %4050 = vmatpush.msra.mxu2 %v6442_v0  ;;  %v34_v20 = vstv %s11265_s17 }
 0x9c6   :  { %v3967_v29 = vmax.f32 %v3868_v51, %v3958_v63  ;;  %v3971_v41 = vadd.f32 %v3958_v63, %v3872_v43  ;;  %4141 = vmatpush.msra.mxu1 %v6454_v12  ;;  %4092 = vmatpush.msrb.mxu0 %v4013_v52  ;;  %v6452_v51 = vld [vmem:[%s11264_s16 + $0x40] sm:$0xff]  ;;  %v11366_v63 = vmov 0.0   ;;  %35 = vst [vmem:[#allocation5] sm:$0x1] %v34_v20 }
 0x9c7   :  { %4195 = vmatpush.msrb.mxu3 %v6462_v2  ;;  %4051 = vmatpush.msra.mxu2 %v6441_v62  ;;  %v6460_v43 = vld [vmem:[%s11264_s16 + $0x60] sm:$0xff]  ;;  %3979 = vst.msk [vmem:[#allocation3] sm:$0x7] %vm3978_vm7, %v11366_v63 }
 0x9c8   :  { %v3975_v22 = vmul.f32 0.0625, %v3971_v41  ;;  %3993 = vrot.lane.b32.xlu0 %v3967_v29, %s7117_s21  ;;  %4142 = vmatpush.msra.mxu1 %v6453_v33  ;;  %3980 = vst.msk [vmem:[#allocation3 + $0x18] sm:$0x7] %vm3978_vm7, %v11366_v63  ;;  %v6470_v29 = vld [vmem:[%s11264_s16 + $0x90] sm:$0xff] }
 0x9c9   :  { %v3832_v39 = vpop.f32.mrf.mxu2  ;;  %4196 = vmatpush.msrb.mxu3 %v6461_v17  ;;  %4052 = vmatpush.msra.mxu2 %v6440_v11  ;;  %3981 = vst.msk [vmem:[#allocation3 + $0x13] sm:$0x7] %vm3978_vm7, %v11366_v63  ;;  %v6478_v41 = vld [vmem:[%s11264_s16 + $0xb0] sm:$0xff] }
 0x9ca   :  { %3984 = vst.msk [vmem:[#allocation3 + $0xb] sm:$0xff] %vm543_vm6, %v3975_v22  ;;  %v3862_v54 = vadd.f32 %v3861_v8, %v3832_v39  ;;  %v3960_v16 = vpop.f32.mrf.mxu3  ;;  %4093 = vmatpush.msrb.mxu0 %v4012_v38  ;;  %4143 = vmatpush.msra.mxu1 %v6452_v51  ;;  %v6469_v8 = vld [vmem:[%s11264_s16 + $0x88] sm:$0xff]  ;;  %v6484_v39 = vld [vmem:[%s11264_s16 + $0xc0] sm:$0xff] }
 0x9cb   :  { %v3961_v55 = vadd.f32 %v3960_v16, %v3931_v35  ;;  %v3864_v28 = vpop.f32.mrf.mxu0  ;;  %4197 = vmatpush.msrb.mxu3 %v6460_v43  ;;  %3982 = vst.msk [vmem:[#allocation3 + $0x2b] sm:$0x7] %vm3978_vm7, %v11366_v63  ;;  %4248 = vmatpush.msrb.mxu2 %v6471_v32 }
 0x9cc   :  { %v3869_v30 = vmax.f32 %v3770_v10, %v3862_v54  ;;  %v3873_v49 = vadd.f32 %v3862_v54, %v3774_v13  ;;  %v3934_v47 = vpop.f32.mrf.mxu1  ;;  %4302 = vmatpush.msra.mxu0 %v6479_v26  ;;  %4356 = vmatpush.msrb.mxu1 %v6487_v18 }
 0x9cd   :  { %4249 = vmatpush.msrb.mxu2 %v6470_v29 }
 0x9ce   :  { %v3972_v37 = vadd.f32 %v3961_v55, %v3873_v49  ;;  %v3968_v27 = vmax.f32 %v3869_v30, %v3961_v55  ;;  %4303 = vmatpush.msra.mxu0 %v6478_v41  ;;  %4357 = vmatpush.msrb.mxu1 %v6486_v57 }
 0x9cf   :  { %4250 = vmatpush.msrb.mxu2 %v6469_v8 }
 0x9d0   :  { %v3976_v15 = vmul.f32 0.0625, %v3972_v37  ;;  %3995 = vrot.lane.b32.xlu1 %v3968_v27, %s7117_s21  ;;  %4304 = vmatpush.msra.mxu0 %v6477_v19 }
 0x9d1   :  { %v3835_v42 = vpop.f32.mrf.mxu2  ;;  %4358 = vmatpush.msrb.mxu1 %v6485_v48  ;;  %4251 = vmatpush.msrb.mxu2 %v6468_v36 }
 0x9d2   :  { %3985 = vst.msk [vmem:[#allocation3 + $0x1b] sm:$0xff] %vm543_vm6, %v3976_v15  ;;  %v3865_v9 = vadd.f32 %v3864_v28, %v3835_v42  ;;  %v3963_v14 = vpop.f32.mrf.mxu3  ;;  %4305 = vmatpush.msra.mxu0 %v6476_v31  ;;  %v7118_v15 = vmov 0  }
 0x9d3   :  { %v3964_v58 = vadd.f32 %v3963_v14, %v3934_v47  ;;  %4359 = vmatpush.msrb.mxu1 %v6484_v39  ;;  %7082 = vset.pattern.permute.xlu2 %v7118_v15 }
 0x9d4   :  { %v3870_v6 = vmax.f32 %v3771_v24, %v3865_v9  ;;  %v3874_v21 = vadd.f32 %v3865_v9, %v3775_v60  ;;  %7083 = vset.pattern.permute.xlu0 %v7118_v15  ;;  %v7087_v60 = vld [vmem:[#allocation5] ss:$0 sm:$0xff] }
 0x9d5   :  { %4381 = vperm.xlu2 %7082, %v7087_v60  }
 0x9d6   :  { %v3969_v1 = vmax.f32 %v3870_v6, %v3964_v58  ;;  %v3973_v44 = vadd.f32 %v3964_v58, %v3874_v21 }
 0x9d8   :  { %v3977_v61 = vmul.f32 0.0625, %v3973_v44  ;;  %3997 = vrot.lane.b32.xlu1 %v3969_v1, %s7117_s21 }
 0x9da   :  { %3986 = vst.msk [vmem:[#allocation3 + $0x23] sm:$0xff] %vm543_vm6, %v3977_v61 }
 0xa2f   :  { %v4382_v8 = vpop.permute.xlu2 %4381 }
 0xa32   :  { %v3992_v3 = vpop.permute.xlu0 %3991 }
 0xa33   :  { %4004 = vst.msk [vmem:[#allocation3 + $0x3] sm:$0xff] %vm4003_vm8, %v3992_v3 }
 0xa3a   :  { %v3994_v22 = vpop.permute.xlu0 %3993  ;;  %v4016_v53 = vld [vmem:[#allocation3 + $0x1] sm:$0xff] }
 0xa3b   :  { %v4008_v40 = vld [vmem:[#allocation3] sm:$0xff]  ;;  %4005 = vst.msk [vmem:[#allocation3 + $0xb] sm:$0xff] %vm4003_vm8, %v3994_v22  ;;  %6444 = vmatmul.msk.f32.vlgmr.msra.gmra.mxu2 %vm659_vm2, %v4016_v53 }
 0xa3c   :  { %v4107_v50 = vld [vmem:[#allocation3 + $0x2] sm:$0xff]  ;;  %6448 = vmatmul.msk.f32.vlgmr.msrb.gmra.mxu0 %vm659_vm2, %v4008_v40 }
 0xa3d   :  { %v4161_v35 = vld [vmem:[#allocation3 + $0x3] sm:$0xff]  ;;  %6456 = vmatmul.msk.f32.vlgmr.msra.gmra.mxu1 %vm659_vm2, %v4107_v50 }
 0xa3e   :  { %6464 = vmatmul.msk.f32.vlgmr.msrb.gmra.mxu3 %vm659_vm2, %v4161_v35 }
 0xa42   :  { %v3996_v10 = vpop.permute.xlu1 %3995  ;;  %v4017_v13 = vld [vmem:[#allocation3 + $0x9] sm:$0xff] }
 0xa43   :  { %v4009_v34 = vld [vmem:[#allocation3 + $0x8] sm:$0xff]  ;;  %4006 = vst.msk [vmem:[#allocation3 + $0x1b] sm:$0xff] %vm4003_vm8, %v3996_v10  ;;  %6445 = vmatmul.msk.f32.gmra.mxu2 %vm659_vm2, %v4017_v13 }
 0xa44   :  { %v4108_v54 = vld [vmem:[#allocation3 + $0xa] sm:$0xff]  ;;  %6449 = vmatmul.msk.f32.gmra.mxu0 %vm659_vm2, %v4009_v34 }
 0xa45   :  { %v4162_v16 = vld [vmem:[#allocation3 + $0xb] sm:$0xff]  ;;  %6457 = vmatmul.msk.f32.gmra.mxu1 %vm659_vm2, %v4108_v54  ;;  %v4467_v54 = vld [vmem:[%s11266_s26 + $0x18] sm:$0xff] }
 0xa46   :  { %6465 = vmatmul.msk.f32.gmra.mxu3 %vm659_vm2, %v4162_v16  ;;  %v4215_v28 = vld [vmem:[#allocation3 + $0x4] sm:$0xff]  ;;  %v4216_v9 = vld [vmem:[#allocation3 + $0xc] sm:$0xff]  ;;  %4523 = vmatpush.msra.mxu2 %v4467_v54 }
 0xa47   :  { %v4269_v42 = vld [vmem:[#allocation3 + $0x5] sm:$0xff]  ;;  %v4270_v14 = vld [vmem:[#allocation3 + $0xd] sm:$0xff] }
 0xa48   :  { %v4323_v24 = vld [vmem:[#allocation3 + $0x6] sm:$0xff]  ;;  %v4324_v47 = vld [vmem:[#allocation3 + $0xe] sm:$0xff] }
 0xa49   :  { %v4466_v34 = vld [vmem:[%s11266_s26 + $0x10] sm:$0xff]  ;;  %v4464_v16 = vld [vmem:[%s11266_s26] sm:$0xff] }
 0xa4a   :  { %v3998_v46 = vpop.permute.xlu1 %3997  ;;  %v4018_v25 = vld [vmem:[#allocation3 + $0x19] sm:$0xff]  ;;  %4494 = vmatpush.msra.mxu3 %v4466_v34 }
 0xa4b   :  { %v4010_v30 = vld [vmem:[#allocation3 + $0x18] sm:$0xff]  ;;  %4007 = vst.msk [vmem:[#allocation3 + $0x23] sm:$0xff] %vm4003_vm8, %v3998_v46  ;;  %6446 = vmatmul.msk.f32.gmra.mxu2 %vm659_vm2, %v4018_v25  ;;  %v4465_v25 = vld [vmem:[%s11266_s26 + $0x8] sm:$0xff] }
 0xa4c   :  { %v4109_v49 = vld [vmem:[#allocation3 + $0x1a] sm:$0xff]  ;;  %6450 = vmatmul.msk.f32.gmra.mxu0 %vm659_vm2, %v4010_v30  ;;  %4495 = vmatpush.msra.mxu3 %v4464_v16 }
 0xa4d   :  { %v4163_v55 = vld [vmem:[#allocation3 + $0x1b] sm:$0xff]  ;;  %6458 = vmatmul.msk.f32.gmra.mxu1 %vm659_vm2, %v4109_v49  ;;  %4524 = vmatpush.msra.mxu2 %v4465_v25 }
 0xa4e   :  { %6466 = vmatmul.msk.f32.gmra.mxu3 %vm659_vm2, %v4163_v55 }
 0xa52   :  { %v4019_v45 = vld [vmem:[#allocation3 + $0x21] sm:$0xff] }
 0xa53   :  { %v4011_v4 = vld [vmem:[#allocation3 + $0x20] sm:$0xff]  ;;  %6447 = vmatmul.msk.f32.gmra.mxu2 %vm659_vm2, %v4019_v45 }
 0xa54   :  { %v4110_v37 = vld [vmem:[#allocation3 + $0x22] sm:$0xff]  ;;  %6451 = vmatmul.msk.f32.gmra.mxu0 %vm659_vm2, %v4011_v4 }
 0xa55   :  { %v4164_v27 = vld [vmem:[#allocation3 + $0x23] sm:$0xff]  ;;  %6459 = vmatmul.msk.f32.gmra.mxu1 %vm659_vm2, %v4110_v37 }
 0xa56   :  { %6467 = vmatmul.msk.f32.gmra.mxu3 %vm659_vm2, %v4164_v27  ;;  %v4217_v6 = vld [vmem:[#allocation3 + $0x1c] sm:$0xff]  ;;  %v4218_v1 = vld [vmem:[#allocation3 + $0x24] sm:$0xff] }
 0xa57   :  { %v4271_v21 = vld [vmem:[#allocation3 + $0x1d] sm:$0xff]  ;;  %v4272_v44 = vld [vmem:[#allocation3 + $0x25] sm:$0xff] }
 0xa58   :  { %v4325_v58 = vld [vmem:[#allocation3 + $0x1e] sm:$0xff]  ;;  %v4326_v61 = vld [vmem:[#allocation3 + $0x26] sm:$0xff] }
 0xa5b   :  { %6472 = vmatmul.msk.f32.vlgmr.msrb.gmra.mxu2 %vm659_vm2, %v4215_v28 }
 0xa5c   :  { %6480 = vmatmul.msk.f32.vlgmr.msra.gmra.mxu0 %vm659_vm2, %v4269_v42 }
 0xa5d   :  { %6488 = vmatmul.msk.f32.vlgmr.msrb.gmra.mxu1 %vm659_vm2, %v4323_v24 }
 0xa63   :  { %6473 = vmatmul.msk.f32.gmra.mxu2 %vm659_vm2, %v4216_v9 }
 0xa64   :  { %6481 = vmatmul.msk.f32.gmra.mxu0 %vm659_vm2, %v4270_v14 }
 0xa65   :  { %6489 = vmatmul.msk.f32.gmra.mxu1 %vm659_vm2, %v4324_v47 }
 0xa6b   :  { %6474 = vmatmul.msk.f32.gmra.mxu2 %vm659_vm2, %v4217_v6 }
 0xa6c   :  { %6482 = vmatmul.msk.f32.gmra.mxu0 %vm659_vm2, %v4271_v21 }
 0xa6d   :  { %6490 = vmatmul.msk.f32.gmra.mxu1 %vm659_vm2, %v4325_v58 }
 0xa73   :  { %6475 = vmatmul.msk.f32.gmra.mxu2 %vm659_vm2, %v4218_v1 }
 0xa74   :  { %6483 = vmatmul.msk.f32.gmra.mxu0 %vm659_vm2, %v4272_v44 }
 0xa75   :  { %6491 = vmatmul.msk.f32.gmra.mxu1 %vm659_vm2, %v4326_v61 }
 0xab9   :  { %v4095_v5 = vpop.f32.mrf.mxu0 }
 0xaba   :  { %v4145_v7 = vpop.f32.mrf.mxu1 }
 0xabe   :  { %v4054_v59 = vpop.f32.mrf.mxu2 }
 0xabf   :  { %v4096_v17 = vadd.f32 %v4095_v5, %v4054_v59 }
 0xac1   :  { %v4098_v56 = vpop.f32.mrf.mxu0  ;;  %v4199_v11 = vpop.f32.mrf.mxu3  ;;  %v4157_v51 = vadd.f32 %v4145_v7, %v4096_v17 }
 0xac2   :  { %v4148_v0 = vpop.f32.mrf.mxu1 }
 0xac3   :  { %v4211_v3 = vadd.f32 %v4199_v11, %v4157_v51 }
 0xac6   :  { %v4057_v23 = vpop.f32.mrf.mxu2 }
 0xac7   :  { %v4099_v32 = vadd.f32 %v4098_v56, %v4057_v23 }
 0xac9   :  { %v4101_v12 = vpop.f32.mrf.mxu0  ;;  %v4202_v29 = vpop.f32.mrf.mxu3  ;;  %v4158_v41 = vadd.f32 %v4148_v0, %v4099_v32 }
 0xaca   :  { %v4151_v2 = vpop.f32.mrf.mxu1 }
 0xacb   :  { %v4212_v36 = vadd.f32 %v4202_v29, %v4158_v41 }
 0xace   :  { %v4060_v62 = vpop.f32.mrf.mxu2 }
 0xacf   :  { %v4102_v31 = vadd.f32 %v4101_v12, %v4060_v62 }
 0xad1   :  { %v4104_v52 = vpop.f32.mrf.mxu0  ;;  %v4159_v39 = vadd.f32 %v4151_v2, %v4102_v31  ;;  %v4205_v13 = vpop.f32.mrf.mxu3 }
 0xad2   :  { %v4154_v33 = vpop.f32.mrf.mxu1 }
 0xad3   :  { %v4213_v30 = vadd.f32 %v4205_v13, %v4159_v39 }
 0xad6   :  { %v4063_v38 = vpop.f32.mrf.mxu2 }
 0xad7   :  { %v4105_v49 = vadd.f32 %v4104_v52, %v4063_v38 }
 0xad9   :  { %v4307_v43 = vpop.f32.mrf.mxu0  ;;  %v4160_v42 = vadd.f32 %v4154_v33, %v4105_v49  ;;  %v4208_v9 = vpop.f32.mrf.mxu3 }
 0xada   :  { %v4361_v63 = vpop.f32.mrf.mxu1 }
 0xadb   :  { %v4214_v14 = vadd.f32 %v4208_v9, %v4160_v42  ;;  %v7042_v42 = vld [vmem:[%s11267_s18 + $0xf0] sm:$0xff]  ;;  %v7032_v9 = vld [vmem:[%s11267_s18 + $0xa0] sm:$0xff] }
 0xade   :  { %v4253_v26 = vpop.f32.mrf.mxu2 }
 0xadf   :  { %v4265_v18 = vadd.f32 %v4253_v26, %v4211_v3 }
 0xae1   :  { %v4319_v57 = vadd.f32 %v4307_v43, %v4265_v18  ;;  %v4310_v48 = vpop.f32.mrf.mxu0 }
 0xae2   :  { %v4364_v53 = vpop.f32.mrf.mxu1 }
 0xae3   :  { %v4373_v19 = vadd.f32 %v4361_v63, %v4319_v57 }
 0xae5   :  { %v4384_v22 = vadd.f32 %v4382_v8, %v4373_v19 }
 0xae6   :  { %v4256_v40 = vpop.f32.mrf.mxu2 }
 0xae7   :  { %v6492_v50 = vmul.f32 -1.442695, %v4384_v22  ;;  %v4266_v35 = vadd.f32 %v4256_v40, %v4212_v36 }
 0xae9   :  { %7099 = vpow2.f32 %v6492_v50  ;;  %v4320_v10 = vadd.f32 %v4310_v48, %v4266_v35  ;;  %v4313_v45 = vpop.f32.mrf.mxu0 }
 0xaea   :  { %v4367_v28 = vpop.f32.mrf.mxu1 }
 0xaeb   :  { %v4374_v46 = vadd.f32 %v4364_v53, %v4320_v10 }
 0xaed   :  { %v4385_v55 = vadd.f32 %v4382_v8, %v4374_v46 }
 0xaee   :  { %v4259_v4 = vpop.f32.mrf.mxu2 }
 0xaef   :  { %v7100_v37 = vpop.eup %7099  ;;  %v6493_v27 = vmul.f32 -1.442695, %v4385_v55  ;;  %v4267_v20 = vadd.f32 %v4259_v4, %v4213_v30 }
 0xaf0   :  { %v4400_v15 = vadd.f32 1.0, %v7100_v37 }
 0xaf1   :  { %7101 = vpow2.f32 %v6493_v27  ;;  %v4321_v24 = vadd.f32 %v4313_v45, %v4267_v20  ;;  %v4316_v5 = vpop.f32.mrf.mxu0  ;;  %v7035_v20 = vld [vmem:[%s11267_s18 + $0xb8] sm:$0xff] }
 0xaf2   :  { %7103 = vrcp.f32 %v4400_v15  ;;  %v4370_v56 = vpop.f32.mrf.mxu1  ;;  %v4415_v12 = vand.u32 2147483648, %v4400_v15  ;;  %v4413_v52 = vand.u32 2147483647, %v4400_v15  ;;  %vm4409_vm10 = vweird.f32 %v4400_v15  ;;  %4792 = vmatpush.bf16.msrb.mxu3 %v7035_v20 }
 0xaf3   :  { %v4375_v60 = vadd.f32 %v4367_v28, %v4321_v24  ;;  %v7034_v28 = vld [vmem:[%s11267_s18 + $0xb0] sm:$0xff]  ;;  %v7033_v24 = vld [vmem:[%s11267_s18 + $0xa8] sm:$0xff] }
 0xaf4   :  { %v4416_v43 = vor.u32 1.1754944e-38, %v4415_v12  ;;  %vm4414_vm12 = vcmp.eq.f32.partialorder %v4413_v52, 8.507059e+37  ;;  %v11367_v52 = vld [vmem:[#allocation10_spill] sm:$0xff] }
 0xaf5   :  { %v4386_v47 = vadd.f32 %v4382_v8, %v4375_v60  ;;  %v7041_v60 = vld [vmem:[%s11267_s18 + $0xe8] sm:$0xff] }
 0xaf6   :  { %v4262_v6 = vpop.f32.mrf.mxu2  ;;  %4793 = vmatpush.bf16.msrb.mxu3 %v7034_v28 }
 0xaf7   :  { %v7102_v21 = vpop.eup %7101  ;;  %v6494_v58 = vmul.f32 -1.442695, %v4386_v47  ;;  %v4268_v1 = vadd.f32 %v4262_v6, %v4214_v14  ;;  %v7040_v14 = vld [vmem:[%s11267_s18 + $0xe0] sm:$0xff]  ;;  %v7031_v47 = vld [vmem:[%s11267_s18 + $0x98] sm:$0xff] }
 0xaf8   :  { %v7104_v44 = vpop.eup %7103  ;;  %v4401_v61 = vadd.f32 1.0, %v7102_v21  ;;  %v7039_v6 = vld [vmem:[%s11267_s18 + $0xd8] sm:$0xff]  ;;  %v7030_v21 = vld [vmem:[%s11267_s18 + $0x90] sm:$0xff] }
 0xaf9   :  { %v4405_v7 = vmul.f32 %v7104_v44, %v4400_v15  ;;  %7105 = vpow2.f32 %v6494_v58  ;;  %v4322_v59 = vadd.f32 %v4316_v5, %v4268_v1  ;;  %vm4410_vm9 = vweird.f32 %v7104_v44  ;;  %v7043_v15 = vld [vmem:[%s11267_s18 + $0xf8] sm:$0xff]  ;;  %v7038_v58 = vld [vmem:[%s11267_s18 + $0xd0] sm:$0xff]  ;;  %v7029_v1 = vld [vmem:[%s11267_s18 + $0x88] sm:$0xff] }
 0xafa   :  { %7107 = vrcp.f32 %v4401_v61  ;;  %vm4411_vm11 = vmor %vm4409_vm10, %vm4410_vm9  ;;  %v4430_v18 = vand.u32 2147483648, %v4401_v61  ;;  %v4428_v41 = vand.u32 2147483647, %v4401_v61  ;;  %vm4424_vm14 = vweird.f32 %v4401_v61  ;;  %4806 = vmatpush.bf16.msrb.mxu2 %v7043_v15  ;;  %4794 = vmatpush.bf16.msrb.mxu3 %v7033_v24  ;;  %v7036_v5 = vld [vmem:[%s11267_s18 + $0xc0] sm:$0xff] }
 0xafb   :  { %v4376_v0 = vadd.f32 %v4370_v56, %v4322_v59  ;;  %v4406_v23 = vsub.f32 1.0, %v4405_v7 }
 0xafc   :  { %v4431_v36 = vor.u32 1.1754944e-38, %v4430_v18  ;;  %vm4429_vm0 = vcmp.eq.f32.partialorder %v4428_v41, 8.507059e+37 }
 0xafd   :  { %v4387_v2 = vadd.f32 %v4382_v8, %v4376_v0  ;;  %v4407_v62 = vmul.f32 %v7104_v44, %v4406_v23 }
 0xafe   :  { %4807 = vmatpush.bf16.msrb.mxu2 %v7042_v42  ;;  %4795 = vmatpush.bf16.msrb.mxu3 %v7032_v9 }
 0xaff   :  { %v7106_v33 = vpop.eup %7105  ;;  %v6495_v17 = vmul.f32 -1.442695, %v4387_v2  ;;  %v4408_v11 = vadd.f32 %v7104_v44, %v4407_v62 }
 0xb00   :  { %v7108_v38 = vpop.eup %7107  ;;  %v4402_v51 = vadd.f32 1.0, %v7106_v33 }
 0xb01   :  { %7109 = vpow2.f32 %v6495_v17  ;;  %v4412_v63 = vsel %vm4411_vm11, %v7104_v44, %v4408_v11  ;;  %v4420_v3 = vmul.f32 %v7108_v38, %v4401_v61  ;;  %vm4425_vm13 = vweird.f32 %v7108_v38  ;;  %v7037_v44 = vld [vmem:[%s11267_s18 + $0xc8] sm:$0xff]  ;;  %v7028_v61 = vld [vmem:[%s11267_s18 + $0x80] sm:$0xff] }
 0xb02   :  { %7111 = vrcp.f32 %v4402_v51  ;;  %v4417_v32 = vsel %vm4414_vm12, %v4416_v43, %v4412_v63  ;;  %vm4426_vm15 = vmor %vm4424_vm14, %vm4425_vm13  ;;  %v4445_v50 = vand.u32 2147483648, %v4402_v51  ;;  %v4443_v39 = vand.u32 2147483647, %v4402_v51  ;;  %4808 = vmatpush.bf16.msrb.mxu2 %v7041_v60  ;;  %4796 = vmatpush.bf16.msrb.mxu3 %v7031_v47  ;;  %v11368_v17 = vld [vmem:[#allocation11_spill] sm:$0xff]  ;;  %v11370_v43 = vld [vmem:[#allocation13_spill] sm:$0xff] }
 0xb03   :  { %6496 = vmatmul.msk.f32.vlgmr.msra.gmra.mxu3 %vm543_vm6, %v4417_v32  ;;  %6500 = vmatmul.msk.f32.vlgmr.msra.gmra.mxu2 %vm543_vm6, %v4417_v32  ;;  %v4421_v26 = vsub.f32 1.0, %v4420_v3  ;;  %vm4439_vm3 = vweird.f32 %v4402_v51  ;;  %v11371_v3 = vld [vmem:[#allocation8_spill] sm:$0xff] }
 0xb04   :  { %v4446_v34 = vor.u32 1.1754944e-38, %v4445_v50  ;;  %vm4444_vm5 = vcmp.eq.f32.partialorder %v4443_v39, 8.507059e+37  ;;  %v7018_v50 = vld [vmem:[%s11267_s18 + $0x38] sm:$0xff]  ;;  %v7024_v39 = vld [vmem:[%s11267_s18 + $0x68] sm:$0xff] }
 0xb05   :  { %v4422_v29 = vmul.f32 %v7108_v38, %v4421_v26  ;;  %v11372_v26 = vld [vmem:[#allocation9_spill] sm:$0xff] }
 0xb06   :  { %4809 = vmatpush.bf16.msrb.mxu2 %v7040_v14  ;;  %4797 = vmatpush.bf16.msrb.mxu3 %v7030_v21  ;;  %v7052_v14 = vld [vmem:[%s11267_s18 + $0x138] sm:$0xff] }
 0xb07   :  { %v7110_v57 = vpop.eup %7109  ;;  %v4423_v8 = vadd.f32 %v7108_v38, %v4422_v29 }
 0xb08   :  { %v7112_v19 = vpop.eup %7111  ;;  %v4403_v48 = vadd.f32 1.0, %v7110_v57  ;;  %v11373_v57 = vld [vmem:[#allocation6_spill] sm:$0xff] }
 0xb09   :  { %v4427_v31 = vsel %vm4426_vm15, %v7108_v38, %v4423_v8  ;;  %v4435_v22 = vmul.f32 %v7112_v19, %v4402_v51  ;;  %vm4440_vm1 = vweird.f32 %v7112_v19  ;;  %v11369_v38 = vld [vmem:[#allocation12_spill] sm:$0xff] }
 0xb0a   :  { %7113 = vrcp.f32 %v4403_v48  ;;  %v4432_v53 = vsel %vm4429_vm0, %v4431_v36, %v4427_v31  ;;  %vm4441_vm4 = vmor %vm4439_vm3, %vm4440_vm1  ;;  %v4460_v30 = vand.u32 2147483648, %v4403_v48  ;;  %v4458_v55 = vand.u32 2147483647, %v4403_v48  ;;  %4810 = vmatpush.bf16.msrb.mxu2 %v7039_v6  ;;  %4798 = vmatpush.bf16.msrb.mxu3 %v7029_v1  ;;  %v7050_v1 = vld [vmem:[%s11267_s18 + $0x128] sm:$0xff] }
 0xb0b   :  { %6497 = vmatmul.msk.f32.gmra.mxu3 %vm543_vm6, %v4432_v53  ;;  %6501 = vmatmul.msk.f32.gmra.mxu2 %vm543_vm6, %v4432_v53  ;;  %v4436_v40 = vsub.f32 1.0, %v4435_v22  ;;  %vm4454_vm8 = vweird.f32 %v4403_v48  ;;  %v7010_v22 = vld [vmem:[%s11268_s20] sm:$0xff]  ;;  %v7026_v53 = vld [vmem:[%s11267_s18 + $0x78] sm:$0xff] }
 0xb0c   :  { %v4461_v4 = vor.u32 1.1754944e-38, %v4460_v30  ;;  %vm4459_vm10 = vcmp.eq.f32.partialorder %v4458_v55, 8.507059e+37  ;;  %v7015_v30 = vld [vmem:[%s11267_s18 + $0x20] sm:$0xff]  ;;  %v7013_v55 = vld [vmem:[%s11267_s18 + $0x10] sm:$0xff] }
 0xb0d   :  { %v4437_v35 = vmul.f32 %v7112_v19, %v4436_v40  ;;  %v7025_v40 = vld [vmem:[%s11267_s18 + $0x70] sm:$0xff] }
 0xb0e   :  { %4811 = vmatpush.bf16.msrb.mxu2 %v7038_v58  ;;  %4799 = vmatpush.bf16.msrb.mxu3 %v7028_v61  ;;  %v7051_v58 = vld [vmem:[%s11267_s18 + $0x130] sm:$0xff] }
 0xb0f   :  { %v4438_v10 = vadd.f32 %v7112_v19, %v4437_v35  ;;  %v7017_v35 = vld [vmem:[%s11267_s18 + $0x30] sm:$0xff] }
 0xb10   :  { %v7114_v13 = vpop.eup %7113  ;;  %v7044_v61 = vld [vmem:[%s11268_s20 + $0x10] sm:$0xff] }
 0xb11   :  { %v4442_v54 = vsel %vm4441_vm4, %v7112_v19, %v4438_v10  ;;  %v4450_v16 = vmul.f32 %v7114_v13, %v4403_v48  ;;  %vm4455_vm7 = vweird.f32 %v7114_v13  ;;  %v11374_v19 = vld [vmem:[#allocation7_spill] sm:$0xff]  ;;  %v7016_v10 = vld [vmem:[%s11267_s18 + $0x28] sm:$0xff] }
 0xb12   :  { %v4447_v46 = vsel %vm4444_vm5, %v4446_v34, %v4442_v54  ;;  %vm4456_vm9 = vmor %vm4454_vm8, %vm4455_vm7  ;;  %4812 = vmatpush.bf16.msrb.mxu2 %v7037_v44  ;;  %v7027_v34 = vld [vmem:[%s11268_s20 + $0x8] sm:$0xff]  ;;  %v7022_v54 = vld [vmem:[%s11267_s18 + $0x58] sm:$0xff] }
 0xb13   :  { %6498 = vmatmul.msk.f32.gmra.mxu3 %vm543_vm6, %v4447_v46  ;;  %6502 = vmatmul.msk.f32.gmra.mxu2 %vm543_vm6, %v4447_v46  ;;  %v4451_v25 = vsub.f32 1.0, %v4450_v16  ;;  %v7021_v16 = vld [vmem:[%s11267_s18 + $0x50] sm:$0xff]  ;;  %v7020_v46 = vld [vmem:[%s11267_s18 + $0x48] sm:$0xff]  ;;  %v7049_v44 = vld [vmem:[%s11267_s18 + $0x120] sm:$0xff] }
 0xb15   :  { %v4452_v49 = vmul.f32 %v7114_v13, %v4451_v25  ;;  %v7019_v25 = vld [vmem:[%s11267_s18 + $0x40] sm:$0xff] }
 0xb16   :  { %4813 = vmatpush.bf16.msrb.mxu2 %v7036_v5  ;;  %v7048_v5 = vld [vmem:[%s11267_s18 + $0x118] sm:$0xff] }
 0xb17   :  { %v4453_v45 = vadd.f32 %v7114_v13, %v4452_v49  ;;  %v7014_v49 = vld [vmem:[%s11267_s18 + $0x18] sm:$0xff] }
 0xb19   :  { %v4457_v37 = vsel %vm4456_vm9, %v7114_v13, %v4453_v45  ;;  %v7023_v13 = vld [vmem:[%s11267_s18 + $0x60] sm:$0xff]  ;;  %v7012_v45 = vld [vmem:[%s11267_s18 + $0x8] sm:$0xff] }
 0xb1a   :  { %v4462_v27 = vsel %vm4459_vm10, %v4461_v4, %v4457_v37  ;;  %v7011_v4 = vld [vmem:[%s11267_s18] sm:$0xff] }
 0xb1b   :  { %6499 = vmatmul.msk.f32.gmra.mxu3 %vm543_vm6, %v4462_v27  ;;  %6503 = vmatmul.msk.f32.gmra.mxu2 %vm543_vm6, %v4462_v27 }
 0xb86   :  { %v4497_v7 = vpop.f32.mrf.mxu3  ;;  %v4526_v59 = vpop.f32.mrf.mxu2 }
 0xb87   :  { %v4538_v8 = vmul.f32 %v4497_v7, %v11373_v57  ;;  %v4539_v48 = vmul.f32 %v4526_v59, %v11374_v19  ;;  %v7047_v7 = vld [vmem:[%s11267_s18 + $0x110] sm:$0xff]  ;;  %v7046_v59 = vld [vmem:[%s11267_s18 + $0x108] sm:$0xff]  ;;  %v7069_v57 = vld [vmem:[%s11267_s18 + $0x1b8] sm:$0xff] }
 0xb8e   :  { %v4500_v56 = vpop.f32.mrf.mxu3  ;;  %v4529_v0 = vpop.f32.mrf.mxu2 }
 0xb8f   :  { %v4540_v32 = vmul.f32 %v4500_v56, %v11371_v3  ;;  %v4541_v18 = vmul.f32 %v4529_v0, %v11372_v26  ;;  %v7045_v56 = vld [vmem:[%s11267_s18 + $0x100] sm:$0xff]  ;;  %v7060_v0 = vld [vmem:[%s11267_s18 + $0x178] sm:$0xff] }
 0xb91   :  { %v11062_v36 = vpack.c.bf16 %v4540_v32, %v4538_v8  ;;  %v4547_v31 = vpack.c.bf16 %v4541_v18, %v4539_v48  ;;  %v7077_v8 = vld [vmem:[%s11267_s18 + $0x1f8] sm:$0xff] }
 0xb96   :  { %v4503_v23 = vpop.f32.mrf.mxu3  ;;  %v4532_v12 = vpop.f32.mrf.mxu2 }
 0xb97   :  { %v4542_v33 = vmul.f32 %v4503_v23, %v11367_v52  ;;  %v4543_v11 = vmul.f32 %v4532_v12, %v11368_v17  ;;  %v7059_v23 = vld [vmem:[%s11267_s18 + $0x170] sm:$0xff]  ;;  %v7058_v12 = vld [vmem:[%s11267_s18 + $0x168] sm:$0xff]  ;;  %v7053_v17 = vld [vmem:[%s11267_s18 + $0x140] sm:$0xff] }
 0xb98   :  { %v7055_v52 = vld [vmem:[%s11267_s18 + $0x150] sm:$0xff] }
 0xb9e   :  { %v4506_v2 = vpop.f32.mrf.mxu3  ;;  %v4535_v62 = vpop.f32.mrf.mxu2 }
 0xb9f   :  { %v4544_v51 = vmul.f32 %v4506_v2, %v11369_v38  ;;  %v4545_v63 = vmul.f32 %v4535_v62, %v11370_v43  ;;  %v7057_v2 = vld [vmem:[%s11267_s18 + $0x160] sm:$0xff]  ;;  %v7056_v62 = vld [vmem:[%s11267_s18 + $0x158] sm:$0xff] }
 0xba1   :  { %v11056_v29 = vpack.c.bf16 %v4544_v51, %v4542_v33  ;;  %v4549_v41 = vpack.c.bf16 %v4545_v63, %v4543_v11  ;;  %v7054_v33 = vld [vmem:[%s11267_s18 + $0x148] sm:$0xff]  ;;  %v7061_v11 = vld [vmem:[%s11268_s20 + $0x18] sm:$0xff] }
 0xba3   :  { %4566 = vmatpush.bf16.msrb.mxu0 %v11056_v29  ;;  %4580 = vmatpush.bf16.msra.mxu1 %v4549_v41 }
 0xba4   :  { %4961 = vmatpush.bf16.msra.mxu3 %v11056_v29  ;;  %4975 = vmatpush.bf16.msra.mxu2 %v4549_v41 }
 0xba7   :  { %4567 = vmatpush.bf16.msrb.mxu0 %v11062_v36  ;;  %4581 = vmatpush.bf16.msra.mxu1 %v4547_v31 }
 0xba8   :  { %4962 = vmatpush.bf16.msra.mxu3 %v11062_v36  ;;  %4976 = vmatpush.bf16.msra.mxu2 %v4547_v31 }
 0xbaa   :  { %6508 = vmatmul.msk.bf16.vlgmr.msrb.gmra.mxu0 %vm659_vm2, %v7010_v22  ;;  %6509 = vmatmul.msk.bf16.vlgmr.msra.gmra.mxu1 %vm659_vm2, %v7010_v22 }
 0xbab   :  { %4639 = vmatpush.bf16.msra.mxu0 %v11056_v29  ;;  %4653 = vmatpush.bf16.msrb.mxu1 %v4549_v41 }
 0xbaf   :  { %4640 = vmatpush.bf16.msra.mxu0 %v11062_v36  ;;  %4654 = vmatpush.bf16.msrb.mxu1 %v4547_v31 }
 0xbb3   :  { %4930 = vmatpush.bf16.msra.mxu1 %v7026_v53  ;;  %4916 = vmatpush.bf16.msrb.mxu0 %v7018_v50  ;;  %v7075_v50 = vld [vmem:[%s11267_s18 + $0x1e8] sm:$0xff] }
 0xbb7   :  { %4931 = vmatpush.bf16.msra.mxu1 %v7025_v40  ;;  %4917 = vmatpush.bf16.msrb.mxu0 %v7017_v35  ;;  %v7076_v40 = vld [vmem:[%s11267_s18 + $0x1f0] sm:$0xff]  ;;  %v7074_v35 = vld [vmem:[%s11267_s18 + $0x1e0] sm:$0xff] }
 0xbba   :  { %6516 = vmatmul.msk.bf16.vlgmr.msra.gmra.mxu0 %vm659_vm2, %v7027_v34  ;;  %6517 = vmatmul.msk.bf16.vlgmr.msrb.gmra.mxu1 %vm659_vm2, %v7027_v34  ;;  %v7067_v34 = vld [vmem:[%s11267_s18 + $0x1a8] sm:$0xff] }
 0xbbb   :  { %4932 = vmatpush.bf16.msra.mxu1 %v7024_v39  ;;  %4918 = vmatpush.bf16.msrb.mxu0 %v7016_v10  ;;  %v7068_v10 = vld [vmem:[%s11267_s18 + $0x1b0] sm:$0xff] }
 0xbbf   :  { %4933 = vmatpush.bf16.msra.mxu1 %v7023_v13  ;;  %4919 = vmatpush.bf16.msrb.mxu0 %v7015_v30  ;;  %v7073_v13 = vld [vmem:[%s11267_s18 + $0x1d8] sm:$0xff] }
 0xbc0   :  { %v7065_v30 = vld [vmem:[%s11267_s18 + $0x198] sm:$0xff] }
 0xbc3   :  { %4934 = vmatpush.bf16.msra.mxu1 %v7022_v54  ;;  %4920 = vmatpush.bf16.msrb.mxu0 %v7014_v49  ;;  %v7072_v54 = vld [vmem:[%s11267_s18 + $0x1d0] sm:$0xff]  ;;  %v7070_v49 = vld [vmem:[%s11267_s18 + $0x1c0] sm:$0xff] }
 0xbc7   :  { %4935 = vmatpush.bf16.msra.mxu1 %v7021_v16  ;;  %4921 = vmatpush.bf16.msrb.mxu0 %v7013_v55  ;;  %v7064_v55 = vld [vmem:[%s11267_s18 + $0x190] sm:$0xff] }
 0xbcb   :  { %4936 = vmatpush.bf16.msra.mxu1 %v7020_v46  ;;  %4922 = vmatpush.bf16.msrb.mxu0 %v7012_v45  ;;  %v7066_v46 = vld [vmem:[%s11267_s18 + $0x1a0] sm:$0xff] }
 0xbcf   :  { %4937 = vmatpush.bf16.msra.mxu1 %v7019_v25  ;;  %4923 = vmatpush.bf16.msrb.mxu0 %v7011_v4  ;;  %v7071_v25 = vld [vmem:[%s11267_s18 + $0x1c8] sm:$0xff] }
 0xbd3   :  { %5175 = vmatpush.bf16.msrb.mxu1 %v4549_v41  ;;  %5314 = vmatpush.bf16.msra.mxu0 %v7069_v57 }
 0xbd7   :  { %5176 = vmatpush.bf16.msrb.mxu1 %v4547_v31  ;;  %5315 = vmatpush.bf16.msra.mxu0 %v7068_v10 }
 0xbdb   :  { %5316 = vmatpush.bf16.msra.mxu0 %v7067_v34 }
 0xbdf   :  { %5317 = vmatpush.bf16.msra.mxu0 %v7066_v46 }
 0xbe3   :  { %5318 = vmatpush.bf16.msra.mxu0 %v7065_v30 }
 0xbe7   :  { %5319 = vmatpush.bf16.msra.mxu0 %v7064_v55 }
 0xc27   :  { %v4569_v37 = vpop.f32.mrf.mxu0  ;;  %v4583_v27 = vpop.f32.mrf.mxu1 }
 0xc2f   :  { %v4571_v20 = vpop.f32.mrf.mxu0  ;;  %v4585_v15 = vpop.f32.mrf.mxu1 }
 0xc30   :  { %v4588_v28 = vpack.c.bf16 %v4571_v20, %v4569_v37  ;;  %v4589_v42 = vpack.c.bf16 %v4585_v15, %v4583_v27  ;;  %v7063_v37 = vld [vmem:[%s11267_s18 + $0x188] sm:$0xff]  ;;  %v7062_v27 = vld [vmem:[%s11267_s18 + $0x180] sm:$0xff] }
 0xc31   :  { %5320 = vmatpush.bf16.msra.mxu0 %v7063_v37 }
 0xc32   :  { %4924 = vmatmul.bf16.vlgmr.msrb.gmra.mxu0 %v4588_v28  ;;  %4938 = vmatmul.bf16.vlgmr.msra.gmra.mxu1 %v4589_v42 }
 0xc33   :  { %5328 = vmatpush.bf16.msra.mxu1 %v7077_v8 }
 0xc35   :  { %5321 = vmatpush.bf16.msra.mxu0 %v7062_v27 }
 0xc37   :  { %v4642_v24 = vpop.f32.mrf.mxu0  ;;  %v4656_v60 = vpop.f32.mrf.mxu1  ;;  %5329 = vmatpush.bf16.msra.mxu1 %v7076_v40 }
 0xc3b   :  { %5330 = vmatpush.bf16.msra.mxu1 %v7075_v50 }
 0xc3f   :  { %v4644_v9 = vpop.f32.mrf.mxu0  ;;  %v4658_v6 = vpop.f32.mrf.mxu1  ;;  %5331 = vmatpush.bf16.msra.mxu1 %v7074_v35 }
 0xc40   :  { %v4661_v47 = vpack.c.bf16 %v4644_v9, %v4642_v24  ;;  %v4662_v21 = vpack.c.bf16 %v4658_v6, %v4656_v60 }
 0xc42   :  { %4800 = vmatmul.bf16.vlgmr.msrb.gmra.mxu3 %v4661_v47  ;;  %4814 = vmatmul.bf16.vlgmr.msrb.gmra.mxu2 %v4662_v21 }
 0xc43   :  { %5114 = vmatpush.bf16.msrb.mxu3 %v7052_v14  ;;  %5128 = vmatpush.bf16.msrb.mxu2 %v7060_v0 }
 0xc44   :  { %6789 = vmatmul.msk.bf16.vlgmr.msrb.gmra.mxu1 %vm659_vm2, %v7061_v11 }
 0xc45   :  { %5332 = vmatpush.bf16.msra.mxu1 %v7073_v13 }
 0xc47   :  { %5115 = vmatpush.bf16.msrb.mxu3 %v7051_v58  ;;  %5129 = vmatpush.bf16.msrb.mxu2 %v7059_v23 }
 0xc49   :  { %5333 = vmatpush.bf16.msra.mxu1 %v7072_v54 }
 0xc4b   :  { %5116 = vmatpush.bf16.msrb.mxu3 %v7050_v1  ;;  %5130 = vmatpush.bf16.msrb.mxu2 %v7058_v12 }
 0xc4d   :  { %5334 = vmatpush.bf16.msra.mxu1 %v7071_v25 }
 0xc4f   :  { %5117 = vmatpush.bf16.msrb.mxu3 %v7049_v44  ;;  %5131 = vmatpush.bf16.msrb.mxu2 %v7057_v2 }
 0xc51   :  { %5335 = vmatpush.bf16.msra.mxu1 %v7070_v49 }
 0xc52   :  { %6684 = vmatmul.msk.bf16.vlgmr.msra.gmra.mxu3 %vm659_vm2, %v7044_v61  ;;  %6685 = vmatmul.msk.bf16.vlgmr.msra.gmra.mxu2 %vm659_vm2, %v7044_v61 }
 0xc53   :  { %5118 = vmatpush.bf16.msrb.mxu3 %v7048_v5  ;;  %5132 = vmatpush.bf16.msrb.mxu2 %v7056_v62 }
 0xc57   :  { %5119 = vmatpush.bf16.msrb.mxu3 %v7047_v7  ;;  %5133 = vmatpush.bf16.msrb.mxu2 %v7055_v52 }
 0xc5b   :  { %5120 = vmatpush.bf16.msrb.mxu3 %v7046_v59  ;;  %5134 = vmatpush.bf16.msrb.mxu2 %v7054_v33  ;;  %v7088_v59 = vld [vmem:[%s11269_s19] ss:$0 sm:$0xff] }
 0xc5f   :  { %5121 = vmatpush.bf16.msrb.mxu3 %v7045_v56  ;;  %5135 = vmatpush.bf16.msrb.mxu2 %v7053_v17 }
 0xc63   :  { %5161 = vmatpush.bf16.msra.mxu3 %v11056_v29 }
 0xc67   :  { %5162 = vmatpush.bf16.msra.mxu3 %v11062_v36 }
 0xcaf   :  { %v4925_v63 = vpop.f32.mrf.mxu0  ;;  %v4939_v3 = vpop.f32.mrf.mxu1 }
 0xcb7   :  { %v4941_v39 = vpop.f32.mrf.mxu1  ;;  %v4927_v24 = vpop.f32.mrf.mxu0 }
 0xcc1   :  { %v5178_v16 = vpop.f32.mrf.mxu1 }
 0xcc5   :  { %v4801_v38 = vpop.f32.mrf.mxu3  ;;  %v4815_v51 = vpop.f32.mrf.mxu2 }
 0xcc6   :  { %v4816_v43 = vadd.f32 %v4815_v51, %v4801_v38 }
 0xcc8   :  { %v4926_v32 = vadd.f32 %v4925_v63, %v4816_v43 }
 0xcc9   :  { %v5180_v45 = vpop.f32.mrf.mxu1 }
 0xcca   :  { %v4940_v26 = vadd.f32 %v4939_v3, %v4926_v32  ;;  %v5184_v4 = vpack.c.bf16 %v5180_v45, %v5178_v16 }
 0xccc   :  { %5336 = vmatmul.bf16.vlgmr.msra.gmra.mxu1 %v5184_v4 }
 0xccd   :  { %v4803_v18 = vpop.f32.mrf.mxu3  ;;  %v4817_v29 = vpop.f32.mrf.mxu2 }
 0xcce   :  { %v4818_v41 = vadd.f32 %v4817_v29, %v4803_v18 }
 0xcd0   :  { %v4928_v60 = vadd.f32 %v4927_v24, %v4818_v41 }
 0xcd2   :  { %v4942_v47 = vadd.f32 %v4941_v39, %v4928_v60 }
 0xcd5   :  { %v4964_v19 = vpop.f32.mrf.mxu3  ;;  %v4978_v48 = vpop.f32.mrf.mxu2 }
 0xcdd   :  { %v4966_v36 = vpop.f32.mrf.mxu3  ;;  %v4980_v22 = vpop.f32.mrf.mxu2 }
 0xcde   :  { %v4983_v31 = vpack.c.bf16 %v4966_v36, %v4964_v19  ;;  %v4984_v53 = vpack.c.bf16 %v4980_v22, %v4978_v48 }
 0xce0   :  { %5122 = vmatmul.bf16.vlgmr.msrb.gmra.mxu3 %v4983_v31  ;;  %5136 = vmatmul.bf16.vlgmr.msrb.gmra.mxu2 %v4984_v53 }
 0xcf0   :  { %6788 = vmatmul.msk.bf16.vlgmr.msra.gmra.mxu3 %vm659_vm2, %v7061_v11 }
 0xd49   :  { %v5337_v61 = vpop.f32.mrf.mxu1 }
 0xd51   :  { %v5339_v12 = vpop.f32.mrf.mxu1 }
 0xd63   :  { %v5123_v20 = vpop.f32.mrf.mxu3  ;;  %v5137_v15 = vpop.f32.mrf.mxu2 }
 0xd64   :  { %v5138_v28 = vadd.f32 %v5137_v15, %v5123_v20 }
 0xd66   :  { %v5142_v42 = vadd.f32 %v5138_v28, %v4940_v26 }
 0xd6b   :  { %v5125_v9 = vpop.f32.mrf.mxu3  ;;  %v5139_v14 = vpop.f32.mrf.mxu2 }
 0xd6c   :  { %v5140_v6 = vadd.f32 %v5139_v14, %v5125_v9 }
 0xd6e   :  { %v5143_v21 = vadd.f32 %v5140_v6, %v4942_v47 }
 0xd73   :  { %v5164_v58 = vpop.f32.mrf.mxu3 }
 0xd7b   :  { %v5166_v1 = vpop.f32.mrf.mxu3 }
 0xd7c   :  { %v5183_v44 = vpack.c.bf16 %v5166_v1, %v5164_v58 }
 0xd7e   :  { %5322 = vmatmul.bf16.vlgmr.msra.gmra.mxu0 %v5183_v44 }
 0xdfb   :  { %v5323_v5 = vpop.f32.mrf.mxu0 }
 0xdfc   :  { %v5338_v7 = vadd.f32 %v5337_v61, %v5323_v5 }
 0xdfe   :  { %v5342_v56 = vadd.f32 %v5338_v7, %v5142_v42 }
 0xe00   :  { %v5348_v0 = vadd.f32 %v7088_v59, %v5342_v56 }
 0xe02   :  { %5350 = vst [vmem:[%s11375_s10] sm:$0xff] %v5348_v0 }
 0xe03   :  { %v5325_v23 = vpop.f32.mrf.mxu0 }
 0xe04   :  { %v5340_v2 = vadd.f32 %v5339_v12, %v5325_v23 }
 0xe06   :  { %v5343_v62 = vadd.f32 %v5340_v2, %v5143_v21 }
 0xe08   :  { %v5349_v52 = vadd.f32 %v7088_v59, %v5343_v62 }
 0xe0a   :  { %5351 = vst [vmem:[%s11375_s10 + $0x8] sm:$0xff] %v5349_v52 }

</bundles_post_ra>
